<compile_context>
chip_gen: v7x
topology: tpu7x:2x2x1
jax: 0.10.0
libtpu: 0.0.40
codegen_flags: <defaults>
</compile_context>

<pallas_src>
import functools

import jax
import jax.numpy as jnp
from jax.experimental import pallas as pl
from jax.experimental.pallas import tpu as pltpu

EPS = 1e-5


def _fused_block_kernel(x_ref, w1_ref, b1_ref, w2_ref, b2_ref, o_ref,
                        xs_ref, y1_ref, *, H, W, C, TH, T):
    """One (image, row-tile) step of the fused BasicBlock.

    x_ref  : (1, H, W, C)     bf16  full input image (resident across row tiles)
    w1_ref : (9*C, C)         bf16  conv1 weight with BN folded in
    b1_ref : (1, C)           f32   folded conv1 bias
    w2_ref : (9*C, C)         bf16  conv2 weight with BN folded in
    b2_ref : (1, C)           f32   folded conv2 bias
    o_ref  : (1, TH, W, C)          output row tile
    xs_ref : (TH+4, W+2, C)   bf16  zero-padded input slab for this tile
    y1_ref : (TH+2, W+2, C)   bf16  zero-padded stage-1 activation slab
    """
    t = pl.program_id(1)
    R1 = TH + 2
    zdt = xs_ref.dtype

    # ---- padded input slab: zero only halos, copy the interior ------------
    # W-halo columns (never touched by the interior copies below).
    xs_ref[:, 0:1, :] = jnp.zeros((TH + 4, 1, C), zdt)
    xs_ref[:, W + 1:, :] = jnp.zeros((TH + 4, 1, C), zdt)

    if T == 1:
        xs_ref[0:2, 1:W + 1, :] = jnp.zeros((2, W, C), zdt)
        xs_ref[TH + 2:, 1:W + 1, :] = jnp.zeros((2, W, C), zdt)
        xs_ref[2:TH + 2, 1:W + 1, :] = x_ref[0]
    else:
        @pl.when(t == 0)
        def _():
            xs_ref[0:2, 1:W + 1, :] = jnp.zeros((2, W, C), zdt)
            xs_ref[2:, 1:W + 1, :] = x_ref[0, 0:TH + 2, :, :]

        @pl.when(jnp.logical_and(t > 0, t < T - 1))
        def _():
            xs_ref[:, 1:W + 1, :] = x_ref[0, pl.ds(t * TH - 2, TH + 4), :, :]

        @pl.when(t == T - 1)
        def _():
            xs_ref[0:TH + 2, 1:W + 1, :] = x_ref[0, H - TH - 2:H, :, :]
            xs_ref[TH + 2:, 1:W + 1, :] = jnp.zeros((2, W, C), zdt)

    # ---- stage 1: relu(bn1(conv1(x))) for rows [t*TH-1, t*TH+TH+1) ---------
    # 9 shifted accumulating MXU matmuls (K = C each), f32 accumulation.
    acc1 = jnp.zeros((R1 * W, C), jnp.float32)
    for dy in range(3):
        for dx in range(3):
            k = dy * 3 + dx
            acc1 = acc1 + jnp.dot(
                xs_ref[dy:dy + R1, dx:dx + W, :].reshape(R1 * W, C),
                w1_ref[k * C:(k + 1) * C, :],
                preferred_element_type=jnp.float32)
    a1 = jnp.maximum(acc1 + b1_ref[...], 0.0)
    y1_ref[:, 1:W + 1, :] = a1.reshape(R1, W, C).astype(zdt)
    # W-halo columns of the stage-1 slab.
    y1_ref[:, 0:1, :] = jnp.zeros((R1, 1, C), zdt)
    y1_ref[:, W + 1:, :] = jnp.zeros((R1, 1, C), zdt)

    # Rows of the stage-1 slab that fall outside the image act as conv2's zero
    # H-padding -> only the first row of the first tile and the last row of the
    # last tile ever need forcing to zero.
    @pl.when(t == 0)
    def _():
        y1_ref[0:1, :, :] = jnp.zeros((1, W + 2, C), zdt)

    @pl.when(t == T - 1)
    def _():
        y1_ref[TH + 1:, :, :] = jnp.zeros((1, W + 2, C), zdt)

    # ---- stage 2: relu(bn2(conv2(y1)) + x) for rows [t*TH, t*TH+TH) --------
    acc2 = jnp.zeros((TH * W, C), jnp.float32)
    for dy in range(3):
        for dx in range(3):
            k = dy * 3 + dx
            acc2 = acc2 + jnp.dot(
                y1_ref[dy:dy + TH, dx:dx + W, :].reshape(TH * W, C),
                w2_ref[k * C:(k + 1) * C, :],
                preferred_element_type=jnp.float32)
    a2 = (acc2 + b2_ref[...]).reshape(TH, W, C)
    res = xs_ref[2:TH + 2, 1:W + 1, :].astype(jnp.float32)   # identity residual
    o_ref[0] = jnp.maximum(a2 + res, 0.0).astype(o_ref.dtype)


def fold_block_params(params, eps=EPS):
    """Fold conv bias + inference BatchNorm into (bf16 (9C,C) weight, f32 (1,C) bias)."""
    def fold(w, b, gamma, beta, mean, var):
        s = gamma * jax.lax.rsqrt(var + eps)                 # (Cout,)
        w_f = w * s[None, None, None, :]                     # scale per out channel
        b_f = (b - mean) * s + beta
        cin, cout = w.shape[2], w.shape[3]
        return (w_f.reshape(9 * cin, cout).astype(jnp.bfloat16),
                b_f.reshape(1, cout).astype(jnp.float32))

    w1m, b1 = fold(params["w1"], params["b1"], params["gamma1"],
                   params["beta1"], params["mean1"], params["var1"])
    w2m, b2 = fold(params["w2"], params["b2"], params["gamma2"],
                   params["beta2"], params["mean2"], params["var2"])
    return w1m, b1, w2m, b2


def _vmem_bytes_estimate(H, W, C, TH, out_bytes):
    """Rough per-step VMEM footprint of the kernel (bytes)."""
    bf = 2
    img = 2 * H * W * C * bf                   # double-buffered whole-image input
    out = 2 * TH * W * C * out_bytes           # double-buffered output row tile
    wgt = 2 * 9 * C * C * bf + 2 * C * 4       # single-buffered weights + biases
    xs = (TH + 4) * (W + 2) * C * bf           # padded input slab scratch
    y1 = (TH + 2) * (W + 2) * C * bf           # padded stage-1 slab scratch
    acc = 2 * (TH + 2) * W * C * 4             # live f32 matmul accumulators
    return img + out + wgt + xs + y1 + acc


def _pick_row_tile(H, W, C, out_bytes, budget_bytes):
    """Largest row tile dividing H that stays inside the VMEM budget.

    T=1 (whole image) avoids the 2-row stage-1 halo recompute entirely; smaller
    tiles cap the per-step footprint for large feature maps.
    """
    cands = []
    for c in (H, 256, 128, 64, 32, 16, 8, 4, 2):
        if c <= H and H % c == 0 and (c == H or c >= 2) and c not in cands:
            cands.append(c)
    for c in cands:
        if _vmem_bytes_estimate(H, W, C, c, out_bytes) <= budget_bytes:
            return c
    return cands[-1]   # best effort: smallest tile


def _const_spec(shape):
    """Constant-index operand (folded weight / bias): block index never changes,
    so single-buffer it (halves its VMEM footprint).  Falls back to a plain
    BlockSpec if the running Pallas version lacks pipeline_mode/Buffered."""
    index_map = lambda n, t: (0,) * len(shape)
    if hasattr(pl, "Buffered"):
        try:
            return pl.BlockSpec(shape, index_map, pipeline_mode=pl.Buffered(1))
        except TypeError:
            pass
    return pl.BlockSpec(shape, index_map)


def basic_block_forward_nhwc(x_nhwc, params, row_tile=None,
                             out_dtype=jnp.bfloat16,
                             vmem_budget_bytes=40 << 20):
    """Fused BasicBlock forward in NHWC (stride=1, identity residual)."""
    N, H, W, C = x_nhwc.shape
    assert params["w1"].shape == (3, 3, C, C), \
        "identity residual requires inplanes == planes"  # TODO(synk): downsample path
    out_bytes = jnp.dtype(out_dtype).itemsize
    TH = (row_tile if row_tile is not None
          else _pick_row_tile(H, W, C, out_bytes, vmem_budget_bytes))
    assert H % TH == 0 and (TH == H or TH >= 2)
    T = H // TH

    w1m, b1, w2m, b2 = fold_block_params(params)
    xb = x_nhwc.astype(jnp.bfloat16)       # bf16 MXU operands, halves HBM read

    kernel = functools.partial(_fused_block_kernel, H=H, W=W, C=C, TH=TH, T=T)

    # Explicit scoped-VMEM limit with headroom; capped at v7x's 64 MiB physical
    # VMEM (raise the cap on v5e/v6e, which have 128 MiB, for very large tiles).
    est = _vmem_bytes_estimate(H, W, C, TH, out_bytes)
    vmem_limit = int(min(max(est * 5 // 4 + (8 << 20), 32 << 20), 64 << 20))

    # Advisory cost hint for XLA scheduling around the custom call.
    flops = 2 * 2 * 9 * C * C * N * H * W            # two 3x3 convs, MAC = 2 flops
    bytes_accessed = N * H * W * C * (2 + out_bytes) + 2 * 9 * C * C * 2
    cost = pl.CostEstimate(flops=flops, transcendentals=0,
                           bytes_accessed=bytes_accessed)

    return pl.pallas_call(
        kernel,
        out_shape=jax.ShapeDtypeStruct((N, H, W, C), out_dtype),
        grid_spec=pltpu.PrefetchScalarGridSpec(
            num_scalar_prefetch=0,
            grid=(N, T),
            in_specs=[
                # full image; block index constant along the row-tile axis, so
                # it is DMA'd from HBM once per image and stays VMEM-resident.
                pl.BlockSpec((1, H, W, C), lambda n, t: (n, 0, 0, 0)),
                _const_spec((9 * C, C)),
                _const_spec((1, C)),
                _const_spec((9 * C, C)),
                _const_spec((1, C)),
            ],
            out_specs=pl.BlockSpec((1, TH, W, C), lambda n, t: (n, t, 0, 0)),
            scratch_shapes=[
                pltpu.VMEM((TH + 4, W + 2, C), jnp.bfloat16),     # padded input slab
                pltpu.VMEM((TH + 2, W + 2, C), jnp.bfloat16),     # padded stage-1 slab
            ]),
        compiler_params=pltpu.CompilerParams(
            # Row tiles are fully independent (read-only resident input, no
            # scratch carried across t), so both axes may be split across the
            # two v7x TensorCores even at batch size 1.
            dimension_semantics=("parallel", "parallel"),
            vmem_limit_bytes=vmem_limit),
        cost_estimate=cost,
    )(xb, w1m, b1, w2m, b2)


def basic_block_forward(x_nchw, params, row_tile=None, out_dtype=jnp.bfloat16):
    """NCHW wrapper matching the PyTorch module.  Prefer basic_block_forward_nhwc
    end-to-end to avoid the two layout transposes (each is a full HBM pass)."""
    x = jnp.transpose(x_nchw, (0, 2, 3, 1))
    y = basic_block_forward_nhwc(x, params, row_tile=row_tile, out_dtype=out_dtype)
    return jnp.transpose(y, (0, 3, 1, 2))


def reference_block_nhwc(x_bf16, w1m, b1, w2m, b2):
    """Pure-JAX reference with the same bf16-operand / f32-accumulation math."""
    C = x_bf16.shape[-1]
    dn = ("NHWC", "HWIO", "NHWC")

    def conv(v, wm):
        return jax.lax.conv_general_dilated(
            v, wm.reshape(3, 3, C, C), window_strides=(1, 1),
            padding=((1, 1), (1, 1)), dimension_numbers=dn,
            preferred_element_type=jnp.float32)

    y = jnp.maximum(conv(x_bf16, w1m) + b1.reshape(1, 1, 1, C), 0.0)
    y = y.astype(jnp.bfloat16)
    z = conv(y, w2m) + b2.reshape(1, 1, 1, C) + x_bf16.astype(jnp.float32)
    return jnp.maximum(z, 0.0)


def make_params(key, planes):
    ks = jax.random.split(key, 14)
    c = planes
    fan_in = 3 * 3 * c
    scale = 1.0 / jnp.sqrt(fan_in)

    def bn(k0, k1, k2, k3):
        return (1.0 + 0.1 * jax.random.normal(k0, (c,), jnp.float32),   # gamma
                0.1 * jax.random.normal(k1, (c,), jnp.float32),         # beta
                0.1 * jax.random.normal(k2, (c,), jnp.float32),         # running_mean
                1.0 + 0.1 * jnp.abs(jax.random.normal(k3, (c,), jnp.float32)))  # running_var

    g1, be1, m1, v1 = bn(ks[2], ks[3], ks[4], ks[5])
    g2, be2, m2, v2 = bn(ks[8], ks[9], ks[10], ks[11])
    return {
        "w1": scale * jax.random.normal(ks[0], (3, 3, c, c), jnp.float32),
        "b1": scale * jax.random.normal(ks[1], (c,), jnp.float32),
        "gamma1": g1, "beta1": be1, "mean1": m1, "var1": v1,
        "w2": scale * jax.random.normal(ks[6], (3, 3, c, c), jnp.float32),
        "b2": scale * jax.random.normal(ks[7], (c,), jnp.float32),
        "gamma2": g2, "beta2": be2, "mean2": m2, "var2": v2,
    }


if __name__ == "__main__":
    key = jax.random.PRNGKey(0)
    k_x, k_p = jax.random.split(key)

    # inplanes == planes (identity residual), stride=1, no downsample.
    N, C, H, W = 2, 8, 16, 16
    x = jax.random.normal(k_x, (N, C, H, W), jnp.float32)
    params = make_params(k_p, C)

    # pure-JAX reference with matched bf16/f32 math for a correctness check
    x_nhwc_bf16 = jnp.transpose(x, (0, 2, 3, 1)).astype(jnp.bfloat16)
    ref = reference_block_nhwc(x_nhwc_bf16, *fold_block_params(params))

    # exercise the T=1 (auto-pick), edge-only (T=2) and interior (T=4) paths
    for rt in (None, 8, 4):
        y = basic_block_forward(x, params, row_tile=rt, out_dtype=jnp.float32)
        jax.block_until_ready(y)
        assert y.shape == (N, C, H, W)
        assert bool(jnp.all(y >= 0.0))                       # final ReLU
        err = float(jnp.max(jnp.abs(jnp.transpose(y, (0, 2, 3, 1)) - ref)))
        assert err < 1e-2, f"row_tile={rt}: max abs err {err}"

    # default bf16 output path (halved HBM write-back)
    yb = basic_block_forward(x, params)
    jax.block_until_ready(yb)
    assert yb.dtype == jnp.bfloat16 and yb.shape == (N, C, H, W)
    errb = float(jnp.max(jnp.abs(
        jnp.transpose(yb.astype(jnp.float32), (0, 2, 3, 1)) - ref)))
    assert errb < 5e-2, f"bf16 output: max abs err {errb}"

    print("KERNEL_OK")
</pallas_src>

<mosaic_0001>
module attributes {stable_mosaic.version = 11 : i64} {
  func.func @_fused_block_kernel(%arg0: i32, %arg1: i32, %arg2: memref<1x16x16x8xbf16, #tpu.memory_space<vmem>>, %arg3: memref<72x8xbf16, #tpu.memory_space<vmem>>, %arg4: memref<1x8xf32, #tpu.memory_space<vmem>>, %arg5: memref<72x8xbf16, #tpu.memory_space<vmem>>, %arg6: memref<1x8xf32, #tpu.memory_space<vmem>>, %arg7: memref<1x16x16x8xf32, #tpu.memory_space<vmem>>, %arg8: memref<20x18x8xbf16, #tpu.memory_space<vmem>>, %arg9: memref<18x18x8xbf16, #tpu.memory_space<vmem>>) attributes {dimension_semantics = [#tpu.dimension_semantics<parallel>, #tpu.dimension_semantics<parallel>], iteration_bounds = array<i64: 2, 1>, scalar_prefetch = 0 : i64, scratch_operands = 2 : i64, tpu.core_type = #tpu.core_type<tc>, window_params = [{transform_indices = @transform_0, window_bounds = array<i64: 1, 16, 16, 8>}, {pipeline_mode = #tpu.pipeline_mode<synchronous>, transform_indices = @transform_1, window_bounds = array<i64: 72, 8>}, {pipeline_mode = #tpu.pipeline_mode<synchronous>, transform_indices = @transform_2, window_bounds = array<i64: 1, 8>}, {pipeline_mode = #tpu.pipeline_mode<synchronous>, transform_indices = @transform_3, window_bounds = array<i64: 72, 8>}, {pipeline_mode = #tpu.pipeline_mode<synchronous>, transform_indices = @transform_4, window_bounds = array<i64: 1, 8>}, {transform_indices = @transform_5, window_bounds = array<i64: 1, 16, 16, 8>}]} {
    %cst = arith.constant 0.000000e+00 : bf16
    %0 = vector.broadcast %cst : bf16 to vector<20x1x8xbf16>
    %c0 = arith.constant 0 : index
    %c0_0 = arith.constant 0 : index
    %c0_1 = arith.constant 0 : index
    %1 = vector.load %arg8[%c0, %c0_0, %c0_1] : memref<20x18x8xbf16, #tpu.memory_space<vmem>>, vector<20x1x8xbf16>
    tpu.vector_store %arg8[%c0, %c0_0, %c0_1], %0 {strides = array<i32>} : memref<20x18x8xbf16, #tpu.memory_space<vmem>>, vector<20x1x8xbf16>,
    %cst_2 = arith.constant 0.000000e+00 : bf16
    %2 = vector.broadcast %cst_2 : bf16 to vector<20x1x8xbf16>
    %c0_3 = arith.constant 0 : index
    %c17 = arith.constant 17 : index
    %c0_4 = arith.constant 0 : index
    %3 = vector.load %arg8[%c0_3, %c17, %c0_4] : memref<20x18x8xbf16, #tpu.memory_space<vmem>>, vector<20x1x8xbf16>
    tpu.vector_store %arg8[%c0_3, %c17, %c0_4], %2 {strides = array<i32>} : memref<20x18x8xbf16, #tpu.memory_space<vmem>>, vector<20x1x8xbf16>,
    %cst_5 = arith.constant 0.000000e+00 : bf16
    %4 = vector.broadcast %cst_5 : bf16 to vector<2x16x8xbf16>
    %c0_6 = arith.constant 0 : index
    %c1 = arith.constant 1 : index
    %c0_7 = arith.constant 0 : index
    %5 = vector.load %arg8[%c0_6, %c1, %c0_7] : memref<20x18x8xbf16, #tpu.memory_space<vmem>>, vector<2x16x8xbf16>
    tpu.vector_store %arg8[%c0_6, %c1, %c0_7], %4 {strides = array<i32>} : memref<20x18x8xbf16, #tpu.memory_space<vmem>>, vector<2x16x8xbf16>,
    %cst_8 = arith.constant 0.000000e+00 : bf16
    %6 = vector.broadcast %cst_8 : bf16 to vector<2x16x8xbf16>
    %c18 = arith.constant 18 : index
    %c1_9 = arith.constant 1 : index
    %c0_10 = arith.constant 0 : index
    %7 = vector.load %arg8[%c18, %c1_9, %c0_10] : memref<20x18x8xbf16, #tpu.memory_space<vmem>>, vector<2x16x8xbf16>
    tpu.vector_store %arg8[%c18, %c1_9, %c0_10], %6 {strides = array<i32>} : memref<20x18x8xbf16, #tpu.memory_space<vmem>>, vector<2x16x8xbf16>,
    %c0_11 = arith.constant 0 : index
    %c0_12 = arith.constant 0 : index
    %c0_13 = arith.constant 0 : index
    %c0_14 = arith.constant 0 : index
    %8 = vector.load %arg2[%c0_11, %c0_12, %c0_13, %c0_14] : memref<1x16x16x8xbf16, #tpu.memory_space<vmem>>, vector<1x16x16x8xbf16>
    %9 = vector.shape_cast %8 : vector<1x16x16x8xbf16> to vector<16x16x8xbf16>
    %c2 = arith.constant 2 : index
    %c1_15 = arith.constant 1 : index
    %c0_16 = arith.constant 0 : index
    %10 = vector.load %arg8[%c2, %c1_15, %c0_16] : memref<20x18x8xbf16, #tpu.memory_space<vmem>>, vector<16x16x8xbf16>
    tpu.vector_store %arg8[%c2, %c1_15, %c0_16], %9 {strides = array<i32>} : memref<20x18x8xbf16, #tpu.memory_space<vmem>>, vector<16x16x8xbf16>,
    %cst_17 = arith.constant 0.000000e+00 : f32
    %11 = vector.broadcast %cst_17 : f32 to vector<288x8xf32>
    %c0_18 = arith.constant 0 : index
    %c0_19 = arith.constant 0 : index
    %c0_20 = arith.constant 0 : index
    %12 = vector.load %arg8[%c0_18, %c0_19, %c0_20] : memref<20x18x8xbf16, #tpu.memory_space<vmem>>, vector<18x16x8xbf16>
    %13 = vector.shape_cast %12 : vector<18x16x8xbf16> to vector<288x8xbf16>
    %c0_21 = arith.constant 0 : index
    %c0_22 = arith.constant 0 : index
    %14 = vector.load %arg3[%c0_21, %c0_22] : memref<72x8xbf16, #tpu.memory_space<vmem>>, vector<8x8xbf16>
    %cst_23 = arith.constant dense<0.000000e+00> : vector<288x8xf32>
    %15 = tpu.matmul %13, %14, %cst_23 {dimension_numbers = #tpu.dot_dimension_numbers<[1], [0], [0], [1], [0, 0, 1, 1], [], []>} : vector<288x8xbf16>, vector<8x8xbf16>, vector<288x8xf32> -> vector<288x8xf32>
    %16 = arith.addf %11, %15 : vector<288x8xf32>
    %c0_24 = arith.constant 0 : index
    %c1_25 = arith.constant 1 : index
    %c0_26 = arith.constant 0 : index
    %17 = vector.load %arg8[%c0_24, %c1_25, %c0_26] : memref<20x18x8xbf16, #tpu.memory_space<vmem>>, vector<18x16x8xbf16>
    %18 = vector.shape_cast %17 : vector<18x16x8xbf16> to vector<288x8xbf16>
    %c8 = arith.constant 8 : index
    %c0_27 = arith.constant 0 : index
    %19 = vector.load %arg3[%c8, %c0_27] : memref<72x8xbf16, #tpu.memory_space<vmem>>, vector<8x8xbf16>
    %cst_28 = arith.constant dense<0.000000e+00> : vector<288x8xf32>
    %20 = tpu.matmul %18, %19, %cst_28 {dimension_numbers = #tpu.dot_dimension_numbers<[1], [0], [0], [1], [0, 0, 1, 1], [], []>} : vector<288x8xbf16>, vector<8x8xbf16>, vector<288x8xf32> -> vector<288x8xf32>
    %21 = arith.addf %16, %20 : vector<288x8xf32>
    %c0_29 = arith.constant 0 : index
    %c2_30 = arith.constant 2 : index
    %c0_31 = arith.constant 0 : index
    %22 = vector.load %arg8[%c0_29, %c2_30, %c0_31] : memref<20x18x8xbf16, #tpu.memory_space<vmem>>, vector<18x16x8xbf16>
    %23 = vector.shape_cast %22 : vector<18x16x8xbf16> to vector<288x8xbf16>
    %c16 = arith.constant 16 : index
    %c0_32 = arith.constant 0 : index
    %24 = vector.load %arg3[%c16, %c0_32] : memref<72x8xbf16, #tpu.memory_space<vmem>>, vector<8x8xbf16>
    %cst_33 = arith.constant dense<0.000000e+00> : vector<288x8xf32>
    %25 = tpu.matmul %23, %24, %cst_33 {dimension_numbers = #tpu.dot_dimension_numbers<[1], [0], [0], [1], [0, 0, 1, 1], [], []>} : vector<288x8xbf16>, vector<8x8xbf16>, vector<288x8xf32> -> vector<288x8xf32>
    %26 = arith.addf %21, %25 : vector<288x8xf32>
    %c1_34 = arith.constant 1 : index
    %c0_35 = arith.constant 0 : index
    %c0_36 = arith.constant 0 : index
    %27 = vector.load %arg8[%c1_34, %c0_35, %c0_36] : memref<20x18x8xbf16, #tpu.memory_space<vmem>>, vector<18x16x8xbf16>
    %28 = vector.shape_cast %27 : vector<18x16x8xbf16> to vector<288x8xbf16>
    %c24 = arith.constant 24 : index
    %c0_37 = arith.constant 0 : index
    %29 = vector.load %arg3[%c24, %c0_37] : memref<72x8xbf16, #tpu.memory_space<vmem>>, vector<8x8xbf16>
    %cst_38 = arith.constant dense<0.000000e+00> : vector<288x8xf32>
    %30 = tpu.matmul %28, %29, %cst_38 {dimension_numbers = #tpu.dot_dimension_numbers<[1], [0], [0], [1], [0, 0, 1, 1], [], []>} : vector<288x8xbf16>, vector<8x8xbf16>, vector<288x8xf32> -> vector<288x8xf32>
    %31 = arith.addf %26, %30 : vector<288x8xf32>
    %c1_39 = arith.constant 1 : index
    %c1_40 = arith.constant 1 : index
    %c0_41 = arith.constant 0 : index
    %32 = vector.load %arg8[%c1_39, %c1_40, %c0_41] : memref<20x18x8xbf16, #tpu.memory_space<vmem>>, vector<18x16x8xbf16>
    %33 = vector.shape_cast %32 : vector<18x16x8xbf16> to vector<288x8xbf16>
    %c32 = arith.constant 32 : index
    %c0_42 = arith.constant 0 : index
    %34 = vector.load %arg3[%c32, %c0_42] : memref<72x8xbf16, #tpu.memory_space<vmem>>, vector<8x8xbf16>
    %cst_43 = arith.constant dense<0.000000e+00> : vector<288x8xf32>
    %35 = tpu.matmul %33, %34, %cst_43 {dimension_numbers = #tpu.dot_dimension_numbers<[1], [0], [0], [1], [0, 0, 1, 1], [], []>} : vector<288x8xbf16>, vector<8x8xbf16>, vector<288x8xf32> -> vector<288x8xf32>
    %36 = arith.addf %31, %35 : vector<288x8xf32>
    %c1_44 = arith.constant 1 : index
    %c2_45 = arith.constant 2 : index
    %c0_46 = arith.constant 0 : index
    %37 = vector.load %arg8[%c1_44, %c2_45, %c0_46] : memref<20x18x8xbf16, #tpu.memory_space<vmem>>, vector<18x16x8xbf16>
    %38 = vector.shape_cast %37 : vector<18x16x8xbf16> to vector<288x8xbf16>
    %c40 = arith.constant 40 : index
    %c0_47 = arith.constant 0 : index
    %39 = vector.load %arg3[%c40, %c0_47] : memref<72x8xbf16, #tpu.memory_space<vmem>>, vector<8x8xbf16>
    %cst_48 = arith.constant dense<0.000000e+00> : vector<288x8xf32>
    %40 = tpu.matmul %38, %39, %cst_48 {dimension_numbers = #tpu.dot_dimension_numbers<[1], [0], [0], [1], [0, 0, 1, 1], [], []>} : vector<288x8xbf16>, vector<8x8xbf16>, vector<288x8xf32> -> vector<288x8xf32>
    %41 = arith.addf %36, %40 : vector<288x8xf32>
    %c2_49 = arith.constant 2 : index
    %c0_50 = arith.constant 0 : index
    %c0_51 = arith.constant 0 : index
    %42 = vector.load %arg8[%c2_49, %c0_50, %c0_51] : memref<20x18x8xbf16, #tpu.memory_space<vmem>>, vector<18x16x8xbf16>
    %43 = vector.shape_cast %42 : vector<18x16x8xbf16> to vector<288x8xbf16>
    %c48 = arith.constant 48 : index
    %c0_52 = arith.constant 0 : index
    %44 = vector.load %arg3[%c48, %c0_52] : memref<72x8xbf16, #tpu.memory_space<vmem>>, vector<8x8xbf16>
    %cst_53 = arith.constant dense<0.000000e+00> : vector<288x8xf32>
    %45 = tpu.matmul %43, %44, %cst_53 {dimension_numbers = #tpu.dot_dimension_numbers<[1], [0], [0], [1], [0, 0, 1, 1], [], []>} : vector<288x8xbf16>, vector<8x8xbf16>, vector<288x8xf32> -> vector<288x8xf32>
    %46 = arith.addf %41, %45 : vector<288x8xf32>
    %c2_54 = arith.constant 2 : index
    %c1_55 = arith.constant 1 : index
    %c0_56 = arith.constant 0 : index
    %47 = vector.load %arg8[%c2_54, %c1_55, %c0_56] : memref<20x18x8xbf16, #tpu.memory_space<vmem>>, vector<18x16x8xbf16>
    %48 = vector.shape_cast %47 : vector<18x16x8xbf16> to vector<288x8xbf16>
    %c56 = arith.constant 56 : index
    %c0_57 = arith.constant 0 : index
    %49 = vector.load %arg3[%c56, %c0_57] : memref<72x8xbf16, #tpu.memory_space<vmem>>, vector<8x8xbf16>
    %cst_58 = arith.constant dense<0.000000e+00> : vector<288x8xf32>
    %50 = tpu.matmul %48, %49, %cst_58 {dimension_numbers = #tpu.dot_dimension_numbers<[1], [0], [0], [1], [0, 0, 1, 1], [], []>} : vector<288x8xbf16>, vector<8x8xbf16>, vector<288x8xf32> -> vector<288x8xf32>
    %51 = arith.addf %46, %50 : vector<288x8xf32>
    %c2_59 = arith.constant 2 : index
    %c2_60 = arith.constant 2 : index
    %c0_61 = arith.constant 0 : index
    %52 = vector.load %arg8[%c2_59, %c2_60, %c0_61] : memref<20x18x8xbf16, #tpu.memory_space<vmem>>, vector<18x16x8xbf16>
    %53 = vector.shape_cast %52 : vector<18x16x8xbf16> to vector<288x8xbf16>
    %c64 = arith.constant 64 : index
    %c0_62 = arith.constant 0 : index
    %54 = vector.load %arg3[%c64, %c0_62] : memref<72x8xbf16, #tpu.memory_space<vmem>>, vector<8x8xbf16>
    %cst_63 = arith.constant dense<0.000000e+00> : vector<288x8xf32>
    %55 = tpu.matmul %53, %54, %cst_63 {dimension_numbers = #tpu.dot_dimension_numbers<[1], [0], [0], [1], [0, 0, 1, 1], [], []>} : vector<288x8xbf16>, vector<8x8xbf16>, vector<288x8xf32> -> vector<288x8xf32>
    %56 = arith.addf %51, %55 : vector<288x8xf32>
    %c0_64 = arith.constant 0 : index
    %c0_65 = arith.constant 0 : index
    %57 = vector.load %arg4[%c0_64, %c0_65] : memref<1x8xf32, #tpu.memory_space<vmem>>, vector<1x8xf32>
    %58 = vector.broadcast %57 : vector<1x8xf32> to vector<288x8xf32>
    %59 = arith.addf %56, %58 : vector<288x8xf32>
    %cst_66 = arith.constant 0.000000e+00 : f32
    %60 = vector.broadcast %cst_66 : f32 to vector<288x8xf32>
    %61 = arith.maximumf %59, %60 : vector<288x8xf32>
    %62 = vector.shape_cast %61 : vector<288x8xf32> to vector<18x16x8xf32>
    %63 = arith.truncf %62 : vector<18x16x8xf32> to vector<18x16x8xbf16>
    %c0_67 = arith.constant 0 : index
    %c1_68 = arith.constant 1 : index
    %c0_69 = arith.constant 0 : index
    %64 = vector.load %arg9[%c0_67, %c1_68, %c0_69] : memref<18x18x8xbf16, #tpu.memory_space<vmem>>, vector<18x16x8xbf16>
    tpu.vector_store %arg9[%c0_67, %c1_68, %c0_69], %63 {strides = array<i32>} : memref<18x18x8xbf16, #tpu.memory_space<vmem>>, vector<18x16x8xbf16>,
    %cst_70 = arith.constant 0.000000e+00 : bf16
    %65 = vector.broadcast %cst_70 : bf16 to vector<18x1x8xbf16>
    %c0_71 = arith.constant 0 : index
    %c0_72 = arith.constant 0 : index
    %c0_73 = arith.constant 0 : index
    %66 = vector.load %arg9[%c0_71, %c0_72, %c0_73] : memref<18x18x8xbf16, #tpu.memory_space<vmem>>, vector<18x1x8xbf16>
    tpu.vector_store %arg9[%c0_71, %c0_72, %c0_73], %65 {strides = array<i32>} : memref<18x18x8xbf16, #tpu.memory_space<vmem>>, vector<18x1x8xbf16>,
    %cst_74 = arith.constant 0.000000e+00 : bf16
    %67 = vector.broadcast %cst_74 : bf16 to vector<18x1x8xbf16>
    %c0_75 = arith.constant 0 : index
    %c17_76 = arith.constant 17 : index
    %c0_77 = arith.constant 0 : index
    %68 = vector.load %arg9[%c0_75, %c17_76, %c0_77] : memref<18x18x8xbf16, #tpu.memory_space<vmem>>, vector<18x1x8xbf16>
    tpu.vector_store %arg9[%c0_75, %c17_76, %c0_77], %67 {strides = array<i32>} : memref<18x18x8xbf16, #tpu.memory_space<vmem>>, vector<18x1x8xbf16>,
    %c0_i32 = arith.constant 0 : i32
    %69 = arith.cmpi eq, %arg1, %c0_i32 : i32
    %70 = arith.extui %69 : i1 to i32
    %c0_i32_78 = arith.constant 0 : i32
    %71 = arith.cmpi ne, %70, %c0_i32_78 : i32
    scf.if %71 {
      %cst_146 = arith.constant 0.000000e+00 : bf16
      %133 = vector.broadcast %cst_146 : bf16 to vector<1x18x8xbf16>
      %c0_147 = arith.constant 0 : index
      %c0_148 = arith.constant 0 : index
      %c0_149 = arith.constant 0 : index
      %134 = vector.load %arg9[%c0_147, %c0_148, %c0_149] : memref<18x18x8xbf16, #tpu.memory_space<vmem>>, vector<1x18x8xbf16>
      tpu.vector_store %arg9[%c0_147, %c0_148, %c0_149], %133 {strides = array<i32>} : memref<18x18x8xbf16, #tpu.memory_space<vmem>>, vector<1x18x8xbf16>,
    } else {
    }
    %c0_i32_79 = arith.constant 0 : i32
    %72 = arith.cmpi eq, %arg1, %c0_i32_79 : i32
    %73 = arith.extui %72 : i1 to i32
    %c0_i32_80 = arith.constant 0 : i32
    %74 = arith.cmpi ne, %73, %c0_i32_80 : i32
    scf.if %74 {
      %cst_146 = arith.constant 0.000000e+00 : bf16
      %133 = vector.broadcast %cst_146 : bf16 to vector<1x18x8xbf16>
      %c17_147 = arith.constant 17 : index
      %c0_148 = arith.constant 0 : index
      %c0_149 = arith.constant 0 : index
      %134 = vector.load %arg9[%c17_147, %c0_148, %c0_149] : memref<18x18x8xbf16, #tpu.memory_space<vmem>>, vector<1x18x8xbf16>
      tpu.vector_store %arg9[%c17_147, %c0_148, %c0_149], %133 {strides = array<i32>} : memref<18x18x8xbf16, #tpu.memory_space<vmem>>, vector<1x18x8xbf16>,
    } else {
    }
    %cst_81 = arith.constant 0.000000e+00 : f32
    %75 = vector.broadcast %cst_81 : f32 to vector<256x8xf32>
    %c0_82 = arith.constant 0 : index
    %c0_83 = arith.constant 0 : index
    %c0_84 = arith.constant 0 : index
    %76 = vector.load %arg9[%c0_82, %c0_83, %c0_84] : memref<18x18x8xbf16, #tpu.memory_space<vmem>>, vector<16x16x8xbf16>
    %77 = vector.shape_cast %76 : vector<16x16x8xbf16> to vector<256x8xbf16>
    %c0_85 = arith.constant 0 : index
    %c0_86 = arith.constant 0 : index
    %78 = vector.load %arg5[%c0_85, %c0_86] : memref<72x8xbf16, #tpu.memory_space<vmem>>, vector<8x8xbf16>
    %cst_87 = arith.constant dense<0.000000e+00> : vector<256x8xf32>
    %79 = tpu.matmul %77, %78, %cst_87 {dimension_numbers = #tpu.dot_dimension_numbers<[1], [0], [0], [1], [0, 0, 1, 1], [], []>} : vector<256x8xbf16>, vector<8x8xbf16>, vector<256x8xf32> -> vector<256x8xf32>
    %80 = arith.addf %75, %79 : vector<256x8xf32>
    %c0_88 = arith.constant 0 : index
    %c1_89 = arith.constant 1 : index
    %c0_90 = arith.constant 0 : index
    %81 = vector.load %arg9[%c0_88, %c1_89, %c0_90] : memref<18x18x8xbf16, #tpu.memory_space<vmem>>, vector<16x16x8xbf16>
    %82 = vector.shape_cast %81 : vector<16x16x8xbf16> to vector<256x8xbf16>
    %c8_91 = arith.constant 8 : index
    %c0_92 = arith.constant 0 : index
    %83 = vector.load %arg5[%c8_91, %c0_92] : memref<72x8xbf16, #tpu.memory_space<vmem>>, vector<8x8xbf16>
    %cst_93 = arith.constant dense<0.000000e+00> : vector<256x8xf32>
    %84 = tpu.matmul %82, %83, %cst_93 {dimension_numbers = #tpu.dot_dimension_numbers<[1], [0], [0], [1], [0, 0, 1, 1], [], []>} : vector<256x8xbf16>, vector<8x8xbf16>, vector<256x8xf32> -> vector<256x8xf32>
    %85 = arith.addf %80, %84 : vector<256x8xf32>
    %c0_94 = arith.constant 0 : index
    %c2_95 = arith.constant 2 : index
    %c0_96 = arith.constant 0 : index
    %86 = vector.load %arg9[%c0_94, %c2_95, %c0_96] : memref<18x18x8xbf16, #tpu.memory_space<vmem>>, vector<16x16x8xbf16>
    %87 = vector.shape_cast %86 : vector<16x16x8xbf16> to vector<256x8xbf16>
    %c16_97 = arith.constant 16 : index
    %c0_98 = arith.constant 0 : index
    %88 = vector.load %arg5[%c16_97, %c0_98] : memref<72x8xbf16, #tpu.memory_space<vmem>>, vector<8x8xbf16>
    %cst_99 = arith.constant dense<0.000000e+00> : vector<256x8xf32>
    %89 = tpu.matmul %87, %88, %cst_99 {dimension_numbers = #tpu.dot_dimension_numbers<[1], [0], [0], [1], [0, 0, 1, 1], [], []>} : vector<256x8xbf16>, vector<8x8xbf16>, vector<256x8xf32> -> vector<256x8xf32>
    %90 = arith.addf %85, %89 : vector<256x8xf32>
    %c1_100 = arith.constant 1 : index
    %c0_101 = arith.constant 0 : index
    %c0_102 = arith.constant 0 : index
    %91 = vector.load %arg9[%c1_100, %c0_101, %c0_102] : memref<18x18x8xbf16, #tpu.memory_space<vmem>>, vector<16x16x8xbf16>
    %92 = vector.shape_cast %91 : vector<16x16x8xbf16> to vector<256x8xbf16>
    %c24_103 = arith.constant 24 : index
    %c0_104 = arith.constant 0 : index
    %93 = vector.load %arg5[%c24_103, %c0_104] : memref<72x8xbf16, #tpu.memory_space<vmem>>, vector<8x8xbf16>
    %cst_105 = arith.constant dense<0.000000e+00> : vector<256x8xf32>
    %94 = tpu.matmul %92, %93, %cst_105 {dimension_numbers = #tpu.dot_dimension_numbers<[1], [0], [0], [1], [0, 0, 1, 1], [], []>} : vector<256x8xbf16>, vector<8x8xbf16>, vector<256x8xf32> -> vector<256x8xf32>
    %95 = arith.addf %90, %94 : vector<256x8xf32>
    %c1_106 = arith.constant 1 : index
    %c1_107 = arith.constant 1 : index
    %c0_108 = arith.constant 0 : index
    %96 = vector.load %arg9[%c1_106, %c1_107, %c0_108] : memref<18x18x8xbf16, #tpu.memory_space<vmem>>, vector<16x16x8xbf16>
    %97 = vector.shape_cast %96 : vector<16x16x8xbf16> to vector<256x8xbf16>
    %c32_109 = arith.constant 32 : index
    %c0_110 = arith.constant 0 : index
    %98 = vector.load %arg5[%c32_109, %c0_110] : memref<72x8xbf16, #tpu.memory_space<vmem>>, vector<8x8xbf16>
    %cst_111 = arith.constant dense<0.000000e+00> : vector<256x8xf32>
    %99 = tpu.matmul %97, %98, %cst_111 {dimension_numbers = #tpu.dot_dimension_numbers<[1], [0], [0], [1], [0, 0, 1, 1], [], []>} : vector<256x8xbf16>, vector<8x8xbf16>, vector<256x8xf32> -> vector<256x8xf32>
    %100 = arith.addf %95, %99 : vector<256x8xf32>
    %c1_112 = arith.constant 1 : index
    %c2_113 = arith.constant 2 : index
    %c0_114 = arith.constant 0 : index
    %101 = vector.load %arg9[%c1_112, %c2_113, %c0_114] : memref<18x18x8xbf16, #tpu.memory_space<vmem>>, vector<16x16x8xbf16>
    %102 = vector.shape_cast %101 : vector<16x16x8xbf16> to vector<256x8xbf16>
    %c40_115 = arith.constant 40 : index
    %c0_116 = arith.constant 0 : index
    %103 = vector.load %arg5[%c40_115, %c0_116] : memref<72x8xbf16, #tpu.memory_space<vmem>>, vector<8x8xbf16>
    %cst_117 = arith.constant dense<0.000000e+00> : vector<256x8xf32>
    %104 = tpu.matmul %102, %103, %cst_117 {dimension_numbers = #tpu.dot_dimension_numbers<[1], [0], [0], [1], [0, 0, 1, 1], [], []>} : vector<256x8xbf16>, vector<8x8xbf16>, vector<256x8xf32> -> vector<256x8xf32>
    %105 = arith.addf %100, %104 : vector<256x8xf32>
    %c2_118 = arith.constant 2 : index
    %c0_119 = arith.constant 0 : index
    %c0_120 = arith.constant 0 : index
    %106 = vector.load %arg9[%c2_118, %c0_119, %c0_120] : memref<18x18x8xbf16, #tpu.memory_space<vmem>>, vector<16x16x8xbf16>
    %107 = vector.shape_cast %106 : vector<16x16x8xbf16> to vector<256x8xbf16>
    %c48_121 = arith.constant 48 : index
    %c0_122 = arith.constant 0 : index
    %108 = vector.load %arg5[%c48_121, %c0_122] : memref<72x8xbf16, #tpu.memory_space<vmem>>, vector<8x8xbf16>
    %cst_123 = arith.constant dense<0.000000e+00> : vector<256x8xf32>
    %109 = tpu.matmul %107, %108, %cst_123 {dimension_numbers = #tpu.dot_dimension_numbers<[1], [0], [0], [1], [0, 0, 1, 1], [], []>} : vector<256x8xbf16>, vector<8x8xbf16>, vector<256x8xf32> -> vector<256x8xf32>
    %110 = arith.addf %105, %109 : vector<256x8xf32>
    %c2_124 = arith.constant 2 : index
    %c1_125 = arith.constant 1 : index
    %c0_126 = arith.constant 0 : index
    %111 = vector.load %arg9[%c2_124, %c1_125, %c0_126] : memref<18x18x8xbf16, #tpu.memory_space<vmem>>, vector<16x16x8xbf16>
    %112 = vector.shape_cast %111 : vector<16x16x8xbf16> to vector<256x8xbf16>
    %c56_127 = arith.constant 56 : index
    %c0_128 = arith.constant 0 : index
    %113 = vector.load %arg5[%c56_127, %c0_128] : memref<72x8xbf16, #tpu.memory_space<vmem>>, vector<8x8xbf16>
    %cst_129 = arith.constant dense<0.000000e+00> : vector<256x8xf32>
    %114 = tpu.matmul %112, %113, %cst_129 {dimension_numbers = #tpu.dot_dimension_numbers<[1], [0], [0], [1], [0, 0, 1, 1], [], []>} : vector<256x8xbf16>, vector<8x8xbf16>, vector<256x8xf32> -> vector<256x8xf32>
    %115 = arith.addf %110, %114 : vector<256x8xf32>
    %c2_130 = arith.constant 2 : index
    %c2_131 = arith.constant 2 : index
    %c0_132 = arith.constant 0 : index
    %116 = vector.load %arg9[%c2_130, %c2_131, %c0_132] : memref<18x18x8xbf16, #tpu.memory_space<vmem>>, vector<16x16x8xbf16>
    %117 = vector.shape_cast %116 : vector<16x16x8xbf16> to vector<256x8xbf16>
    %c64_133 = arith.constant 64 : index
    %c0_134 = arith.constant 0 : index
    %118 = vector.load %arg5[%c64_133, %c0_134] : memref<72x8xbf16, #tpu.memory_space<vmem>>, vector<8x8xbf16>
    %cst_135 = arith.constant dense<0.000000e+00> : vector<256x8xf32>
    %119 = tpu.matmul %117, %118, %cst_135 {dimension_numbers = #tpu.dot_dimension_numbers<[1], [0], [0], [1], [0, 0, 1, 1], [], []>} : vector<256x8xbf16>, vector<8x8xbf16>, vector<256x8xf32> -> vector<256x8xf32>
    %120 = arith.addf %115, %119 : vector<256x8xf32>
    %c0_136 = arith.constant 0 : index
    %c0_137 = arith.constant 0 : index
    %121 = vector.load %arg6[%c0_136, %c0_137] : memref<1x8xf32, #tpu.memory_space<vmem>>, vector<1x8xf32>
    %122 = vector.broadcast %121 : vector<1x8xf32> to vector<256x8xf32>
    %123 = arith.addf %120, %122 : vector<256x8xf32>
    %124 = vector.shape_cast %123 : vector<256x8xf32> to vector<16x16x8xf32>
    %c2_138 = arith.constant 2 : index
    %c1_139 = arith.constant 1 : index
    %c0_140 = arith.constant 0 : index
    %125 = vector.load %arg8[%c2_138, %c1_139, %c0_140] : memref<20x18x8xbf16, #tpu.memory_space<vmem>>, vector<16x16x8xbf16>
    %126 = arith.extf %125 : vector<16x16x8xbf16> to vector<16x16x8xf32>
    %127 = arith.addf %124, %126 : vector<16x16x8xf32>
    %cst_141 = arith.constant 0.000000e+00 : f32
    %128 = vector.broadcast %cst_141 : f32 to vector<16x16x8xf32>
    %129 = arith.maximumf %127, %128 : vector<16x16x8xf32>
    %c0_142 = arith.constant 0 : index
    %c0_143 = arith.constant 0 : index
    %c0_144 = arith.constant 0 : index
    %c0_145 = arith.constant 0 : index
    %130 = vector.load %arg7[%c0_142, %c0_143, %c0_144, %c0_145] : memref<1x16x16x8xf32, #tpu.memory_space<vmem>>, vector<1x16x16x8xf32>
    %131 = vector.shape_cast %130 : vector<1x16x16x8xf32> to vector<16x16x8xf32>
    %132 = vector.shape_cast %129 : vector<16x16x8xf32> to vector<1x16x16x8xf32>
    tpu.vector_store %arg7[%c0_142, %c0_143, %c0_144, %c0_145], %132 {strides = array<i32>} : memref<1x16x16x8xf32, #tpu.memory_space<vmem>>, vector<1x16x16x8xf32>,
    return
  }
  func.func @transform_0(%arg0: i32, %arg1: i32) -> (i32, i32, i32, i32) {
    %c0_i32 = arith.constant 0 : i32
    %c0_i32_0 = arith.constant 0 : i32
    %c0_i32_1 = arith.constant 0 : i32
    %c0_i32_2 = arith.constant 0 : i32
    return %arg0, %c0_i32, %c0_i32_0, %c0_i32_1 : i32, i32, i32, i32
  }
  func.func @transform_1(%arg0: i32, %arg1: i32) -> (i32, i32) {
    %c0_i32 = arith.constant 0 : i32
    %c0_i32_0 = arith.constant 0 : i32
    %c0_i32_1 = arith.constant 0 : i32
    return %c0_i32, %c0_i32_0 : i32, i32
  }
  func.func @transform_2(%arg0: i32, %arg1: i32) -> (i32, i32) {
    %c0_i32 = arith.constant 0 : i32
    %c0_i32_0 = arith.constant 0 : i32
    %c0_i32_1 = arith.constant 0 : i32
    return %c0_i32, %c0_i32_0 : i32, i32
  }
  func.func @transform_3(%arg0: i32, %arg1: i32) -> (i32, i32) {
    %c0_i32 = arith.constant 0 : i32
    %c0_i32_0 = arith.constant 0 : i32
    %c0_i32_1 = arith.constant 0 : i32
    return %c0_i32, %c0_i32_0 : i32, i32
  }
  func.func @transform_4(%arg0: i32, %arg1: i32) -> (i32, i32) {
    %c0_i32 = arith.constant 0 : i32
    %c0_i32_0 = arith.constant 0 : i32
    %c0_i32_1 = arith.constant 0 : i32
    return %c0_i32, %c0_i32_0 : i32, i32
  }
  func.func @transform_5(%arg0: i32, %arg1: i32) -> (i32, i32, i32, i32) {
    %c0_i32 = arith.constant 0 : i32
    %c0_i32_0 = arith.constant 0 : i32
    %c0_i32_1 = arith.constant 0 : i32
    return %arg0, %arg1, %c0_i32, %c0_i32_0 : i32, i32, i32, i32
  }
}

</mosaic_0001>

<bundles_post_ra>
// kernel: tpu_custom_call.1
= control target key start
LH: loop header
LB: loop body
LE: loop exit
PB: predicated region body
PF: predicated region fallthrough
CT: control target
= control target key end

     0   :  { %s14374_s18 = smov 0   ;;  %s14376_s19 = smov 0   ;;  %s18266_s0 = inlined_call_operand.vmem [shape: bf16[2,16,16,8], index: 0, kind: input, shape index: {}]   ;;  %s18267_s1 = inlined_call_operand.vmem [shape: bf16[72,8], index: 1, kind: input, shape index: {}]   ;;  %s18268_s2 = inlined_call_operand.vmem [shape: f32[1,8], index: 2, kind: input, shape index: {}]   ;;  %s18269_s3 = inlined_call_operand.vmem [shape: bf16[72,8], index: 3, kind: input, shape index: {}]   ;;  %s18270_s4 = inlined_call_operand.vmem [shape: f32[1,8], index: 4, kind: input, shape index: {}]   ;;  %s18271_s5 = inlined_call_operand.vmem [shape: f32[2,16,16,8], index: 5, kind: output, shape index: {}]  }
   0x1   :  { %s14378_s20 = smov 0  }
   0x2 LB: > { %s27_s21 = sadd.s32 1, %s14337_s19  ;;  %p11770_p0 = scmp.ge.s32.totalorder %s14341_s20, 1  ;;  %s14341_s20 = sphi %s14378_s20, %s15_s20   ;;  %s14337_s19 = sphi %s14376_s19, %s18623_s19   ;;  %s14333_s18 = sphi %s14374_s18, %s18622_s18  }
   0x3   : > { %p29_p1 = scmp.ge.s32.totalorder %s27_s21, 2  ;;  %p201_p2 = scmp.lt.s32.totalorder %s14341_s20, 3 }
   0x5   : > { %s18625_s21 = smov (%p29_p1, %s27_s21), 0  ;;  %p202_p3 = pnand %p11770_p0, %p201_p2 }
   0x7   : > { %205 = sbr.rel (%p202_p3) target bundleno = 1765 (0x6e5), region = 40 }
   0xe   : > { %v1365_v0 = vld [vmem:[%s18267_s1 + $0x4] sm:$0xf]  ;;  %vm1475_vm0 = vcmask 1043456   ;;  %vm251_vm1 = vcmask 57344   ;;  %vm252_vm2 = vsmask.f32 256 }
   0xf   : > { %14124 = vmatprep.subr.msk.bf16.mxu0 %vm1475_vm0, %v1365_v0  ;;  %v1477_v1 = vsel %vm1475_vm0, %v1365_v0, 0  ;;  %vm14401_vm3 = vmand %vm251_vm1, %vm252_vm2  ;;  %v18373_v2 = vmov 0  ;;  %v254_v3 = vld [vmem:[#allocation2] sm:$0x1]  ;;  %vm314_vm4 = vsmask.f32 7938  ;;  %14125 = vmatprep.subr.msk.bf16.mxu1 %vm1475_vm0, %v1365_v0 }
  0x10   : > { %v18374_v2 = vsel %vm14401_vm3, 4294967295, %v18373_v2  ;;  %12931 = vmatpush3.bf16.msra.mxu0 %v1477_v1  ;;  %v255_v4 = vsel %vm14401_vm3, 0, %v254_v3  ;;  %vm14410_vm5 = vmand %vm251_vm1, %vm314_vm4  ;;  %v18376_v5 = vmov 0  ;;  %v316_v6 = vld [vmem:[#allocation2 + $0x8] sm:$0x1]  ;;  %vm376_vm6 = vcmask 60416   ;;  %13579 = vmatpush3.bf16.msra.mxu1 %v1477_v1 }
  0x11   : > { %18375 = vst [vmem:[#allocation4_spill] sm:$0xff] %v18374_v2  ;;  %v18377_v5 = vsel %vm14410_vm5, 4294967295, %v18376_v5  ;;  %256 = vst [vmem:[#allocation2] sm:$0x1] %v255_v4  ;;  %v317_v7 = vsel %vm14410_vm5, 0, %v316_v6  ;;  %v18272_v8 = vmov 0  }
  0x12   : > { %18378 = vst [vmem:[#allocation5_spill] sm:$0xff] %v18377_v5  ;;  %382 = vst.msk [vmem:[#allocation2 + $0x4] sm:$0xf] %vm376_vm6, %v18272_v8  ;;  %v14427_v9 = vld [vmem:[%s18267_s1] sm:$0xf]  ;;  %p234_p4 = scmp.lt.s32.totalorder %s14333_s18, 1 }
  0x13   : > { %389 = vst.msk [vmem:[#allocation2 + $0x10] sm:$0xf] %vm376_vm6, %v18272_v8  ;;  %397 = vst.msk [vmem:[#allocation2 + $0xdc] sm:$0xf] %vm376_vm6, %v18272_v8  ;;  %14126 = vmatprep.subr.msk.bf16.mxu0 %vm1475_vm0, %v14427_v9  ;;  %v257_v10 = vld [vmem:[#allocation2 + $0xc] sm:$0x1] }
  0x14   : > { %404 = vst.msk [vmem:[#allocation2 + $0xe8] sm:$0xf] %vm376_vm6, %v18272_v8  ;;  %318 = vst [vmem:[#allocation2 + $0x8] sm:$0x1] %v317_v7  ;;  %v319_v11 = vld [vmem:[#allocation2 + $0x14] sm:$0x1] }
  0x15   : > { %v258_v12 = vsel %vm14401_vm3, 0, %v257_v10  ;;  %v320_v13 = vsel %vm14410_vm5, 0, %v319_v11  ;;  %v260_v14 = vld [vmem:[#allocation2 + $0x18] sm:$0x1]  ;;  %v322_v15 = vld [vmem:[#allocation2 + $0x20] sm:$0x1]  ;;  %vm14445_vm7 = vmand %vm376_vm6, %vm314_vm4 }
  0x16   : > { %259 = vst [vmem:[#allocation2 + $0xc] sm:$0x1] %v258_v12  ;;  %321 = vst [vmem:[#allocation2 + $0x14] sm:$0x1] %v320_v13  ;;  %s18627_s18 = smov (!%p234_p4, %s14333_s18), 1  ;;  %v261_v16 = vsel %vm14401_vm3, 0, %v260_v14 }
  0x17   : > { %v323_v17 = vsel %vm14410_vm5, 0, %v322_v15  ;;  %262 = vst [vmem:[#allocation2 + $0x18] sm:$0x1] %v261_v16  ;;  %v263_v18 = vld [vmem:[#allocation2 + $0x24] sm:$0x1]  ;;  %v18379_v20 = vmov 0 }
  0x18   : > { %324 = vst [vmem:[#allocation2 + $0x20] sm:$0x1] %v323_v17  ;;  %v325_v19 = vld [vmem:[#allocation2 + $0x2c] sm:$0x1]  ;;  %v18380_v20 = vsel %vm14445_vm7, 4294967295, %v18379_v20  ;;  %s12529_s26 = sshll.u32 %s18627_s18, 7 }
  0x19   : > { %18381 = vst [vmem:[#allocation6_spill] sm:$0xff] %v18380_v20  ;;  %v264_v21 = vsel %vm14401_vm3, 0, %v263_v18  ;;  %v326_v22 = vsel %vm14410_vm5, 0, %v325_v19  ;;  %v266_v23 = vld [vmem:[#allocation2 + $0x30] sm:$0x1]  ;;  %s14457_s29 = scalar_lea.vmem %s18266_s0, %s12529_s26  ;;  %v18382_v60 = vmov 0 }
  0x1a   : > { %265 = vst [vmem:[#allocation2 + $0x24] sm:$0x1] %v264_v21  ;;  %327 = vst [vmem:[#allocation2 + $0x2c] sm:$0x1] %v326_v22  ;;  %v267_v24 = vsel %vm14401_vm3, 0, %v266_v23  ;;  %vm1420_vm12 = vcmask 64512  }
  0x1b   : > { %v328_v25 = vld [vmem:[#allocation2 + $0x38] sm:$0x1]  ;;  %v378_v26 = vld [vmem:[#allocation2] sm:$0xf]  ;;  %v14461_v27 = vld [vmem:[#allocation2 + $0x4] sm:$0xf] }
  0x1c   : > { %v14463_v28 = vld [vmem:[#allocation2 + $0x10] sm:$0xf]  ;;  %268 = vst [vmem:[#allocation2 + $0x30] sm:$0x1] %v267_v24  ;;  %v379_v29 = vsel %vm14445_vm7, 0, %v378_v26  ;;  %v943_v31 = vshll.u32 %v14461_v27, 16 }
  0x1d   : > { %v383_v30 = vld [vmem:[#allocation2 + $0x8] sm:$0x1]  ;;  %vm930_vm8 = vsmask.f32 3328  ;;  %v947_v32 = vshrl.u32 %v14461_v27, 16  ;;  %v967_v33 = vshll.u32 %v14463_v28, 16 }
  0x1e   : > { %v269_v34 = vld [vmem:[#allocation2 + $0x3c] sm:$0x1]  ;;  %380 = vst [vmem:[#allocation2] sm:$0xf] %v379_v29  ;;  %v384_v35 = vsel %vm14401_vm3, 0, %v383_v30  ;;  %v971_v36 = vshrl.u32 %v14463_v28, 16 }
  0x1f   : > { %v408_v37 = vld [vmem:[%s14457_s29] sm:$0xf]  ;;  %v329_v38 = vsel %vm14410_vm5, 0, %v328_v25  ;;  %385 = vst [vmem:[#allocation2 + $0x8] sm:$0x1] %v384_v35  ;;  %v14476_v39 = vrot.slane %v943_v31, 5 }
  0x20   : > { %v949_v40 = vrot.slane %v947_v32, 4  ;;  %v386_v41 = vld [vmem:[#allocation2 + $0xc] sm:$0xf]  ;;  %v390_v42 = vld [vmem:[#allocation2 + $0x14] sm:$0x1]  ;;  %v14482_v45 = vrot.slane %v967_v33, 5 }
  0x21   : > { %330 = vst [vmem:[#allocation2 + $0x38] sm:$0x1] %v329_v38  ;;  %v387_v43 = vsel %vm14445_vm7, 0, %v386_v41  ;;  %v391_v44 = vsel %vm14401_vm3, 0, %v390_v42  ;;  %v973_v46 = vrot.slane %v971_v36, 4  ;;  %v443_v48 = vshrl.u32 %v408_v37, 16 }
  0x22   : > { %v409_v47 = vld [vmem:[%s14457_s29 + $0x4] sm:$0xf]  ;;  %388 = vst [vmem:[#allocation2 + $0xc] sm:$0xf] %v387_v43  ;;  %392 = vst [vmem:[#allocation2 + $0x14] sm:$0x1] %v391_v44  ;;  %v950_v54 = vor.u32 %v949_v40, %v14476_v39 }
  0x23   : > { %vm440_vm9 = vsmask.f32 4368  ;;  %v446_v49 = vshll.u32 %v408_v37, 16  ;;  %v451_v50 = vshrl.u32 %v409_v47, 16  ;;  %vm931_vm10 = vsmask.f32 7440 }
  0x24   : > { %v454_v51 = vshll.u32 %v409_v47, 16  ;;  %v410_v52 = vld [vmem:[%s14457_s29 + $0x8] sm:$0xf]  ;;  %v270_v53 = vsel %vm14401_vm3, 0, %v269_v34  ;;  %v445_v55 = vrot.slane %v443_v48, 7  ;;  %v974_v59 = vor.u32 %v973_v46, %v14482_v45  ;;  %vm14493_vm11 = vmor %vm252_vm2, %vm440_vm9  ;;  %s12530_s28 = sshll.u32 %s18627_s18, 8 }
  0x25   : > { %v453_v56 = vrot.slane %v451_v50, 7  ;;  %v411_v57 = vld [vmem:[%s14457_s29 + $0xc] sm:$0xf]  ;;  %v460_v58 = vshrl.u32 %v410_v52, 16  ;;  %271 = vst [vmem:[#allocation2 + $0x3c] sm:$0x1] %v270_v53  ;;  %vm14507_vm13 = vmor %vm930_vm8, %vm931_vm10  ;;  %s18134_s30 = scalar_lea.vmem %s18271_s5, %s12530_s28 }
  0x26   : > { %v18383_v60 = vsel %vm14493_vm11, 4294967295, %v18382_v60  ;;  %v763_v61 = vld [vmem:[#allocation2 + $0x18] sm:$0xf]  ;;  %v463_v62 = vshll.u32 %v410_v52, 16  ;;  %v468_v63 = vshrl.u32 %v411_v57, 16  ;;  %v471_v0 = vshll.u32 %v411_v57, 16 }
  0x27   : > { %18384 = vst [vmem:[#allocation7_spill] sm:$0xff] %v18383_v60  ;;  %v14497_v1 = vld [vmem:[#allocation2] sm:$0xf]  ;;  %v448_v3 = vor.u32 %v446_v49, %v445_v55  ;;  %v449_v4 = vrot.slane %v445_v55, 4  ;;  %v456_v6 = vor.u32 %v454_v51, %v453_v56  ;;  %v458_v7 = vrot.slane %v453_v56, 4 }
  0x28   : > { %v767_v10 = vld [vmem:[#allocation2 + $0x20] sm:$0x1]  ;;  %v912_v11 = vld [vmem:[#allocation2 + $0x8] sm:$0x1]  ;;  %v934_v12 = vshrl.u32 %v14497_v1, 16  ;;  %v937_v13 = vshll.u32 %v14497_v1, 16 }
  0x29   : > { %v462_v14 = vrot.slane %v460_v58, 7  ;;  %v470_v15 = vrot.slane %v468_v63, 7  ;;  %v951_v16 = vrot.slane %v950_v54, 4  ;;  %v953_v17 = vshll.u32 %v912_v11, 16  ;;  %v14511_v24 = vld [vmem:[#allocation2 + $0xc] sm:$0xf] }
  0x2a   : > { %v457_v18 = vsel %vm14493_vm11, %v449_v4, %v456_v6  ;;  %v764_v19 = vsel %vm14445_vm7, %v448_v3, %v763_v61  ;;  %v936_v22 = vrot.slane %v934_v12, 4  ;;  %v939_v23 = vrot.slane %v937_v13, 5  ;;  %v913_v25 = vld [vmem:[#allocation2 + $0x14] sm:$0x1]  ;;  %v770_v34 = vld [vmem:[#allocation2 + $0x24] sm:$0xf] }
  0x2b   : > { %765 = vst [vmem:[#allocation2 + $0x18] sm:$0xf] %v764_v19  ;;  %766 = vst.msk [vmem:[#allocation2 + $0x1c] sm:$0xf] %vm376_vm6, %v457_v18  ;;  %v768_v26 = vsel %vm14401_vm3, %v458_v7, %v767_v10  ;;  %v465_v29 = vor.u32 %v463_v62, %v462_v14  ;;  %v955_v30 = vrot.slane %v953_v17, 5  ;;  %v958_v31 = vshrl.u32 %v14511_v24, 16 }
  0x2c   : > { %v961_v32 = vshll.u32 %v14511_v24, 16  ;;  %v977_v33 = vshll.u32 %v913_v25, 16  ;;  %769 = vst [vmem:[#allocation2 + $0x20] sm:$0x1] %v768_v26  ;;  %v940_v35 = vor.u32 %v939_v23, %v936_v22  ;;  %v975_v36 = vrot.slane %v974_v59, 4 }
  0x2d   : > { %v466_v37 = vrot.slane %v462_v14, 4  ;;  %v473_v38 = vor.u32 %v471_v0, %v470_v15  ;;  %v774_v40 = vld [vmem:[#allocation2 + $0x2c] sm:$0x1]  ;;  %v412_v41 = vld [vmem:[%s14457_s29 + $0x10] sm:$0xf]  ;;  %v956_v42 = vsel %vm14507_vm13, %v951_v16, %v955_v30  ;;  %v960_v43 = vrot.slane %v958_v31, 4 }
  0x2e   : > { %v963_v44 = vrot.slane %v961_v32, 5  ;;  %v979_v46 = vrot.slane %v977_v33, 5  ;;  %v413_v47 = vld [vmem:[%s14457_s29 + $0x14] sm:$0xf]  ;;  %v941_v48 = vrot.slane %v940_v35, 4  ;;  %v475_v50 = vrot.slane %v470_v15, 4 }
  0x2f   : > { %v474_v49 = vsel %vm14493_vm11, %v466_v37, %v473_v38  ;;  %v771_v51 = vsel %vm14445_vm7, %v465_v29, %v770_v34  ;;  %v1801_v53 = vsel %vm1475_vm0, %v14427_v9, 0  ;;  %v477_v54 = vshrl.u32 %v412_v41, 16  ;;  %v777_v61 = vld [vmem:[#allocation2 + $0x30] sm:$0xf]  ;;  %v331_v16 = vld [vmem:[#allocation2 + $0x44] sm:$0x1] }
  0x30   : > { %v964_v52 = vor.u32 %v963_v44, %v960_v43  ;;  %772 = vst [vmem:[#allocation2 + $0x24] sm:$0xf] %v771_v51  ;;  %773 = vst.msk [vmem:[#allocation2 + $0x28] sm:$0xf] %vm376_vm6, %v474_v49  ;;  %v480_v55 = vshll.u32 %v412_v41, 16  ;;  %v946_v56 = vsel %vm14507_vm13, %v941_v48, %v14476_v39  ;;  %v775_v57 = vsel %vm14401_vm3, %v475_v50, %v774_v40 }
  0x31   : > { %v485_v58 = vshrl.u32 %v413_v47, 16  ;;  %v488_v59 = vshll.u32 %v413_v47, 16  ;;  %v11775_v62 = vcombine.low %v946_v56, %v956_v42  ;;  %v980_v9 = vsel %vm14507_vm13, %v975_v36, %v979_v46  ;;  %776 = vst [vmem:[#allocation2 + $0x2c] sm:$0x1] %v775_v57  ;;  %v414_v17 = vld [vmem:[%s14457_s29 + $0x18] sm:$0xf] }
  0x32   : > { %v965_v63 = vrot.slane %v964_v52, 4  ;;  %v14536_v0 = vld [vmem:[#allocation2 + $0x18] sm:$0xf]  ;;  %v14538_v3 = vld [vmem:[#allocation2 + $0x1c] sm:$0xf]  ;;  %v479_v4 = vrot.slane %v477_v54, 7  ;;  %v11812_v35 = vcombine.low %v14511_v24, %v14463_v28 }
  0x33   : > { %v914_v6 = vld [vmem:[#allocation2 + $0x20] sm:$0x1]  ;;  %v982_v39 = vshrl.u32 %v14536_v0, 16  ;;  %v985_v7 = vshll.u32 %v14536_v0, 16  ;;  %v991_v10 = vshll.u32 %v14538_v3, 16  ;;  %v995_v11 = vshrl.u32 %v14538_v3, 16  ;;  %12932 = vmatprep.mubr.msk.bf16.mxu0 %vm1420_vm12, %v11775_v62 }
  0x34   : > { %v970_v12 = vsel %vm14507_vm13, %v965_v63, %v14482_v45  ;;  %v1001_v13 = vshll.u32 %v914_v6, 16  ;;  %v482_v14 = vor.u32 %v480_v55, %v479_v4  ;;  %v483_v15 = vrot.slane %v479_v4, 4  ;;  %v781_v41 = vld [vmem:[#allocation2 + $0x38] sm:$0x1]  ;;  %v415_v56 = vld [vmem:[%s14457_s29 + $0x1c] sm:$0xf] }
  0x35   : > { %v11776_v18 = vcombine.low %v970_v12, %v980_v9  ;;  %v984_v19 = vrot.slane %v982_v39, 4  ;;  %v987_v22 = vrot.slane %v985_v7, 5  ;;  %v993_v23 = vrot.slane %v991_v10, 5  ;;  %v784_v62 = vld [vmem:[#allocation2 + $0x3c] sm:$0xf] }
  0x36   : > { %v997_v25 = vrot.slane %v995_v11, 4  ;;  %v1003_v26 = vrot.slane %v1001_v13, 5  ;;  %v487_v29 = vrot.slane %v485_v58, 7  ;;  %v778_v30 = vsel %vm14445_vm7, %v482_v14, %v777_v61  ;;  %v272_v63 = vld [vmem:[#allocation2 + $0x48] sm:$0x1] }
  0x37   : > { %12933 = vmatmul.mubr.msk.bf16.vlgmr.msra.gmra.mrb[0].mxu0 %vm1420_vm12, %v11776_v18  ;;  %v988_v31 = vor.u32 %v987_v22, %v984_v19  ;;  %v14552_v32 = vld [vmem:[#allocation2 + $0x24] sm:$0xf]  ;;  %v14554_v45 = vld [vmem:[#allocation2 + $0x28] sm:$0xf]  ;;  %779 = vst [vmem:[#allocation2 + $0x30] sm:$0xf] %v778_v30 }
  0x38   : > { %v332_v33 = vsel %vm14410_vm5, 0, %v331_v16  ;;  %v494_v34 = vshrl.u32 %v414_v17, 16  ;;  %12969 = vmatpush3.bf16.msra.mxu0 %v1801_v53  ;;  %v998_v36 = vor.u32 %v997_v25, %v993_v23  ;;  %v1006_v37 = vshrl.u32 %v14552_v32, 16  ;;  %v915_v43 = vld [vmem:[#allocation2 + $0x2c] sm:$0x1] }
  0x39   : > { %v1009_v38 = vshll.u32 %v14552_v32, 16  ;;  %v1015_v40 = vshll.u32 %v14554_v45, 16  ;;  %333 = vst [vmem:[#allocation2 + $0x44] sm:$0x1] %v332_v33  ;;  %v989_v42 = vrot.slane %v988_v31, 4  ;;  %v1019_v44 = vshrl.u32 %v14554_v45, 16 }
  0x3a   : > { %v490_v46 = vor.u32 %v488_v59, %v487_v29  ;;  %v492_v47 = vrot.slane %v487_v29, 4  ;;  %v999_v48 = vrot.slane %v998_v36, 4  ;;  %v1008_v49 = vrot.slane %v1006_v37, 4  ;;  %v334_v7 = vld [vmem:[#allocation2 + $0x50] sm:$0x1] }
  0x3b   : > { %v1011_v50 = vrot.slane %v1009_v38, 5  ;;  %v1017_v51 = vrot.slane %v1015_v40, 5  ;;  %v994_v52 = vsel %vm14507_vm13, %v989_v42, %v993_v23  ;;  %v1021_v53 = vrot.slane %v1019_v44, 4  ;;  %v416_v10 = vld [vmem:[%s14457_s29 + $0x20] sm:$0xf] }
  0x3c   : > { %v1025_v54 = vshll.u32 %v915_v43, 16  ;;  %v491_v55 = vsel %vm14493_vm11, %v483_v15, %v490_v46  ;;  %v1004_v57 = vsel %vm14507_vm13, %v999_v48, %v1003_v26  ;;  %v782_v59 = vsel %vm14401_vm3, %v492_v47, %v781_v41  ;;  %v417_v23 = vld [vmem:[%s14457_s29 + $0x24] sm:$0xf]  ;;  %v14590_v30 = vld [vmem:[%s18267_s1 + $0x8] sm:$0xf] }
  0x3d   : > { %v1012_v58 = vor.u32 %v1011_v50, %v1008_v49  ;;  %780 = vst.msk [vmem:[#allocation2 + $0x34] sm:$0xf] %vm376_vm6, %v491_v55  ;;  %v496_v61 = vrot.slane %v494_v34, 7  ;;  %v11777_v9 = vcombine.low %v994_v52, %v1004_v57  ;;  %v1022_v4 = vor.u32 %v1021_v53, %v1017_v51  ;;  %783 = vst [vmem:[#allocation2 + $0x38] sm:$0x1] %v782_v59 }
  0x3e   : > { %v1027_v6 = vrot.slane %v1025_v54, 5  ;;  %v497_v39 = vshll.u32 %v414_v17, 16  ;;  %v14575_v12 = vld [vmem:[#allocation2 + $0x30] sm:$0xf]  ;;  %v502_v14 = vshrl.u32 %v415_v56, 16  ;;  %v505_v15 = vshll.u32 %v415_v56, 16  ;;  %14127 = vmatprep.subr.msk.bf16.mxu0 %vm1475_vm0, %v14590_v30 }
  0x3f   : > { %v1013_v11 = vrot.slane %v1012_v58, 4  ;;  %v500_v13 = vrot.slane %v496_v61, 4  ;;  %12936 = vmatprep.mubr.msk.bf16.mxu0 %vm1420_vm12, %v11777_v9  ;;  %v1023_v16 = vrot.slane %v1022_v4, 4  ;;  %v1030_v18 = vshrl.u32 %v14575_v12, 16  ;;  %v275_v43 = vld [vmem:[#allocation2 + $0x54] sm:$0x1] }
  0x40   : > { %v1033_v19 = vshll.u32 %v14575_v12, 16  ;;  %v499_v22 = vor.u32 %v497_v39, %v496_v61  ;;  %v504_v25 = vrot.slane %v502_v14, 7  ;;  %v273_v26 = vsel %vm14401_vm3, 0, %v272_v63  ;;  %v788_v37 = vld [vmem:[#allocation2 + $0x44] sm:$0x1] }
  0x41   : > { %v1018_v17 = vsel %vm14507_vm13, %v1013_v11, %v1017_v51  ;;  %v335_v29 = vsel %vm14410_vm5, 0, %v334_v7  ;;  %v1028_v31 = vsel %vm14507_vm13, %v1023_v16, %v1027_v6  ;;  %v1032_v33 = vrot.slane %v1030_v18, 4  ;;  %274 = vst [vmem:[#allocation2 + $0x48] sm:$0x1] %v273_v26  ;;  %v337_v44 = vld [vmem:[#allocation2 + $0x5c] sm:$0x1] }
  0x42   : > { %v1035_v34 = vrot.slane %v1033_v19, 5  ;;  %v785_v36 = vsel %vm14445_vm7, %v499_v22, %v784_v62  ;;  %336 = vst [vmem:[#allocation2 + $0x50] sm:$0x1] %v335_v29  ;;  %v11778_v38 = vcombine.low %v1018_v17, %v1028_v31  ;;  %v507_v40 = vor.u32 %v505_v15, %v504_v25  ;;  %v418_v61 = vld [vmem:[%s14457_s29 + $0x28] sm:$0xf] }
  0x43   : > { %v509_v41 = vrot.slane %v504_v25, 4  ;;  %786 = vst [vmem:[#allocation2 + $0x3c] sm:$0xf] %v785_v36  ;;  %v511_v42 = vshrl.u32 %v416_v10, 16  ;;  %v514_v48 = vshll.u32 %v416_v10, 16  ;;  %v519_v49 = vshrl.u32 %v417_v23, 16 }
  0x44   : > { %v14598_v46 = vld [vmem:[#allocation2 + $0x34] sm:$0xf]  ;;  %v1036_v47 = vor.u32 %v1035_v34, %v1032_v33  ;;  %v522_v50 = vshll.u32 %v417_v23, 16  ;;  %12937 = vmatmul.mubr.msk.bf16.gmra.mrb[4].mxu0 %vm1420_vm12, %v11778_v38  ;;  %v916_v51 = vld [vmem:[#allocation2 + $0x38] sm:$0x1]  ;;  %v508_v54 = vsel %vm14493_vm11, %v500_v13, %v507_v40  ;;  %v276_v9 = vsel %vm14401_vm3, 0, %v275_v43 }
  0x45   : > { %v1039_v52 = vshll.u32 %v14598_v46, 16  ;;  %v1043_v53 = vshrl.u32 %v14598_v46, 16  ;;  %v789_v55 = vsel %vm14401_vm3, %v509_v41, %v788_v37  ;;  %v1049_v57 = vshll.u32 %v916_v51, 16  ;;  %787 = vst.msk [vmem:[#allocation2 + $0x40] sm:$0xf] %vm376_vm6, %v508_v54 }
  0x46   : > { %v1037_v56 = vrot.slane %v1036_v47, 4  ;;  %790 = vst [vmem:[#allocation2 + $0x44] sm:$0x1] %v789_v55  ;;  %v513_v58 = vrot.slane %v511_v42, 7  ;;  %v521_v59 = vrot.slane %v519_v49, 7  ;;  %v338_v4 = vsel %vm14410_vm5, 0, %v337_v44 }
  0x47   : > { %v1041_v62 = vrot.slane %v1039_v52, 5  ;;  %v1045_v63 = vrot.slane %v1043_v53, 4  ;;  %v419_v6 = vld [vmem:[%s14457_s29 + $0x2c] sm:$0xf]  ;;  %v1051_v39 = vrot.slane %v1049_v57, 5  ;;  %v528_v22 = vshrl.u32 %v418_v61, 16 }
  0x48   : > { %v516_v7 = vor.u32 %v514_v48, %v513_v58  ;;  %v517_v10 = vrot.slane %v513_v58, 4  ;;  %v524_v11 = vor.u32 %v522_v50, %v521_v59  ;;  %277 = vst [vmem:[#allocation2 + $0x54] sm:$0x1] %v276_v9  ;;  %339 = vst [vmem:[#allocation2 + $0x5c] sm:$0x1] %v338_v4  ;;  %v526_v16 = vrot.slane %v521_v59, 4 }
  0x49   : > { %v278_v13 = vld [vmem:[#allocation2 + $0x60] sm:$0x1]  ;;  %v1042_v14 = vsel %vm14507_vm13, %v1037_v56, %v1041_v62  ;;  %v1046_v15 = vor.u32 %v1045_v63, %v1041_v62  ;;  %v791_v18 = vld [vmem:[#allocation2 + $0x48] sm:$0xf]  ;;  %v795_v19 = vld [vmem:[#allocation2 + $0x50] sm:$0x1]  ;;  %v11814_v24 = vcombine.low %v14552_v32, %v14554_v45 }
  0x4a   : > { %v14616_v23 = vld [vmem:[#allocation2 + $0x3c] sm:$0xf]  ;;  %v525_v17 = vsel %vm14493_vm11, %v517_v10, %v524_v11  ;;  %v792_v25 = vsel %vm14445_vm7, %v516_v7, %v791_v18  ;;  %v531_v26 = vshll.u32 %v418_v61, 16  ;;  %v536_v29 = vshrl.u32 %v419_v6, 16  ;;  %v340_v42 = vld [vmem:[#allocation2 + $0x68] sm:$0x1] }
  0x4b   : > { %v1047_v31 = vrot.slane %v1046_v15, 4  ;;  %v1054_v33 = vshrl.u32 %v14616_v23, 16  ;;  %v1057_v34 = vshll.u32 %v14616_v23, 16  ;;  %793 = vst [vmem:[#allocation2 + $0x48] sm:$0xf] %v792_v25  ;;  %v796_v36 = vsel %vm14401_vm3, %v526_v16, %v795_v19 }
  0x4c   : > { %794 = vst.msk [vmem:[#allocation2 + $0x4c] sm:$0xf] %vm376_vm6, %v525_v17  ;;  %797 = vst [vmem:[#allocation2 + $0x50] sm:$0x1] %v796_v36  ;;  %v530_v37 = vrot.slane %v528_v22, 7  ;;  %v538_v38 = vrot.slane %v536_v29, 7 }
  0x4d   : > { %v539_v40 = vshll.u32 %v419_v6, 16  ;;  %v279_v41 = vsel %vm14401_vm3, 0, %v278_v13  ;;  %v1052_v43 = vsel %vm14507_vm13, %v1047_v31, %v1051_v39  ;;  %v14631_v44 = vld [vmem:[#allocation2 + $0x40] sm:$0xf]  ;;  %v917_v47 = vld [vmem:[#allocation2 + $0x44] sm:$0x1] }
  0x4e   : > { %v1056_v48 = vrot.slane %v1054_v33, 4  ;;  %v1059_v49 = vrot.slane %v1057_v34, 5  ;;  %280 = vst [vmem:[#allocation2 + $0x60] sm:$0x1] %v279_v41  ;;  %v11779_v50 = vcombine.low %v1042_v14, %v1052_v43  ;;  %v1063_v51 = vshll.u32 %v14631_v44, 16 }
  0x4f   : > { %v1067_v52 = vshrl.u32 %v14631_v44, 16  ;;  %v1073_v53 = vshll.u32 %v917_v47, 16  ;;  %v420_v54 = vld [vmem:[%s14457_s29 + $0x30] sm:$0xf]  ;;  %v533_v56 = vor.u32 %v531_v26, %v530_v37  ;;  %v534_v57 = vrot.slane %v530_v37, 4 }
  0x50   : > { %v1060_v55 = vor.u32 %v1059_v49, %v1056_v48  ;;  %v541_v58 = vor.u32 %v539_v40, %v538_v38  ;;  %v798_v59 = vld [vmem:[#allocation2 + $0x54] sm:$0xf]  ;;  %v802_v61 = vld [vmem:[#allocation2 + $0x5c] sm:$0x1]  ;;  %12940 = vmatprep.mubr.msk.bf16.mxu0 %vm1420_vm12, %v11779_v50  ;;  %v1065_v62 = vrot.slane %v1063_v51, 5  ;;  %v543_v4 = vrot.slane %v538_v38, 4 }
  0x51   : > { %v1069_v63 = vrot.slane %v1067_v52, 4  ;;  %v1075_v9 = vrot.slane %v1073_v53, 5  ;;  %v799_v7 = vsel %vm14445_vm7, %v533_v56, %v798_v59  ;;  %v341_v10 = vsel %vm14410_vm5, 0, %v340_v42  ;;  %v421_v11 = vld [vmem:[%s14457_s29 + $0x34] sm:$0xf] }
  0x52   : > { %v1061_v6 = vrot.slane %v1060_v55, 4  ;;  %v542_v39 = vsel %vm14493_vm11, %v534_v57, %v541_v58  ;;  %v14644_v14 = vld [vmem:[#allocation2 + $0x48] sm:$0xf]  ;;  %800 = vst [vmem:[#allocation2 + $0x54] sm:$0xf] %v799_v7  ;;  %v803_v16 = vsel %vm14401_vm3, %v543_v4, %v802_v61  ;;  %v545_v18 = vshrl.u32 %v420_v54, 16 }
  0x53   : > { %v1070_v13 = vor.u32 %v1069_v63, %v1065_v62  ;;  %v14646_v15 = vld [vmem:[#allocation2 + $0x4c] sm:$0xf]  ;;  %801 = vst.msk [vmem:[#allocation2 + $0x58] sm:$0xf] %vm376_vm6, %v542_v39  ;;  %342 = vst [vmem:[#allocation2 + $0x68] sm:$0x1] %v341_v10 }
  0x54   : > { %v548_v19 = vshll.u32 %v420_v54, 16  ;;  %v1066_v22 = vsel %vm14507_vm13, %v1061_v6, %v1065_v62  ;;  %v918_v17 = vld [vmem:[#allocation2 + $0x50] sm:$0x1]  ;;  %v1078_v25 = vshrl.u32 %v14644_v14, 16  ;;  %v1081_v26 = vshll.u32 %v14644_v14, 16 }
  0x55   : > { %v1087_v29 = vshll.u32 %v14646_v15, 16  ;;  %804 = vst [vmem:[#allocation2 + $0x5c] sm:$0x1] %v803_v16  ;;  %v1071_v31 = vrot.slane %v1070_v13, 4  ;;  %v1091_v33 = vshrl.u32 %v14646_v15, 16  ;;  %v1097_v34 = vshll.u32 %v918_v17, 16 }
  0x56   : > { %v547_v36 = vrot.slane %v545_v18, 7  ;;  %v281_v37 = vld [vmem:[#allocation2 + $0x6c] sm:$0x1]  ;;  %v1080_v38 = vrot.slane %v1078_v25, 4  ;;  %v1083_v40 = vrot.slane %v1081_v26, 5  ;;  %v553_v42 = vshrl.u32 %v421_v11, 16 }
  0x57   : > { %v1089_v41 = vrot.slane %v1087_v29, 5  ;;  %v805_v43 = vld [vmem:[#allocation2 + $0x60] sm:$0xf]  ;;  %v1076_v47 = vsel %vm14507_vm13, %v1071_v31, %v1075_v9  ;;  %v1093_v48 = vrot.slane %v1091_v33, 4  ;;  %v1099_v49 = vrot.slane %v1097_v34, 5 }
  0x58   : > { %v550_v50 = vor.u32 %v548_v19, %v547_v36  ;;  %v11780_v51 = vcombine.low %v1066_v22, %v1076_v47  ;;  %v1084_v52 = vor.u32 %v1083_v40, %v1080_v38  ;;  %v551_v53 = vrot.slane %v547_v36, 4  ;;  %v343_v9 = vld [vmem:[#allocation2 + $0x74] sm:$0x1]  ;;  %v422_v22 = vld [vmem:[%s14457_s29 + $0x38] sm:$0xf] }
  0x59   : > { %v555_v54 = vrot.slane %v553_v42, 7  ;;  %v1094_v55 = vor.u32 %v1093_v48, %v1089_v41  ;;  %v556_v56 = vshll.u32 %v421_v11, 16  ;;  %v282_v58 = vsel %vm14401_vm3, 0, %v281_v37  ;;  %v14664_v61 = vld [vmem:[#allocation2 + $0x54] sm:$0xf] }
  0x5a   : > { %v806_v57 = vsel %vm14445_vm7, %v550_v50, %v805_v43  ;;  %12941 = vmatmul.mubr.msk.bf16.gmra.mrb[8].mxu0 %vm1420_vm12, %v11780_v51  ;;  %v1085_v59 = vrot.slane %v1084_v52, 4  ;;  %v14666_v62 = vld [vmem:[#allocation2 + $0x58] sm:$0xf]  ;;  %283 = vst [vmem:[#allocation2 + $0x6c] sm:$0x1] %v282_v58  ;;  %v1102_v39 = vshrl.u32 %v14664_v61, 16 }
  0x5b   : > { %v560_v63 = vrot.slane %v555_v54, 4  ;;  %807 = vst [vmem:[#allocation2 + $0x60] sm:$0xf] %v806_v57  ;;  %v1095_v4 = vrot.slane %v1094_v55, 4  ;;  %v1105_v7 = vshll.u32 %v14664_v61, 16  ;;  %v1111_v10 = vshll.u32 %v14666_v62, 16 }
  0x5c   : > { %v919_v6 = vld [vmem:[#allocation2 + $0x5c] sm:$0x1]  ;;  %v1090_v11 = vsel %vm14507_vm13, %v1085_v59, %v1089_v41  ;;  %v1115_v13 = vshrl.u32 %v14666_v62, 16  ;;  %v558_v18 = vor.u32 %v556_v56, %v555_v54  ;;  %v809_v19 = vld [vmem:[#allocation2 + $0x68] sm:$0x1]  ;;  %v1104_v25 = vrot.slane %v1102_v39, 4 }
  0x5d   : > { %v1121_v16 = vshll.u32 %v919_v6, 16  ;;  %v1100_v17 = vsel %vm14507_vm13, %v1095_v4, %v1099_v49  ;;  %v1107_v26 = vrot.slane %v1105_v7, 5  ;;  %v1113_v29 = vrot.slane %v1111_v10, 5  ;;  %v423_v31 = vld [vmem:[%s14457_s29 + $0x3c] sm:$0xf] }
  0x5e   : > { %v11781_v33 = vcombine.low %v1090_v11, %v1100_v17  ;;  %v1117_v34 = vrot.slane %v1115_v13, 4  ;;  %v559_v37 = vsel %vm14493_vm11, %v551_v53, %v558_v18  ;;  %v810_v40 = vsel %vm14401_vm3, %v560_v63, %v809_v19  ;;  %v424_v4 = vld [vmem:[%s14457_s29 + $0x40] sm:$0xf]  ;;  %v425_v18 = vld [vmem:[%s14457_s29 + $0x44] sm:$0xf] }
  0x5f   : > { %v1123_v36 = vrot.slane %v1121_v16, 5  ;;  %v1108_v38 = vor.u32 %v1107_v26, %v1104_v25  ;;  %808 = vst.msk [vmem:[#allocation2 + $0x64] sm:$0xf] %vm376_vm6, %v559_v37  ;;  %v344_v41 = vsel %vm14410_vm5, 0, %v343_v9  ;;  %v562_v42 = vshrl.u32 %v422_v22, 16 }
  0x60   : > { %12944 = vmatprep.mubr.msk.bf16.mxu0 %vm1420_vm12, %v11781_v33  ;;  %v1118_v43 = vor.u32 %v1117_v34, %v1113_v29  ;;  %811 = vst [vmem:[#allocation2 + $0x68] sm:$0x1] %v810_v40  ;;  %345 = vst [vmem:[#allocation2 + $0x74] sm:$0x1] %v344_v41  ;;  %v565_v47 = vshll.u32 %v422_v22, 16  ;;  %v570_v48 = vshrl.u32 %v423_v31, 16 }
  0x61   : > { %v573_v49 = vshll.u32 %v423_v31, 16  ;;  %v1109_v50 = vrot.slane %v1108_v38, 4  ;;  %v564_v52 = vrot.slane %v562_v42, 7  ;;  %v812_v57 = vld [vmem:[#allocation2 + $0x6c] sm:$0xf]  ;;  %v579_v26 = vshrl.u32 %v424_v4, 16 }
  0x62   : > { %v14686_v51 = vld [vmem:[#allocation2 + $0x60] sm:$0xf]  ;;  %v1119_v53 = vrot.slane %v1118_v43, 4  ;;  %v572_v56 = vrot.slane %v570_v48, 7  ;;  %v284_v9 = vld [vmem:[#allocation2 + $0x78] sm:$0x1] }
  0x63   : > { %v1126_v54 = vshrl.u32 %v14686_v51, 16  ;;  %v1129_v55 = vshll.u32 %v14686_v51, 16  ;;  %v1114_v58 = vsel %vm14507_vm13, %v1109_v50, %v1113_v29  ;;  %v567_v59 = vor.u32 %v565_v47, %v564_v52  ;;  %v287_v29 = vld [vmem:[#allocation2 + $0x84] sm:$0x1]  ;;  %v14711_v37 = vld [vmem:[%s14457_s29 + $0x48] sm:$0xf] }
  0x64   : > { %v568_v63 = vrot.slane %v564_v52, 4  ;;  %v1124_v6 = vsel %vm14507_vm13, %v1119_v53, %v1123_v36  ;;  %v575_v10 = vor.u32 %v573_v49, %v572_v56  ;;  %v577_v13 = vrot.slane %v572_v56, 4  ;;  %v427_v50 = vld [vmem:[%s14457_s29 + $0x4c] sm:$0xf] }
  0x65   : > { %v1128_v39 = vrot.slane %v1126_v54, 4  ;;  %v1131_v7 = vrot.slane %v1129_v55, 5  ;;  %v11782_v11 = vcombine.low %v1114_v58, %v1124_v6  ;;  %v813_v16 = vsel %vm14445_vm7, %v567_v59, %v812_v57  ;;  %v290_v55 = vld [vmem:[#allocation2 + $0x90] sm:$0x1]  ;;  %v305_v28 = vld [vmem:[#allocation2 + $0xcc] sm:$0x1] }
  0x66   : > { %v14698_v19 = vld [vmem:[#allocation2 + $0x64] sm:$0xf]  ;;  %v576_v17 = vsel %vm14493_vm11, %v568_v63, %v575_v10  ;;  %814 = vst [vmem:[#allocation2 + $0x6c] sm:$0xf] %v813_v16  ;;  %v285_v25 = vsel %vm14401_vm3, 0, %v284_v9  ;;  %v581_v42 = vrot.slane %v579_v26, 7 }
  0x67   : > { %v1132_v22 = vor.u32 %v1131_v7, %v1128_v39  ;;  %12945 = vmatmul.mubr.msk.bf16.gmra.mrb[12].mxu0 %vm1420_vm12, %v11782_v11  ;;  %v14705_v31 = vld [vmem:[#allocation2 + $0x68] sm:$0x1]  ;;  %v1135_v33 = vshll.u32 %v14698_v19, 16  ;;  %v1139_v34 = vshrl.u32 %v14698_v19, 16  ;;  %815 = vst.msk [vmem:[#allocation2 + $0x70] sm:$0xf] %vm376_vm6, %v576_v17 }
  0x68   : > { %v816_v36 = vld [vmem:[#allocation2 + $0x74] sm:$0x1]  ;;  %286 = vst [vmem:[#allocation2 + $0x78] sm:$0x1] %v285_v25  ;;  %v1145_v40 = vshll.u32 %v14705_v31, 16  ;;  %v582_v48 = vshll.u32 %v424_v4, 16 }
  0x69   : > { %v1133_v38 = vrot.slane %v1132_v22, 4  ;;  %v817_v41 = vsel %vm14401_vm3, %v577_v13, %v816_v36  ;;  %v1137_v43 = vrot.slane %v1135_v33, 5  ;;  %v1141_v47 = vrot.slane %v1139_v34, 4  ;;  %v428_v13 = vld [vmem:[%s14457_s29 + $0x50] sm:$0xf] }
  0x6a   : > { %818 = vst [vmem:[#allocation2 + $0x74] sm:$0x1] %v817_v41  ;;  %v587_v49 = vshrl.u32 %v425_v18, 16  ;;  %v1147_v52 = vrot.slane %v1145_v40, 5  ;;  %v590_v53 = vshll.u32 %v425_v18, 16  ;;  %v288_v54 = vsel %vm14401_vm3, 0, %v287_v29 }
  0x6b   : > { %v1142_v56 = vor.u32 %v1141_v47, %v1137_v43  ;;  %v585_v57 = vrot.slane %v581_v42, 4  ;;  %289 = vst [vmem:[#allocation2 + $0x84] sm:$0x1] %v288_v54  ;;  %v1138_v59 = vsel %vm14507_vm13, %v1133_v38, %v1137_v43  ;;  %v584_v63 = vor.u32 %v582_v48, %v581_v42  ;;  %v429_v25 = vld [vmem:[%s14457_s29 + $0x54] sm:$0xf] }
  0x6c   : > { %v14719_v58 = vrot.slane %v587_v49, 7  ;;  %v596_v9 = vshrl.u32 %v14711_v37, 16  ;;  %v599_v4 = vshll.u32 %v14711_v37, 16  ;;  %v604_v10 = vshrl.u32 %v427_v50, 16 }
  0x6d   : > { %v1143_v6 = vrot.slane %v1142_v56, 4  ;;  %v14725_v39 = vld [vmem:[#allocation2 + $0x6c] sm:$0xf]  ;;  %v291_v11 = vsel %vm14401_vm3, 0, %v290_v55  ;;  %v607_v34 = vshll.u32 %v427_v50, 16  ;;  %vm2034_vm14 = vcmask 1042432  }
  0x6e   : > { %v592_v7 = vor.u32 %v590_v53, %v14719_v58  ;;  %v14731_v16 = vld [vmem:[#allocation2 + $0x70] sm:$0xf]  ;;  %v1150_v18 = vshrl.u32 %v14725_v39, 16  ;;  %v1153_v22 = vshll.u32 %v14725_v39, 16  ;;  %292 = vst [vmem:[#allocation2 + $0x90] sm:$0x1] %v291_v11 }
  0x6f   : > { %v819_v17 = vld [vmem:[#allocation2 + $0x78] sm:$0xf]  ;;  %v1148_v26 = vsel %vm14507_vm13, %v1143_v6, %v1147_v52  ;;  %v1159_v29 = vshll.u32 %v14731_v16, 16  ;;  %v1163_v33 = vshrl.u32 %v14731_v16, 16  ;;  %v598_v50 = vrot.slane %v596_v9, 7 }
  0x70   : > { %v11783_v36 = vcombine.low %v1138_v59, %v1148_v26  ;;  %v1152_v38 = vrot.slane %v1150_v18, 4  ;;  %v1155_v40 = vrot.slane %v1153_v22, 5  ;;  %v593_v41 = vsel %vm14493_vm11, %v585_v57, %v592_v7  ;;  %v293_v6 = vld [vmem:[#allocation2 + $0x9c] sm:$0x1]  ;;  %v430_v7 = vld [vmem:[%s14457_s29 + $0x58] sm:$0xf] }
  0x71   : > { %v14740_v37 = vld [vmem:[#allocation2 + $0x74] sm:$0x1]  ;;  %v1161_v42 = vrot.slane %v1159_v29, 5  ;;  %v1165_v43 = vrot.slane %v1163_v33, 4  ;;  %v820_v48 = vsel %vm14445_vm7, %v584_v63, %v819_v17  ;;  %822 = vst.msk [vmem:[#allocation2 + $0x7c] sm:$0xf] %vm376_vm6, %v593_v41  ;;  %v601_v11 = vor.u32 %v599_v4, %v598_v50 }
  0x72   : > { %v1169_v47 = vshll.u32 %v14740_v37, 16  ;;  %12948 = vmatprep.mubr.msk.bf16.mxu0 %vm1420_vm12, %v11783_v36  ;;  %v1156_v49 = vor.u32 %v1155_v40, %v1152_v38  ;;  %821 = vst [vmem:[#allocation2 + $0x78] sm:$0xf] %v820_v48  ;;  %v14749_v52 = vrot.slane %v604_v10, 7  ;;  %v613_v53 = vshrl.u32 %v428_v13, 16 }
  0x73   : > { %v1166_v54 = vor.u32 %v1165_v43, %v1161_v42  ;;  %v826_v56 = vld [vmem:[#allocation2 + $0x84] sm:$0xf]  ;;  %v616_v57 = vshll.u32 %v428_v13, 16  ;;  %v621_v59 = vshrl.u32 %v429_v25, 16  ;;  %v602_v18 = vrot.slane %v598_v50, 4 }
  0x74   : > { %v1171_v55 = vrot.slane %v1169_v47, 5  ;;  %v1157_v63 = vrot.slane %v1156_v49, 4  ;;  %v609_v22 = vor.u32 %v607_v34, %v14749_v52  ;;  %v431_v17 = vld [vmem:[%s14457_s29 + $0x5c] sm:$0xf]  ;;  %v615_v29 = vrot.slane %v613_v53, 7 }
  0x75   : > { %v1167_v26 = vrot.slane %v1166_v54, 4  ;;  %v14754_v9 = vrot.slane %v621_v59, 7  ;;  %v833_v10 = vld [vmem:[#allocation2 + $0x90] sm:$0xf]  ;;  %v296_v33 = vld [vmem:[#allocation2 + $0xa8] sm:$0x1]  ;;  %v827_v4 = vsel %vm14445_vm7, %v601_v11, %v826_v56  ;;  %v11811_v41 = vcombine.low %v14497_v1, %v14461_v27 }
  0x76   : > { %v1162_v13 = vsel %vm14507_vm13, %v1157_v63, %v1161_v42  ;;  %v610_v36 = vsel %vm14493_vm11, %v602_v18, %v609_v22  ;;  %v624_v38 = vshll.u32 %v429_v25, 16  ;;  %v432_v40 = vld [vmem:[%s14457_s29 + $0x60] sm:$0xf]  ;;  %828 = vst [vmem:[#allocation2 + $0x84] sm:$0xf] %v827_v4  ;;  %v618_v43 = vor.u32 %v616_v57, %v615_v29 }
  0x77   : > { %v1172_v34 = vsel %vm14507_vm13, %v1167_v26, %v1171_v55  ;;  %829 = vst.msk [vmem:[#allocation2 + $0x88] sm:$0xf] %vm376_vm6, %v610_v36  ;;  %v619_v47 = vrot.slane %v615_v29, 4  ;;  %v294_v49 = vsel %vm14401_vm3, 0, %v293_v6  ;;  %v630_v25 = vshrl.u32 %v430_v7, 16 }
  0x78   : > { %v11784_v42 = vcombine.low %v1162_v13, %v1172_v34  ;;  %v626_v48 = vor.u32 %v624_v38, %v14754_v9  ;;  %v433_v50 = vld [vmem:[%s14457_s29 + $0x64] sm:$0xf]  ;;  %v834_v53 = vsel %vm14445_vm7, %v618_v43, %v833_v10  ;;  %295 = vst [vmem:[#allocation2 + $0x9c] sm:$0x1] %v294_v49  ;;  %v633_v54 = vshll.u32 %v430_v7, 16 }
  0x79   : > { %v638_v27 = vshrl.u32 %v431_v17, 16  ;;  %v641_v1 = vshll.u32 %v431_v17, 16  ;;  %v299_v55 = vld [vmem:[#allocation2 + $0xb4] sm:$0x1]  ;;  %835 = vst [vmem:[#allocation2 + $0x90] sm:$0xf] %v834_v53  ;;  %v11813_v4 = vcombine.low %v14536_v0, %v14538_v3 }
  0x7a   : > { %12949 = vmatmul.mubr.msk.bf16.gmra.mrb[16].mxu0 %vm1420_vm12, %v11784_v42  ;;  %v627_v56 = vsel %vm14493_vm11, %v619_v47, %v626_v48  ;;  %v632_v57 = vrot.slane %v630_v25, 7  ;;  %v297_v59 = vsel %vm14401_vm3, 0, %v296_v33  ;;  %v434_v6 = vld [vmem:[%s14457_s29 + $0x68] sm:$0xf]  ;;  %v647_v63 = vshrl.u32 %v432_v40, 16 }
  0x7b   : > { %12970 = vmatprep.mubr.msk.bf16.mxu0 %vm1420_vm12, %v11811_v41  ;;  %836 = vst.msk [vmem:[#allocation2 + $0x94] sm:$0xf] %vm376_vm6, %v627_v56  ;;  %v14782_v7 = vrot.slane %v638_v27, 7  ;;  %298 = vst [vmem:[#allocation2 + $0xa8] sm:$0x1] %v297_v59  ;;  %v655_v11 = vshrl.u32 %v433_v50, 16 }
  0x7c   : > { %v636_v18 = vrot.slane %v632_v57, 4  ;;  %v650_v22 = vshll.u32 %v432_v40, 16  ;;  %v658_v17 = vshll.u32 %v433_v50, 16  ;;  %v300_v26 = vsel %vm14401_vm3, 0, %v299_v55  ;;  %v435_v38 = vld [vmem:[%s14457_s29 + $0x6c] sm:$0xf] }
  0x7d   : > { %v635_v29 = vor.u32 %v633_v54, %v632_v57  ;;  %v643_v10 = vor.u32 %v641_v1, %v14782_v7  ;;  %v649_v33 = vrot.slane %v647_v63, 7  ;;  %v14787_v13 = vrot.slane %v655_v11, 7  ;;  %301 = vst [vmem:[#allocation2 + $0xb4] sm:$0x1] %v300_v26  ;;  %v302_v49 = vld [vmem:[#allocation2 + $0xc0] sm:$0x1] }
  0x7e   : > { %v2273_v36 = vsel %vm1475_vm0, %v14590_v30, 0  ;;  %v664_v40 = vshrl.u32 %v434_v6, 16  ;;  %v667_v30 = vshll.u32 %v434_v6, 16  ;;  %v14803_v0 = vld [vmem:[%s18267_s1 + $0xc] sm:$0xf]  ;;  %v672_v1 = vshrl.u32 %v435_v38, 16 }
  0x7f   : > { %v644_v34 = vsel %vm14493_vm11, %v636_v18, %v643_v10  ;;  %v840_v41 = vld [vmem:[#allocation2 + $0x9c] sm:$0xf]  ;;  %v652_v43 = vor.u32 %v650_v22, %v649_v33  ;;  %v653_v47 = vrot.slane %v649_v33, 4  ;;  %v660_v42 = vor.u32 %v658_v17, %v14787_v13  ;;  %v436_v50 = vld [vmem:[%s14457_s29 + $0x70] sm:$0xf] }
  0x80   : > { %v841_v48 = vsel %vm14445_vm7, %v635_v29, %v840_v41  ;;  %843 = vst.msk [vmem:[#allocation2 + $0xa0] sm:$0xf] %vm376_vm6, %v644_v34  ;;  %v437_v53 = vld [vmem:[%s14457_s29 + $0x74] sm:$0xf]  ;;  %v666_v27 = vrot.slane %v664_v40, 7  ;;  %v675_v55 = vshll.u32 %v435_v38, 16 }
  0x81   : > { %842 = vst [vmem:[#allocation2 + $0x9c] sm:$0xf] %v841_v48  ;;  %v661_v3 = vsel %vm14493_vm11, %v653_v47, %v660_v42  ;;  %v438_v57 = vld [vmem:[%s14457_s29 + $0x78] sm:$0xf]  ;;  %v303_v63 = vsel %vm14401_vm3, 0, %v302_v49  ;;  %v681_v11 = vshrl.u32 %v436_v50, 16 }
  0x82   : > { %12971 = vmatmul.mubr.msk.bf16.vlgmr.msra.gmra.mrb[0].mxu0 %vm1420_vm12, %v11812_v35  ;;  %v847_v25 = vld [vmem:[#allocation2 + $0xa8] sm:$0xf]  ;;  %850 = vst.msk [vmem:[#allocation2 + $0xac] sm:$0xf] %vm376_vm6, %v661_v3  ;;  %v11815_v35 = vcombine.low %v14575_v12, %v14598_v46  ;;  %v669_v59 = vor.u32 %v667_v30, %v666_v27  ;;  %v670_v6 = vrot.slane %v666_v27, 4  ;;  %v14826_v18 = vrot.slane %v672_v1, 7 }
  0x83   : > { %13007 = vmatpush3.bf16.msra.mxu0 %v2273_v36  ;;  %12974 = vmatprep.mubr.msk.bf16.mxu0 %vm1420_vm12, %v11813_v4  ;;  %v848_v54 = vsel %vm14445_vm7, %v652_v43, %v847_v25  ;;  %304 = vst [vmem:[#allocation2 + $0xc0] sm:$0x1] %v303_v63  ;;  %v684_v32 = vshll.u32 %v436_v50, 16  ;;  %v689_v45 = vshrl.u32 %v437_v53, 16  ;;  %v692_v12 = vshll.u32 %v437_v53, 16 }
  0x84   : > { %849 = vst [vmem:[#allocation2 + $0xa8] sm:$0xf] %v848_v54  ;;  %v854_v56 = vld [vmem:[#allocation2 + $0xb4] sm:$0xf]  ;;  %14128 = vmatprep.subr.msk.bf16.mxu0 %vm1475_vm0, %v14803_v0  ;;  %v683_v22 = vrot.slane %v681_v11, 7  ;;  %v306_v17 = vsel %vm14401_vm3, 0, %v305_v28  ;;  %v677_v29 = vor.u32 %v675_v55, %v14826_v18  ;;  %v11816_v3 = vcombine.low %v14616_v23, %v14631_v44 }
  0x85   : > { %v855_v46 = vsel %vm14445_vm7, %v669_v59, %v854_v56  ;;  %v698_v26 = vshrl.u32 %v438_v57, 16  ;;  %v14833_v10 = vrot.slane %v689_v45, 7  ;;  %307 = vst [vmem:[#allocation2 + $0xcc] sm:$0x1] %v306_v17  ;;  %v701_v33 = vshll.u32 %v438_v57, 16 }
  0x86   : > { %856 = vst [vmem:[#allocation2 + $0xb4] sm:$0xf] %v855_v46  ;;  %v687_v36 = vrot.slane %v683_v22, 4  ;;  %v678_v38 = vsel %vm14493_vm11, %v670_v6, %v677_v29  ;;  %v686_v40 = vor.u32 %v684_v32, %v683_v22  ;;  %v439_v34 = vld [vmem:[%s14457_s29 + $0x7c] sm:$0xf]  ;;  %v11817_v54 = vcombine.low %v14644_v14, %v14646_v15 }
  0x87   : > { %v700_v4 = vrot.slane %v698_v26, 7  ;;  %857 = vst.msk [vmem:[#allocation2 + $0xb8] sm:$0xf] %vm376_vm6, %v678_v38  ;;  %v694_v41 = vor.u32 %v692_v12, %v14833_v10  ;;  %v706_v48 = vshrl.u32 %v439_v34, 16  ;;  %v14255_v30 = vld [vmem:[#allocation2 + $0x10] sm:$0xf]  ;;  %v11818_v63 = vcombine.low %v14664_v61, %v14666_v62 }
  0x88   : > { %v2046_v49 = vrot.slane %v14255_v30, 5  ;;  %v709_v50 = vshll.u32 %v439_v34, 16  ;;  %v1981_v53 = vld [vmem:[#allocation2 + $0xc] sm:$0xe]  ;;  %vm2035_vm15 = vcmask 1046532   ;;  %v11819_v11 = vcombine.low %v14686_v51, %v14698_v19 }
  0x89   : > { %v703_v43 = vor.u32 %v701_v33, %v700_v4  ;;  %v695_v47 = vsel %vm14493_vm11, %v687_v36, %v694_v41  ;;  %v704_v27 = vrot.slane %v700_v4, 4  ;;  %v14851_v28 = vrot.slane %v706_v48, 7  ;;  %vm14856_vm2 = vmor %vm2034_vm14, %vm2035_vm15  ;;  %v14881_v32 = vld [vmem:[#allocation2 + $0x7c] sm:$0xf]  ;;  %v895_v45 = vld [vmem:[#allocation2 + $0x78] sm:$0xf] }
  0x8a   : > { %12975 = vmatmul.mubr.msk.bf16.gmra.mrb[4].mxu0 %vm1420_vm12, %v11814_v24  ;;  %v861_v42 = vld [vmem:[#allocation2 + $0xc0] sm:$0xf]  ;;  %864 = vst.msk [vmem:[#allocation2 + $0xc4] sm:$0xf] %vm376_vm6, %v695_v47  ;;  %v11848_v14 = vrot.slane %v1981_v53, 9  ;;  %v2048_v15 = vrot.slane %v2046_v49, 4  ;;  %v11820_v12 = vcombine.low %v14725_v39, %v14731_v16  ;;  %v11821_v22 = vcombine.low %v895_v45, %v14881_v32 }
  0x8b   : > { %12978 = vmatprep.mubr.msk.bf16.mxu0 %vm1420_vm12, %v11815_v35  ;;  %v862_v25 = vsel %vm14445_vm7, %v686_v40, %v861_v42  ;;  %v14256_v35 = vld [vmem:[#allocation2 + $0x14] sm:$0x1]  ;;  %v711_v44 = vor.u32 %v709_v50, %v14851_v28  ;;  %v1988_v46 = vld [vmem:[#allocation2 + $0x60] sm:$0xe]  ;;  %v1989_v17 = vld [vmem:[#allocation2 + $0x6c] sm:$0xe] }
  0x8c   : > { %863 = vst [vmem:[#allocation2 + $0xc0] sm:$0xf] %v862_v25  ;;  %v868_v24 = vld [vmem:[#allocation2 + $0xcc] sm:$0xf]  ;;  %v2049_v1 = vrot.slane %v14256_v35, 5  ;;  %v14867_v57 = vsel %vm14856_vm2, %v11848_v14, %v2046_v49  ;;  %v11855_v62 = vrot.slane %v1988_v46, 9 }
  0x8d   : > { %v869_v23 = vsel %vm14445_vm7, %v703_v43, %v868_v24  ;;  %v712_v56 = vsel %vm14493_vm11, %v704_v27, %v711_v44  ;;  %v346_v26 = vld [vmem:[#allocation2 + $0x80] sm:$0x1]  ;;  %v897_v29 = vld [vmem:[#allocation2 + $0x84] sm:$0xf]  ;;  %v14886_v61 = vld [vmem:[#allocation2 + $0x88] sm:$0xf] }
  0x8e   : > { %870 = vst [vmem:[#allocation2 + $0xcc] sm:$0xf] %v869_v23  ;;  %871 = vst.msk [vmem:[#allocation2 + $0xd0] sm:$0xf] %vm376_vm6, %v712_v56  ;;  %v14871_v59 = vsel %vm14856_vm2, %v2048_v15, %v2049_v1  ;;  %v2095_v51 = vrot.slane %v14698_v19, 5  ;;  %v2098_v34 = vrot.slane %v14705_v31, 5  ;;  %v11822_v49 = vcombine.low %v897_v29, %v14886_v61 }
  0x8f   : > { %v11866_v6 = vcombine.low %v14867_v57, %v14871_v59  ;;  %v899_v33 = vld [vmem:[#allocation2 + $0x90] sm:$0xf]  ;;  %v349_v36 = vld [vmem:[#allocation2 + $0x8c] sm:$0x1]  ;;  %v352_v4 = vld [vmem:[#allocation2 + $0x98] sm:$0x1] }
  0x90   : > { %v14891_v38 = vld [vmem:[#allocation2 + $0x94] sm:$0xf]  ;;  %v14895_v39 = vsel %vm14856_vm2, %v11855_v62, %v2095_v51  ;;  %v2097_v40 = vrot.slane %v2095_v51, 4  ;;  %v11856_v41 = vrot.slane %v1989_v17, 9  ;;  %v2102_v43 = vrot.slane %v14731_v16, 5 }
  0x91   : > { %v2105_v19 = vrot.slane %v14740_v37, 5  ;;  %v347_v42 = vsel %vm14410_vm5, 0, %v346_v26  ;;  %v355_v48 = vld [vmem:[#allocation2 + $0xa4] sm:$0x1]  ;;  %v358_v30 = vld [vmem:[#allocation2 + $0xb0] sm:$0x1]  ;;  %v11823_v37 = vcombine.low %v899_v33, %v14891_v38 }
  0x92   : > { %12979 = vmatmul.mubr.msk.bf16.gmra.mrb[8].mxu0 %vm1420_vm12, %v11816_v3  ;;  %v14902_v47 = vsel %vm14856_vm2, %v2097_v40, %v2098_v34  ;;  %v14911_v31 = vsel %vm14856_vm2, %v11856_v41, %v2102_v43  ;;  %v2104_v16 = vrot.slane %v2102_v43, 4  ;;  %348 = vst [vmem:[#allocation2 + $0x80] sm:$0x1] %v347_v42  ;;  %v350_v25 = vsel %vm14410_vm5, 0, %v349_v36  ;;  %v361_v53 = vld [vmem:[#allocation2 + $0xbc] sm:$0x1] }
  0x93   : > { %12982 = vmatprep.mubr.msk.bf16.mxu0 %vm1420_vm12, %v11817_v54  ;;  %v11873_v3 = vcombine.low %v14895_v39, %v14902_v47  ;;  %v353_v50 = vsel %vm14410_vm5, 0, %v352_v4  ;;  %351 = vst [vmem:[#allocation2 + $0x8c] sm:$0x1] %v350_v25  ;;  %v364_v27 = vld [vmem:[#allocation2 + $0xc8] sm:$0x1]  ;;  %v594_v1 = vrot.slane %v14719_v58, 4 }
  0x94   : > { %v14920_v54 = vsel %vm14856_vm2, %v2104_v16, %v2105_v19  ;;  %354 = vst [vmem:[#allocation2 + $0x98] sm:$0x1] %v353_v50  ;;  %v367_v35 = vld [vmem:[#allocation2 + $0xd4] sm:$0x1]  ;;  %v611_v23 = vrot.slane %v14749_v52, 4  ;;  %v356_v14 = vsel %vm14410_vm5, 0, %v355_v48 }
  0x95   : > { %v11874_v24 = vcombine.low %v14911_v31, %v14920_v54  ;;  %v14927_v44 = vld [vmem:[#allocation2 + $0xa0] sm:$0xf]  ;;  %v359_v15 = vsel %vm14410_vm5, 0, %v358_v30  ;;  %v901_v56 = vld [vmem:[#allocation2 + $0x9c] sm:$0xf]  ;;  %v628_v58 = vrot.slane %v14754_v9, 4 }
  0x96   : > { %357 = vst [vmem:[#allocation2 + $0xa4] sm:$0x1] %v356_v14  ;;  %360 = vst [vmem:[#allocation2 + $0xb0] sm:$0x1] %v359_v15  ;;  %v903_v52 = vld [vmem:[#allocation2 + $0xa8] sm:$0xf] }
  0x97   : > { %v645_v45 = vrot.slane %v14782_v7, 4  ;;  %v365_v46 = vsel %vm14410_vm5, 0, %v364_v27  ;;  %v662_v17 = vrot.slane %v14787_v13, 4  ;;  %v368_v9 = vsel %vm14410_vm5, 0, %v367_v35  ;;  %v14257_v13 = vld [vmem:[#allocation2 + $0x4] sm:$0xf] }
  0x98   : > { %366 = vst [vmem:[#allocation2 + $0xc8] sm:$0x1] %v365_v46  ;;  %v679_v7 = vrot.slane %v14826_v18, 4  ;;  %v696_v62 = vrot.slane %v14833_v10, 4  ;;  %369 = vst [vmem:[#allocation2 + $0xd4] sm:$0x1] %v368_v9 }
  0x99   : > { %v713_v36 = vrot.slane %v14851_v28, 4  ;;  %v2039_v4 = vrot.slane %v14257_v13, 5  ;;  %v905_v41 = vld [vmem:[#allocation2 + $0xb4] sm:$0xf]  ;;  %v14956_v43 = vld [vmem:[#allocation2 + $0xb8] sm:$0xf] }
  0x9a   : > { %12983 = vmatmul.mubr.msk.bf16.gmra.mrb[12].mxu0 %vm1420_vm12, %v11818_v63  ;;  %v14934_v63 = vld [vmem:[#allocation2 + $0xac] sm:$0xf]  ;;  %v14959_v18 = vld [vmem:[#allocation2 + $0xc4] sm:$0xf]  ;;  %v907_v28 = vld [vmem:[#allocation2 + $0xc0] sm:$0xf]  ;;  %v11826_v25 = vcombine.low %v905_v41, %v14956_v43 }
  0x9b   : > { %12986 = vmatprep.mubr.msk.bf16.mxu0 %vm1420_vm12, %v11819_v11  ;;  %v362_v11 = vsel %vm14410_vm5, 0, %v361_v53  ;;  %v11825_v29 = vcombine.low %v903_v52, %v14934_v63  ;;  %v830_v51 = vld [vmem:[#allocation2 + $0x8c] sm:$0x1]  ;;  %v837_v33 = vld [vmem:[#allocation2 + $0x98] sm:$0x1]  ;;  %v11827_v27 = vcombine.low %v907_v28, %v14959_v18  ;;  %v2041_v15 = vrot.slane %v2039_v4, 4 }
  0x9c   : > { %363 = vst [vmem:[#allocation2 + $0xbc] sm:$0x1] %v362_v11  ;;  %v831_v40 = vsel %vm14401_vm3, %v611_v23, %v830_v51  ;;  %v838_v34 = vsel %vm14401_vm3, %v628_v58, %v837_v33  ;;  %v1980_v42 = vld [vmem:[#allocation2] sm:$0xe]  ;;  %v14976_v58 = vld [vmem:[#allocation2 + $0xd0] sm:$0xf] }
  0x9d   : > { %832 = vst [vmem:[#allocation2 + $0x8c] sm:$0x1] %v831_v40  ;;  %839 = vst [vmem:[#allocation2 + $0x98] sm:$0x1] %v838_v34  ;;  %v844_v10 = vld [vmem:[#allocation2 + $0xa4] sm:$0x1] }
  0x9e   : > { %v851_v19 = vld [vmem:[#allocation2 + $0xb0] sm:$0x1]  ;;  %v845_v48 = vsel %vm14401_vm3, %v645_v45, %v844_v10  ;;  %v11847_v14 = vrot.slane %v1980_v42, 9  ;;  %v14259_v45 = vld [vmem:[#allocation2 + $0x1c] sm:$0xf]  ;;  %v2137_v54 = vrot.slane %v14934_v63, 5 }
  0x9f   : > { %v852_v30 = vsel %vm14401_vm3, %v662_v17, %v851_v19  ;;  %846 = vst [vmem:[#allocation2 + $0xa4] sm:$0x1] %v845_v48  ;;  %v872_v53 = vld [vmem:[#allocation2 + $0xd4] sm:$0x1]  ;;  %v1982_v46 = vld [vmem:[#allocation2 + $0x18] sm:$0xe] }
  0xa0   : > { %853 = vst [vmem:[#allocation2 + $0xb0] sm:$0x1] %v852_v30  ;;  %v873_v35 = vsel %vm14401_vm3, %v713_v36, %v872_v53  ;;  %v2040_v52 = vsel %vm14856_vm2, %v11847_v14, %v2039_v4  ;;  %v308_v17 = vld [vmem:[#allocation2 + $0xd8] sm:$0x1]  ;;  %v14261_v33 = vld [vmem:[#allocation2 + $0x28] sm:$0xf] }
  0xa1   : > { %874 = vst [vmem:[#allocation2 + $0xd4] sm:$0x1] %v873_v35  ;;  %v309_v9 = vsel %vm14401_vm3, 0, %v308_v17  ;;  %v2060_v36 = vrot.slane %v14261_v33, 5  ;;  %v1983_v40 = vld [vmem:[#allocation2 + $0x24] sm:$0xe] }
  0xa2   : > { %12987 = vmatmul.mubr.msk.bf16.gmra.mrb[16].mxu0 %vm1420_vm12, %v11820_v12  ;;  %v823_v12 = vld [vmem:[#allocation2 + $0x80] sm:$0x1]  ;;  %310 = vst [vmem:[#allocation2 + $0xd8] sm:$0x1] %v309_v9  ;;  %v14262_v34 = vld [vmem:[#allocation2 + $0x34] sm:$0xf] }
  0xa3   : > { %12990 = vmatprep.mubr.msk.bf16.mxu0 %vm1420_vm12, %v11821_v22  ;;  %v11824_v22 = vcombine.low %v901_v56, %v14927_v44  ;;  %v824_v26 = vsel %vm14401_vm3, %v594_v1, %v823_v12  ;;  %v14258_v1 = vld [vmem:[#allocation2 + $0x8] sm:$0x1]  ;;  %v909_v56 = vld [vmem:[#allocation2 + $0xcc] sm:$0xf]  ;;  %v2053_v12 = vrot.slane %v14259_v45, 5  ;;  %v2067_v41 = vrot.slane %v14262_v34, 5 }
  0xa4   : > { %825 = vst [vmem:[#allocation2 + $0x80] sm:$0x1] %v824_v26  ;;  %v2042_v23 = vrot.slane %v14258_v1, 5  ;;  %v1984_v10 = vld [vmem:[#allocation2 + $0x30] sm:$0xe]  ;;  %v2671_v19 = vsel %vm1475_vm0, %v14803_v0, 0 }
  0xa5   : > { %v11850_v42 = vrot.slane %v1983_v40, 9  ;;  %v2062_v48 = vrot.slane %v2060_v36, 4  ;;  %v14263_v30 = vld [vmem:[#allocation2 + $0x2c] sm:$0x1]  ;;  %v14998_v35 = vld [vmem:[%s18267_s1 + $0x10] sm:$0xf] }
  0xa6   : > { %v2043_v11 = vsel %vm14856_vm2, %v2041_v15, %v2042_v23  ;;  %v14265_v23 = vld [vmem:[#allocation2 + $0x40] sm:$0xf]  ;;  %v1985_v57 = vld [vmem:[#allocation2 + $0x3c] sm:$0xe]  ;;  %v14266_v59 = vld [vmem:[#allocation2 + $0x4c] sm:$0xf] }
  0xa7   : > { %v11865_v26 = vcombine.low %v2040_v52, %v2043_v11  ;;  %v2061_v0 = vsel %vm14856_vm2, %v11850_v42, %v2060_v36  ;;  %v2074_v14 = vrot.slane %v14265_v23, 5  ;;  %v1986_v52 = vld [vmem:[#allocation2 + $0x48] sm:$0xe]  ;;  %v14269_v33 = vld [vmem:[#allocation2 + $0x58] sm:$0xf] }
  0xa8   : > { %v2088_v36 = vrot.slane %v14269_v33, 5  ;;  %v1987_v40 = vld [vmem:[#allocation2 + $0x54] sm:$0xe]  ;;  %v923_v23 = vld [vmem:[#allocation2 + $0x8c] sm:$0x1]  ;;  %v2139_v33 = vrot.slane %v2137_v54, 4 }
  0xa9   : > { %v2119_v39 = vrot.slane %v923_v23, 5  ;;  %v1993_v31 = vld [vmem:[#allocation2 + $0x9c] sm:$0xe] }
  0xaa   : > { %12991 = vmatmul.mubr.msk.bf16.gmra.mrb[20].mxu0 %vm1420_vm12, %v11822_v49  ;;  %v858_v49 = vld [vmem:[#allocation2 + $0xbc] sm:$0x1] }
  0xab   : > { %12994 = vmatprep.mubr.msk.bf16.mxu0 %vm1420_vm12, %v11823_v37  ;;  %v859_v16 = vsel %vm14401_vm3, %v679_v7, %v858_v49  ;;  %v865_v37 = vld [vmem:[#allocation2 + $0xc8] sm:$0x1]  ;;  %v2055_v7 = vrot.slane %v2053_v12, 4  ;;  %v2063_v49 = vrot.slane %v14263_v30, 5 }
  0xac   : > { %860 = vst [vmem:[#allocation2 + $0xbc] sm:$0x1] %v859_v16  ;;  %v866_v50 = vsel %vm14401_vm3, %v696_v62, %v865_v37  ;;  %v14260_v62 = vld [vmem:[#allocation2 + $0x20] sm:$0x1]  ;;  %v394_v16 = vld [vmem:[#allocation2 + $0xd8] sm:$0xf] }
  0xad   : > { %867 = vst [vmem:[#allocation2 + $0xc8] sm:$0x1] %v866_v50  ;;  %v2056_v51 = vrot.slane %v14260_v62, 5  ;;  %v11851_v37 = vrot.slane %v1984_v10, 9  ;;  %v14264_v50 = vld [vmem:[#allocation2 + $0x38] sm:$0x1]  ;;  %v2064_v1 = vsel %vm14856_vm2, %v2062_v48, %v2063_v49 }
  0xae   : > { %v2070_v53 = vrot.slane %v14264_v50, 5  ;;  %v11868_v11 = vcombine.low %v2061_v0, %v2064_v1  ;;  %v11854_v10 = vrot.slane %v1987_v40, 9  ;;  %v2109_v49 = vrot.slane %v14881_v32, 5 }
  0xaf   : > { %v2057_v4 = vsel %vm14856_vm2, %v2055_v7, %v2056_v51  ;;  %v2068_v15 = vsel %vm14856_vm2, %v11851_v37, %v2067_v41  ;;  %v1990_v37 = vld [vmem:[#allocation2 + $0x78] sm:$0xe]  ;;  %v2116_v0 = vrot.slane %v14886_v61, 5 }
  0xb0   : > { %v2089_v48 = vsel %vm14856_vm2, %v11854_v10, %v2088_v36  ;;  %v11857_v50 = vrot.slane %v1990_v37, 9  ;;  %v2151_v10 = vrot.slane %v14959_v18, 5 }
  0xb2   : > { %12995 = vmatmul.mubr.msk.bf16.gmra.mrb[24].mxu0 %vm1420_vm12, %v11824_v22  ;;  %v11828_v22 = vcombine.low %v909_v56, %v14976_v58  ;;  %v2110_v1 = vsel %vm14856_vm2, %v11857_v50, %v2109_v49 }
  0xb3   : > { %12998 = vmatprep.mubr.msk.bf16.mxu0 %vm1420_vm12, %v11825_v29  ;;  %v11849_v29 = vrot.slane %v1982_v46, 9  ;;  %v2076_v46 = vrot.slane %v2074_v14, 4 }
  0xb5   : > { %v2054_v13 = vsel %vm14856_vm2, %v11849_v29, %v2053_v12  ;;  %v11852_v12 = vrot.slane %v1985_v57, 9  ;;  %v14268_v29 = vld [vmem:[#allocation2 + $0x50] sm:$0x1]  ;;  %v1992_v57 = vld [vmem:[#allocation2 + $0x90] sm:$0xe] }
  0xb6   : > { %v11867_v28 = vcombine.low %v2054_v13, %v2057_v4  ;;  %v2084_v7 = vrot.slane %v14268_v29, 5  ;;  %v11859_v47 = vrot.slane %v1992_v57, 9  ;;  %v11860_v29 = vrot.slane %v1993_v31, 9  ;;  %v14183_v31 = vld [vmem:[#allocation2 + $0x54] sm:$0xff]  }
  0xb7   : > { %v2075_v62 = vsel %vm14856_vm2, %v11852_v12, %v2074_v14  ;;  %v1991_v14 = vld [vmem:[#allocation2 + $0x84] sm:$0xe] }
  0xba   : > { %12999 = vmatmul.mubr.msk.bf16.gmra.mrb[28].mxu0 %vm1420_vm12, %v11826_v25  ;;  %v2069_v25 = vrot.slane %v2067_v41, 4 }
  0xbb   : > { %13002 = vmatprep.mubr.msk.bf16.mxu0 %vm1420_vm12, %v11827_v27  ;;  %v395_v27 = vsel %vm14445_vm7, 0, %v394_v16  ;;  %v922_v16 = vld [vmem:[#allocation2 + $0x80] sm:$0x1] }
  0xbc   : > { %396 = vst [vmem:[#allocation2 + $0xd8] sm:$0xf] %v395_v27  ;;  %v2071_v56 = vsel %vm14856_vm2, %v2069_v25, %v2070_v53  ;;  %v2111_v53 = vrot.slane %v2109_v49, 4  ;;  %v2112_v27 = vrot.slane %v922_v16, 5 }
  0xbd   : > { %v11869_v45 = vcombine.low %v2068_v15, %v2071_v56  ;;  %v2123_v15 = vrot.slane %v14891_v38, 5  ;;  %v924_v56 = vld [vmem:[#allocation2 + $0x98] sm:$0x1] }
  0xbe   : > { %v2113_v32 = vsel %vm14856_vm2, %v2111_v53, %v2112_v27  ;;  %v2158_v53 = vrot.slane %v14976_v58, 5 }
  0xbf   : > { %v2124_v12 = vsel %vm14856_vm2, %v11859_v47, %v2123_v15  ;;  %v14179_v47 = vld [vmem:[#allocation2 + $0x24] sm:$0xff]  }
  0xc2   : > { %13003 = vmatmul.mubr.msk.bf16.gmra.mrb[32].mxu0 %vm1420_vm12, %v11828_v22  ;;  %v14267_v22 = vld [vmem:[#allocation2 + $0x44] sm:$0x1] }
  0xc3   : > { %13008 = vmatprep.mubr.msk.bf16.mxu0 %vm1420_vm12, %v11865_v26  ;;  %v2077_v17 = vrot.slane %v14267_v22, 5  ;;  %v11853_v26 = vrot.slane %v1986_v52, 9  ;;  %v2118_v52 = vrot.slane %v2116_v0, 4  ;;  %v925_v22 = vld [vmem:[#allocation2 + $0xa4] sm:$0x1] }
  0xc5   : > { %v2078_v51 = vsel %vm14856_vm2, %v2076_v46, %v2077_v17  ;;  %v2120_v38 = vsel %vm14856_vm2, %v2118_v52, %v2119_v39  ;;  %v1994_v17 = vld [vmem:[#allocation2 + $0xa8] sm:$0xe]  ;;  %v14177_v52 = vld [vmem:[#allocation2 + $0xc] sm:$0xff]   ;;  %v14178_v39 = vld [vmem:[#allocation2 + $0x18] sm:$0xff]  }
  0xc6   : > { %v11870_v34 = vcombine.low %v2075_v62, %v2078_v51  ;;  %v2133_v62 = vrot.slane %v925_v22, 5  ;;  %v11861_v51 = vrot.slane %v1994_v17, 9  ;;  %v14186_v17 = vld [vmem:[#allocation2 + $0x78] sm:$0xff]  }
  0xca   : > { %13009 = vmatmul.mubr.msk.bf16.vlgmr.msra.gmra.mrb[0].mxu0 %vm1420_vm12, %v11866_v6  ;;  %v2081_v6 = vrot.slane %v14266_v59, 5  ;;  %v11875_v59 = vcombine.low %v2110_v1, %v2113_v32  ;;  %v929_v1 = vld [vmem:[#allocation2 + $0xd4] sm:$0x1]  ;;  %v1997_v32 = vld [vmem:[#allocation2 + $0xcc] sm:$0xe] }
  0xcb   : > { %13045 = vmatpush3.bf16.msra.mxu0 %v2671_v19  ;;  %13012 = vmatprep.mubr.msk.bf16.mxu0 %vm1420_vm12, %v11867_v28  ;;  %v2090_v19 = vrot.slane %v2088_v36, 4  ;;  %v14270_v28 = vld [vmem:[#allocation2 + $0x5c] sm:$0x1]  ;;  %v2161_v57 = vrot.slane %v929_v1, 5  ;;  %v14190_v1 = vld [vmem:[#allocation2 + $0xa8] sm:$0xff]  }
  0xcc   : > { %14129 = vmatprep.subr.msk.bf16.mxu0 %vm1475_vm0, %v14998_v35  ;;  %v2083_v9 = vrot.slane %v2081_v6, 4  ;;  %v2082_v13 = vsel %vm14856_vm2, %v11853_v26, %v2081_v6  ;;  %v2091_v42 = vrot.slane %v14270_v28, 5  ;;  %v11858_v6 = vrot.slane %v1991_v14, 9  ;;  %v1996_v28 = vld [vmem:[#allocation2 + $0xc0] sm:$0xe] }
  0xcd   : > { %v11863_v37 = vrot.slane %v1996_v28, 9 }
  0xce   : > { %v2085_v4 = vsel %vm14856_vm2, %v2083_v9, %v2084_v7  ;;  %v2092_v30 = vsel %vm14856_vm2, %v2090_v19, %v2091_v42  ;;  %v2117_v61 = vsel %vm14856_vm2, %v11858_v6, %v2116_v0  ;;  %v928_v19 = vld [vmem:[#allocation2 + $0xc8] sm:$0x1] }
  0xcf   : > { %v11871_v41 = vcombine.low %v2082_v13, %v2085_v4  ;;  %v11872_v25 = vcombine.low %v2089_v48, %v2092_v30  ;;  %v11876_v26 = vcombine.low %v2117_v61, %v2120_v38  ;;  %v2144_v13 = vrot.slane %v14956_v43, 5  ;;  %v370_v61 = vld [vmem:[#allocation2 + $0xe0] sm:$0x1] }
  0xd0   : > { %v2138_v4 = vsel %vm14856_vm2, %v11861_v51, %v2137_v54  ;;  %v2154_v43 = vrot.slane %v928_v19, 5  ;;  %v2152_v27 = vsel %vm14856_vm2, %v11863_v37, %v2151_v10  ;;  %v371_v38 = vsel %vm14410_vm5, 0, %v370_v61  ;;  %v14184_v54 = vld [vmem:[#allocation2 + $0x60] sm:$0xff]   ;;  %v15124_v37 = vld [vmem:[#allocation2 + $0x28] sm:$0xf] }
  0xd1   : > { %v2146_v49 = vrot.slane %v2144_v13, 4  ;;  %372 = vst [vmem:[#allocation2 + $0xe0] sm:$0x1] %v371_v38 }
  0xd2   : > { %13013 = vmatmul.mubr.msk.bf16.gmra.mrb[4].mxu0 %vm1420_vm12, %v11868_v11  ;;  %v2126_v11 = vrot.slane %v924_v56, 5  ;;  %v2160_v56 = vrot.slane %v2158_v53, 4 }
  0xd3   : > { %13016 = vmatprep.mubr.msk.bf16.mxu0 %vm1420_vm12, %v11869_v45  ;;  %v2130_v45 = vrot.slane %v14927_v44, 5 }
  0xd5   : > { %v2132_v7 = vrot.slane %v2130_v45, 4  ;;  %v2131_v36 = vsel %vm14856_vm2, %v11860_v29, %v2130_v45  ;;  %v14180_v45 = vld [vmem:[#allocation2 + $0x30] sm:$0xff]  }
  0xd6   : > { %v15111_v29 = vld [vmem:[#allocation2 + $0x10] sm:$0xf] }
  0xd7   : > { %v2134_v63 = vsel %vm14856_vm2, %v2132_v7, %v2133_v62  ;;  %v2889_v7 = vld [vmem:[#allocation2 + $0x18] sm:$0xf] }
  0xd8   : > { %v11878_v42 = vcombine.low %v2131_v36, %v2134_v63  ;;  %v15116_v36 = vld [vmem:[#allocation2 + $0x1c] sm:$0xf]  ;;  %v2965_v63 = vshrl.u32 %v2889_v7, 16 }
  0xd9   : > { %v2978_v19 = vshrl.u32 %v15116_v36, 16 }
  0xda   : > { %13017 = vmatmul.mubr.msk.bf16.gmra.mrb[8].mxu0 %vm1420_vm12, %v11870_v34  ;;  %v927_v34 = vld [vmem:[#allocation2 + $0xbc] sm:$0x1] }
  0xdb   : > { %13020 = vmatprep.mubr.msk.bf16.mxu0 %vm1420_vm12, %v11871_v41  ;;  %v1995_v41 = vld [vmem:[#allocation2 + $0xb4] sm:$0xe]  ;;  %v2147_v16 = vrot.slane %v927_v34, 5 }
  0xdc   : > { %v11862_v30 = vrot.slane %v1995_v41, 9 }
  0xdd   : > { %v2148_v18 = vsel %vm14856_vm2, %v2146_v49, %v2147_v16  ;;  %v15121_v49 = vld [vmem:[#allocation2 + $0x14] sm:$0x1]  ;;  %v2892_v16 = vld [vmem:[#allocation2 + $0x24] sm:$0xf] }
  0xde   : > { %v2145_v50 = vsel %vm14856_vm2, %v11862_v30, %v2144_v13  ;;  %v2968_v13 = vshll.u32 %v2889_v7, 16  ;;  %v14192_v7 = vld [vmem:[#allocation2 + $0xc0] sm:$0xff]  }
  0xdf   : > { %v11880_v23 = vcombine.low %v2145_v50, %v2148_v18 }
  0xe0   : > { %v2970_v30 = vrot.slane %v2968_v13, 5  ;;  %v15154_v13 = vld [vmem:[#allocation2 + $0x38] sm:$0x1] }
  0xe2   : > { %13021 = vmatmul.mubr.msk.bf16.gmra.mrb[12].mxu0 %vm1420_vm12, %v11872_v25  ;;  %v2153_v25 = vrot.slane %v2151_v10, 4  ;;  %v2974_v10 = vshll.u32 %v15116_v36, 16 }
  0xe3   : > { %13024 = vmatprep.mubr.msk.bf16.mxu0 %vm1420_vm12, %v11873_v3  ;;  %v2125_v3 = vrot.slane %v2123_v15, 4  ;;  %v11864_v15 = vrot.slane %v1997_v32, 9  ;;  %v2989_v32 = vshrl.u32 %v2892_v16, 16 }
  0xe4   : > { %v2155_v0 = vsel %vm14856_vm2, %v2153_v25, %v2154_v43  ;;  %v15126_v25 = vrot.slane %v2974_v10, 5  ;;  %v2980_v43 = vrot.slane %v2978_v19, 4 }
  0xe5   : > { %v2127_v46 = vsel %vm14856_vm2, %v2125_v3, %v2126_v11  ;;  %v11881_v14 = vcombine.low %v2152_v27, %v2155_v0  ;;  %v2159_v58 = vsel %vm14856_vm2, %v11864_v15, %v2158_v53  ;;  %v3482_v3 = vsel %vm1475_vm0, %v14998_v35, 0  ;;  %v15094_v11 = vld [vmem:[%s18267_s1 + $0x14] sm:$0xf]  ;;  %v14181_v35 = vld [vmem:[#allocation2 + $0x3c] sm:$0xff]  }
  0xe6   : > { %v11877_v9 = vcombine.low %v2124_v12, %v2127_v46  ;;  %v398_v12 = vld [vmem:[#allocation2 + $0xe0] sm:$0x1]  ;;  %v14182_v46 = vld [vmem:[#allocation2 + $0x48] sm:$0xff]   ;;  %v2960_v53 = vshll.u32 %v15121_v49, 16  ;;  %v3002_v15 = vshrl.u32 %v15124_v37, 16 }
  0xe7   : > { %v399_v22 = vsel %vm14401_vm3, 0, %v398_v12  ;;  %v15129_v27 = vld [vmem:[#allocation2 + $0x20] sm:$0x1] }
  0xe8   : > { %400 = vst [vmem:[#allocation2 + $0xe0] sm:$0x1] %v399_v22 }
  0xea   : > { %13025 = vmatmul.mubr.msk.bf16.gmra.mrb[16].mxu0 %vm1420_vm12, %v11874_v24  ;;  %v926_v24 = vld [vmem:[#allocation2 + $0xb0] sm:$0x1] }
  0xeb   : > { %13028 = vmatprep.mubr.msk.bf16.mxu0 %vm1420_vm12, %v11875_v59  ;;  %v2140_v44 = vrot.slane %v926_v24, 5  ;;  %v2162_v59 = vsel %vm14856_vm2, %v2160_v56, %v2161_v57  ;;  %v14185_v24 = vld [vmem:[#allocation2 + $0x6c] sm:$0xff]   ;;  %v14191_v56 = vld [vmem:[#allocation2 + $0xb4] sm:$0xff]   ;;  %v2981_v57 = vor.u32 %v2980_v43, %v15126_v25 }
  0xec   : > { %v11882_v6 = vcombine.low %v2159_v58, %v2162_v59  ;;  %v2984_v58 = vshll.u32 %v15129_v27, 16  ;;  %v2895_v59 = vld [vmem:[#allocation2 + $0x30] sm:$0xf] }
  0xed   : > { %v2141_v40 = vsel %vm14856_vm2, %v2139_v33, %v2140_v44  ;;  %v2950_v33 = vshll.u32 %v15111_v29, 16  ;;  %v2954_v44 = vshrl.u32 %v15111_v29, 16  ;;  %v3013_v12 = vshrl.u32 %v2895_v59, 16 }
  0xee   : > { %v11879_v48 = vcombine.low %v2138_v4, %v2141_v40  ;;  %v14188_v4 = vld [vmem:[#allocation2 + $0x90] sm:$0xff]   ;;  %v14189_v40 = vld [vmem:[#allocation2 + $0x9c] sm:$0xff]   ;;  %v2982_v22 = vrot.slane %v2981_v57, 4 }
  0xef   : > { %v2952_v28 = vrot.slane %v2950_v33, 5 }
  0xf2   : > { %13029 = vmatmul.mubr.msk.bf16.gmra.mrb[20].mxu0 %vm1420_vm12, %v11876_v26  ;;  %v14187_v26 = vld [vmem:[#allocation2 + $0x84] sm:$0xff]  }
  0xf3   : > { %13032 = vmatprep.mubr.msk.bf16.mxu0 %vm1420_vm12, %v11877_v9  ;;  %v2886_v9 = vld [vmem:[#allocation2 + $0xc] sm:$0xf] }
  0xf4   : > { %v2941_v62 = vshrl.u32 %v2886_v9, 16  ;;  %v2944_v51 = vshll.u32 %v2886_v9, 16  ;;  %v15147_v9 = vld [vmem:[#allocation2 + $0x40] sm:$0xf] }
  0xf6   : > { %v2943_v34 = vrot.slane %v2941_v62, 4  ;;  %v2946_v41 = vrot.slane %v2944_v51, 5  ;;  %v14193_v62 = vld [vmem:[#allocation2 + $0xcc] sm:$0xff]  }
  0xf8   : > { %v2947_v50 = vor.u32 %v2946_v41, %v2943_v34 }
  0xfa   : > { %13033 = vmatmul.mubr.msk.bf16.gmra.mrb[24].mxu0 %vm1420_vm12, %v11878_v42  ;;  %v2956_v42 = vrot.slane %v2954_v44, 4 }
  0xfb   : > { %13036 = vmatprep.mubr.msk.bf16.mxu0 %vm1420_vm12, %v11879_v48  ;;  %v2967_v48 = vrot.slane %v2965_v63, 4 }
  0xfc   : > { %v2957_v18 = vor.u32 %v2956_v42, %v2952_v28  ;;  %v3046_v42 = vshll.u32 %v15147_v9, 16 }
  0xfd   : > { %v2971_v0 = vor.u32 %v2970_v30, %v2967_v48  ;;  %v15163_v30 = vsel %vm1475_vm0, %v15094_v11, 0 }
 0x102   : > { %13037 = vmatmul.mubr.msk.bf16.gmra.mrb[28].mxu0 %vm1420_vm12, %v11880_v23  ;;  %v2992_v23 = vshll.u32 %v2892_v16, 16  ;;  %v3050_v16 = vshrl.u32 %v15147_v9, 16 }
 0x103   : > { %13040 = vmatprep.mubr.msk.bf16.mxu0 %vm1420_vm12, %v11881_v14  ;;  %v2998_v14 = vshll.u32 %v15124_v37, 16 }
 0x104   : > { %v2994_v61 = vrot.slane %v2992_v23, 5 }
 0x105   : > { %v15136_v38 = vrot.slane %v2998_v14, 5  ;;  %v2904_v14 = vld [vmem:[#allocation2 + $0x54] sm:$0xf] }
 0x10a   : > { %13041 = vmatmul.mubr.msk.bf16.gmra.mrb[32].mxu0 %vm1420_vm12, %v11882_v6  ;;  %v2948_v6 = vrot.slane %v2947_v50, 4 }
 0x10b   : > { %13046 = vmatprep.mubr.msk.bf16.mxu0 %vm1420_vm12, %v14177_v52  ;;  %v2958_v52 = vrot.slane %v2957_v18, 4 }
 0x112   : > { %13047 = vmatmul.mubr.msk.bf16.vlgmr.msra.gmra.mrb[0].mxu0 %vm1420_vm12, %v14178_v39  ;;  %v2962_v39 = vrot.slane %v2960_v53, 5  ;;  %v3032_v53 = vshll.u32 %v15154_v13, 16 }
 0x113   : > { %13083 = vmatpush3.bf16.msra.mxu0 %v3482_v3  ;;  %13050 = vmatprep.mubr.msk.bf16.mxu0 %vm1420_vm12, %v14179_v47  ;;  %v2972_v47 = vrot.slane %v2971_v0, 4  ;;  %v2991_v3 = vrot.slane %v2989_v32, 4  ;;  %v15168_v0 = vld [vmem:[#allocation2 + $0x4c] sm:$0xf] }
 0x114   : > { %14130 = vmatprep.subr.msk.bf16.mxu0 %vm1475_vm0, %v15094_v11 }
 0x115   : > { %v2977_v51 = vsel %vm14507_vm13, %v2972_v47, %v15126_v25  ;;  %v2995_v33 = vor.u32 %v2994_v61, %v2991_v3  ;;  %v2901_v25 = vld [vmem:[#allocation2 + $0x48] sm:$0xf]  ;;  %v3070_v47 = vshll.u32 %v15168_v0, 16  ;;  %v3074_v3 = vshrl.u32 %v15168_v0, 16  ;;  %v14194_v61 = vld [vmem:[#allocation2 + $0xd8] sm:$0xff]  }
 0x117   : > { %v2996_v43 = vrot.slane %v2995_v33, 4 }
 0x11a   : > { %13051 = vmatmul.mubr.msk.bf16.gmra.mrb[4].mxu0 %vm1420_vm12, %v14180_v45  ;;  %v3004_v45 = vrot.slane %v3002_v15, 4  ;;  %v15175_v15 = vld [vmem:[#allocation2 + $0x58] sm:$0xf] }
 0x11b   : > { %13054 = vmatprep.mubr.msk.bf16.mxu0 %vm1420_vm12, %v14181_v35  ;;  %v15139_v35 = vld [vmem:[#allocation2 + $0x2c] sm:$0x1] }
 0x11c   : > { %v3005_v44 = vor.u32 %v3004_v45, %v15136_v38  ;;  %v3008_v63 = vshll.u32 %v15139_v35, 16  ;;  %v3085_v45 = vshrl.u32 %v2904_v14, 16 }
 0x11e   : > { %v3006_v50 = vrot.slane %v3005_v44, 4  ;;  %v3010_v18 = vrot.slane %v3008_v63, 5  ;;  %v2907_v44 = vld [vmem:[#allocation2 + $0x60] sm:$0xf] }
 0x122   : > { %13055 = vmatmul.mubr.msk.bf16.gmra.mrb[8].mxu0 %vm1420_vm12, %v14182_v46  ;;  %v3016_v46 = vshll.u32 %v2895_v59, 16  ;;  %v15179_v59 = vrot.slane %v3046_v42, 5 }
 0x123   : > { %13058 = vmatprep.mubr.msk.bf16.mxu0 %vm1420_vm12, %v14183_v31  ;;  %v2986_v31 = vrot.slane %v2984_v58, 5 }
 0x125   : > { %v2987_v10 = vsel %vm14507_vm13, %v2982_v22, %v2986_v31  ;;  %v3098_v22 = vshrl.u32 %v15175_v15, 16  ;;  %v3001_v31 = vsel %vm14507_vm13, %v2996_v43, %v15136_v38  ;;  %v3076_v38 = vrot.slane %v3074_v3, 4  ;;  %v15207_v43 = vld [vmem:[#allocation2 + $0x5c] sm:$0x1] }
 0x127   : > { %v3100_v42 = vrot.slane %v3098_v22, 4 }
 0x12a   : > { %13059 = vmatmul.mubr.msk.bf16.gmra.mrb[12].mxu0 %vm1420_vm12, %v14184_v54  ;;  %v15141_v54 = vld [vmem:[#allocation2 + $0x34] sm:$0xf] }
 0x12b   : > { %13062 = vmatprep.mubr.msk.bf16.mxu0 %vm1420_vm12, %v14185_v24  ;;  %v2953_v24 = vsel %vm14507_vm13, %v2948_v6, %v2952_v28  ;;  %v3022_v34 = vshll.u32 %v15141_v54, 16  ;;  %v3026_v41 = vshrl.u32 %v15141_v54, 16  ;;  %v3061_v6 = vshrl.u32 %v2901_v25, 16 }
 0x12d   : > { %v15173_v23 = vrot.slane %v3022_v34, 5  ;;  %v3028_v11 = vrot.slane %v3026_v41, 4  ;;  %v3063_v33 = vrot.slane %v3061_v6, 4  ;;  %v15199_v34 = vld [vmem:[#allocation2 + $0x64] sm:$0xf] }
 0x12e   : > { %v15202_v41 = vld [vmem:[#allocation2 + $0x50] sm:$0x1] }
 0x132   : > { %13063 = vmatmul.mubr.msk.bf16.gmra.mrb[16].mxu0 %vm1420_vm12, %v14186_v17  ;;  %v2963_v17 = vsel %vm14507_vm13, %v2958_v52, %v2962_v39  ;;  %v3052_v52 = vrot.slane %v3050_v16, 4  ;;  %v3064_v39 = vshll.u32 %v2901_v25, 16 }
 0x133   : > { %13066 = vmatprep.mubr.msk.bf16.mxu0 %vm1420_vm12, %v14187_v26  ;;  %v2898_v26 = vld [vmem:[#allocation2 + $0x3c] sm:$0xf]  ;;  %v11937_v48 = vcombine.low %v2953_v24, %v2963_v17  ;;  %v3011_v24 = vsel %vm14507_vm13, %v3006_v50, %v3010_v18  ;;  %v3029_v17 = vor.u32 %v3028_v11, %v15173_v23  ;;  %v3109_v50 = vshrl.u32 %v2907_v44, 16 }
 0x134   : > { %v3037_v19 = vshrl.u32 %v2898_v26, 16  ;;  %v3040_v28 = vshll.u32 %v2898_v26, 16  ;;  %v3053_v63 = vor.u32 %v3052_v52, %v15179_v59  ;;  %v3112_v18 = vshll.u32 %v2907_v44, 16 }
 0x135   : > { %v3030_v16 = vrot.slane %v3029_v17, 4  ;;  %v3118_v11 = vshll.u32 %v15199_v34, 16 }
 0x136   : > { %v3039_v57 = vrot.slane %v3037_v19, 4  ;;  %v3042_v58 = vrot.slane %v3040_v28, 5  ;;  %v3054_v6 = vrot.slane %v3053_v63, 4  ;;  %v3114_v17 = vrot.slane %v3112_v18, 5 }
 0x13a   : > { %13067 = vmatmul.mubr.msk.bf16.gmra.mrb[20].mxu0 %vm1420_vm12, %v14188_v4  ;;  %v3015_v4 = vrot.slane %v3013_v12, 4  ;;  %v3088_v12 = vshll.u32 %v2904_v14, 16  ;;  %v3122_v14 = vshrl.u32 %v15199_v34, 16 }
 0x13b   : > { %13070 = vmatprep.mubr.msk.bf16.mxu0 %vm1420_vm12, %v14189_v40  ;;  %v3018_v40 = vrot.slane %v3016_v46, 5  ;;  %v3094_v46 = vshll.u32 %v15175_v15, 16 }
 0x13c   : > { %v3090_v19 = vrot.slane %v3088_v12, 5 }
 0x13d   : > { %v3019_v32 = vor.u32 %v3018_v40, %v3015_v4  ;;  %v3066_v4 = vrot.slane %v3064_v39, 5  ;;  %v15197_v40 = vrot.slane %v3070_v47, 5  ;;  %v15204_v28 = vrot.slane %v3094_v46, 5 }
 0x13e   : > { %v3080_v39 = vshll.u32 %v15202_v41, 16 }
 0x13f   : > { %v3067_v52 = vor.u32 %v3066_v4, %v3063_v33  ;;  %v3077_v47 = vor.u32 %v3076_v38, %v15197_v40  ;;  %v15240_v4 = vld [vmem:[%s18267_s1 + $0x18] sm:$0xf] }
 0x140   : > { %v15235_v63 = vrot.slane %v3080_v39, 5 }
 0x141   : > { %v15233_v44 = vrot.slane %v3067_v52, 4 }
 0x142   : > { %13071 = vmatmul.mubr.msk.bf16.gmra.mrb[24].mxu0 %vm1420_vm12, %v14190_v1  ;;  %v15171_v1 = vcombine.low %v2977_v51, %v2987_v10  ;;  %v3043_v51 = vor.u32 %v3042_v58, %v3039_v57  ;;  %v3087_v10 = vrot.slane %v3085_v45, 4  ;;  %v2910_v57 = vld [vmem:[#allocation2 + $0x6c] sm:$0xf]  ;;  %v15215_v58 = vld [vmem:[#allocation2 + $0x70] sm:$0xf]  ;;  %v3104_v45 = vshll.u32 %v15207_v43, 16 }
 0x143   : > { %13074 = vmatprep.mubr.msk.bf16.mxu0 %vm1420_vm12, %v14191_v56  ;;  %v15177_v56 = vld [vmem:[#allocation2 + $0x44] sm:$0x1]  ;;  %v3133_v12 = vshrl.u32 %v2910_v57, 16  ;;  %v3136_v46 = vshll.u32 %v2910_v57, 16  ;;  %v3142_v22 = vshll.u32 %v15215_v58, 16  ;;  %v3073_v39 = vsel %vm14507_vm13, %v15233_v44, %v15197_v40 }
 0x144   : > { %v3056_v26 = vshll.u32 %v15177_v56, 16  ;;  %v3091_v3 = vor.u32 %v3090_v19, %v3087_v10  ;;  %v3106_v10 = vrot.slane %v3104_v45, 5  ;;  %v2916_v45 = vld [vmem:[#allocation2 + $0x84] sm:$0xf] }
 0x145   : > { %v3181_v44 = vshrl.u32 %v2916_v45, 16 }
 0x146   : > { %v3058_v25 = vrot.slane %v3056_v26, 5  ;;  %v15225_v26 = vrot.slane %v3118_v11, 5  ;;  %v15251_v11 = vld [vmem:[#allocation2 + $0x7c] sm:$0xf] }
 0x147   : > { %v3183_v60 = vrot.slane %v3181_v44, 4 }
 0x148   : > { %v3059_v38 = vsel %vm14507_vm13, %v3054_v6, %v3058_v25 }
 0x14a   : > { %13075 = vmatmul.mubr.msk.bf16.gmra.mrb[28].mxu0 %vm1420_vm12, %v14192_v7  ;;  %v15192_v7 = vrot.slane %v3019_v32, 4 }
 0x14b   : > { %13078 = vmatprep.mubr.msk.bf16.mxu0 %vm1420_vm12, %v14193_v62  ;;  %v15194_v62 = vrot.slane %v3032_v53, 5  ;;  %v11939_v53 = vcombine.low %v3001_v31, %v3011_v24  ;;  %v3146_v31 = vshrl.u32 %v15215_v58, 16  ;;  %v3111_v24 = vrot.slane %v3109_v50, 4 }
 0x14c   : > { %v3025_v32 = vsel %vm14507_vm13, %v15192_v7, %v15173_v23  ;;  %v15221_v23 = vld [vmem:[#allocation2 + $0x68] sm:$0x1]  ;;  %v3124_v7 = vrot.slane %v3122_v14, 4  ;;  %v15249_v50 = vrot.slane %v3142_v22, 5 }
 0x14d   : > { %v3128_v19 = vshll.u32 %v15221_v23, 16  ;;  %v3148_v18 = vrot.slane %v3146_v31, 4  ;;  %v3115_v57 = vor.u32 %v3114_v17, %v3111_v24 }
 0x14e   : > { %v3125_v25 = vor.u32 %v3124_v7, %v15225_v26 }
 0x14f   : > { %v3149_v22 = vor.u32 %v3148_v18, %v15249_v50  ;;  %v3116_v17 = vrot.slane %v3115_v57, 4 }
 0x150   : > { %v3126_v7 = vrot.slane %v3125_v25, 4 }
 0x151   : > { %v3150_v18 = vrot.slane %v3149_v22, 4  ;;  %v3121_v22 = vsel %vm14507_vm13, %v3116_v17, %v15225_v26 }
 0x152   : > { %13079 = vmatmul.mubr.msk.bf16.gmra.mrb[32].mxu0 %vm1420_vm12, %v14194_v61  ;;  %v3101_v61 = vor.u32 %v3100_v42, %v15204_v28  ;;  %v3135_v42 = vrot.slane %v3133_v12, 4  ;;  %v15267_v12 = vld [vmem:[#allocation2 + $0x88] sm:$0xf] }
 0x153   : > { %13084 = vmatprep.mubr.msk.bf16.mxu0 %vm1420_vm12, %v11937_v48  ;;  %v3044_v48 = vrot.slane %v3043_v51, 4  ;;  %v3035_v51 = vsel %vm14507_vm13, %v3030_v16, %v15194_v62  ;;  %v3078_v62 = vrot.slane %v3077_v47, 4  ;;  %v3138_v16 = vrot.slane %v3136_v46, 5 }
 0x154   : > { %v3102_v14 = vrot.slane %v3101_v61, 4  ;;  %v3170_v61 = vshrl.u32 %v15251_v11, 16 }
 0x155   : > { %v3049_v33 = vsel %vm14507_vm13, %v3044_v48, %v15179_v59  ;;  %v2913_v59 = vld [vmem:[#allocation2 + $0x78] sm:$0xf]  ;;  %v15254_v48 = vld [vmem:[#allocation2 + $0x74] sm:$0x1]  ;;  %v3083_v47 = vsel %vm14507_vm13, %v3078_v62, %v15235_v63  ;;  %v3139_v46 = vor.u32 %v3138_v16, %v3135_v42  ;;  %v3184_v63 = vshll.u32 %v2916_v45, 16 }
 0x156   : > { %v11941_v6 = vcombine.low %v3049_v33, %v3059_v38  ;;  %v3160_v52 = vshll.u32 %v2913_v59, 16  ;;  %v3152_v31 = vshll.u32 %v15254_v48, 16  ;;  %v3107_v24 = vsel %vm14507_vm13, %v3102_v14, %v3106_v10  ;;  %v2919_v33 = vld [vmem:[#allocation2 + $0x90] sm:$0xf] }
 0x157   : > { %v3190_v38 = vshll.u32 %v15267_v12, 16  ;;  %v3194_v62 = vshrl.u32 %v15267_v12, 16  ;;  %v3172_v10 = vrot.slane %v3170_v61, 4  ;;  %v3140_v16 = vrot.slane %v3139_v46, 4  ;;  %v15292_v46 = vld [vmem:[#allocation2 + $0x8c] sm:$0x1] }
 0x158   : > { %v3205_v57 = vshrl.u32 %v2919_v33, 16  ;;  %v3208_v25 = vshll.u32 %v2919_v33, 16 }
 0x159   : > { %v3145_v33 = vsel %vm14507_vm13, %v3140_v16, %v15249_v50 }
 0x15a   : > { %13085 = vmatmul.mubr.msk.bf16.vlgmr.msra.gmra.mrb[0].mxu0 %vm1420_vm12, %v15171_v1  ;;  %v3092_v1 = vrot.slane %v3091_v3, 4  ;;  %v3166_v3 = vshll.u32 %v15251_v11, 16 }
 0x15b   : > { %13121 = vmatpush3.bf16.msra.mxu0 %v15163_v30  ;;  %13088 = vmatprep.mubr.msk.bf16.mxu0 %vm1420_vm12, %v11939_v53  ;;  %v11940_v30 = vcombine.low %v3025_v32, %v3035_v51  ;;  %v3157_v53 = vshrl.u32 %v2913_v59, 16  ;;  %v3130_v32 = vrot.slane %v3128_v19, 5  ;;  %v15276_v51 = vld [vmem:[#allocation2 + $0x80] sm:$0x1]  ;;  %v15280_v19 = vld [vmem:[#allocation2 + $0x94] sm:$0xf] }
 0x15c   : > { %14131 = vmatprep.subr.msk.bf16.mxu0 %vm1475_vm0, %v15240_v4  ;;  %v3097_v40 = vsel %vm14507_vm13, %v3092_v1, %v15204_v28  ;;  %v3162_v28 = vrot.slane %v3160_v52, 5  ;;  %v15283_v42 = vrot.slane %v3166_v3, 5  ;;  %v3154_v1 = vrot.slane %v3152_v31, 5 }
 0x15d   : > { %v3159_v59 = vrot.slane %v3157_v53, 4  ;;  %v3176_v14 = vshll.u32 %v15276_v51, 16  ;;  %v3214_v45 = vshll.u32 %v15280_v19, 16  ;;  %v3218_v8 = vshrl.u32 %v15280_v19, 16 }
 0x15e   : > { %v15289_v53 = vrot.slane %v3190_v38, 5  ;;  %v3196_v52 = vrot.slane %v3194_v62, 4  ;;  %v11942_v3 = vcombine.low %v3073_v39, %v3083_v47  ;;  %v11943_v61 = vcombine.low %v3097_v40, %v3107_v24  ;;  %v2922_v47 = vld [vmem:[#allocation2 + $0x9c] sm:$0xf]  ;;  %v15306_v38 = vld [vmem:[#allocation2 + $0xa0] sm:$0xf] }
 0x15f   : > { %v3163_v5 = vor.u32 %v3162_v28, %v3159_v59  ;;  %v3131_v31 = vsel %vm14507_vm13, %v3126_v7, %v3130_v32  ;;  %v3155_v39 = vsel %vm14507_vm13, %v3150_v18, %v3154_v1  ;;  %v3207_v40 = vrot.slane %v3205_v57, 4  ;;  %18389 = vst [vmem:[#allocation8_spill] sm:$0xff] %v15306_v38  ;;  %v15310_v7 = vld [vmem:[#allocation2 + $0x98] sm:$0x1]  ;;  %v2925_v57 = vld [vmem:[#allocation2 + $0xa8] sm:$0xf] }
 0x160   : > { %v3210_v24 = vrot.slane %v3208_v25, 5  ;;  %v15304_v44 = vrot.slane %v3214_v45, 5  ;;  %v3178_v62 = vrot.slane %v3176_v14, 5  ;;  %v3197_v17 = vor.u32 %v3196_v52, %v15289_v53  ;;  %18390 = vst [vmem:[#allocation9_spill] sm:$0xff] %v15310_v7  ;;  %v15318_v52 = vld [vmem:[#allocation2 + $0xa4] sm:$0x1] }
 0x161   : > { %v3200_v32 = vshll.u32 %v15292_v46, 16  ;;  %v3164_v50 = vrot.slane %v3163_v5, 4  ;;  %v3229_v28 = vshrl.u32 %v2922_v47, 16  ;;  %v3242_v16 = vshrl.u32 %v15306_v38, 16  ;;  %18391 = vst [vmem:[#allocation10_spill] sm:$0xff] %v15318_v52 }
 0x162   : > { %13089 = vmatmul.mubr.msk.bf16.gmra.mrb[4].mxu0 %vm1420_vm12, %v11940_v30  ;;  %v3186_v30 = vrot.slane %v3184_v63, 5  ;;  %v3220_v63 = vrot.slane %v3218_v8, 4  ;;  %v3238_v8 = vshll.u32 %v15306_v38, 16  ;;  %v11944_v18 = vcombine.low %v3121_v22, %v3131_v31  ;;  %v15325_v31 = vld [vmem:[#allocation2 + $0xac] sm:$0xf] }
 0x163   : > { %13092 = vmatprep.mubr.msk.bf16.mxu0 %vm1420_vm12, %v11941_v6  ;;  %v3173_v6 = vor.u32 %v3172_v10, %v15283_v42  ;;  %v3232_v10 = vshll.u32 %v2922_v47, 16  ;;  %v3224_v14 = vshll.u32 %v15310_v7, 16  ;;  %v11945_v25 = vcombine.low %v3145_v33, %v3155_v39  ;;  %18392 = vst [vmem:[#allocation11_spill] sm:$0xff] %v15325_v31  ;;  %v2928_v47 = vld [vmem:[#allocation2 + $0xb4] sm:$0xf] }
 0x164   : > { %v3187_v26 = vor.u32 %v3186_v30, %v3183_v60  ;;  %v3211_v60 = vor.u32 %v3210_v24, %v3207_v40  ;;  %v3221_v1 = vor.u32 %v3220_v63, %v15304_v44  ;;  %v3198_v30 = vrot.slane %v3197_v17, 4  ;;  %v15329_v63 = vld [vmem:[#allocation2 + $0xb8] sm:$0xf]  ;;  %v15378_v38 = vld [vmem:[#allocation2 + $0xdc] sm:$0xf] }
 0x165   : > { %v3174_v59 = vrot.slane %v3173_v6, 4  ;;  %v3202_v5 = vrot.slane %v3200_v32, 5  ;;  %v3231_v6 = vrot.slane %v3229_v28, 4  ;;  %v3234_v22 = vrot.slane %v3232_v10, 5  ;;  %18393 = vst [vmem:[#allocation12_spill] sm:$0xff] %v15329_v63 }
 0x166   : > { %v3188_v45 = vrot.slane %v3187_v26, 4  ;;  %v15327_v40 = vrot.slane %v3238_v8, 5  ;;  %v3244_v33 = vrot.slane %v3242_v16, 4  ;;  %v3253_v39 = vshrl.u32 %v2925_v57, 16 }
 0x167   : > { %v3256_v24 = vshll.u32 %v2925_v57, 16  ;;  %v3212_v26 = vrot.slane %v3211_v60, 4  ;;  %v3222_v17 = vrot.slane %v3221_v1, 4  ;;  %v3226_v32 = vrot.slane %v3224_v14, 5 }
 0x168   : > { %v3280_v28 = vshll.u32 %v2928_v47, 16  ;;  %v3193_v10 = vsel %vm14507_vm13, %v3188_v45, %v15289_v53  ;;  %v3203_v8 = vsel %vm14507_vm13, %v3198_v30, %v3202_v5  ;;  %v3286_v16 = vshll.u32 %v15329_v63, 16  ;;  %v15349_v30 = vld [vmem:[#allocation2 + $0xb0] sm:$0x1] }
 0x169   : > { %v3290_v60 = vshrl.u32 %v15329_v63, 16  ;;  %v3235_v1 = vor.u32 %v3234_v22, %v3231_v6  ;;  %v3245_v14 = vor.u32 %v3244_v33, %v15327_v40  ;;  %v3255_v57 = vrot.slane %v3253_v39, 4  ;;  %18394 = vst [vmem:[#allocation13_spill] sm:$0xff] %v15349_v30  ;;  %v15353_v33 = vld [vmem:[#allocation2 + $0xbc] sm:$0x1] }
 0x16a   : > { %13093 = vmatmul.mubr.msk.bf16.gmra.mrb[8].mxu0 %vm1420_vm12, %v11942_v3  ;;  %v3169_v3 = vsel %vm14507_vm13, %v3164_v50, %v15283_v42  ;;  %v3248_v42 = vshll.u32 %v15318_v52, 16  ;;  %v3262_v50 = vshll.u32 %v15325_v31, 16  ;;  %v3227_v53 = vsel %vm14507_vm13, %v3222_v17, %v3226_v32  ;;  %18395 = vst [vmem:[#allocation14_spill] sm:$0xff] %v15353_v33  ;;  %v2931_v52 = vld [vmem:[#allocation2 + $0xc0] sm:$0xf] }
 0x16b   : > { %13096 = vmatprep.mubr.msk.bf16.mxu0 %vm1420_vm12, %v11943_v61  ;;  %v3179_v61 = vsel %vm14507_vm13, %v3174_v59, %v3178_v62  ;;  %v3266_v62 = vshrl.u32 %v15325_v31, 16  ;;  %v3277_v59 = vshrl.u32 %v2928_v47, 16  ;;  %v3258_v47 = vrot.slane %v3256_v24, 5  ;;  %v15358_v32 = vld [vmem:[#allocation2 + $0xc4] sm:$0xf] }
 0x16c   : > { %v3250_v45 = vrot.slane %v3248_v42, 5  ;;  %v15351_v5 = vrot.slane %v3262_v50, 5  ;;  %v11946_v6 = vcombine.low %v3169_v3, %v3179_v61  ;;  %v11947_v22 = vcombine.low %v3193_v10, %v3203_v8  ;;  %18396 = vst [vmem:[#allocation15_spill] sm:$0xff] %v15358_v32 }
 0x16d   : > { %v3268_v63 = vrot.slane %v3266_v62, 4  ;;  %v3279_v31 = vrot.slane %v3277_v59, 4  ;;  %v15355_v39 = vrot.slane %v3286_v16, 5  ;;  %v3292_v24 = vrot.slane %v3290_v60, 4  ;;  %v2934_v59 = vld [vmem:[#allocation2 + $0xcc] sm:$0xf] }
 0x16e   : > { %v3259_v7 = vor.u32 %v3258_v47, %v3255_v57  ;;  %v3272_v17 = vshll.u32 %v15349_v30, 16  ;;  %v3296_v3 = vshll.u32 %v15353_v33, 16  ;;  %v3301_v61 = vshrl.u32 %v2931_v52, 16 }
 0x16f   : > { %v3269_v50 = vor.u32 %v3268_v63, %v15351_v5  ;;  %v3293_v10 = vor.u32 %v3292_v24, %v15355_v39  ;;  %v3304_v8 = vshll.u32 %v2931_v52, 16  ;;  %v3310_v16 = vshll.u32 %v15358_v32, 16 }
 0x170   : > { %v3314_v60 = vshrl.u32 %v15358_v32, 16  ;;  %v3325_v57 = vshrl.u32 %v2934_v59, 16  ;;  %v3328_v47 = vshll.u32 %v2934_v59, 16  ;;  %v3303_v24 = vrot.slane %v3301_v61, 4  ;;  %v15376_v32 = vld [vmem:[#allocation2 + $0xc8] sm:$0x1] }
 0x171   : > { %v3306_v33 = vrot.slane %v3304_v8, 5  ;;  %v15386_v61 = vld [vmem:[#allocation2 + $0xd4] sm:$0x1] }
 0x172   : > { %13097 = vmatmul.mubr.msk.bf16.gmra.mrb[12].mxu0 %vm1420_vm12, %v11944_v18  ;;  %v3217_v18 = vsel %vm14507_vm13, %v3212_v26, %v15304_v44  ;;  %v3236_v44 = vrot.slane %v3235_v1, 4  ;;  %v3246_v26 = vrot.slane %v3245_v14, 4  ;;  %v3260_v1 = vrot.slane %v3259_v7, 4 }
 0x173   : > { %13100 = vmatprep.mubr.msk.bf16.mxu0 %vm1420_vm12, %v11945_v25  ;;  %v3282_v25 = vrot.slane %v3280_v28, 5  ;;  %v11948_v42 = vcombine.low %v3217_v18, %v3227_v53  ;;  %v15362_v28 = vld [vmem:[#allocation2 + $0xd0] sm:$0xf]  ;;  %v3274_v14 = vrot.slane %v3272_v17, 5  ;;  %v3270_v53 = vrot.slane %v3269_v50, 4 }
 0x174   : > { %v3251_v63 = vsel %vm14507_vm13, %v3246_v26, %v3250_v45  ;;  %v3334_v18 = vshll.u32 %v15362_v28, 16  ;;  %v3338_v52 = vshrl.u32 %v15362_v28, 16  ;;  %v2937_v45 = vld [vmem:[#allocation2 + $0xd8] sm:$0xf]  ;;  %v3327_v7 = vrot.slane %v3325_v57, 4 }
 0x175   : > { %v3283_v62 = vor.u32 %v3282_v25, %v3279_v31  ;;  %v3241_v31 = vsel %vm14507_vm13, %v3236_v44, %v15327_v40  ;;  %v3312_v40 = vrot.slane %v3310_v16, 5  ;;  %v3316_v44 = vrot.slane %v3314_v60, 4 }
 0x176   : > { %v11949_v30 = vcombine.low %v3241_v31, %v3251_v63  ;;  %v3330_v26 = vrot.slane %v3328_v47, 5  ;;  %v3336_v17 = vrot.slane %v3334_v18, 5  ;;  %v3340_v59 = vrot.slane %v3338_v52, 4 }
 0x177   : > { %v3284_v25 = vrot.slane %v3283_v62, 4  ;;  %v3265_v50 = vsel %vm14507_vm13, %v3260_v1, %v15351_v5  ;;  %v3275_v62 = vsel %vm14507_vm13, %v3270_v53, %v3274_v14  ;;  %v3307_v16 = vor.u32 %v3306_v33, %v3303_v24 }
 0x178   : > { %v3317_v60 = vor.u32 %v3316_v44, %v3312_v40  ;;  %v3349_v5 = vshrl.u32 %v2937_v45, 16  ;;  %v3352_v31 = vshll.u32 %v2937_v45, 16  ;;  %v3358_v63 = vshll.u32 %v15378_v38, 16  ;;  %v15398_v45 = vld [vmem:[#allocation2 + $0xe0] sm:$0x1] }
 0x179   : > { %v3362_v1 = vshrl.u32 %v15378_v38, 16  ;;  %v3331_v14 = vor.u32 %v3330_v26, %v3327_v7  ;;  %v3341_v57 = vor.u32 %v3340_v59, %v3336_v17  ;;  %v11950_v47 = vcombine.low %v3265_v50, %v3275_v62 }
 0x17a   : > { %13101 = vmatmul.mubr.msk.bf16.gmra.mrb[16].mxu0 %vm1420_vm12, %v11946_v6  ;;  %v3298_v6 = vrot.slane %v3296_v3, 5  ;;  %v3320_v3 = vshll.u32 %v15376_v32, 16  ;;  %v3318_v52 = vrot.slane %v3317_v60, 4  ;;  %v3354_v33 = vrot.slane %v3352_v31, 5 }
 0x17b   : > { %13104 = vmatprep.mubr.msk.bf16.mxu0 %vm1420_vm12, %v11947_v22  ;;  %v3294_v22 = vrot.slane %v3293_v10, 4  ;;  %v3289_v10 = vsel %vm14507_vm13, %v3284_v25, %v15355_v39  ;;  %v3308_v39 = vrot.slane %v3307_v16, 4  ;;  %v3351_v25 = vrot.slane %v3349_v5, 4  ;;  %v3697_v16 = vld [vmem:[#allocation2 + $0xc] sm:$0xe] }
 0x17c   : > { %v3322_v53 = vrot.slane %v3320_v3, 5  ;;  %v3364_v24 = vrot.slane %v3362_v1, 4  ;;  %v3368_v62 = vshll.u32 %v15398_v45, 16  ;;  %v11973_v1 = vrot.slane %v3697_v16, 9 }
 0x17d   : > { %v3299_v8 = vsel %vm14507_vm13, %v3294_v22, %v3298_v6  ;;  %v3360_v6 = vrot.slane %v3358_v63, 5  ;;  %v3342_v22 = vrot.slane %v3341_v57, 4  ;;  %v3313_v7 = vsel %vm14507_vm13, %v3308_v39, %v3312_v40 }
 0x17e   : > { %v11951_v18 = vcombine.low %v3289_v10, %v3299_v8  ;;  %v3323_v26 = vsel %vm14507_vm13, %v3318_v52, %v3322_v53  ;;  %v3355_v59 = vor.u32 %v3354_v33, %v3351_v25  ;;  %v3771_v8 = vrot.slane %v15111_v29, 5  ;;  %v3699_v52 = vld [vmem:[#allocation2 + $0x24] sm:$0xe]  ;;  %v311_v33 = vld [vmem:[#allocation2 + $0xe4] sm:$0x1] }
 0x17f   : > { %v3365_v50 = vor.u32 %v3364_v24, %v3360_v6  ;;  %v11952_v60 = vcombine.low %v3313_v7, %v3323_v26  ;;  %v3370_v63 = vrot.slane %v3368_v62, 5  ;;  %v3774_v57 = vrot.slane %v15121_v49, 5 }
 0x180   : > { %v3356_v5 = vrot.slane %v3355_v59, 4  ;;  %v3785_v49 = vrot.slane %v15124_v37, 5  ;;  %v3788_v7 = vrot.slane %v15139_v35, 5  ;;  %v3700_v35 = vld [vmem:[#allocation2 + $0x30] sm:$0xe]  ;;  %v3799_v62 = vrot.slane %v15147_v9, 5 }
 0x181   : > { %v3366_v31 = vrot.slane %v3365_v50, 4  ;;  %v15450_v9 = vld [vmem:[%s18267_s1 + $0x1c] sm:$0xf] }
 0x182   : > { %13105 = vmatmul.mubr.msk.bf16.gmra.mrb[20].mxu0 %vm1420_vm12, %v11948_v42  ;;  %v3344_v42 = vshll.u32 %v15386_v61, 16 }
 0x183   : > { %13108 = vmatprep.mubr.msk.bf16.mxu0 %vm1420_vm12, %v11949_v30  ;;  %v3332_v30 = vrot.slane %v3331_v14, 4  ;;  %v3773_v14 = vrot.slane %v3771_v8, 4  ;;  %v3371_v29 = vsel %vm14507_vm13, %v3366_v31, %v3370_v63  ;;  %v3801_v63 = vrot.slane %v3799_v62, 4 }
 0x184   : > { %v3346_v44 = vrot.slane %v3344_v42, 5  ;;  %v3698_v42 = vld [vmem:[#allocation2 + $0x18] sm:$0xe] }
 0x185   : > { %v3337_v3 = vsel %vm14507_vm13, %v3332_v30, %v3336_v17  ;;  %v3361_v17 = vsel %vm14507_vm13, %v3356_v5, %v3360_v6  ;;  %v3775_v39 = vsel %vm14856_vm2, %v3773_v14, %v3774_v57  ;;  %v11974_v25 = vrot.slane %v3698_v42, 9 }
 0x186   : > { %v3347_v10 = vsel %vm14507_vm13, %v3342_v22, %v3346_v44  ;;  %v11954_v53 = vcombine.low %v3361_v17, %v3371_v29  ;;  %v3781_v30 = vrot.slane %v15129_v27, 5  ;;  %v312_v22 = vsel %vm14401_vm3, 0, %v311_v33  ;;  %v3702_v29 = vld [vmem:[#allocation2 + $0x48] sm:$0xe] }
 0x187   : > { %v11953_v40 = vcombine.low %v3337_v3, %v3347_v10  ;;  %v3787_v44 = vrot.slane %v3785_v49, 4  ;;  %313 = vst [vmem:[#allocation2 + $0xe4] sm:$0x1] %v312_v22  ;;  %v3792_v27 = vrot.slane %v15141_v54, 5  ;;  %v3701_v3 = vld [vmem:[#allocation2 + $0x3c] sm:$0xe] }
 0x188   : > { %v3795_v5 = vrot.slane %v15154_v13, 5  ;;  %v11977_v31 = vrot.slane %v3701_v3, 9  ;;  %v3813_v42 = vrot.slane %v15175_v15, 5  ;;  %v3816_v33 = vrot.slane %v15207_v43, 5  ;;  %v3704_v22 = vld [vmem:[#allocation2 + $0x60] sm:$0xe] }
 0x189   : > { %v3789_v50 = vsel %vm14856_vm2, %v3787_v44, %v3788_v7  ;;  %v3827_v43 = vrot.slane %v15215_v58, 5 }
 0x18a   : > { %13109 = vmatmul.mubr.msk.bf16.gmra.mrb[24].mxu0 %vm1420_vm12, %v11950_v47  ;;  %v3778_v47 = vrot.slane %v15116_v36, 5  ;;  %v11975_v36 = vrot.slane %v3699_v52, 9  ;;  %v3800_v57 = vsel %vm14856_vm2, %v11977_v31, %v3799_v62  ;;  %v3834_v62 = vrot.slane %v15251_v11, 5 }
 0x18b   : > { %13112 = vmatprep.mubr.msk.bf16.mxu0 %vm1420_vm12, %v11951_v18  ;;  %v3772_v18 = vsel %vm14856_vm2, %v11973_v1, %v3771_v8  ;;  %v4402_v8 = vsel %vm1475_vm0, %v15240_v4, 0  ;;  %v3802_v1 = vrot.slane %v15177_v56, 5  ;;  %v3806_v4 = vrot.slane %v15168_v0, 5 }
 0x18c   : > { %v11991_v24 = vcombine.low %v3772_v18, %v3775_v39  ;;  %v3780_v6 = vrot.slane %v3778_v47, 4  ;;  %v3779_v37 = vsel %vm14856_vm2, %v11974_v25, %v3778_v47  ;;  %v3786_v59 = vsel %vm14856_vm2, %v11975_v36, %v3785_v49  ;;  %v3703_v47 = vld [vmem:[#allocation2 + $0x54] sm:$0xe]  ;;  %v3705_v36 = vld [vmem:[#allocation2 + $0x6c] sm:$0xe] }
 0x18d   : > { %v11993_v16 = vcombine.low %v3786_v59, %v3789_v50  ;;  %v3803_v17 = vsel %vm14856_vm2, %v3801_v63, %v3802_v1  ;;  %v11978_v49 = vrot.slane %v3702_v29, 9  ;;  %v3808_v52 = vrot.slane %v3806_v4, 4 }
 0x18e   : > { %v3782_v26 = vsel %vm14856_vm2, %v3780_v6, %v3781_v30  ;;  %v401_v54 = vld [vmem:[#allocation2 + $0xe4] sm:$0xf]  ;;  %v11995_v39 = vcombine.low %v3800_v57, %v3803_v17  ;;  %v11979_v0 = vrot.slane %v3703_v47, 9  ;;  %v3815_v25 = vrot.slane %v3813_v42, 4  ;;  %v3709_v57 = vld [vmem:[#allocation2 + $0x9c] sm:$0xe] }
 0x18f   : > { %v11992_v10 = vcombine.low %v3779_v37, %v3782_v26  ;;  %v402_v14 = vsel %vm14445_vm7, 0, %v401_v54  ;;  %v3807_v15 = vsel %vm14856_vm2, %v11978_v49, %v3806_v4  ;;  %v3820_v6 = vrot.slane %v15199_v34, 5 }
 0x190   : > { %403 = vst [vmem:[#allocation2 + $0xe4] sm:$0xf] %v402_v14  ;;  %v3814_v30 = vsel %vm14856_vm2, %v11979_v0, %v3813_v42  ;;  %v11980_v37 = vrot.slane %v3704_v22, 9  ;;  %v11981_v59 = vrot.slane %v3705_v36, 9  ;;  %v3829_v50 = vrot.slane %v3827_v43, 4 }
 0x191   : > { %v3822_v26 = vrot.slane %v3820_v6, 4  ;;  %v3830_v34 = vrot.slane %v15254_v48, 5  ;;  %v3841_v48 = vrot.slane %v15267_v12, 5  ;;  %v3837_v54 = vrot.slane %v15276_v51, 5 }
 0x192   : > { %13113 = vmatmul.mubr.msk.bf16.gmra.mrb[28].mxu0 %vm1420_vm12, %v11952_v60  ;;  %v11976_v60 = vrot.slane %v3700_v35, 9  ;;  %v3821_v35 = vsel %vm14856_vm2, %v11980_v37, %v3820_v6  ;;  %v3828_v3 = vsel %vm14856_vm2, %v11981_v59, %v3827_v43  ;;  %v3844_v11 = vrot.slane %v15292_v46, 5  ;;  %v18397_v46 = vld [vmem:[#allocation8_spill] sm:$0xff]  ;;  %v3711_v43 = vld [vmem:[#allocation2 + $0xb4] sm:$0xe] }
 0x193   : > { %13116 = vmatprep.mubr.msk.bf16.mxu0 %vm1420_vm12, %v11953_v40  ;;  %v3794_v40 = vrot.slane %v3792_v27, 4  ;;  %v3843_v63 = vrot.slane %v3841_v48, 4  ;;  %v3848_v14 = vrot.slane %v15280_v19, 5  ;;  %v3855_v4 = vrot.slane %v18397_v46, 5 }
 0x194   : > { %v3793_v13 = vsel %vm14856_vm2, %v11976_v60, %v3792_v27  ;;  %v3823_v27 = vrot.slane %v15221_v23, 5  ;;  %v3831_v23 = vsel %vm14856_vm2, %v3829_v50, %v3830_v34  ;;  %v11985_v49 = vrot.slane %v3709_v57, 9  ;;  %v18403_v34 = vld [vmem:[#allocation14_spill] sm:$0xff] }
 0x195   : > { %v3796_v56 = vsel %vm14856_vm2, %v3794_v40, %v3795_v5  ;;  %v11999_v60 = vcombine.low %v3828_v3, %v3831_v23  ;;  %v3836_v5 = vrot.slane %v3834_v62, 4  ;;  %v3845_v51 = vsel %vm14856_vm2, %v3843_v63, %v3844_v11  ;;  %v18404_v3 = vld [vmem:[#allocation15_spill] sm:$0xff] }
 0x196   : > { %v11994_v18 = vcombine.low %v3793_v13, %v3796_v56  ;;  %v3824_v58 = vsel %vm14856_vm2, %v3822_v26, %v3823_v27  ;;  %v3708_v56 = vld [vmem:[#allocation2 + $0x90] sm:$0xe]  ;;  %v3850_v47 = vrot.slane %v3848_v14, 4  ;;  %v11987_v59 = vrot.slane %v3711_v43, 9 }
 0x197   : > { %v3838_v12 = vsel %vm14856_vm2, %v3836_v5, %v3837_v54  ;;  %v11984_v42 = vrot.slane %v3708_v56, 9  ;;  %v18402_v26 = vld [vmem:[#allocation13_spill] sm:$0xff]  ;;  %v3876_v23 = vrot.slane %v18404_v3, 5  ;;  %v3879_v63 = vrot.slane %v15376_v32, 5  ;;  %v3714_v56 = vld [vmem:[#allocation2 + $0xd8] sm:$0xe] }
 0x198   : > { %v3865_v27 = vrot.slane %v18402_v26, 5 }
 0x199   : > { %v3849_v0 = vsel %vm14856_vm2, %v11984_v42, %v3848_v14 }
 0x19a   : > { %13117 = vmatmul.mubr.msk.bf16.gmra.mrb[32].mxu0 %vm1420_vm12, %v11954_v53  ;;  %v3809_v53 = vrot.slane %v15202_v41, 5  ;;  %v3817_v41 = vsel %vm14856_vm2, %v3815_v25, %v3816_v33  ;;  %v18400_v33 = vld [vmem:[#allocation11_spill] sm:$0xff] }
 0x19b   : > { %13122 = vmatprep.mubr.msk.bf16.mxu0 %vm1420_vm12, %v11991_v24  ;;  %v11997_v7 = vcombine.low %v3814_v30, %v3817_v41  ;;  %v3710_v30 = vld [vmem:[#allocation2 + $0xa8] sm:$0xe] }
 0x19c   : > { %v3810_v24 = vsel %vm14856_vm2, %v3808_v52, %v3809_v53  ;;  %v3857_v52 = vrot.slane %v3855_v4, 4  ;;  %v18399_v53 = vld [vmem:[#allocation10_spill] sm:$0xff]  ;;  %v18401_v41 = vld [vmem:[#allocation12_spill] sm:$0xff] }
 0x19d   : > { %v11996_v44 = vcombine.low %v3807_v15, %v3810_v24  ;;  %v3858_v19 = vrot.slane %v18399_v53, 5  ;;  %v3862_v15 = vrot.slane %v18400_v33, 5  ;;  %v3856_v24 = vsel %vm14856_vm2, %v11985_v49, %v3855_v4  ;;  %v15563_v49 = vld [vmem:[%s18267_s1 + $0x20] sm:$0xf] }
 0x19e   : > { %v3869_v22 = vrot.slane %v18401_v41, 5  ;;  %v11990_v4 = vrot.slane %v3714_v56, 9  ;;  %v14273_v41 = vld [vmem:[#allocation2 + $0x9c] sm:$0xf] }
 0x19f   : > { %v3859_v6 = vsel %vm14856_vm2, %v3857_v52, %v3858_v19  ;;  %v3864_v37 = vrot.slane %v3862_v15, 4  ;;  %v373_v52 = vld [vmem:[#allocation2 + $0xec] sm:$0x1]  ;;  %v1249_v43 = vshll.u32 %v14273_v41, 16  ;;  %v15607_v56 = vld [vmem:[#allocation2 + $0x1c] sm:$0xf] }
 0x1a0   : > { %v3871_v50 = vrot.slane %v3869_v22, 4  ;;  %v374_v19 = vsel %vm14410_vm5, 0, %v373_v52  ;;  %v4621_v52 = vld [vmem:[#allocation2 + $0x28] sm:$0xf] }
 0x1a1   : > { %375 = vst [vmem:[#allocation2 + $0xec] sm:$0x1] %v374_v19  ;;  %v4623_v19 = vld [vmem:[#allocation2 + $0x30] sm:$0xf] }
 0x1a2   : > { %13123 = vmatmul.mubr.msk.bf16.vlgmr.msra.gmra.mrb[0].mxu0 %vm1420_vm12, %v11992_v10  ;;  %v3706_v10 = vld [vmem:[#allocation2 + $0x78] sm:$0xe] }
 0x1a3   : > { %13159 = vmatpush3.bf16.msra.mxu0 %v4402_v8  ;;  %13126 = vmatprep.mubr.msk.bf16.mxu0 %vm1420_vm12, %v11993_v16  ;;  %v3707_v8 = vld [vmem:[#allocation2 + $0x84] sm:$0xe]  ;;  %v11998_v16 = vcombine.low %v3821_v35, %v3824_v58  ;;  %v11982_v40 = vrot.slane %v3706_v10, 9  ;;  %v3872_v35 = vrot.slane %v18403_v34, 5  ;;  %v3870_v10 = vsel %vm14856_vm2, %v11987_v59, %v3869_v22 }
 0x1a4   : > { %14132 = vmatprep.subr.msk.bf16.mxu0 %vm1475_vm0, %v15450_v9  ;;  %v11983_v31 = vrot.slane %v3707_v8, 9  ;;  %v3712_v8 = vld [vmem:[#allocation2 + $0xc0] sm:$0xe]  ;;  %v1246_v22 = vshrl.u32 %v14273_v41, 16 }
 0x1a5   : > { %v3835_v1 = vsel %vm14856_vm2, %v11982_v40, %v3834_v62  ;;  %v3866_v62 = vsel %vm14856_vm2, %v3864_v37, %v3865_v27  ;;  %v11988_v54 = vrot.slane %v3712_v8, 9  ;;  %v14276_v27 = vld [vmem:[#allocation2 + $0xb4] sm:$0xf]  ;;  %v4627_v41 = vld [vmem:[#allocation2 + $0x40] sm:$0xf] }
 0x1a6   : > { %v3842_v13 = vsel %vm14856_vm2, %v11983_v31, %v3841_v48  ;;  %v12000_v17 = vcombine.low %v3835_v1, %v3838_v12  ;;  %v3873_v48 = vsel %vm14856_vm2, %v3871_v50, %v3872_v35  ;;  %v3878_v31 = vrot.slane %v3876_v23, 4  ;;  %v15579_v35 = vld [vmem:[#allocation2 + $0x94] sm:$0xf] }
 0x1a7   : > { %v12001_v29 = vcombine.low %v3842_v13, %v3845_v51  ;;  %v12005_v5 = vcombine.low %v3870_v10, %v3873_v48  ;;  %v3886_v12 = vrot.slane %v15386_v61, 5  ;;  %v3877_v14 = vsel %vm14856_vm2, %v11988_v54, %v3876_v23  ;;  %v14278_v10 = vld [vmem:[#allocation2 + $0xc0] sm:$0xf] }
 0x1a8   : > { %v3890_v13 = vrot.slane %v15378_v38, 5  ;;  %v1294_v59 = vshrl.u32 %v14276_v27, 16  ;;  %v1318_v48 = vshrl.u32 %v14278_v10, 16  ;;  %v1321_v8 = vshll.u32 %v14278_v10, 16  ;;  %v14202_v10 = vld [vmem:[#allocation2 + $0x6c] sm:$0xff]  }
 0x1aa   : > { %13127 = vmatmul.mubr.msk.bf16.gmra.mrb[4].mxu0 %vm1420_vm12, %v11994_v18  ;;  %v18398_v18 = vld [vmem:[#allocation9_spill] sm:$0xff]  ;;  %v3892_v57 = vrot.slane %v3890_v13, 4  ;;  %v3891_v38 = vsel %vm14856_vm2, %v11990_v4, %v3890_v13  ;;  %v15609_v4 = vld [vmem:[#allocation2 + $0xb8] sm:$0xf] }
 0x1ab   : > { %13130 = vmatprep.mubr.msk.bf16.mxu0 %vm1420_vm12, %v11995_v39  ;;  %v3851_v39 = vrot.slane %v18398_v18, 5  ;;  %v14196_v18 = vld [vmem:[#allocation2 + $0x24] sm:$0xff]  }
 0x1ad   : > { %v3852_v25 = vsel %vm14856_vm2, %v3850_v47, %v3851_v39  ;;  %v14195_v47 = vld [vmem:[#allocation2 + $0x18] sm:$0xff]   ;;  %v14197_v39 = vld [vmem:[#allocation2 + $0x30] sm:$0xff]  }
 0x1ae   : > { %v12002_v36 = vcombine.low %v3849_v0, %v3852_v25  ;;  %v14198_v0 = vld [vmem:[#allocation2 + $0x3c] sm:$0xff]  }
 0x1b2   : > { %13131 = vmatmul.mubr.msk.bf16.gmra.mrb[8].mxu0 %vm1420_vm12, %v11996_v44  ;;  %v12003_v44 = vcombine.low %v3856_v24, %v3859_v6  ;;  %v14272_v24 = vld [vmem:[#allocation2 + $0x90] sm:$0xf] }
 0x1b3   : > { %13134 = vmatprep.mubr.msk.bf16.mxu0 %vm1420_vm12, %v11997_v7  ;;  %v11986_v7 = vrot.slane %v3710_v30, 9  ;;  %v1222_v6 = vshrl.u32 %v14272_v24, 16  ;;  %v1225_v30 = vshll.u32 %v14272_v24, 16 }
 0x1b5   : > { %v3863_v58 = vsel %vm14856_vm2, %v11986_v7, %v3862_v15  ;;  %v14199_v15 = vld [vmem:[#allocation2 + $0x48] sm:$0xff]   ;;  %v15583_v3 = vrot.slane %v1222_v6, 4  ;;  %v15585_v23 = vrot.slane %v1225_v30, 5 }
 0x1b6   : > { %v12004_v40 = vcombine.low %v3863_v58, %v3866_v62  ;;  %v14275_v7 = vld [vmem:[#allocation2 + $0xa8] sm:$0xf]  ;;  %v1297_v62 = vshll.u32 %v14276_v27, 16  ;;  %v15637_v58 = vld [vmem:[#allocation2 + $0x4c] sm:$0xf] }
 0x1b7   : > { %v1270_v37 = vshrl.u32 %v14275_v7, 16  ;;  %v1273_v26 = vshll.u32 %v14275_v7, 16  ;;  %v4720_v7 = vshrl.u32 %v4623_v19, 16  ;;  %18407 = vst [vmem:[#allocation9_spill] sm:$0xff] %v15637_v58 }
 0x1ba   : > { %13135 = vmatmul.mubr.msk.bf16.gmra.mrb[12].mxu0 %vm1420_vm12, %v11998_v16  ;;  %v3883_v16 = vrot.slane %v15362_v28, 5  ;;  %v3880_v28 = vsel %vm14856_vm2, %v3878_v31, %v3879_v63  ;;  %v15594_v31 = vld [vmem:[#allocation2 + $0xac] sm:$0xf] }
 0x1bb   : > { %13138 = vmatprep.mubr.msk.bf16.mxu0 %vm1420_vm12, %v11999_v60  ;;  %v3713_v60 = vld [vmem:[#allocation2 + $0xcc] sm:$0xe]  ;;  %v12006_v61 = vcombine.low %v3877_v14, %v3880_v28  ;;  %v15601_v14 = vrot.slane %v1294_v59, 4  ;;  %v14200_v28 = vld [vmem:[#allocation2 + $0x54] sm:$0xff]  }
 0x1bc   : > { %v11989_v11 = vrot.slane %v3713_v60, 9  ;;  %v3885_v1 = vrot.slane %v3883_v16, 4  ;;  %v15587_v60 = vrot.slane %v1246_v22, 4  ;;  %v4705_v22 = vshll.u32 %v4621_v52, 16 }
 0x1be   : > { %v3884_v51 = vsel %vm14856_vm2, %v11989_v11, %v3883_v16  ;;  %v3887_v32 = vsel %vm14856_vm2, %v3885_v1, %v3886_v12  ;;  %v4617_v16 = vld [vmem:[#allocation2 + $0x18] sm:$0xf]  ;;  %v405_v11 = vld [vmem:[#allocation2 + $0xec] sm:$0x1]  ;;  %v15597_v1 = vrot.slane %v1270_v37, 4  ;;  %v15599_v12 = vrot.slane %v1273_v26, 5 }
 0x1bf   : > { %v12007_v46 = vcombine.low %v3884_v51, %v3887_v32  ;;  %v406_v13 = vsel %vm14401_vm3, 0, %v405_v11  ;;  %v15605_v51 = vrot.slane %v1297_v62, 5  ;;  %v14201_v32 = vld [vmem:[#allocation2 + $0x60] sm:$0xff]   ;;  %v4723_v37 = vshll.u32 %v4623_v19, 16 }
 0x1c0   : > { %407 = vst [vmem:[#allocation2 + $0xec] sm:$0x1] %v406_v13  ;;  %v4757_v11 = vshrl.u32 %v4627_v41, 16  ;;  %v15633_v19 = vrot.slane %v4705_v22, 5 }
 0x1c2   : > { %13139 = vmatmul.mubr.msk.bf16.gmra.mrb[16].mxu0 %vm1420_vm12, %v12000_v17  ;;  %v3893_v17 = vrot.slane %v15398_v45, 5  ;;  %v5213_v45 = vsel %vm1475_vm0, %v15450_v9, 0  ;;  %v14271_v9 = vld [vmem:[#allocation2 + $0x84] sm:$0xf] }
 0x1c3   : > { %13142 = vmatprep.mubr.msk.bf16.mxu0 %vm1420_vm12, %v12001_v29  ;;  %v1198_v25 = vshrl.u32 %v14271_v9, 16  ;;  %v1201_v33 = vshll.u32 %v14271_v9, 16  ;;  %v4685_v9 = vshrl.u32 %v15607_v56, 16 }
 0x1c4   : > { %v3894_v29 = vsel %vm14856_vm2, %v3892_v57, %v3893_v17  ;;  %v15612_v17 = vrot.slane %v1318_v48, 4  ;;  %v15627_v48 = vld [vmem:[#allocation2 + $0x20] sm:$0x1] }
 0x1c5   : > { %v12008_v42 = vcombine.low %v3891_v38, %v3894_v29  ;;  %v15575_v50 = vrot.slane %v1198_v25, 4  ;;  %v15577_v34 = vrot.slane %v1201_v33, 5  ;;  %v15614_v38 = vrot.slane %v1321_v8, 5  ;;  %v15616_v29 = vld [vmem:[#allocation2 + $0xc4] sm:$0xf] }
 0x1c6   : > { %v4624_v25 = vld [vmem:[#allocation2 + $0x34] sm:$0xf]  ;;  %v4626_v33 = vld [vmem:[#allocation2 + $0x3c] sm:$0xf]  ;;  %v4691_v22 = vshll.u32 %v15627_v48, 16 }
 0x1c7   : > { %v4729_v26 = vshll.u32 %v4624_v25, 16  ;;  %v4733_v27 = vshrl.u32 %v4624_v25, 16  ;;  %v4744_v59 = vshrl.u32 %v4626_v33, 16  ;;  %v4747_v62 = vshll.u32 %v4626_v33, 16 }
 0x1c8   : > { %v4725_v33 = vrot.slane %v4723_v37, 5  ;;  %v15648_v37 = vld [vmem:[#allocation2 + $0x44] sm:$0x1] }
 0x1c9   : > { %v15635_v57 = vrot.slane %v4729_v26, 5  ;;  %v4735_v63 = vrot.slane %v4733_v27, 4  ;;  %v4749_v54 = vrot.slane %v4747_v62, 5  ;;  %v4781_v62 = vshrl.u32 %v15637_v58, 16 }
 0x1ca   : > { %13143 = vmatmul.mubr.msk.bf16.gmra.mrb[20].mxu0 %vm1420_vm12, %v12002_v36  ;;  %v15571_v36 = vld [vmem:[#allocation2 + $0x88] sm:$0xf] }
 0x1cb   : > { %13146 = vmatprep.mubr.msk.bf16.mxu0 %vm1420_vm12, %v12003_v44 }
 0x1d2   : > { %13147 = vmatmul.mubr.msk.bf16.gmra.mrb[24].mxu0 %vm1420_vm12, %v12004_v40  ;;  %v15589_v40 = vrot.slane %v1249_v43, 5  ;;  %v4709_v43 = vshrl.u32 %v4621_v52, 16  ;;  %v15631_v52 = vld [vmem:[#allocation2 + $0x2c] sm:$0x1] }
 0x1d3   : > { %13150 = vmatprep.mubr.msk.bf16.mxu0 %vm1420_vm12, %v12005_v5  ;;  %v15591_v5 = vld [vmem:[#allocation2 + $0xa0] sm:$0xf]  ;;  %18406 = vst [vmem:[#allocation8_spill] sm:$0xff] %v15631_v52 }
 0x1d4   : > { %v4711_v25 = vrot.slane %v4709_v43, 4 }
 0x1d6   : > { %v4712_v27 = vor.u32 %v4711_v25, %v15633_v19 }
 0x1da   : > { %13151 = vmatmul.mubr.msk.bf16.gmra.mrb[28].mxu0 %vm1420_vm12, %v12006_v61  ;;  %v4672_v61 = vshrl.u32 %v4617_v16, 16 }
 0x1db   : > { %13154 = vmatprep.mubr.msk.bf16.mxu0 %vm1420_vm12, %v12007_v46  ;;  %v4675_v46 = vshll.u32 %v4617_v16, 16  ;;  %v4753_v16 = vshll.u32 %v4627_v41, 16 }
 0x1dd   : > { %v4677_v24 = vrot.slane %v4675_v46, 5 }
 0x1e2   : > { %13155 = vmatmul.mubr.msk.bf16.gmra.mrb[32].mxu0 %vm1420_vm12, %v12008_v42  ;;  %v4722_v42 = vrot.slane %v4720_v7, 4  ;;  %v4715_v7 = vshll.u32 %v15631_v52, 16  ;;  %v15663_v52 = vld [vmem:[#allocation2 + $0x50] sm:$0x1] }
 0x1e3   : > { %13160 = vmatprep.mubr.msk.bf16.mxu0 %vm1420_vm12, %v14195_v47  ;;  %v4620_v47 = vld [vmem:[#allocation2 + $0x24] sm:$0xf] }
 0x1e4   : > { %v4696_v6 = vshrl.u32 %v4620_v47, 16  ;;  %v4699_v30 = vshll.u32 %v4620_v47, 16  ;;  %v4629_v47 = vld [vmem:[#allocation2 + $0x48] sm:$0xf] }
 0x1e6   : > { %v4701_v46 = vrot.slane %v4699_v30, 5  ;;  %v4771_v30 = vshll.u32 %v4629_v47, 16 }
 0x1e8   : > { %v4773_v44 = vrot.slane %v4771_v30, 5 }
 0x1ea   : > { %13161 = vmatmul.mubr.msk.bf16.vlgmr.msra.gmra.mrb[0].mxu0 %vm1420_vm12, %v14196_v18  ;;  %v15619_v18 = vld [vmem:[#allocation2 + $0xcc] sm:$0xf] }
 0x1eb   : > { %13197 = vmatpush3.bf16.msra.mxu0 %v5213_v45  ;;  %13164 = vmatprep.mubr.msk.bf16.mxu0 %vm1420_vm12, %v14197_v39  ;;  %v14205_v45 = vld [vmem:[#allocation2 + $0x90] sm:$0xff]   ;;  %v4693_v39 = vrot.slane %v4691_v22, 5 }
 0x1ec   : > { %14133 = vmatprep.subr.msk.bf16.mxu0 %vm1475_vm0, %v15563_v49 }
 0x1f2   : > { %13165 = vmatmul.mubr.msk.bf16.gmra.mrb[4].mxu0 %vm1420_vm12, %v14198_v0  ;;  %v4681_v0 = vshll.u32 %v15607_v56, 16 }
 0x1f3   : > { %13168 = vmatprep.mubr.msk.bf16.mxu0 %vm1420_vm12, %v14199_v15  ;;  %v4674_v15 = vrot.slane %v4672_v61, 4  ;;  %v4698_v61 = vrot.slane %v4696_v6, 4  ;;  %v4768_v6 = vshrl.u32 %v4629_v47, 16  ;;  %v4763_v47 = vshll.u32 %v15648_v37, 16 }
 0x1f4   : > { %v15629_v8 = vrot.slane %v4681_v0, 5  ;;  %v4746_v0 = vrot.slane %v4744_v59, 4  ;;  %v4777_v59 = vshll.u32 %v15637_v58, 16  ;;  %v4717_v58 = vrot.slane %v4715_v7, 5 }
 0x1f5   : > { %v4678_v13 = vor.u32 %v4677_v24, %v4674_v15  ;;  %v15642_v15 = vrot.slane %v4753_v16, 5  ;;  %v4759_v24 = vrot.slane %v4757_v11, 4  ;;  %v4702_v43 = vor.u32 %v4701_v46, %v4698_v61  ;;  %v14204_v61 = vld [vmem:[#allocation2 + $0x84] sm:$0xff]  }
 0x1f6   : > { %v4726_v16 = vor.u32 %v4725_v33, %v4722_v42  ;;  %v4736_v11 = vor.u32 %v4735_v63, %v15635_v57  ;;  %v15659_v42 = vrot.slane %v4777_v59, 5  ;;  %v4783_v63 = vrot.slane %v4781_v62, 4  ;;  %v15661_v33 = vld [vmem:[#allocation2 + $0x58] sm:$0xf] }
 0x1f7   : > { %v15650_v26 = vrot.slane %v4678_v13, 4  ;;  %v4760_v46 = vor.u32 %v4759_v24, %v15642_v15  ;;  %v4770_v13 = vrot.slane %v4768_v6, 4  ;;  %v4703_v20 = vrot.slane %v4702_v43, 4 }
 0x1f8   : > { %v4801_v59 = vshll.u32 %v15661_v33, 16  ;;  %v4805_v62 = vshrl.u32 %v15661_v33, 16 }
 0x1f9   : > { %v4761_v30 = vrot.slane %v4760_v46, 4  ;;  %v4774_v22 = vor.u32 %v4773_v44, %v4770_v13  ;;  %v4787_v44 = vshll.u32 %v15663_v52, 16 }
 0x1fa   : > { %13169 = vmatmul.mubr.msk.bf16.gmra.mrb[8].mxu0 %vm1420_vm12, %v14200_v28  ;;  %v14203_v28 = vld [vmem:[#allocation2 + $0x78] sm:$0xff]   ;;  %v15702_v13 = vrot.slane %v4801_v59, 5 }
 0x1fb   : > { %13172 = vmatprep.mubr.msk.bf16.mxu0 %vm1420_vm12, %v14201_v32  ;;  %v4687_v32 = vrot.slane %v4685_v9, 4  ;;  %v15640_v9 = vld [vmem:[#allocation2 + $0x38] sm:$0x1] }
 0x1fc   : > { %18408 = vst [vmem:[#allocation10_spill] sm:$0xff] %v15640_v9 }
 0x1fd   : > { %v4688_v41 = vor.u32 %v4687_v32, %v15629_v8  ;;  %v4750_v32 = vor.u32 %v4749_v54, %v4746_v0  ;;  %v4713_v54 = vrot.slane %v4712_v27, 4  ;;  %v4727_v0 = vrot.slane %v4726_v16, 4 }
 0x1fe   : > { %v18409_v27 = vshrl.u32 %v15619_v18, 16  ;;  %v18410_v16 = vshll.u32 %v15619_v18, 16 }
 0x1ff   : > { %v4689_v25 = vrot.slane %v4688_v41, 4  ;;  %v4751_v6 = vrot.slane %v4750_v32, 4  ;;  %v4765_v41 = vrot.slane %v4763_v47, 5  ;;  %v4718_v18 = vsel %vm14507_vm13, %v4713_v54, %v4717_v58  ;;  %v15690_v32 = vld [vmem:[#allocation2 + $0x5c] sm:$0x1] }
 0x200   : > { %18411 = vst [vmem:[#allocation11_spill] sm:$0xff] %v15690_v32  ;;  %v4732_v46 = vsel %vm14507_vm13, %v4727_v0, %v15635_v57  ;;  %v4775_v58 = vrot.slane %v4774_v22, 4  ;;  %v15706_v57 = vld [vmem:[#allocation2 + $0xd0] sm:$0xf]  ;;  %v4789_v0 = vrot.slane %v4787_v44, 5 }
 0x202   : > { %13173 = vmatmul.mubr.msk.bf16.gmra.mrb[12].mxu0 %vm1420_vm12, %v14202_v10  ;;  %v4632_v10 = vld [vmem:[#allocation2 + $0x54] sm:$0xf] }
 0x203   : > { %13176 = vmatprep.mubr.msk.bf16.mxu0 %vm1420_vm12, %v14203_v28  ;;  %v4739_v28 = vshll.u32 %v15640_v9, 16  ;;  %v4792_v53 = vshrl.u32 %v4632_v10, 16  ;;  %v4795_v2 = vshll.u32 %v4632_v10, 16  ;;  %v4737_v9 = vrot.slane %v4736_v11, 4 }
 0x204   : > { %v15671_v10 = vrot.slane %v18409_v27, 4  ;;  %v15675_v11 = vrot.slane %v18410_v16, 5  ;;  %v14285_v16 = vld [vmem:[#allocation2 + $0x78] sm:$0xf] }
 0x205   : > { %v4741_v24 = vrot.slane %v4739_v28, 5  ;;  %v4794_v43 = vrot.slane %v4792_v53, 4  ;;  %v4797_v7 = vrot.slane %v4795_v2, 5  ;;  %v4784_v28 = vor.u32 %v4783_v63, %v15659_v42  ;;  %v15704_v63 = vld [vmem:[#allocation2 + $0x64] sm:$0xf] }
 0x206   : > { %v4684_v2 = vsel %vm14507_vm13, %v15650_v26, %v15629_v8  ;;  %v4694_v53 = vsel %vm14507_vm13, %v4689_v25, %v4693_v39  ;;  %v4756_v39 = vsel %vm14507_vm13, %v4751_v6, %v15642_v15  ;;  %v14207_v26 = vld [vmem:[#allocation2 + $0xa8] sm:$0xff]   ;;  %v4807_v25 = vrot.slane %v4805_v62, 4  ;;  %18412 = vst [vmem:[#allocation12_spill] sm:$0xff] %v15704_v63 }
 0x207   : > { %v4742_v8 = vsel %vm14507_vm13, %v4737_v9, %v4741_v24  ;;  %v4798_v47 = vor.u32 %v4797_v7, %v4794_v43  ;;  %v4785_v54 = vrot.slane %v4784_v28, 4  ;;  %v4811_v15 = vshll.u32 %v15690_v32, 16 }
 0x208   : > { %v15710_v24 = vcombine.low %v4684_v2, %v4694_v53  ;;  %v15714_v6 = vsel %vm1475_vm0, %v15563_v49, 0  ;;  %v15719_v43 = vcombine.low %v4732_v46, %v4742_v8  ;;  %v4825_v59 = vshll.u32 %v15704_v63, 16 }
 0x209   : > { %v4780_v62 = vsel %vm14507_vm13, %v4775_v58, %v15659_v42  ;;  %v4799_v49 = vrot.slane %v4798_v47, 4  ;;  %v4808_v27 = vor.u32 %v4807_v25, %v15702_v13  ;;  %v1174_v28 = vshrl.u32 %v14285_v16, 16  ;;  %v14209_v25 = vld [vmem:[#allocation2 + $0xc0] sm:$0xff]  }
 0x20a   : > { %13177 = vmatmul.mubr.msk.bf16.gmra.mrb[16].mxu0 %vm1420_vm12, %v14204_v61  ;;  %v14206_v61 = vld [vmem:[#allocation2 + $0x9c] sm:$0xff]   ;;  %v4790_v44 = vsel %vm14507_vm13, %v4785_v54, %v4789_v0  ;;  %v4813_v2 = vrot.slane %v4811_v15, 5  ;;  %v1177_v53 = vshll.u32 %v14285_v16, 16  ;;  %v15733_v42 = vrot.slane %v4825_v59, 5 }
 0x20b   : > { %13180 = vmatprep.mubr.msk.bf16.mxu0 %vm1420_vm12, %v14205_v45  ;;  %v4708_v45 = vsel %vm14507_vm13, %v4703_v20, %v15633_v19  ;;  %v4766_v20 = vsel %vm14507_vm13, %v4761_v30, %v4765_v41  ;;  %v4635_v19 = vld [vmem:[#allocation2 + $0x60] sm:$0xf]  ;;  %v15736_v9 = vcombine.low %v4780_v62, %v4790_v44  ;;  %v4809_v54 = vrot.slane %v4808_v27, 4  ;;  %v14288_v62 = vld [vmem:[#allocation2 + $0x8c] sm:$0x1] }
 0x20c   : > { %v4816_v30 = vshrl.u32 %v4635_v19, 16  ;;  %v4819_v41 = vshll.u32 %v4635_v19, 16  ;;  %v15717_v22 = vcombine.low %v4708_v45, %v4718_v18  ;;  %v15721_v7 = vcombine.low %v4756_v39, %v4766_v20  ;;  %v14286_v45 = vld [vmem:[#allocation2 + $0x7c] sm:$0xf]  ;;  %v14208_v19 = vld [vmem:[#allocation2 + $0xb4] sm:$0xff]  }
 0x20d   : > { %v1183_v18 = vshll.u32 %v14286_v45, 16  ;;  %v1176_v39 = vrot.slane %v1174_v28, 4  ;;  %v1187_v20 = vshrl.u32 %v14286_v45, 16  ;;  %v1179_v58 = vrot.slane %v1177_v53, 5  ;;  %v14287_v15 = vld [vmem:[#allocation2 + $0x80] sm:$0x1] }
 0x20e   : > { %v4818_v46 = vrot.slane %v4816_v30, 4  ;;  %v4821_v8 = vrot.slane %v4819_v41, 5  ;;  %v1193_v16 = vshll.u32 %v14287_v15, 16  ;;  %v4638_v30 = vld [vmem:[#allocation2 + $0x6c] sm:$0xf]  ;;  %v1204_v28 = vor.u32 %v15577_v34, %v15575_v50 }
 0x20f   : > { %v1185_v47 = vrot.slane %v1183_v18, 5  ;;  %v1189_v0 = vrot.slane %v1187_v20, 4  ;;  %v1180_v41 = vor.u32 %v1179_v58, %v1176_v39  ;;  %v1207_v59 = vshll.u32 %v15571_v36, 16  ;;  %v15748_v20 = vld [vmem:[#allocation2 + $0x70] sm:$0xf] }
 0x210   : > { %v18413_v53 = vshrl.u32 %v15571_v36, 16  ;;  %v1217_v44 = vshll.u32 %v14288_v62, 16  ;;  %v4804_v27 = vsel %vm14507_vm13, %v4799_v49, %v15702_v13  ;;  %v1205_v58 = vrot.slane %v1204_v28, 4  ;;  %v14211_v28 = vld [vmem:[#allocation2 + $0xd8] sm:$0xff]  }
 0x211   : > { %v1190_v45 = vor.u32 %v1189_v0, %v1185_v47  ;;  %v1181_v39 = vrot.slane %v1180_v41, 4  ;;  %v1209_v50 = vrot.slane %v1207_v59, 5  ;;  %v4822_v34 = vor.u32 %v4821_v8, %v4818_v46  ;;  %v14210_v46 = vld [vmem:[#allocation2 + $0xcc] sm:$0xff]  }
 0x212   : > { %13181 = vmatmul.mubr.msk.bf16.gmra.mrb[20].mxu0 %vm1420_vm12, %v14206_v61  ;;  %v15731_v61 = vld [vmem:[#allocation2 + $0x68] sm:$0x1]  ;;  %v1213_v18 = vrot.slane %v18413_v53, 4  ;;  %v4840_v15 = vshrl.u32 %v4638_v30, 16  ;;  %v1219_v62 = vrot.slane %v1217_v44, 5  ;;  %v4843_v49 = vshll.u32 %v4638_v30, 16 }
 0x213   : > { %13184 = vmatprep.mubr.msk.bf16.mxu0 %vm1420_vm12, %v14207_v26  ;;  %v4829_v26 = vshrl.u32 %v15704_v63, 16  ;;  %v4835_v32 = vshll.u32 %v15731_v61, 16  ;;  %v1195_v63 = vrot.slane %v1193_v16, 5  ;;  %v1191_v36 = vrot.slane %v1190_v45, 4 }
 0x214   : > { %v4814_v16 = vsel %vm14507_vm13, %v4809_v54, %v4813_v2  ;;  %v1214_v53 = vor.u32 %v1213_v18, %v1209_v50  ;;  %v4849_v41 = vshll.u32 %v15748_v20, 16  ;;  %v4853_v8 = vshrl.u32 %v15748_v20, 16 }
 0x215   : > { %v4831_v0 = vrot.slane %v4829_v26, 4  ;;  %v15755_v13 = vrot.slane %v4835_v32, 5  ;;  %v1210_v2 = vsel %vm14507_vm13, %v1205_v58, %v1209_v50  ;;  %v15765_v59 = vrot.slane %v4822_v34, 4  ;;  %v15776_v58 = vld [vmem:[#allocation2 + $0x74] sm:$0x1] }
 0x216   : > { %v1215_v54 = vrot.slane %v1214_v53, 4  ;;  %v1228_v30 = vor.u32 %v15585_v23, %v15583_v3  ;;  %v1231_v45 = vshll.u32 %v15579_v35, 16  ;;  %v18414_v18 = vshrl.u32 %v15579_v35, 16 }
 0x217   : > { %v4832_v32 = vor.u32 %v4831_v0, %v15733_v42  ;;  %v4842_v50 = vrot.slane %v4840_v15, 4  ;;  %v4845_v34 = vrot.slane %v4843_v49, 5  ;;  %v1252_v3 = vor.u32 %v15589_v40, %v15587_v60 }
 0x218   : > { %v1237_v44 = vrot.slane %v18414_v18, 4  ;;  %v15781_v23 = vrot.slane %v4849_v41, 5  ;;  %v1255_v35 = vshll.u32 %v15591_v5, 16  ;;  %v4855_v53 = vrot.slane %v4853_v8, 4  ;;  %v15789_v41 = vld [vmem:[#allocation2 + $0x7c] sm:$0xf] }
 0x219   : > { %v1253_v15 = vrot.slane %v1252_v3, 4  ;;  %v4859_v40 = vshll.u32 %v15776_v58, 16  ;;  %v4828_v8 = vsel %vm14507_vm13, %v15765_v59, %v15733_v42 }
 0x21a   : > { %13185 = vmatmul.mubr.msk.bf16.gmra.mrb[24].mxu0 %vm1420_vm12, %v14208_v19  ;;  %v1186_v19 = vsel %vm14507_vm13, %v1181_v39, %v1185_v47  ;;  %v15763_v47 = vcombine.low %v4804_v27, %v4814_v16  ;;  %v14289_v39 = vld [vmem:[#allocation2 + $0x98] sm:$0x1]  ;;  %v1229_v16 = vrot.slane %v1228_v30, 4 }
 0x21b   : > { %13188 = vmatprep.mubr.msk.bf16.mxu0 %vm1420_vm12, %v14209_v25  ;;  %v1196_v25 = vsel %vm14507_vm13, %v1191_v36, %v1195_v63  ;;  %v1220_v63 = vsel %vm14507_vm13, %v1215_v54, %v1219_v62  ;;  %v1241_v27 = vshll.u32 %v14289_v39, 16  ;;  %v4641_v36 = vld [vmem:[#allocation2 + $0x78] sm:$0xf]  ;;  %v18415_v62 = vshrl.u32 %v15591_v5, 16 }
 0x21c   : > { %v11785_v26 = vcombine.low %v1186_v19, %v1196_v25  ;;  %v11786_v0 = vcombine.low %v1210_v2, %v1220_v63  ;;  %v1233_v19 = vrot.slane %v1231_v45, 5  ;;  %v14290_v25 = vld [vmem:[#allocation2 + $0xa4] sm:$0x1]  ;;  %v1257_v2 = vrot.slane %v1255_v35, 5 }
 0x21d   : > { %v1261_v49 = vrot.slane %v18415_v62, 4  ;;  %v1265_v60 = vshll.u32 %v14290_v25, 16  ;;  %v4833_v54 = vrot.slane %v4832_v32, 4  ;;  %v4867_v30 = vshll.u32 %v4641_v36, 16  ;;  %v14212_v63 = vld [vmem:[#allocation2 + $0xe4] sm:$0xff]  }
 0x21e   : > { %12952 = vmatprep.mubr.msk.bf16.mxu1 %vm1420_vm12, %v11785_v26  ;;  %v1243_v26 = vrot.slane %v1241_v27, 5  ;;  %v1234_v5 = vsel %vm14507_vm13, %v1229_v16, %v1233_v19  ;;  %v4873_v27 = vshll.u32 %v15789_v41, 16  ;;  %v1258_v3 = vsel %vm14507_vm13, %v1253_v15, %v1257_v2 }
 0x21f   : > { %12953 = vmatmul.mubr.msk.bf16.vlgmr.msra.gmra.mrb[0].mxu1 %vm1420_vm12, %v11786_v0  ;;  %v1262_v18 = vor.u32 %v1261_v49, %v1257_v2  ;;  %v1267_v39 = vrot.slane %v1265_v60, 5  ;;  %v4846_v0 = vor.u32 %v4845_v34, %v4842_v50  ;;  %v1276_v32 = vor.u32 %v15599_v12, %v15597_v1  ;;  %v14291_v49 = vld [vmem:[#allocation2 + $0xb0] sm:$0x1] }
 0x220   : > { %v4838_v50 = vsel %vm14507_vm13, %v4833_v54, %v15755_v13  ;;  %v4877_v15 = vshrl.u32 %v15789_v41, 16  ;;  %v1289_v25 = vshll.u32 %v14291_v49, 16  ;;  %v15820_v60 = vrot.slane %v4859_v40, 5  ;;  %v14292_v54 = vld [vmem:[#allocation2 + $0xbc] sm:$0x1] }
 0x221   : > { %v1263_v59 = vrot.slane %v1262_v18, 4  ;;  %v1277_v1 = vrot.slane %v1276_v32, 4  ;;  %v15834_v40 = vrot.slane %v4873_v27, 5  ;;  %v15836_v18 = vld [vmem:[#allocation2 + $0x88] sm:$0xf] }
 0x222   : > { %13189 = vmatmul.mubr.msk.bf16.gmra.mrb[28].mxu0 %vm1420_vm12, %v14210_v46  ;;  %v1238_v46 = vor.u32 %v1237_v44, %v1233_v19  ;;  %v4856_v44 = vor.u32 %v4855_v53, %v15781_v23  ;;  %v18416_v19 = vshrl.u32 %v15594_v31, 16  ;;  %v4869_v53 = vrot.slane %v4867_v30, 5 }
 0x223   : > { %13192 = vmatprep.mubr.msk.bf16.mxu0 %vm1420_vm12, %v14211_v28  ;;  %v4864_v28 = vshrl.u32 %v4641_v36, 16  ;;  %v1279_v36 = vshll.u32 %v15594_v31, 16  ;;  %v1268_v62 = vsel %vm14507_vm13, %v1263_v59, %v1267_v39  ;;  %v1300_v31 = vor.u32 %v15605_v51, %v15601_v14 }
 0x224   : > { %v1239_v45 = vrot.slane %v1238_v46, 4  ;;  %v1285_v35 = vrot.slane %v18416_v19, 4  ;;  %v11788_v12 = vcombine.low %v1258_v3, %v1268_v62  ;;  %v1303_v46 = vshll.u32 %v15609_v4, 16 }
 0x225   : > { %v4866_v34 = vrot.slane %v4864_v28, 4  ;;  %v1281_v13 = vrot.slane %v1279_v36, 5  ;;  %v1313_v28 = vshll.u32 %v14292_v54, 16  ;;  %v15825_v30 = vcombine.low %v4828_v8, %v4838_v50 }
 0x226   : > { %v1244_v42 = vsel %vm14507_vm13, %v1239_v45, %v1243_v26  ;;  %v18417_v26 = vshrl.u32 %v15609_v4, 16  ;;  %v1291_v14 = vrot.slane %v1289_v25, 5  ;;  %v15832_v51 = vrot.slane %v4856_v44, 4  ;;  %v4647_v25 = vld [vmem:[#allocation2 + $0x90] sm:$0xf] }
 0x227   : > { %v11787_v16 = vcombine.low %v1234_v5, %v1244_v42  ;;  %v4644_v5 = vld [vmem:[#allocation2 + $0x84] sm:$0xf]  ;;  %v1286_v45 = vor.u32 %v1285_v35, %v1281_v13  ;;  %v1301_v4 = vrot.slane %v1300_v31, 4  ;;  %v1305_v39 = vrot.slane %v1303_v46, 5 }
 0x228   : > { %v1309_v2 = vrot.slane %v18417_v26, 4  ;;  %v4870_v3 = vor.u32 %v4869_v53, %v4866_v34  ;;  %v4879_v8 = vrot.slane %v4877_v15, 4  ;;  %v4888_v32 = vshrl.u32 %v4644_v5, 16  ;;  %v15868_v26 = vld [vmem:[#allocation2 + $0x94] sm:$0xf] }
 0x229   : > { %12956 = vmatprep.mubr.msk.bf16.mxu1 %vm1420_vm12, %v11787_v16  ;;  %v1287_v42 = vrot.slane %v1286_v45, 4  ;;  %v1315_v50 = vrot.slane %v1313_v28, 5  ;;  %v4891_v16 = vshll.u32 %v4644_v5, 16  ;;  %v4897_v44 = vshll.u32 %v15836_v18, 16 }
 0x22a   : > { %13193 = vmatmul.mubr.msk.bf16.gmra.mrb[32].mxu0 %vm1420_vm12, %v14212_v63  ;;  %v15829_v63 = vld [vmem:[#allocation2 + $0x80] sm:$0x1]  ;;  %12957 = vmatmul.mubr.msk.bf16.gmra.mrb[4].mxu1 %vm1420_vm12, %v11788_v12  ;;  %v1310_v36 = vor.u32 %v1309_v2, %v1305_v39  ;;  %v1327_v19 = vshll.u32 %v15616_v29, 16  ;;  %v1306_v35 = vsel %vm14507_vm13, %v1301_v4, %v1305_v39  ;;  %v1324_v15 = vor.u32 %v15614_v38, %v15612_v17 }
 0x22b   : > { %13198 = vmatprep.mubr.msk.bf16.mxu0 %vm1420_vm12, %v15710_v24  ;;  %v15827_v24 = vrot.slane %v4846_v0, 4  ;;  %v1282_v0 = vsel %vm14507_vm13, %v1277_v1, %v1281_v13  ;;  %v4883_v59 = vshll.u32 %v15829_v63, 16  ;;  %v1292_v27 = vsel %vm14507_vm13, %v1287_v42, %v1291_v14  ;;  %v15875_v14 = vld [vmem:[#allocation2 + $0x8c] sm:$0x1] }
 0x22c   : > { %v11789_v34 = vcombine.low %v1282_v0, %v1292_v27  ;;  %v1311_v53 = vrot.slane %v1310_v36, 4  ;;  %v15854_v62 = vrot.slane %v4870_v3, 4  ;;  %v4880_v1 = vor.u32 %v4879_v8, %v15834_v40 }
 0x22d   : > { %v1329_v12 = vrot.slane %v1327_v19, 5  ;;  %v15859_v49 = vrot.slane %v4883_v59, 5  ;;  %v1325_v38 = vrot.slane %v1324_v15, 4  ;;  %v15866_v46 = vrot.slane %v4891_v16, 5  ;;  %v4650_v59 = vld [vmem:[#allocation2 + $0x9c] sm:$0xf] }
 0x22e   : > { %12960 = vmatprep.mubr.msk.bf16.mxu1 %vm1420_vm12, %v11789_v34  ;;  %v1316_v17 = vsel %vm14507_vm13, %v1311_v53, %v1315_v50  ;;  %v15870_v54 = vrot.slane %v4897_v44, 5  ;;  %v4901_v28 = vshrl.u32 %v15836_v18, 16  ;;  %v1348_v45 = vor.u32 %v15675_v11, %v15671_v10  ;;  %v14294_v50 = vld [vmem:[#allocation2 + $0xd4] sm:$0x1]  ;;  %v15885_v16 = vld [vmem:[#allocation2 + $0xa0] sm:$0xf] }
 0x22f   : > { %v11790_v2 = vcombine.low %v1306_v35, %v1316_v17  ;;  %v4912_v4 = vshrl.u32 %v4647_v25, 16  ;;  %v1330_v39 = vsel %vm14507_vm13, %v1325_v38, %v1329_v12  ;;  %v1351_v8 = vshll.u32 %v15706_v57, 16 }
 0x230   : > { %v4915_v0 = vshll.u32 %v4647_v25, 16  ;;  %v4921_v42 = vshll.u32 %v15868_v26, 16  ;;  %v1361_v10 = vshll.u32 %v14294_v50, 16  ;;  %v4925_v11 = vshrl.u32 %v15868_v26, 16 }
 0x231   : > { %v1349_v27 = vrot.slane %v1348_v45, 4  ;;  %v1353_v19 = vrot.slane %v1351_v8, 5  ;;  %v4881_v34 = vrot.slane %v4880_v1, 4  ;;  %v4903_v35 = vrot.slane %v4901_v28, 4  ;;  %v15912_v45 = vld [vmem:[#allocation2 + $0x98] sm:$0x1] }
 0x232   : > { %13199 = vmatmul.mubr.msk.bf16.vlgmr.msra.gmra.mrb[0].mxu0 %vm1420_vm12, %v15717_v22  ;;  %v18418_v22 = vshrl.u32 %v15616_v29, 16  ;;  %12961 = vmatmul.mubr.msk.bf16.gmra.mrb[8].mxu1 %vm1420_vm12, %v11790_v2  ;;  %v4907_v53 = vshll.u32 %v15875_v14, 16  ;;  %v4914_v15 = vrot.slane %v4912_v4, 4  ;;  %v4917_v25 = vrot.slane %v4915_v0, 5 }
 0x233   : > { %13235 = vmatpush3.bf16.msra.mxu0 %v15714_v6  ;;  %13202 = vmatprep.mubr.msk.bf16.mxu0 %vm1420_vm12, %v15719_v43  ;;  %v14293_v6 = vld [vmem:[#allocation2 + $0xc8] sm:$0x1]  ;;  %v15864_v43 = vrot.slane %v4888_v32, 4  ;;  %v18419_v32 = vshrl.u32 %v15706_v57, 16  ;;  %v4939_v17 = vshll.u32 %v4650_v59, 16  ;;  %v4945_v38 = vshll.u32 %v15885_v16, 16 }
 0x234   : > { %v1333_v13 = vrot.slane %v18418_v22, 4  ;;  %v1337_v31 = vshll.u32 %v14293_v6, 16  ;;  %v4949_v6 = vshrl.u32 %v15885_v16, 16  ;;  %v4927_v1 = vrot.slane %v4925_v11, 4 }
 0x235   : > { %v1357_v36 = vrot.slane %v18419_v32, 4  ;;  %v4894_v28 = vor.u32 %v15866_v46, %v15864_v43  ;;  %v4876_v4 = vsel %vm14507_vm13, %v15854_v62, %v15834_v40  ;;  %v15923_v43 = vrot.slane %v4945_v38, 5  ;;  %v4659_v38 = vld [vmem:[#allocation2 + $0xc0] sm:$0xf] }
 0x236   : > { %v1334_v29 = vor.u32 %v1333_v13, %v1329_v12  ;;  %v1339_v5 = vrot.slane %v1337_v31, 5  ;;  %v4936_v12 = vshrl.u32 %v4650_v59, 16  ;;  %v1363_v13 = vrot.slane %v1361_v10, 5  ;;  %v15929_v59 = vld [vmem:[#allocation2 + $0xa4] sm:$0x1] }
 0x237   : > { %v1358_v22 = vor.u32 %v1357_v36, %v1353_v19  ;;  %v1354_v31 = vsel %vm14507_vm13, %v1349_v27, %v1353_v19  ;;  %v4951_v46 = vrot.slane %v4949_v6, 4  ;;  %v4909_v0 = vrot.slane %v4907_v53, 5 }
 0x238   : > { %v1335_v3 = vrot.slane %v1334_v29, 4  ;;  %v4862_v29 = vsel %vm14507_vm13, %v15832_v51, %v15820_v60  ;;  %v4941_v51 = vrot.slane %v4939_v17, 5  ;;  %v4931_v62 = vshll.u32 %v15912_v45, 16  ;;  %v15947_v17 = vld [vmem:[#allocation2 + $0xb8] sm:$0xf] }
 0x239   : > { %v1359_v2 = vrot.slane %v1358_v22, 4  ;;  %v4952_v19 = vor.u32 %v4951_v46, %v15923_v43 }
 0x23a   : > { %v1340_v44 = vsel %vm14507_vm13, %v1335_v3, %v1339_v5  ;;  %13203 = vmatmul.mubr.msk.bf16.gmra.mrb[4].mxu0 %vm1420_vm12, %v15721_v7  ;;  %v15897_v7 = vrot.slane %v4921_v42, 5  ;;  %v4904_v5 = vor.u32 %v4903_v35, %v15870_v54  ;;  %v15925_v3 = vld [vmem:[#allocation2 + $0xac] sm:$0xf]  ;;  %v4918_v42 = vor.u32 %v4917_v25, %v4914_v15 }
 0x23b   : > { %v11791_v57 = vcombine.low %v1330_v39, %v1340_v44  ;;  %13206 = vmatprep.mubr.msk.bf16.mxu0 %vm1420_vm12, %v15736_v9  ;;  %v4852_v9 = vsel %vm14507_vm13, %v15827_v24, %v15781_v23  ;;  %v4886_v23 = vsel %vm14507_vm13, %v4881_v34, %v15859_v49  ;;  %v4938_v24 = vrot.slane %v4936_v12, 4  ;;  %v4653_v39 = vld [vmem:[#allocation2 + $0xa8] sm:$0xf]  ;;  %v15940_v12 = vld [vmem:[#allocation2 + $0xb0] sm:$0x1] }
 0x23c   : > { %v1364_v60 = vsel %vm14507_vm13, %v1359_v2, %v1363_v13  ;;  %v4928_v40 = vor.u32 %v4927_v1, %v15897_v7  ;;  %v4895_v49 = vrot.slane %v4894_v28, 4  ;;  %v4905_v32 = vrot.slane %v4904_v5, 4 }
 0x23d   : > { %12964 = vmatprep.mubr.msk.bf16.mxu1 %vm1420_vm12, %v11791_v57  ;;  %v11792_v8 = vcombine.low %v1354_v31, %v1364_v60  ;;  %v4960_v36 = vshrl.u32 %v4653_v39, 16  ;;  %v4963_v50 = vshll.u32 %v4653_v39, 16  ;;  %v4969_v10 = vshll.u32 %v15925_v3, 16 }
 0x23e   : > { %v4973_v11 = vshrl.u32 %v15925_v3, 16  ;;  %v12070_v44 = vcombine.low %v4852_v9, %v4862_v29  ;;  %v4942_v27 = vor.u32 %v4941_v51, %v4938_v24  ;;  %v4955_v34 = vshll.u32 %v15929_v59, 16  ;;  %v15951_v9 = vld [vmem:[#allocation2 + $0xc4] sm:$0xf] }
 0x23f   : > { %12965 = vmatmul.mubr.msk.bf16.gmra.mrb[12].mxu1 %vm1420_vm12, %v11792_v8  ;;  %v12071_v35 = vcombine.low %v4876_v4, %v4886_v23  ;;  %v4919_v53 = vrot.slane %v4918_v42, 4  ;;  %v4929_v57 = vrot.slane %v4928_v40, 4  ;;  %v4933_v15 = vrot.slane %v4931_v62, 5 }
 0x240   : > { %v4910_v22 = vsel %vm14507_vm13, %v4905_v32, %v4909_v0  ;;  %v4962_v13 = vrot.slane %v4960_v36, 4  ;;  %v4965_v25 = vrot.slane %v4963_v50, 5  ;;  %v15949_v6 = vrot.slane %v4969_v10, 5  ;;  %v15971_v36 = vld [vmem:[#allocation2 + $0xbc] sm:$0x1] }
 0x241   : > { %v4975_v1 = vrot.slane %v4973_v11, 4  ;;  %v4943_v29 = vrot.slane %v4942_v27, 4  ;;  %v4953_v28 = vrot.slane %v4952_v19, 4  ;;  %v4957_v5 = vrot.slane %v4955_v34, 5  ;;  %v15975_v34 = vld [vmem:[#allocation2 + $0xc8] sm:$0x1] }
 0x242   : > { %13207 = vmatmul.mubr.msk.bf16.gmra.mrb[8].mxu0 %vm1420_vm12, %v15763_v47  ;;  %v4656_v47 = vld [vmem:[#allocation2 + $0xb4] sm:$0xf]  ;;  %v4993_v4 = vshll.u32 %v15947_v17, 16  ;;  %v4997_v23 = vshrl.u32 %v15947_v17, 16  ;;  %v5008_v24 = vshrl.u32 %v4659_v38, 16  ;;  %v5011_v39 = vshll.u32 %v4659_v38, 16 }
 0x243   : > { %13210 = vmatprep.mubr.msk.bf16.mxu0 %vm1420_vm12, %v15825_v30  ;;  %v4900_v30 = vsel %vm14507_vm13, %v4895_v49, %v15870_v54  ;;  %v4984_v31 = vshrl.u32 %v4656_v47, 16  ;;  %v4987_v2 = vshll.u32 %v4656_v47, 16  ;;  %v4979_v54 = vshll.u32 %v15940_v12, 16 }
 0x244   : > { %v4924_v60 = vsel %vm14507_vm13, %v4919_v53, %v15897_v7  ;;  %v4934_v51 = vsel %vm14507_vm13, %v4929_v57, %v4933_v15  ;;  %v5017_v46 = vshll.u32 %v15951_v9, 16  ;;  %v5021_v8 = vshrl.u32 %v15951_v9, 16  ;;  %v4662_v53 = vld [vmem:[#allocation2 + $0xcc] sm:$0xf] }
 0x245   : > { %v4966_v0 = vor.u32 %v4965_v25, %v4962_v13  ;;  %v4976_v42 = vor.u32 %v4975_v1, %v15949_v6  ;;  %v4986_v40 = vrot.slane %v4984_v31, 4  ;;  %v4989_v62 = vrot.slane %v4987_v2, 5  ;;  %v15980_v25 = vld [vmem:[#allocation2 + $0xd0] sm:$0xf]  ;;  %v4665_v2 = vld [vmem:[#allocation2 + $0xd8] sm:$0xf] }
 0x246   : > { %v4948_v49 = vsel %vm14507_vm13, %v4943_v29, %v15923_v43  ;;  %v4958_v7 = vsel %vm14507_vm13, %v4953_v28, %v4957_v5  ;;  %v4981_v32 = vrot.slane %v4979_v54, 5  ;;  %v15973_v50 = vrot.slane %v4993_v4, 5  ;;  %v15984_v29 = vld [vmem:[#allocation2 + $0xdc] sm:$0xf] }
 0x247   : > { %v4999_v10 = vrot.slane %v4997_v23, 4  ;;  %v5010_v11 = vrot.slane %v5008_v24, 4  ;;  %v12072_v27 = vcombine.low %v4900_v30, %v4910_v22  ;;  %v12073_v19 = vcombine.low %v4924_v60, %v4934_v51 }
 0x248   : > { %v15977_v47 = vrot.slane %v5017_v46, 5  ;;  %v4967_v43 = vrot.slane %v4966_v0, 4  ;;  %v4977_v57 = vrot.slane %v4976_v42, 4  ;;  %v4990_v15 = vor.u32 %v4989_v62, %v4986_v40 }
 0x249   : > { %v5003_v13 = vshll.u32 %v15971_v36, 16  ;;  %v12074_v38 = vcombine.low %v4948_v49, %v4958_v7  ;;  %v5000_v1 = vor.u32 %v4999_v10, %v15973_v50  ;;  %v5027_v30 = vshll.u32 %v15975_v34, 16  ;;  %v15998_v10 = vld [vmem:[#allocation2 + $0xd4] sm:$0x1] }
 0x24a   : > { %13211 = vmatmul.mubr.msk.bf16.gmra.mrb[12].mxu0 %vm1420_vm12, %v12070_v44  ;;  %v5013_v44 = vrot.slane %v5011_v39, 5  ;;  %v5032_v22 = vshrl.u32 %v4662_v53, 16  ;;  %v5035_v5 = vshll.u32 %v4662_v53, 16  ;;  %v5041_v54 = vshll.u32 %v15980_v25, 16 }
 0x24b   : > { %13214 = vmatprep.mubr.msk.bf16.mxu0 %vm1420_vm12, %v12071_v35  ;;  %v5023_v35 = vrot.slane %v5021_v8, 4  ;;  %v5045_v4 = vshrl.u32 %v15980_v25, 16  ;;  %v4972_v23 = vsel %vm14507_vm13, %v4967_v43, %v15949_v6  ;;  %v4982_v24 = vsel %vm14507_vm13, %v4977_v57, %v4981_v32  ;;  %v4668_v32 = vld [vmem:[#allocation2 + $0xe4] sm:$0xf]  ;;  %v16000_v57 = vld [vmem:[#allocation2 + $0xe8] sm:$0xf] }
 0x24c   : > { %v5014_v31 = vor.u32 %v5013_v44, %v5010_v11  ;;  %v4991_v39 = vrot.slane %v4990_v15, 4  ;;  %v5005_v60 = vrot.slane %v5003_v13, 5  ;;  %v5056_v51 = vshrl.u32 %v4665_v2, 16 }
 0x24d   : > { %v5024_v28 = vor.u32 %v5023_v35, %v15977_v47  ;;  %v5059_v46 = vshll.u32 %v4665_v2, 16  ;;  %v5065_v8 = vshll.u32 %v15984_v29, 16  ;;  %v5069_v0 = vshrl.u32 %v15984_v29, 16 }
 0x24e   : > { %v5001_v42 = vrot.slane %v5000_v1, 4  ;;  %v5015_v40 = vrot.slane %v5014_v31, 4  ;;  %v5029_v62 = vrot.slane %v5027_v30, 5  ;;  %v5034_v49 = vrot.slane %v5032_v22, 4  ;;  %v16008_v31 = vld [vmem:[#allocation2 + $0xe0] sm:$0x1] }
 0x24f   : > { %v5025_v7 = vrot.slane %v5024_v28, 4  ;;  %v5037_v11 = vrot.slane %v5035_v5, 5  ;;  %v5043_v6 = vrot.slane %v5041_v54, 5  ;;  %v5047_v44 = vrot.slane %v5045_v4, 4 }
 0x250   : > { %v5061_v35 = vrot.slane %v5059_v46, 5  ;;  %v5067_v53 = vrot.slane %v5065_v8, 5  ;;  %v5071_v43 = vrot.slane %v5069_v0, 4  ;;  %v4996_v15 = vsel %vm14507_vm13, %v4991_v39, %v15973_v50 }
 0x251   : > { %v5006_v13 = vsel %vm14507_vm13, %v5001_v42, %v5005_v60  ;;  %v5051_v1 = vshll.u32 %v15998_v10, 16  ;;  %v5020_v30 = vsel %vm14507_vm13, %v5015_v40, %v15977_v47  ;;  %v5030_v22 = vsel %vm14507_vm13, %v5025_v7, %v5029_v62 }
 0x252   : > { %13215 = vmatmul.mubr.msk.bf16.gmra.mrb[16].mxu0 %vm1420_vm12, %v12072_v27  ;;  %v12075_v27 = vcombine.low %v4972_v23, %v4982_v24  ;;  %v5038_v2 = vor.u32 %v5037_v11, %v5034_v49  ;;  %v5048_v28 = vor.u32 %v5047_v44, %v5043_v6  ;;  %v5080_v50 = vshrl.u32 %v4668_v32, 16  ;;  %v16020_v11 = vld [vmem:[#allocation2 + $0xec] sm:$0x1] }
 0x253   : > { %13218 = vmatprep.mubr.msk.bf16.mxu0 %vm1420_vm12, %v12073_v19  ;;  %v5058_v19 = vrot.slane %v5056_v51, 4  ;;  %v5083_v5 = vshll.u32 %v4668_v32, 16  ;;  %v5089_v54 = vshll.u32 %v16000_v57, 16  ;;  %v5093_v4 = vshrl.u32 %v16000_v57, 16 }
 0x254   : > { %v5072_v24 = vor.u32 %v5071_v43, %v5067_v53  ;;  %v12076_v39 = vcombine.low %v4996_v15, %v5006_v13  ;;  %v12077_v60 = vcombine.low %v5020_v30, %v5030_v22  ;;  %v5039_v47 = vrot.slane %v5038_v2, 4 }
 0x255   : > { %v5062_v23 = vor.u32 %v5061_v35, %v5058_v19  ;;  %v5049_v51 = vrot.slane %v5048_v28, 4  ;;  %v5053_v46 = vrot.slane %v5051_v1, 5  ;;  %v5082_v8 = vrot.slane %v5080_v50, 4  ;;  %v5428_v1 = vld [vmem:[#allocation2 + $0x18] sm:$0xe] }
 0x256   : > { %v5085_v0 = vrot.slane %v5083_v5, 5  ;;  %v5091_v42 = vrot.slane %v5089_v54, 5  ;;  %v5095_v40 = vrot.slane %v5093_v4, 4  ;;  %v5073_v49 = vrot.slane %v5072_v24, 4  ;;  %v14295_v4 = vld [vmem:[#allocation2 + $0x28] sm:$0xf] }
 0x257   : > { %v5063_v62 = vrot.slane %v5062_v23, 4  ;;  %v5044_v44 = vsel %vm14507_vm13, %v5039_v47, %v5043_v6  ;;  %v5099_v35 = vshll.u32 %v16020_v11, 16  ;;  %v5502_v13 = vrot.slane %v15607_v56, 5  ;;  %v5430_v47 = vld [vmem:[#allocation2 + $0x30] sm:$0xe] }
 0x258   : > { %v5086_v32 = vor.u32 %v5085_v0, %v5082_v8  ;;  %v5096_v19 = vor.u32 %v5095_v40, %v5091_v42  ;;  %v12099_v50 = vrot.slane %v5428_v1, 9  ;;  %v5505_v54 = vrot.slane %v15627_v48, 5  ;;  %v14296_v48 = vld [vmem:[#allocation2 + $0x34] sm:$0xf] }
 0x259   : > { %v5068_v43 = vsel %vm14507_vm13, %v5063_v62, %v5067_v53  ;;  %v5101_v28 = vrot.slane %v5099_v35, 5  ;;  %v5504_v5 = vrot.slane %v5502_v13, 4  ;;  %v5509_v23 = vrot.slane %v14295_v4, 5  ;;  %v18422_v1 = vld [vmem:[#allocation9_spill] sm:$0xff] }
 0x25a   : > { %13219 = vmatmul.mubr.msk.bf16.gmra.mrb[20].mxu0 %vm1420_vm12, %v12074_v38  ;;  %v5075_v38 = vshll.u32 %v16008_v31, 16  ;;  %v5087_v22 = vrot.slane %v5086_v32, 4  ;;  %v5097_v2 = vrot.slane %v5096_v19, 4  ;;  %v5503_v24 = vsel %vm14856_vm2, %v12099_v50, %v5502_v13  ;;  %v14297_v19 = vld [vmem:[#allocation2 + $0x40] sm:$0xf] }
 0x25b   : > { %13222 = vmatprep.mubr.msk.bf16.mxu0 %vm1420_vm12, %v12075_v27  ;;  %v5054_v27 = vsel %vm14507_vm13, %v5049_v51, %v5053_v46  ;;  %v5511_v0 = vrot.slane %v5509_v23, 4  ;;  %v12101_v62 = vrot.slane %v5430_v47, 9  ;;  %v5523_v35 = vrot.slane %v14297_v19, 5  ;;  %v5431_v13 = vld [vmem:[#allocation2 + $0x3c] sm:$0xe] }
 0x25c   : > { %v5077_v7 = vrot.slane %v5075_v38, 5  ;;  %v12078_v30 = vcombine.low %v5044_v44, %v5054_v27  ;;  %v5092_v53 = vsel %vm14507_vm13, %v5087_v22, %v5091_v42  ;;  %v5102_v56 = vsel %vm14507_vm13, %v5097_v2, %v5101_v28  ;;  %v18420_v42 = vld [vmem:[#allocation8_spill] sm:$0xff] }
 0x25d   : > { %v5506_v38 = vsel %vm14856_vm2, %v5504_v5, %v5505_v54  ;;  %v12080_v51 = vcombine.low %v5092_v53, %v5102_v56  ;;  %v5512_v40 = vrot.slane %v18420_v42, 5  ;;  %v12102_v28 = vrot.slane %v5431_v13, 9  ;;  %v5435_v19 = vld [vmem:[#allocation2 + $0x6c] sm:$0xe] }
 0x25e   : > { %v5078_v15 = vsel %vm14507_vm13, %v5073_v49, %v5077_v7  ;;  %v12117_v46 = vcombine.low %v5503_v24, %v5506_v38  ;;  %v18421_v7 = vld [vmem:[#allocation10_spill] sm:$0xff]  ;;  %v5525_v50 = vrot.slane %v5523_v35, 4  ;;  %v5526_v5 = vrot.slane %v15648_v37, 5 }
 0x25f   : > { %v12079_v6 = vcombine.low %v5068_v43, %v5078_v15  ;;  %v5519_v44 = vrot.slane %v18421_v7, 5  ;;  %v5513_v32 = vsel %vm14856_vm2, %v5511_v0, %v5512_v40  ;;  %v5533_v56 = vrot.slane %v15663_v52, 5  ;;  %v18423_v52 = vld [vmem:[#allocation12_spill] sm:$0xff]  ;;  %v18424_v0 = vld [vmem:[#allocation11_spill] sm:$0xff] }
 0x260   : > { %v5524_v4 = vsel %vm14856_vm2, %v12102_v28, %v5523_v35  ;;  %v5537_v24 = vrot.slane %v15661_v33, 5  ;;  %v5540_v42 = vrot.slane %v18424_v0, 5  ;;  %v5547_v33 = vrot.slane %v15731_v61, 5  ;;  %v5436_v35 = vld [vmem:[#allocation2 + $0x78] sm:$0xe] }
 0x261   : > { %v5558_v61 = vrot.slane %v15789_v41, 5  ;;  %v12106_v13 = vrot.slane %v5435_v19, 9  ;;  %v5565_v28 = vrot.slane %v15836_v18, 5  ;;  %v5575_v18 = vrot.slane %v15912_v45, 5 }
 0x262   : > { %13223 = vmatmul.mubr.msk.bf16.gmra.mrb[24].mxu0 %vm1420_vm12, %v12076_v39  ;;  %v5429_v39 = vld [vmem:[#allocation2 + $0x24] sm:$0xe]  ;;  %v5586_v45 = vrot.slane %v15925_v3, 5 }
 0x263   : > { %13226 = vmatprep.mubr.msk.bf16.mxu0 %vm1420_vm12, %v12077_v60  ;;  %v5516_v60 = vrot.slane %v14296_v48, 5  ;;  %v12100_v8 = vrot.slane %v5429_v39, 9  ;;  %v5433_v39 = vld [vmem:[#allocation2 + $0x54] sm:$0xe]  ;;  %v5544_v48 = vrot.slane %v18423_v52, 5  ;;  %v5579_v52 = vrot.slane %v15885_v16, 5 }
 0x264   : > { %v5589_v16 = vrot.slane %v15940_v12, 5  ;;  %v5600_v12 = vrot.slane %v15951_v9, 5 }
 0x265   : > { %v5518_v49 = vrot.slane %v5516_v60, 4  ;;  %v5510_v27 = vsel %vm14856_vm2, %v12100_v8, %v5509_v23  ;;  %v5517_v43 = vsel %vm14856_vm2, %v12101_v62, %v5516_v60  ;;  %v5527_v23 = vsel %vm14856_vm2, %v5525_v50, %v5526_v5  ;;  %v5434_v60 = vld [vmem:[#allocation2 + $0x60] sm:$0xe]  ;;  %v5437_v5 = vld [vmem:[#allocation2 + $0x84] sm:$0xe] }
 0x266   : > { %v12118_v22 = vcombine.low %v5510_v27, %v5513_v32  ;;  %v12120_v47 = vcombine.low %v5524_v4, %v5527_v23  ;;  %v5539_v8 = vrot.slane %v5537_v24, 4  ;;  %v12105_v40 = vrot.slane %v5434_v60, 9  ;;  %v5439_v60 = vld [vmem:[#allocation2 + $0x9c] sm:$0xe] }
 0x267   : > { %v5520_v15 = vsel %vm14856_vm2, %v5518_v49, %v5519_v44  ;;  %v5546_v62 = vrot.slane %v5544_v48, 4  ;;  %v5551_v44 = vrot.slane %v15748_v20, 5  ;;  %v5561_v20 = vrot.slane %v15829_v63, 5 }
 0x268   : > { %v12119_v2 = vcombine.low %v5517_v43, %v5520_v15  ;;  %v5541_v7 = vsel %vm14856_vm2, %v5539_v8, %v5540_v42  ;;  %v5545_v27 = vsel %vm14856_vm2, %v12105_v40, %v5544_v48  ;;  %v5572_v63 = vrot.slane %v15868_v26, 5 }
 0x269   : > { %v5548_v32 = vsel %vm14856_vm2, %v5546_v62, %v5547_v33  ;;  %v12108_v4 = vrot.slane %v5437_v5, 9  ;;  %v5567_v23 = vrot.slane %v5565_v28, 4  ;;  %v12110_v8 = vrot.slane %v5439_v60, 9 }
 0x26a   : > { %13227 = vmatmul.mubr.msk.bf16.gmra.mrb[28].mxu0 %vm1420_vm12, %v12078_v30  ;;  %v5530_v30 = vrot.slane %v18422_v1, 5  ;;  %v12123_v15 = vcombine.low %v5545_v27, %v5548_v32  ;;  %v5553_v1 = vrot.slane %v5551_v44, 4  ;;  %v5581_v0 = vrot.slane %v5579_v52, 4  ;;  %v5442_v27 = vld [vmem:[#allocation2 + $0xc0] sm:$0xe] }
 0x26b   : > { %13230 = vmatprep.mubr.msk.bf16.mxu0 %vm1420_vm12, %v12079_v6  ;;  %v5432_v6 = vld [vmem:[#allocation2 + $0x48] sm:$0xe]  ;;  %v5582_v42 = vrot.slane %v15929_v59, 5  ;;  %v5588_v62 = vrot.slane %v5586_v45, 4  ;;  %v5580_v33 = vsel %vm14856_vm2, %v12110_v8, %v5579_v52 }
 0x26c   : > { %v12103_v54 = vrot.slane %v5432_v6, 9  ;;  %v5532_v53 = vrot.slane %v5530_v30, 4  ;;  %v12107_v6 = vrot.slane %v5436_v35, 9 }
 0x26d   : > { %v5583_v3 = vsel %vm14856_vm2, %v5581_v0, %v5582_v42  ;;  %v5590_v59 = vsel %vm14856_vm2, %v5588_v62, %v5589_v16 }
 0x26e   : > { %v5531_v38 = vsel %vm14856_vm2, %v12103_v54, %v5530_v30  ;;  %v5534_v37 = vsel %vm14856_vm2, %v5532_v53, %v5533_v56  ;;  %v5554_v30 = vrot.slane %v15776_v58, 5  ;;  %v5559_v50 = vsel %vm14856_vm2, %v12107_v6, %v5558_v61  ;;  %v5438_v54 = vld [vmem:[#allocation2 + $0x90] sm:$0xe] }
 0x26f   : > { %v12128_v32 = vcombine.low %v5580_v33, %v5583_v3  ;;  %v16204_v33 = vld [vmem:[%s18268_s2] ss:$0 sm:$0xff] }
 0x270   : > { %v5555_v41 = vsel %vm14856_vm2, %v5553_v1, %v5554_v30  ;;  %v5607_v30 = vrot.slane %v15980_v25, 5  ;;  %v5617_v25 = vrot.slane %v16008_v31, 5 }
 0x272   : > { %13231 = vmatmul.mubr.msk.bf16.gmra.mrb[32].mxu0 %vm1420_vm12, %v12080_v51  ;;  %v12121_v51 = vcombine.low %v5531_v38, %v5534_v37  ;;  %v12109_v38 = vrot.slane %v5438_v54, 9  ;;  %v5574_v37 = vrot.slane %v5572_v63, 4 }
 0x273   : > { %13236 = vmatprep.mubr.msk.bf16.mxu0 %vm1420_vm12, %v12117_v46  ;;  %v12104_v46 = vrot.slane %v5433_v39, 9  ;;  %v5566_v39 = vsel %vm14856_vm2, %v12108_v4, %v5565_v28  ;;  %v5445_v4 = vld [vmem:[#allocation2 + $0xe4] sm:$0xe] }
 0x274   : > { %v5573_v48 = vsel %vm14856_vm2, %v12109_v38, %v5572_v63 }
 0x275   : > { %v5538_v49 = vsel %vm14856_vm2, %v12104_v46, %v5537_v24  ;;  %v5568_v24 = vrot.slane %v15875_v14, 5  ;;  %v5576_v14 = vsel %vm14856_vm2, %v5574_v37, %v5575_v18  ;;  %v5624_v37 = vrot.slane %v16020_v11, 5 }
 0x276   : > { %v12122_v43 = vcombine.low %v5538_v49, %v5541_v7  ;;  %v12127_v46 = vcombine.low %v5573_v48, %v5576_v14  ;;  %v5593_v49 = vrot.slane %v15947_v17, 5  ;;  %v5603_v17 = vrot.slane %v15975_v34, 5 }
 0x277   : > { %v5569_v26 = vsel %vm14856_vm2, %v5567_v23, %v5568_v24  ;;  %v5614_v34 = vrot.slane %v15984_v29, 5  ;;  %v12116_v24 = vrot.slane %v5445_v4, 9  ;;  %v6498_v4 = vld [vmem:[#allocation3] sm:$0xf] }
 0x278   : > { %v5595_v35 = vrot.slane %v5593_v49, 4 }
 0x279   : > { %v5616_v63 = vrot.slane %v5614_v34, 4 }
 0x27a   : > { %13237 = vmatmul.mubr.msk.bf16.vlgmr.msra.gmra.mrb[0].mxu0 %vm1420_vm12, %v12118_v22  ;;  %v5560_v22 = vrot.slane %v5558_v61, 4 }
 0x27b   : > { %13240 = vmatprep.mubr.msk.bf16.mxu0 %vm1420_vm12, %v12119_v2  ;;  %v5552_v2 = vsel %vm14856_vm2, %v12106_v13, %v5551_v44  ;;  %v5441_v44 = vld [vmem:[#allocation2 + $0xb4] sm:$0xe]  ;;  %v5602_v13 = vrot.slane %v5600_v12, 4 }
 0x27c   : > { %v5562_v58 = vsel %vm14856_vm2, %v5560_v22, %v5561_v20  ;;  %v12124_v53 = vcombine.low %v5552_v2, %v5555_v41  ;;  %v12112_v61 = vrot.slane %v5441_v44, 9  ;;  %v5443_v22 = vld [vmem:[#allocation2 + $0xcc] sm:$0xe]  ;;  %v5444_v20 = vld [vmem:[#allocation2 + $0xd8] sm:$0xe] }
 0x27d   : > { %v12125_v56 = vcombine.low %v5559_v50, %v5562_v58  ;;  %v12114_v28 = vrot.slane %v5443_v22, 9  ;;  %v5609_v50 = vrot.slane %v5607_v30, 4  ;;  %v5610_v58 = vrot.slane %v15998_v10, 5 }
 0x27e   : > { %v5594_v1 = vsel %vm14856_vm2, %v12112_v61, %v5593_v49  ;;  %v12115_v5 = vrot.slane %v5444_v20, 9  ;;  %v5618_v10 = vsel %vm14856_vm2, %v5616_v63, %v5617_v25 }
 0x27f   : > { %v5608_v54 = vsel %vm14856_vm2, %v12114_v28, %v5607_v30  ;;  %v5611_v29 = vsel %vm14856_vm2, %v5609_v50, %v5610_v58  ;;  %v6505_v30 = vld [vmem:[#allocation3 + $0xc] sm:$0xf] }
 0x280   : > { %v12132_v31 = vcombine.low %v5608_v54, %v5611_v29 }
 0x282   : > { %13241 = vmatmul.mubr.msk.bf16.gmra.mrb[4].mxu0 %vm1420_vm12, %v12120_v47  ;;  %v5440_v47 = vld [vmem:[#allocation2 + $0xa8] sm:$0xe] }
 0x283   : > { %13244 = vmatprep.mubr.msk.bf16.mxu0 %vm1420_vm12, %v12121_v51  ;;  %v12126_v51 = vcombine.low %v5566_v39, %v5569_v26  ;;  %v12111_v40 = vrot.slane %v5440_v47, 9  ;;  %v7177_v26 = vld [vmem:[%s18269_s3 + $0x4] sm:$0xf]  ;;  %v16181_v47 = vld [vmem:[%s18269_s3] sm:$0xf] }
 0x284   : > { %14134 = vmatprep.subr.msk.bf16.mxu1 %vm1475_vm0, %v7177_v26  ;;  %v7275_v11 = vsel %vm1475_vm0, %v7177_v26, 0 }
 0x285   : > { %v5587_v7 = vsel %vm14856_vm2, %v12111_v40, %v5586_v45  ;;  %13273 = vmatpush3.bf16.msra.mxu1 %v7275_v11 }
 0x286   : > { %v12129_v19 = vcombine.low %v5587_v7, %v5590_v59  ;;  %14135 = vmatprep.subr.msk.bf16.mxu1 %vm1475_vm0, %v16181_v47 }
 0x28a   : > { %13245 = vmatmul.mubr.msk.bf16.gmra.mrb[8].mxu0 %vm1420_vm12, %v12122_v43  ;;  %v5596_v43 = vrot.slane %v15971_v36, 5  ;;  %v5604_v36 = vsel %vm14856_vm2, %v5602_v13, %v5603_v17 }
 0x28b   : > { %13248 = vmatprep.mubr.msk.bf16.mxu0 %vm1420_vm12, %v12123_v15  ;;  %v12113_v15 = vrot.slane %v5442_v27, 9 }
 0x28c   : > { %v5597_v9 = vsel %vm14856_vm2, %v5595_v35, %v5596_v43 }
 0x28d   : > { %v5601_v6 = vsel %vm14856_vm2, %v12113_v15, %v5600_v12  ;;  %v12130_v2 = vcombine.low %v5594_v1, %v5597_v9 }
 0x28e   : > { %v12131_v41 = vcombine.low %v5601_v6, %v5604_v36 }
 0x292   : > { %13249 = vmatmul.mubr.msk.bf16.gmra.mrb[12].mxu0 %vm1420_vm12, %v12124_v53  ;;  %v5621_v53 = vrot.slane %v16000_v57, 5 }
 0x293   : > { %13252 = vmatprep.mubr.msk.bf16.mxu0 %vm1420_vm12, %v12125_v56  ;;  %v5615_v56 = vsel %vm14856_vm2, %v12115_v5, %v5614_v34 }
 0x294   : > { %v12133_v23 = vcombine.low %v5615_v56, %v5618_v10  ;;  %v5623_v38 = vrot.slane %v5621_v53, 4  ;;  %v5622_v57 = vsel %vm14856_vm2, %v12116_v24, %v5621_v53 }
 0x296   : > { %v5625_v18 = vsel %vm14856_vm2, %v5623_v38, %v5624_v37 }
 0x297   : > { %v12134_v39 = vcombine.low %v5622_v57, %v5625_v18  ;;  %v6509_v57 = vld [vmem:[#allocation3 + $0x14] sm:$0x1] }
 0x29a   : > { %13253 = vmatmul.mubr.msk.bf16.gmra.mrb[16].mxu0 %vm1420_vm12, %v12126_v51 }
 0x29b   : > { %13256 = vmatprep.mubr.msk.bf16.mxu0 %vm1420_vm12, %v12127_v46 }
 0x2a2   : > { %13257 = vmatmul.mubr.msk.bf16.gmra.mrb[20].mxu0 %vm1420_vm12, %v12128_v32 }
 0x2a3   : > { %13260 = vmatprep.mubr.msk.bf16.mxu0 %vm1420_vm12, %v12129_v19 }
 0x2aa   : > { %13261 = vmatmul.mubr.msk.bf16.gmra.mrb[24].mxu0 %vm1420_vm12, %v12130_v2 }
 0x2ab   : > { %13264 = vmatprep.mubr.msk.bf16.mxu0 %vm1420_vm12, %v12131_v41 }
 0x2b2   : > { %13265 = vmatmul.mubr.msk.bf16.gmra.mrb[28].mxu0 %vm1420_vm12, %v12132_v31 }
 0x2b3   : > { %13268 = vmatprep.mubr.msk.bf16.mxu0 %vm1420_vm12, %v12133_v23 }
 0x2ba   : > { %13269 = vmatmul.mubr.msk.bf16.gmra.mrb[32].mxu0 %vm1420_vm12, %v12134_v39 }
 0x2f2   : > { %v16168_v52 = vpop.f32.mrb[0].mxu1 }
 0x2f3   : > { %v16170_v48 = vpop.f32.mrb[1].mxu1 }
 0x2f4   : > { %v16172_v14 = vpop.f32.mrb[2].mxu1 }
 0x2f5   : > { %v16174_v60 = vpop.f32.mrb[3].mxu1 }
 0x2fd   : > { %v16176_v45 = vpop.f32.mrb[4].mxu1 }
 0x2fe   : > { %v16183_v51 = vpop.f32.mrb[5].mxu1 }
 0x2ff   : > { %v16187_v46 = vpop.f32.mrb[6].mxu1 }
 0x300   : > { %v16189_v8 = vpop.f32.mrb[7].mxu1 }
 0x305   : > { %v16191_v0 = vpop.f32.mrb[8].mxu1 }
 0x306   : > { %v16193_v42 = vpop.f32.mrb[9].mxu1 }
 0x307   : > { %v16195_v40 = vpop.f32.mrb[10].mxu1 }
 0x308   : > { %v16197_v62 = vpop.f32.mrb[11].mxu1 }
 0x312   : > { %v16199_v16 = vpop.f32.mrb[12].mxu1 }
 0x313   : > { %v16211_v58 = vpop.f32.mrb[13].mxu1 }
 0x314   : > { %v16214_v53 = vpop.f32.mrb[14].mxu1 }
 0x315   : > { %v16216_v26 = vpop.f32.mrb[15].mxu1 }
 0x34d   : > { %v13238_v3 = vpop.f32.mrb[0].mxu0 }
 0x34e   : > { %v5960_v49 = vadd.f32 %v13238_v3, %v16204_v33  ;;  %v5772_v7 = vpop.f32.mrb[1].mxu0 }
 0x34f   : > { %v5958_v59 = vadd.f32 %v16204_v33, %v5772_v7  ;;  %v13239_v44 = vpop.f32.mrb[2].mxu0 }
 0x350   : > { %v5996_v12 = vmax.f32 %v5960_v49, 0.0  ;;  %v5961_v27 = vadd.f32 %v13239_v44, %v16204_v33  ;;  %v5775_v32 = vpop.f32.mrb[3].mxu0 }
 0x351   : > { %v5994_v19 = vmax.f32 %v5958_v59, 0.0  ;;  %v5959_v61 = vadd.f32 %v16204_v33, %v5775_v32  ;;  %v6502_v59 = vld [vmem:[#allocation3 + $0x8] sm:$0x1] }
 0x352   : > { %v12533_v35 = vpack.c.bf16 %v5996_v12, %v5996_v12  ;;  %v5997_v43 = vmax.f32 %v5961_v27, 0.0 }
 0x353   : > { %v12531_v15 = vpack.c.bf16 %v5994_v19, %v5994_v19  ;;  %v5995_v13 = vmax.f32 %v5959_v61, 0.0 }
 0x354   : > { %v6156_v17 = vshrl.u32 %v12533_v35, 16  ;;  %v12534_v1 = vpack.c.bf16 %v5997_v43, %v5997_v43  ;;  %v6159_v9 = vshll.u32 %v12533_v35, 16 }
 0x355   : > { %v6139_v6 = vshrl.u32 %v12531_v15, 16  ;;  %v6142_v36 = vshll.u32 %v12531_v15, 16  ;;  %v12532_v22 = vpack.c.bf16 %v5995_v13, %v5995_v13  ;;  %v13242_v34 = vpop.f32.mrb[4].mxu0 }
 0x356   : > { %v6158_v20 = vrot.slane %v6156_v17, 7  ;;  %v6164_v2 = vshrl.u32 %v12534_v1, 16  ;;  %v6167_v41 = vshll.u32 %v12534_v1, 16  ;;  %v5964_v28 = vadd.f32 %v13242_v34, %v16204_v33  ;;  %v5788_v50 = vpop.f32.mrb[5].mxu0 }
 0x357   : > { %v6141_v5 = vrot.slane %v6139_v6, 7  ;;  %v6147_v63 = vshrl.u32 %v12532_v22, 16  ;;  %v6150_v25 = vshll.u32 %v12532_v22, 16  ;;  %v5962_v54 = vadd.f32 %v16204_v33, %v5788_v50  ;;  %v13243_v29 = vpop.f32.mrb[6].mxu0 }
 0x358   : > { %v6161_v56 = vor.u32 %v6159_v9, %v6158_v20  ;;  %v6162_v10 = vrot.slane %v6158_v20, 4  ;;  %v6166_v31 = vrot.slane %v6164_v2, 7  ;;  %v6000_v23 = vmax.f32 %v5964_v28, 0.0  ;;  %v5791_v24 = vpop.f32.mrb[7].mxu0  ;;  %v6519_v28 = vld [vmem:[#allocation3 + $0x24] sm:$0xf] }
 0x359   : > { %v6144_v38 = vor.u32 %v6142_v36, %v6141_v5  ;;  %v6145_v37 = vrot.slane %v6141_v5, 4  ;;  %v6149_v18 = vrot.slane %v6147_v63, 7  ;;  %v5998_v39 = vmax.f32 %v5962_v54, 0.0 }
 0x35a   : > { %v6506_v3 = vsel %vm14445_vm7, %v6161_v56, %v6505_v30  ;;  %v6169_v49 = vor.u32 %v6167_v41, %v6166_v31  ;;  %v6171_v7 = vrot.slane %v6166_v31, 4  ;;  %v12537_v44 = vpack.c.bf16 %v6000_v23, %v6000_v23 }
 0x35b   : > { %6507 = vst [vmem:[#allocation3 + $0xc] sm:$0xf] %v6506_v3  ;;  %v6499_v12 = vsel %vm14445_vm7, %v6144_v38, %v6498_v4  ;;  %v6152_v27 = vor.u32 %v6150_v25, %v6149_v18  ;;  %v6154_v32 = vrot.slane %v6149_v18, 4  ;;  %v12535_v19 = vpack.c.bf16 %v5998_v39, %v5998_v39 }
 0x35c   : > { %6500 = vst [vmem:[#allocation3] sm:$0xf] %v6499_v12  ;;  %v6170_v35 = vsel %vm14493_vm11, %v6162_v10, %v6169_v49  ;;  %v6510_v15 = vsel %vm14401_vm3, %v6171_v7, %v6509_v57  ;;  %v6190_v13 = vshrl.u32 %v12537_v44, 16  ;;  %v6193_v9 = vshll.u32 %v12537_v44, 16  ;;  %v6512_v10 = vld [vmem:[#allocation3 + $0x18] sm:$0xf] }
 0x35d   : > { %6508 = vst.msk [vmem:[#allocation3 + $0x10] sm:$0xf] %vm376_vm6, %v6170_v35  ;;  %6511 = vst [vmem:[#allocation3 + $0x14] sm:$0x1] %v6510_v15  ;;  %v6153_v17 = vsel %vm14493_vm11, %v6145_v37, %v6152_v27  ;;  %v6503_v1 = vsel %vm14401_vm3, %v6154_v32, %v6502_v59  ;;  %v6173_v30 = vshrl.u32 %v12535_v19, 16  ;;  %v13246_v6 = vpop.f32.mrb[8].mxu0  ;;  %v5965_v22 = vadd.f32 %v13243_v29, %v16204_v33 }
 0x35e   : > { %6501 = vst.msk [vmem:[#allocation3 + $0x4] sm:$0xf] %vm376_vm6, %v6153_v17  ;;  %6504 = vst [vmem:[#allocation3 + $0x8] sm:$0x1] %v6503_v1  ;;  %v16232_v36 = vrot.slane %v6190_v13, 7  ;;  %v5963_v34 = vadd.f32 %v16204_v33, %v5791_v24  ;;  %v5968_v20 = vadd.f32 %v13246_v6, %v16204_v33  ;;  %v5804_v2 = vpop.f32.mrb[9].mxu0 }
 0x35f   : > { %v18428_v41 = vmov 0   ;;  %v16239_v50 = vrot.slane %v6173_v30, 7  ;;  %v6176_v5 = vshll.u32 %v12535_v19, 16  ;;  %v5966_v63 = vadd.f32 %v16204_v33, %v5804_v2  ;;  %v13247_v25 = vpop.f32.mrb[10].mxu0  ;;  %v6523_v30 = vld [vmem:[#allocation3 + $0x2c] sm:$0x1] }
 0x360   : > { %6737 = vst.msk [vmem:[#allocation3 + $0x4] sm:$0xf] %vm376_vm6, %v18428_v41  ;;  %v16244_v54 = vsel %vm1475_vm0, %v16181_v47, 0  ;;  %v6195_v29 = vor.u32 %v6193_v9, %v16232_v36  ;;  %v6196_v56 = vrot.slane %v16232_v36, 4  ;;  %v6001_v4 = vmax.f32 %v5965_v22, 0.0  ;;  %v5807_v23 = vpop.f32.mrb[11].mxu0 }
 0x361   : > { %v5999_v31 = vmax.f32 %v5963_v34, 0.0  ;;  %v6178_v24 = vor.u32 %v6176_v5, %v16239_v50  ;;  %v6179_v38 = vrot.slane %v16239_v50, 4  ;;  %v6004_v37 = vmax.f32 %v5968_v20, 0.0  ;;  %v6516_v5 = vld [vmem:[#allocation3 + $0x20] sm:$0x1] }
 0x362   : > { %v6002_v57 = vmax.f32 %v5966_v63, 0.0  ;;  %v6627_v18 = vld [vmem:[#allocation3 + $0xc] sm:$0x1]  ;;  %v6520_v39 = vsel %vm14445_vm7, %v6195_v29, %v6519_v28  ;;  %v12538_v47 = vpack.c.bf16 %v6001_v4, %v6001_v4  ;;  %v5969_v49 = vadd.f32 %v13247_v25, %v16204_v33 }
 0x363   : > { %v12536_v3 = vpack.c.bf16 %v5999_v31, %v5999_v31  ;;  %v6628_v7 = vsel %vm14401_vm3, 0, %v6627_v18  ;;  %v6624_v59 = vld [vmem:[#allocation3] sm:$0x1]  ;;  %6521 = vst [vmem:[#allocation3 + $0x24] sm:$0xf] %v6520_v39  ;;  %v6513_v44 = vsel %vm14445_vm7, %v6178_v24, %v6512_v10  ;;  %v12541_v12 = vpack.c.bf16 %v6004_v37, %v6004_v37 }
 0x364   : > { %v12539_v27 = vpack.c.bf16 %v6002_v57, %v6002_v57  ;;  %6629 = vst [vmem:[#allocation3 + $0xc] sm:$0x1] %v6628_v7  ;;  %v6625_v32 = vsel %vm14401_vm3, 0, %v6624_v59  ;;  %v6681_v19 = vld [vmem:[#allocation3 + $0x14] sm:$0x1]  ;;  %v6198_v35 = vshrl.u32 %v12538_v47, 16  ;;  %v5967_v10 = vadd.f32 %v16204_v33, %v5807_v23 }
 0x365   : > { %6514 = vst [vmem:[#allocation3 + $0x18] sm:$0xf] %v6513_v44  ;;  %v6201_v15 = vshll.u32 %v12538_v47, 16  ;;  %v6181_v13 = vshrl.u32 %v12536_v3, 16  ;;  %6626 = vst [vmem:[#allocation3] sm:$0x1] %v6625_v32 }
 0x366   : > { %v6682_v1 = vsel %vm14410_vm5, 0, %v6681_v19  ;;  %v6678_v9 = vld [vmem:[#allocation3 + $0x8] sm:$0x1]  ;;  %v6184_v6 = vshll.u32 %v12536_v3, 16  ;;  %v6224_v36 = vshrl.u32 %v12541_v12, 16  ;;  %v6227_v22 = vshll.u32 %v12541_v12, 16 }
 0x367   : > { %6736 = vst.msk [vmem:[#allocation3] sm:$0xf] %vm376_vm6, %v18428_v41  ;;  %6683 = vst [vmem:[#allocation3 + $0x14] sm:$0x1] %v6682_v1  ;;  %v6679_v34 = vsel %vm14410_vm5, 0, %v6678_v9  ;;  %v6200_v20 = vrot.slane %v6198_v35, 7 }
 0x368   : > { %v6183_v2 = vrot.slane %v6181_v13, 7  ;;  %v6207_v28 = vshrl.u32 %v12539_v27, 16  ;;  %v13250_v50 = vpop.f32.mrb[12].mxu0  ;;  %6680 = vst [vmem:[#allocation3 + $0x8] sm:$0x1] %v6679_v34  ;;  %v16265_v63 = vrot.slane %v6224_v36, 7 }
 0x369   : > { %v6210_v25 = vshll.u32 %v12539_v27, 16  ;;  %v6005_v29 = vmax.f32 %v5969_v49, 0.0  ;;  %v5820_v4 = vpop.f32.mrb[13].mxu0  ;;  %6739 = vst.msk [vmem:[#allocation3 + $0x8] sm:$0x1] %vm251_vm1, %v18428_v41  ;;  %v6203_v31 = vor.u32 %v6201_v15, %v6200_v20  ;;  %v6205_v24 = vrot.slane %v6200_v20, 4 }
 0x36a   : > { %v6186_v37 = vor.u32 %v6184_v6, %v6183_v2  ;;  %v6188_v57 = vrot.slane %v6183_v2, 4  ;;  %v6533_v18 = vld [vmem:[#allocation3 + $0x3c] sm:$0xf]  ;;  %v13251_v39 = vpop.f32.mrb[14].mxu0  ;;  %v6229_v47 = vor.u32 %v6227_v22, %v16265_v63  ;;  %v6230_v3 = vrot.slane %v16265_v63, 4 }
 0x36b   : > { %v16272_v7 = vrot.slane %v6207_v28, 7  ;;  %v12542_v59 = vpack.c.bf16 %v6005_v29, %v6005_v29  ;;  %v5823_v49 = vpop.f32.mrb[15].mxu0  ;;  %v6633_v44 = vld [vmem:[#allocation3 + $0x24] sm:$0x1]  ;;  %v6204_v23 = vsel %vm14493_vm11, %v6196_v56, %v6203_v31  ;;  %v6524_v12 = vsel %vm14401_vm3, %v6205_v24, %v6523_v30  ;;  %v6526_v19 = vld [vmem:[#allocation3 + $0x30] sm:$0xf] }
 0x36c   : > { %v6187_v27 = vsel %vm14493_vm11, %v6179_v38, %v6186_v37  ;;  %v6517_v32 = vsel %vm14401_vm3, %v6188_v57, %v6516_v5  ;;  %v6634_v35 = vsel %vm14401_vm3, 0, %v6633_v44  ;;  %v6630_v15 = vld [vmem:[#allocation3 + $0x18] sm:$0x1]  ;;  %6522 = vst.msk [vmem:[#allocation3 + $0x28] sm:$0xf] %vm376_vm6, %v6204_v23  ;;  %v6534_v56 = vsel %vm14445_vm7, %v6229_v47, %v6533_v18 }
 0x36d   : > { %6525 = vst [vmem:[#allocation3 + $0x2c] sm:$0x1] %v6524_v12  ;;  %6515 = vst.msk [vmem:[#allocation3 + $0x1c] sm:$0xf] %vm376_vm6, %v6187_v27  ;;  %v6212_v13 = vor.u32 %v6210_v25, %v16272_v7  ;;  %v6213_v38 = vrot.slane %v16272_v7, 4  ;;  %v6631_v1 = vsel %vm14401_vm3, 0, %v6630_v15  ;;  %v5972_v22 = vadd.f32 %v13250_v50, %v16204_v33 }
 0x36e   : > { %6518 = vst [vmem:[#allocation3 + $0x20] sm:$0x1] %v6517_v32  ;;  %6635 = vst [vmem:[#allocation3 + $0x24] sm:$0x1] %v6634_v35  ;;  %v6232_v9 = vshrl.u32 %v12542_v59, 16  ;;  %v6235_v30 = vshll.u32 %v12542_v59, 16  ;;  %v5970_v34 = vadd.f32 %v16204_v33, %v5820_v4  ;;  %v5973_v20 = vadd.f32 %v13251_v39, %v16204_v33 }
 0x36f   : > { %6535 = vst [vmem:[#allocation3 + $0x3c] sm:$0xf] %v6534_v56  ;;  %v6003_v6 = vmax.f32 %v5967_v10, 0.0  ;;  %6632 = vst [vmem:[#allocation3 + $0x18] sm:$0x1] %v6631_v1  ;;  %v6527_v36 = vsel %vm14445_vm7, %v6212_v13, %v6526_v19  ;;  %v13254_v2 = vpop.f32.mrb[16].mxu0  ;;  %v5971_v63 = vadd.f32 %v16204_v33, %v5823_v49 }
 0x370   : > { %6528 = vst [vmem:[#allocation3 + $0x30] sm:$0xf] %v6527_v36  ;;  %v6234_v28 = vrot.slane %v6232_v9, 7  ;;  %v5976_v25 = vadd.f32 %v13254_v2, %v16204_v33  ;;  %v5836_v29 = vpop.f32.mrb[17].mxu0  ;;  %v6537_v10 = vld [vmem:[#allocation3 + $0x44] sm:$0x1] }
 0x371   : > { %v12540_v5 = vpack.c.bf16 %v6003_v6, %v6003_v6  ;;  %v6008_v31 = vmax.f32 %v5972_v22, 0.0  ;;  %v6006_v24 = vmax.f32 %v5970_v34, 0.0  ;;  %v6009_v37 = vmax.f32 %v5973_v20, 0.0  ;;  %v16302_v50 = vpop.f32.mrb[18].mxu0  ;;  %v6530_v59 = vld [vmem:[#allocation3 + $0x38] sm:$0x1] }
 0x372   : > { %v16300_v57 = vadd.f32 %v16204_v33, %v5836_v29  ;;  %v6237_v4 = vor.u32 %v6235_v30, %v6234_v28  ;;  %v6239_v18 = vrot.slane %v6234_v28, 4  ;;  %v16304_v7 = vpop.f32.mrb[19].mxu0  ;;  %v6007_v12 = vmax.f32 %v5971_v63, 0.0 }
 0x373   : > { %v6215_v39 = vshrl.u32 %v12540_v5, 16  ;;  %v6218_v47 = vshll.u32 %v12540_v5, 16  ;;  %v12545_v49 = vpack.c.bf16 %v6008_v31, %v6008_v31  ;;  %v12543_v44 = vpack.c.bf16 %v6006_v24, %v6006_v24  ;;  %v6547_v31 = vld [vmem:[#allocation3 + $0x54] sm:$0xf] }
 0x374   : > { %v12546_v23 = vpack.c.bf16 %v6009_v37, %v6009_v37  ;;  %v6687_v27 = vld [vmem:[#allocation3 + $0x2c] sm:$0x1]  ;;  %v6238_v19 = vsel %vm14493_vm11, %v6230_v3, %v6237_v4  ;;  %v6538_v35 = vsel %vm14401_vm3, %v6239_v18, %v6537_v10  ;;  %v6012_v56 = vmax.f32 %v5976_v25, 0.0 }
 0x375   : > { %v6684_v32 = vld [vmem:[#allocation3 + $0x20] sm:$0x1]  ;;  %v6217_v15 = vrot.slane %v6215_v39, 7  ;;  %v6688_v13 = vsel %vm14410_vm5, 0, %v6687_v27  ;;  %6536 = vst.msk [vmem:[#allocation3 + $0x40] sm:$0xf] %vm376_vm6, %v6238_v19 }
 0x376   : > { %v6685_v1 = vsel %vm14410_vm5, 0, %v6684_v32  ;;  %v6639_v9 = vld [vmem:[#allocation3 + $0x3c] sm:$0x1]  ;;  %6539 = vst [vmem:[#allocation3 + $0x44] sm:$0x1] %v6538_v35  ;;  %v6258_v30 = vshrl.u32 %v12545_v49, 16 }
 0x377   : > { %v6261_v6 = vshll.u32 %v12545_v49, 16  ;;  %6689 = vst [vmem:[#allocation3 + $0x2c] sm:$0x1] %v6688_v13  ;;  %6686 = vst [vmem:[#allocation3 + $0x20] sm:$0x1] %v6685_v1  ;;  %v6640_v3 = vsel %vm14401_vm3, 0, %v6639_v9  ;;  %v6220_v36 = vor.u32 %v6218_v47, %v6217_v15  ;;  %v12544_v49 = vpack.c.bf16 %v6007_v12, %v6007_v12 }
 0x378   : > { %v6222_v22 = vrot.slane %v6217_v15, 4  ;;  %v6241_v34 = vshrl.u32 %v12543_v44, 16  ;;  %6641 = vst [vmem:[#allocation3 + $0x3c] sm:$0x1] %v6640_v3  ;;  %v6636_v20 = vld [vmem:[#allocation3 + $0x30] sm:$0x1] }
 0x379   : > { %v6260_v2 = vrot.slane %v6258_v30, 7  ;;  %v6244_v28 = vshll.u32 %v12543_v44, 16  ;;  %v6266_v5 = vshrl.u32 %v12546_v23, 16  ;;  %v6269_v63 = vshll.u32 %v12546_v23, 16  ;;  %v13258_v37 = vpop.f32.mrb[20].mxu0 }
 0x37a   : > { %v6637_v25 = vsel %vm14401_vm3, 0, %v6636_v20  ;;  %v6221_v29 = vsel %vm14493_vm11, %v6213_v38, %v6220_v36  ;;  %v6531_v10 = vsel %vm14401_vm3, %v6222_v22, %v6530_v59  ;;  %v6243_v24 = vrot.slane %v6241_v34, 7  ;;  %v6540_v39 = vld [vmem:[#allocation3 + $0x48] sm:$0xf]  ;;  %v5852_v44 = vpop.f32.mrb[21].mxu0 }
 0x37b   : > { %6638 = vst [vmem:[#allocation3 + $0x30] sm:$0x1] %v6637_v25  ;;  %6529 = vst.msk [vmem:[#allocation3 + $0x34] sm:$0xf] %vm376_vm6, %v6221_v29  ;;  %v6263_v4 = vor.u32 %v6261_v6, %v6260_v2  ;;  %v6264_v18 = vrot.slane %v6260_v2, 4  ;;  %v6268_v47 = vrot.slane %v6266_v5, 7  ;;  %v12549_v38 = vpack.c.bf16 %v6012_v56, %v6012_v56 }
 0x37c   : > { %6532 = vst [vmem:[#allocation3 + $0x38] sm:$0x1] %v6531_v10  ;;  %v6246_v23 = vor.u32 %v6244_v28, %v6243_v24  ;;  %v6247_v27 = vrot.slane %v6243_v24, 4  ;;  %v6551_v32 = vld [vmem:[#allocation3 + $0x5c] sm:$0x1]  ;;  %v6010_v19 = vmax.f32 %v16300_v57, 0.0  ;;  %v5975_v25 = vadd.f32 %v16204_v33, %v16304_v7 }
 0x37d   : > { %v13259_v59 = vpop.f32.mrb[22].mxu0  ;;  %v6548_v35 = vsel %vm14445_vm7, %v6263_v4, %v6547_v31  ;;  %v6271_v15 = vor.u32 %v6269_v63, %v6268_v47  ;;  %v6273_v13 = vrot.slane %v6268_v47, 4  ;;  %v6249_v1 = vshrl.u32 %v12544_v49, 16  ;;  %v6693_v30 = vld [vmem:[#allocation3 + $0x44] sm:$0x1] }
 0x37e   : > { %v5855_v9 = vpop.f32.mrb[23].mxu0  ;;  %6549 = vst [vmem:[#allocation3 + $0x54] sm:$0xf] %v6548_v35  ;;  %v6541_v12 = vsel %vm14445_vm7, %v6246_v23, %v6540_v39  ;;  %v6252_v6 = vshll.u32 %v12544_v49, 16  ;;  %v6292_v3 = vshrl.u32 %v12549_v38, 16  ;;  %v6295_v36 = vshll.u32 %v12549_v38, 16 }
 0x37f   : > { %v6694_v56 = vsel %vm14410_vm5, 0, %v6693_v30  ;;  %6542 = vst [vmem:[#allocation3 + $0x48] sm:$0xf] %v6541_v12  ;;  %v6272_v57 = vsel %vm14493_vm11, %v6264_v18, %v6271_v15  ;;  %v6552_v22 = vsel %vm14401_vm3, %v6273_v13, %v6551_v32  ;;  %v6251_v34 = vrot.slane %v6249_v1, 7  ;;  %v6544_v20 = vld [vmem:[#allocation3 + $0x50] sm:$0x1] }
 0x380   : > { %6695 = vst [vmem:[#allocation3 + $0x44] sm:$0x1] %v6694_v56  ;;  %6550 = vst.msk [vmem:[#allocation3 + $0x58] sm:$0xf] %vm376_vm6, %v6272_v57  ;;  %v16336_v2 = vrot.slane %v6292_v3, 7  ;;  %v12547_v5 = vpack.c.bf16 %v6010_v19, %v6010_v19  ;;  %v5977_v63 = vadd.f32 %v16302_v50, %v16204_v33  ;;  %v13580_v31 = vadd.f32 %v13258_v37, %v16168_v52  ;;  %v16344_v4 = vpop.f32.mrb[24].mxu0 }
 0x381   : > { %6553 = vst [vmem:[#allocation3 + $0x5c] sm:$0x1] %v6552_v22  ;;  %v6561_v28 = vld [vmem:[#allocation3 + $0x6c] sm:$0xf]  ;;  %v6254_v29 = vor.u32 %v6252_v6, %v6251_v34  ;;  %v6256_v10 = vrot.slane %v6251_v34, 4  ;;  %v13581_v24 = vadd.f32 %v5852_v44, %v16170_v48  ;;  %v16348_v32 = vpop.f32.mrb[25].mxu0  ;;  %v13582_v12 = vadd.f32 %v13259_v59, %v16172_v14 }
 0x382   : > { %v6297_v39 = vor.u32 %v6295_v36, %v16336_v2  ;;  %v6298_v47 = vrot.slane %v16336_v2, 4  ;;  %v6275_v49 = vshrl.u32 %v12547_v5, 16  ;;  %v6278_v23 = vshll.u32 %v12547_v5, 16  ;;  %v16356_v37 = vpop.f32.mrb[26].mxu0  ;;  %v6554_v19 = vld [vmem:[#allocation3 + $0x60] sm:$0xf] }
 0x383   : > { %v6690_v18 = vld [vmem:[#allocation3 + $0x38] sm:$0x1]  ;;  %v6255_v7 = vsel %vm14493_vm11, %v6247_v27, %v6254_v29  ;;  %v6545_v52 = vsel %vm14401_vm3, %v6256_v10, %v6544_v20  ;;  %v6013_v48 = vmax.f32 %v5977_v63, 0.0  ;;  %v6011_v35 = vmax.f32 %v5975_v25, 0.0  ;;  %v16364_v27 = vpop.f32.mrb[27].mxu0 }
 0x384   : > { %v6691_v50 = vsel %vm14410_vm5, 0, %v6690_v18  ;;  %6543 = vst.msk [vmem:[#allocation3 + $0x4c] sm:$0xf] %vm376_vm6, %v6255_v7  ;;  %6546 = vst [vmem:[#allocation3 + $0x50] sm:$0x1] %v6545_v52  ;;  %v6562_v44 = vsel %vm14445_vm7, %v6297_v39, %v6561_v28  ;;  %v16361_v38 = vrot.slane %v6275_v49, 7  ;;  %v5980_v15 = vadd.f32 %v13580_v31, %v16204_v33 }
 0x385   : > { %6692 = vst [vmem:[#allocation3 + $0x38] sm:$0x1] %v6691_v50  ;;  %v6645_v13 = vld [vmem:[#allocation3 + $0x54] sm:$0x1]  ;;  %6563 = vst [vmem:[#allocation3 + $0x6c] sm:$0xf] %v6562_v44  ;;  %v12550_v1 = vpack.c.bf16 %v6013_v48, %v6013_v48  ;;  %v5978_v30 = vadd.f32 %v13581_v24, %v16204_v33  ;;  %v13583_v6 = vadd.f32 %v5855_v9, %v16174_v60 }
 0x386   : > { %v16369_v3 = vld [vmem:[#allocation3] sm:$0xf]  ;;  %v6646_v36 = vsel %vm14401_vm3, 0, %v6645_v13  ;;  %v6642_v56 = vld [vmem:[#allocation3 + $0x48] sm:$0x1]  ;;  %v6280_v57 = vor.u32 %v6278_v23, %v16361_v38  ;;  %v6281_v22 = vrot.slane %v16361_v38, 4  ;;  %v12548_v34 = vpack.c.bf16 %v6011_v35, %v6011_v35 }
 0x387   : > { %6647 = vst [vmem:[#allocation3 + $0x54] sm:$0x1] %v6646_v36  ;;  %v6643_v20 = vsel %vm14401_vm3, 0, %v6642_v56  ;;  %v6300_v5 = vshrl.u32 %v12550_v1, 16  ;;  %v6303_v14 = vshll.u32 %v12550_v1, 16  ;;  %v6016_v59 = vmax.f32 %v5980_v15, 0.0 }
 0x388   : > { %v6699_v28 = vld [vmem:[#allocation3 + $0x5c] sm:$0x1]  ;;  %6644 = vst [vmem:[#allocation3 + $0x48] sm:$0x1] %v6643_v20  ;;  %v6555_v9 = vsel %vm14445_vm7, %v6280_v57, %v6554_v19  ;;  %v6283_v63 = vshrl.u32 %v12548_v34, 16  ;;  %v6286_v25 = vshll.u32 %v12548_v34, 16  ;;  %v5981_v18 = vadd.f32 %v13582_v12, %v16204_v33 }
 0x389   : > { %v6700_v60 = vsel %vm14410_vm5, 0, %v6699_v28  ;;  %6556 = vst [vmem:[#allocation3 + $0x60] sm:$0xf] %v6555_v9  ;;  %v6302_v29 = vrot.slane %v6300_v5, 7  ;;  %v6565_v10 = vld [vmem:[#allocation3 + $0x74] sm:$0x1]  ;;  %v12553_v31 = vpack.c.bf16 %v6016_v59, %v6016_v59  ;;  %v5979_v50 = vadd.f32 %v13583_v6, %v16204_v33 }
 0x38a   : > { %6701 = vst [vmem:[#allocation3 + $0x5c] sm:$0x1] %v6700_v60  ;;  %v6014_v24 = vmax.f32 %v5978_v30, 0.0  ;;  %v16382_v39 = vpop.f32.mrb[28].mxu0  ;;  %v6285_v49 = vrot.slane %v6283_v63, 7  ;;  %v6794_v7 = vshrl.u32 %v16369_v3, 16 }
 0x38b   : > { %v6558_v23 = vld [vmem:[#allocation3 + $0x68] sm:$0x1]  ;;  %v6797_v52 = vshll.u32 %v16369_v3, 16  ;;  %v16387_v48 = vpop.f32.mrb[29].mxu0  ;;  %v6696_v44 = vld [vmem:[#allocation3 + $0x50] sm:$0x1]  ;;  %v6305_v38 = vor.u32 %v6303_v14, %v6302_v29 }
 0x38c   : > { %v6307_v19 = vrot.slane %v6302_v29, 4  ;;  %v6326_v35 = vshrl.u32 %v12553_v31, 16  ;;  %v6329_v15 = vshll.u32 %v12553_v31, 16  ;;  %v16389_v13 = vpop.f32.mrb[30].mxu0  ;;  %v6697_v1 = vsel %vm14410_vm5, 0, %v6696_v44 }
 0x38d   : > { %v6651_v30 = vld [vmem:[#allocation3 + $0x6c] sm:$0x1]  ;;  %v6288_v12 = vor.u32 %v6286_v25, %v6285_v49  ;;  %v6290_v36 = vrot.slane %v6285_v49, 4  ;;  %v12551_v6 = vpack.c.bf16 %v6014_v24, %v6014_v24  ;;  %v16393_v56 = vpop.f32.mrb[31].mxu0  ;;  %6698 = vst [vmem:[#allocation3 + $0x50] sm:$0x1] %v6697_v1  ;;  %v6306_v57 = vsel %vm14493_vm11, %v6298_v47, %v6305_v38 }
 0x38e   : > { %v6652_v3 = vsel %vm14401_vm3, 0, %v6651_v30  ;;  %v6566_v34 = vsel %vm14401_vm3, %v6307_v19, %v6565_v10  ;;  %v16403_v20 = vrot.slane %v6326_v35, 7  ;;  %v6745_v28 = vld [vmem:[#allocation3 + $0x4] sm:$0xf]  ;;  %6564 = vst.msk [vmem:[#allocation3 + $0x70] sm:$0xf] %vm376_vm6, %v6306_v57 }
 0x38f   : > { %6653 = vst [vmem:[#allocation3 + $0x6c] sm:$0x1] %v6652_v3  ;;  %6567 = vst [vmem:[#allocation3 + $0x74] sm:$0x1] %v6566_v34  ;;  %v6289_v5 = vsel %vm14493_vm11, %v6281_v22, %v6288_v12  ;;  %v6559_v14 = vsel %vm14401_vm3, %v6290_v36, %v6558_v23  ;;  %v6575_v2 = vld [vmem:[#allocation3 + $0x84] sm:$0xf] }
 0x390   : > { %v6309_v59 = vshrl.u32 %v12551_v6, 16  ;;  %v6312_v60 = vshll.u32 %v12551_v6, 16  ;;  %6557 = vst.msk [vmem:[#allocation3 + $0x64] sm:$0xf] %vm376_vm6, %v6289_v5  ;;  %6560 = vst [vmem:[#allocation3 + $0x68] sm:$0x1] %v6559_v14  ;;  %v6331_v47 = vor.u32 %v6329_v15, %v16403_v20 }
 0x391   : > { %v6332_v9 = vrot.slane %v16403_v20, 4  ;;  %v6017_v63 = vmax.f32 %v5981_v18, 0.0  ;;  %v6015_v25 = vmax.f32 %v5979_v50, 0.0  ;;  %v6648_v29 = vld [vmem:[#allocation3 + $0x60] sm:$0x1]  ;;  %v6796_v31 = vrot.slane %v6794_v7, 4 }
 0x392   : > { %v6311_v10 = vrot.slane %v6309_v59, 7  ;;  %v6799_v24 = vrot.slane %v6797_v52, 5  ;;  %v6803_v22 = vshll.u32 %v6745_v28, 16  ;;  %v6649_v49 = vsel %vm14401_vm3, 0, %v6648_v29  ;;  %v6568_v44 = vld [vmem:[#allocation3 + $0x78] sm:$0xf] }
 0x393   : > { %v6576_v23 = vsel %vm14445_vm7, %v6331_v47, %v6575_v2  ;;  %v12554_v38 = vpack.c.bf16 %v6017_v63, %v6017_v63  ;;  %v12552_v19 = vpack.c.bf16 %v6015_v25, %v6015_v25  ;;  %v6777_v35 = vld [vmem:[#allocation3 + $0x8] sm:$0x1]  ;;  %v16417_v15 = vpop.f32.mrb[32].mxu0  ;;  %6650 = vst [vmem:[#allocation3 + $0x60] sm:$0x1] %v6649_v49  ;;  %v6807_v14 = vshrl.u32 %v6745_v28, 16 }
 0x394   : > { %6577 = vst [vmem:[#allocation3 + $0x84] sm:$0xf] %v6576_v23  ;;  %v6314_v18 = vor.u32 %v6312_v60, %v6311_v10  ;;  %v6315_v50 = vrot.slane %v6311_v10, 4  ;;  %v6800_v1 = vor.u32 %v6799_v24, %v6796_v31  ;;  %v16419_v7 = vrot.slane %v6803_v22, 5  ;;  %v6746_v52 = vld [vmem:[#allocation3 + $0xc] sm:$0xf] }
 0x395   : > { %v16421_v30 = vpop.f32.mrb[33].mxu0  ;;  %v6334_v12 = vshrl.u32 %v12554_v38, 16  ;;  %v6337_v36 = vshll.u32 %v12554_v38, 16  ;;  %v6317_v6 = vshrl.u32 %v12552_v19, 16  ;;  %v6320_v3 = vshll.u32 %v12552_v19, 16 }
 0x396   : > { %v16423_v57 = vpop.f32.mrb[34].mxu0  ;;  %v6569_v34 = vsel %vm14445_vm7, %v6314_v18, %v6568_v44  ;;  %v6579_v20 = vld [vmem:[#allocation3 + $0x8c] sm:$0x1]  ;;  %v6801_v5 = vrot.slane %v6800_v1, 4  ;;  %v6813_v2 = vshll.u32 %v6777_v35, 16  ;;  %v6818_v29 = vshrl.u32 %v6746_v52, 16 }
 0x397   : > { %v6747_v59 = vld [vmem:[#allocation3 + $0x10] sm:$0xf]  ;;  %v16427_v60 = vpop.f32.mrb[35].mxu0  ;;  %v6705_v47 = vld [vmem:[#allocation3 + $0x74] sm:$0x1]  ;;  %v6336_v63 = vrot.slane %v6334_v12, 7 }
 0x398   : > { %6570 = vst [vmem:[#allocation3 + $0x78] sm:$0xf] %v6569_v34  ;;  %v6319_v25 = vrot.slane %v6317_v6, 7  ;;  %v6821_v10 = vshll.u32 %v6746_v52, 16  ;;  %v6706_v31 = vsel %vm14410_vm5, 0, %v6705_v47  ;;  %v6806_v22 = vsel %vm14507_vm13, %v6801_v5, %v16419_v7 }
 0x399   : > { %v6702_v24 = vld [vmem:[#allocation3 + $0x68] sm:$0x1]  ;;  %v6809_v49 = vrot.slane %v6807_v14, 4  ;;  %v6815_v28 = vrot.slane %v6813_v2, 5  ;;  %6707 = vst [vmem:[#allocation3 + $0x74] sm:$0x1] %v6706_v31  ;;  %v6339_v44 = vor.u32 %v6337_v36, %v6336_v63 }
 0x39a   : > { %v6703_v23 = vsel %vm14410_vm5, 0, %v6702_v24  ;;  %v6341_v38 = vrot.slane %v6336_v63, 4  ;;  %v6322_v19 = vor.u32 %v6320_v3, %v6319_v25  ;;  %v6572_v35 = vld [vmem:[#allocation3 + $0x80] sm:$0x1]  ;;  %v6324_v18 = vrot.slane %v6319_v25, 4 }
 0x39b   : > { %6704 = vst [vmem:[#allocation3 + $0x68] sm:$0x1] %v6703_v23  ;;  %v6810_v1 = vor.u32 %v6809_v49, %v16419_v7  ;;  %v6778_v52 = vld [vmem:[#allocation3 + $0x14] sm:$0x1]  ;;  %v6820_v12 = vrot.slane %v6818_v29, 4  ;;  %v6823_v6 = vrot.slane %v6821_v10, 5  ;;  %v6340_v5 = vsel %vm14493_vm11, %v6332_v9, %v6339_v44 }
 0x39c   : > { %v6657_v34 = vld [vmem:[#allocation3 + $0x84] sm:$0x1]  ;;  %v6580_v14 = vsel %vm14401_vm3, %v6341_v38, %v6579_v20  ;;  %v6323_v36 = vsel %vm14493_vm11, %v6315_v50, %v6322_v19  ;;  %v6827_v2 = vshll.u32 %v6747_v59, 16  ;;  %6578 = vst.msk [vmem:[#allocation3 + $0x88] sm:$0xf] %vm376_vm6, %v6340_v5  ;;  %v6573_v7 = vsel %vm14401_vm3, %v6324_v18, %v6572_v35 }
 0x39d   : > { %v6658_v3 = vsel %vm14401_vm3, 0, %v6657_v34  ;;  %6581 = vst [vmem:[#allocation3 + $0x8c] sm:$0x1] %v6580_v14  ;;  %6571 = vst.msk [vmem:[#allocation3 + $0x7c] sm:$0xf] %vm376_vm6, %v6323_v36  ;;  %v6811_v47 = vrot.slane %v6810_v1, 4  ;;  %v6824_v9 = vor.u32 %v6823_v6, %v6820_v12  ;;  %v13584_v29 = vadd.f32 %v16344_v4, %v16176_v45 }
 0x39e   : > { %v6748_v63 = vld [vmem:[#allocation3 + $0x18] sm:$0xf]  ;;  %6659 = vst [vmem:[#allocation3 + $0x84] sm:$0x1] %v6658_v3  ;;  %6574 = vst [vmem:[#allocation3 + $0x80] sm:$0x1] %v6573_v7  ;;  %v13585_v23 = vadd.f32 %v16348_v32, %v16183_v51  ;;  %v13586_v44 = vadd.f32 %v16356_v37, %v16187_v46  ;;  %v13587_v46 = vadd.f32 %v16364_v27, %v16189_v8 }
 0x39f   : > { %v6829_v20 = vrot.slane %v6827_v2, 5  ;;  %v6831_v25 = vshrl.u32 %v6747_v59, 16  ;;  %v6837_v50 = vshll.u32 %v6778_v52, 16  ;;  %v16451_v10 = vld [vmem:[#allocation3 + $0x1c] sm:$0xf]  ;;  %v6816_v24 = vsel %vm14507_vm13, %v6811_v47, %v6815_v28 }
 0x3a0   : > { %v6654_v31 = vld [vmem:[#allocation3 + $0x78] sm:$0x1]  ;;  %v6825_v49 = vrot.slane %v6824_v9, 4  ;;  %v12190_v38 = vcombine.low %v6806_v22, %v6816_v24  ;;  %v5984_v4 = vadd.f32 %v13584_v29, %v16204_v33  ;;  %v5982_v28 = vadd.f32 %v13585_v23, %v16204_v33  ;;  %v10111_v55 = vld [vmem:[#allocation3 + $0x60] sm:$0xf] }
 0x3a1   : > { %v6655_v59 = vsel %vm14401_vm3, 0, %v6654_v31  ;;  %v6833_v19 = vrot.slane %v6831_v25, 4  ;;  %v6839_v35 = vrot.slane %v6837_v50, 5  ;;  %v5985_v18 = vadd.f32 %v13586_v44, %v16204_v33  ;;  %v6589_v31 = vld [vmem:[#allocation3 + $0x9c] sm:$0xf] }
 0x3a2   : > { %6656 = vst [vmem:[#allocation3 + $0x78] sm:$0x1] %v6655_v59  ;;  %v6830_v45 = vsel %vm14507_vm13, %v6825_v49, %v6829_v20  ;;  %13274 = vmatprep.mubr.msk.bf16.mxu1 %vm1420_vm12, %v12190_v38  ;;  %v6842_v32 = vshrl.u32 %v6748_v63, 16  ;;  %v6845_v37 = vshll.u32 %v6748_v63, 16  ;;  %v6020_v22 = vmax.f32 %v5984_v4, 0.0 }
 0x3a3   : > { %v6834_v51 = vor.u32 %v6833_v19, %v6829_v20  ;;  %v6018_v1 = vmax.f32 %v5982_v28, 0.0  ;;  %v6021_v52 = vmax.f32 %v5985_v18, 0.0  ;;  %v6851_v12 = vshll.u32 %v16451_v10, 16  ;;  %v6582_v49 = vld [vmem:[#allocation3 + $0x90] sm:$0xf] }
 0x3a4   : > { %v6711_v6 = vld [vmem:[#allocation3 + $0x8c] sm:$0x1]  ;;  %v5983_v5 = vadd.f32 %v13587_v46, %v16204_v33  ;;  %v6844_v14 = vrot.slane %v6842_v32, 4  ;;  %v6847_v36 = vrot.slane %v6845_v37, 5  ;;  %v12557_v7 = vpack.c.bf16 %v6020_v22, %v6020_v22  ;;  %v7890_v38 = vld [vmem:[%s18269_s3 + $0x8] sm:$0xf] }
 0x3a5   : > { %v6835_v34 = vrot.slane %v6834_v51, 4  ;;  %v6712_v2 = vsel %vm14410_vm5, 0, %v6711_v6  ;;  %v6708_v3 = vld [vmem:[#allocation3 + $0x80] sm:$0x1]  ;;  %v12555_v47 = vpack.c.bf16 %v6018_v1, %v6018_v1  ;;  %v12558_v8 = vpack.c.bf16 %v6021_v52, %v6021_v52  ;;  %v6593_v4 = vld [vmem:[#allocation3 + $0xa4] sm:$0x1] }
 0x3a6   : > { %6713 = vst [vmem:[#allocation3 + $0x8c] sm:$0x1] %v6712_v2  ;;  %v6709_v27 = vsel %vm14410_vm5, 0, %v6708_v3  ;;  %v6019_v63 = vmax.f32 %v5983_v5, 0.0  ;;  %v6848_v20 = vor.u32 %v6847_v36, %v6844_v14  ;;  %v6360_v25 = vshrl.u32 %v12557_v7, 16 }
 0x3a7   : > { %v6840_v9 = vsel %vm14507_vm13, %v6835_v34, %v6839_v35  ;;  %6710 = vst [vmem:[#allocation3 + $0x80] sm:$0x1] %v6709_v27  ;;  %v6363_v50 = vshll.u32 %v12557_v7, 16  ;;  %v6343_v29 = vshrl.u32 %v12555_v47, 16  ;;  %v6346_v24 = vshll.u32 %v12555_v47, 16 }
 0x3a8   : > { %v12191_v33 = vcombine.low %v6830_v45, %v6840_v9  ;;  %v6368_v23 = vshrl.u32 %v12558_v8, 16  ;;  %v6371_v44 = vshll.u32 %v12558_v8, 16  ;;  %v12556_v59 = vpack.c.bf16 %v6019_v63, %v6019_v63  ;;  %v6779_v28 = vld [vmem:[#allocation3 + $0x20] sm:$0x1]  ;;  %v6750_v22 = vld [vmem:[#allocation3 + $0x24] sm:$0xf] }
 0x3a9   : > { %v6362_v19 = vrot.slane %v6360_v25, 7  ;;  %v6345_v35 = vrot.slane %v6343_v29, 7  ;;  %v6849_v45 = vrot.slane %v6848_v20, 4  ;;  %v6853_v18 = vrot.slane %v6851_v12, 5  ;;  %v16490_v47 = vld [vmem:[#allocation3 + $0x28] sm:$0xf] }
 0x3aa   : > { %13275 = vmatmul.mubr.msk.bf16.vlgmr.msra.gmra.mrb[16].mxu1 %vm1420_vm12, %v12191_v33  ;;  %v6370_v51 = vrot.slane %v6368_v23, 7  ;;  %v6351_v46 = vshrl.u32 %v12556_v59, 16  ;;  %v6354_v32 = vshll.u32 %v12556_v59, 16  ;;  %v6855_v37 = vshrl.u32 %v16451_v10, 16  ;;  %v6586_v10 = vld [vmem:[#allocation3 + $0x98] sm:$0x1] }
 0x3ab   : > { %13307 = vmatpush3.bf16.msra.mxu1 %v16244_v54  ;;  %v6365_v1 = vor.u32 %v6363_v50, %v6362_v19  ;;  %v6366_v52 = vrot.slane %v6362_v19, 4  ;;  %v6348_v6 = vor.u32 %v6346_v24, %v6345_v35  ;;  %v6349_v34 = vrot.slane %v6345_v35, 4  ;;  %v6780_v20 = vld [vmem:[#allocation3 + $0x2c] sm:$0x1] }
 0x3ac   : > { %14136 = vmatprep.subr.msk.bf16.mxu1 %vm1475_vm0, %v7890_v38  ;;  %v6373_v5 = vor.u32 %v6371_v44, %v6370_v51  ;;  %v6375_v14 = vrot.slane %v6370_v51, 4  ;;  %v6353_v36 = vrot.slane %v6351_v46, 7  ;;  %v6854_v12 = vsel %vm14507_vm13, %v6849_v45, %v6853_v18 }
 0x3ad   : > { %v6590_v54 = vsel %vm14445_vm7, %v6365_v1, %v6589_v31  ;;  %v6583_v2 = vsel %vm14445_vm7, %v6348_v6, %v6582_v49  ;;  %v6857_v3 = vrot.slane %v6855_v37, 4  ;;  %v6861_v7 = vshll.u32 %v6779_v28, 16 }
 0x3ae   : > { %6591 = vst [vmem:[#allocation3 + $0x9c] sm:$0xf] %v6590_v54  ;;  %6584 = vst [vmem:[#allocation3 + $0x90] sm:$0xf] %v6583_v2  ;;  %v6374_v8 = vsel %vm14493_vm11, %v6366_v52, %v6373_v5  ;;  %v6594_v27 = vsel %vm14401_vm3, %v6375_v14, %v6593_v4  ;;  %v6356_v9 = vor.u32 %v6354_v32, %v6353_v36  ;;  %v6358_v63 = vrot.slane %v6353_v36, 4 }
 0x3af   : > { %6592 = vst.msk [vmem:[#allocation3 + $0xa0] sm:$0xf] %vm376_vm6, %v6374_v8  ;;  %6595 = vst [vmem:[#allocation3 + $0xa4] sm:$0x1] %v6594_v27  ;;  %v6858_v33 = vor.u32 %v6857_v3, %v6853_v18  ;;  %v6863_v25 = vrot.slane %v6861_v7, 5  ;;  %v6866_v50 = vshrl.u32 %v6750_v22, 16  ;;  %v13588_v28 = vadd.f32 %v16382_v39, %v16191_v0 }
 0x3b0   : > { %v6869_v29 = vshll.u32 %v6750_v22, 16  ;;  %v6357_v31 = vsel %vm14493_vm11, %v6349_v34, %v6356_v9  ;;  %v6587_v24 = vsel %vm14401_vm3, %v6358_v63, %v6586_v10  ;;  %v6875_v49 = vshll.u32 %v16490_v47, 16  ;;  %v16508_v18 = vld [vmem:[#allocation3 + $0x30] sm:$0xf] }
 0x3b1   : > { %v6879_v23 = vshrl.u32 %v16490_v47, 16  ;;  %6585 = vst.msk [vmem:[#allocation3 + $0x94] sm:$0xf] %vm376_vm6, %v6357_v31  ;;  %6588 = vst [vmem:[#allocation3 + $0x98] sm:$0x1] %v6587_v24  ;;  %v6859_v44 = vrot.slane %v6858_v33, 4  ;;  %v13589_v45 = vadd.f32 %v16387_v48, %v16193_v42  ;;  %v13590_v37 = vadd.f32 %v16389_v13, %v16195_v40 }
 0x3b2   : > { %v6868_v59 = vrot.slane %v6866_v50, 4  ;;  %v6871_v38 = vrot.slane %v6869_v29, 5  ;;  %v6885_v19 = vshll.u32 %v6780_v20, 16  ;;  %v6877_v35 = vrot.slane %v6875_v49, 5  ;;  %v16517_v52 = vld [vmem:[%s18268_s2] ss:$0 sm:$0xff] }
 0x3b3   : > { %v6881_v4 = vrot.slane %v6879_v23, 4  ;;  %v6864_v51 = vsel %vm14507_vm13, %v6859_v44, %v6863_v25  ;;  %v5988_v0 = vadd.f32 %v16517_v52, %v13588_v28  ;;  %v5986_v42 = vadd.f32 %v16517_v52, %v13589_v45  ;;  %v16539_v50 = vld [vmem:[#allocation3 + $0x34] sm:$0xf]  ;;  %v6781_v29 = vld [vmem:[#allocation3 + $0x38] sm:$0x1] }
 0x3b4   : > { %v6872_v46 = vor.u32 %v6871_v38, %v6868_v59  ;;  %v6887_v32 = vrot.slane %v6885_v19, 5  ;;  %v12192_v22 = vcombine.low %v6854_v12, %v6864_v51  ;;  %v5989_v34 = vadd.f32 %v16517_v52, %v13590_v37 }
 0x3b5   : > { %v6882_v1 = vor.u32 %v6881_v4, %v6877_v35  ;;  %v6663_v39 = vld [vmem:[#allocation3 + $0x9c] sm:$0x1]  ;;  %v6660_v48 = vld [vmem:[#allocation3 + $0x90] sm:$0x1]  ;;  %v13591_v5 = vadd.f32 %v16393_v56, %v16197_v62  ;;  %v6890_v40 = vshrl.u32 %v16508_v18, 16  ;;  %v6024_v54 = vmax.f32 %v5988_v0, 0.0 }
 0x3b6   : > { %v6873_v6 = vrot.slane %v6872_v46, 4  ;;  %v6664_v13 = vsel %vm14401_vm3, 0, %v6663_v39  ;;  %v6661_v14 = vsel %vm14401_vm3, 0, %v6660_v48  ;;  %v6717_v36 = vld [vmem:[#allocation3 + $0xa4] sm:$0x1]  ;;  %13278 = vmatprep.mubr.msk.bf16.mxu1 %vm1420_vm12, %v12192_v22  ;;  %v6022_v56 = vmax.f32 %v5986_v42, 0.0 }
 0x3b7   : > { %v6883_v12 = vrot.slane %v6882_v1, 4  ;;  %6665 = vst [vmem:[#allocation3 + $0x9c] sm:$0x1] %v6664_v13  ;;  %6662 = vst [vmem:[#allocation3 + $0x90] sm:$0x1] %v6661_v14  ;;  %v6718_v2 = vsel %vm14410_vm5, 0, %v6717_v36  ;;  %v12561_v8 = vpack.c.bf16 %v6024_v54, %v6024_v54  ;;  %v5987_v27 = vadd.f32 %v16517_v52, %v13591_v5 }
 0x3b8   : > { %v6878_v62 = vsel %vm14507_vm13, %v6873_v6, %v6877_v35  ;;  %v6025_v10 = vmax.f32 %v5989_v34, 0.0  ;;  %6719 = vst [vmem:[#allocation3 + $0xa4] sm:$0x1] %v6718_v2  ;;  %v6714_v3 = vld [vmem:[#allocation3 + $0x98] sm:$0x1]  ;;  %v6892_v9 = vrot.slane %v6890_v40, 4  ;;  %v12559_v33 = vpack.c.bf16 %v6022_v56, %v6022_v56 }
 0x3b9   : > { %v6888_v7 = vsel %vm14507_vm13, %v6883_v12, %v6887_v32  ;;  %v6715_v63 = vsel %vm14410_vm5, 0, %v6714_v3  ;;  %v6394_v31 = vshrl.u32 %v12561_v8, 16  ;;  %v6397_v24 = vshll.u32 %v12561_v8, 16  ;;  %v6603_v4 = vld [vmem:[#allocation3 + $0xb4] sm:$0xf] }
 0x3ba   : > { %v12193_v20 = vcombine.low %v6878_v62, %v6888_v7  ;;  %v12562_v25 = vpack.c.bf16 %v6025_v10, %v6025_v10  ;;  %6716 = vst [vmem:[#allocation3 + $0x98] sm:$0x1] %v6715_v63  ;;  %v6023_v49 = vmax.f32 %v5987_v27, 0.0  ;;  %v6893_v23 = vshll.u32 %v16508_v18, 16  ;;  %v6596_v32 = vld [vmem:[#allocation3 + $0xa8] sm:$0xf] }
 0x3bb   : > { %v6377_v44 = vshrl.u32 %v12559_v33, 16  ;;  %v6380_v59 = vshll.u32 %v12559_v33, 16  ;;  %v6396_v35 = vrot.slane %v6394_v31, 7  ;;  %v6899_v51 = vshll.u32 %v16539_v50, 16  ;;  %v6607_v39 = vld [vmem:[#allocation3 + $0xbc] sm:$0x1] }
 0x3bc   : > { %13279 = vmatmul.mubr.msk.bf16.gmra.mrb[20].mxu1 %vm1420_vm12, %v12193_v20  ;;  %v6402_v38 = vshrl.u32 %v12562_v25, 16  ;;  %v6405_v19 = vshll.u32 %v12562_v25, 16  ;;  %v12560_v28 = vpack.c.bf16 %v6023_v49, %v6023_v49  ;;  %v6895_v45 = vrot.slane %v6893_v23, 5  ;;  %v16545_v14 = vld [vmem:[#allocation3 + $0x3c] sm:$0xf] }
 0x3bd   : > { %v6379_v46 = vrot.slane %v6377_v44, 7  ;;  %v6903_v22 = vshrl.u32 %v16539_v50, 16  ;;  %v6909_v1 = vshll.u32 %v6781_v29, 16  ;;  %v6399_v0 = vor.u32 %v6397_v24, %v6396_v35  ;;  %v16549_v62 = vld [vmem:[#allocation3 + $0x40] sm:$0xf] }
 0x3be   : > { %v6404_v37 = vrot.slane %v6402_v38, 7  ;;  %v6400_v42 = vrot.slane %v6396_v35, 4  ;;  %v6385_v48 = vshrl.u32 %v12560_v28, 16  ;;  %v6388_v6 = vshll.u32 %v12560_v28, 16  ;;  %v6600_v7 = vld [vmem:[#allocation3 + $0xb0] sm:$0x1] }
 0x3bf   : > { %v6382_v34 = vor.u32 %v6380_v59, %v6379_v46  ;;  %v6383_v5 = vrot.slane %v6379_v46, 4  ;;  %v6604_v36 = vsel %vm14445_vm7, %v6399_v0, %v6603_v4  ;;  %v6896_v54 = vor.u32 %v6895_v45, %v6892_v9  ;;  %v6782_v25 = vld [vmem:[#allocation3 + $0x44] sm:$0x1] }
 0x3c0   : > { %v6407_v40 = vor.u32 %v6405_v19, %v6404_v37  ;;  %v6409_v13 = vrot.slane %v6404_v37, 4  ;;  %v6387_v12 = vrot.slane %v6385_v48, 7  ;;  %v6901_v2 = vrot.slane %v6899_v51, 5  ;;  %6605 = vst [vmem:[#allocation3 + $0xb4] sm:$0xf] %v6604_v36 }
 0x3c1   : > { %v6597_v56 = vsel %vm14445_vm7, %v6382_v34, %v6596_v32  ;;  %v6905_v8 = vrot.slane %v6903_v22, 4  ;;  %v6897_v63 = vrot.slane %v6896_v54, 4  ;;  %v6911_v20 = vrot.slane %v6909_v1, 5 }
 0x3c2   : > { %v6408_v10 = vsel %vm14493_vm11, %v6400_v42, %v6407_v40  ;;  %v6608_v3 = vsel %vm14401_vm3, %v6409_v13, %v6607_v39  ;;  %6598 = vst [vmem:[#allocation3 + $0xa8] sm:$0xf] %v6597_v56  ;;  %v6390_v27 = vor.u32 %v6388_v6, %v6387_v12  ;;  %v6392_v9 = vrot.slane %v6387_v12, 4 }
 0x3c3   : > { %6606 = vst.msk [vmem:[#allocation3 + $0xb8] sm:$0xf] %vm376_vm6, %v6408_v10  ;;  %6609 = vst [vmem:[#allocation3 + $0xbc] sm:$0x1] %v6608_v3  ;;  %v6906_v33 = vor.u32 %v6905_v8, %v6901_v2  ;;  %v6914_v29 = vshrl.u32 %v16545_v14, 16  ;;  %v6917_v31 = vshll.u32 %v16545_v14, 16  ;;  %v6902_v44 = vsel %vm14507_vm13, %v6897_v63, %v6901_v2 }
 0x3c4   : > { %v6923_v24 = vshll.u32 %v16549_v62, 16  ;;  %v6391_v49 = vsel %vm14493_vm11, %v6383_v5, %v6390_v27  ;;  %v6601_v23 = vsel %vm14401_vm3, %v6392_v9, %v6600_v7  ;;  %v6927_v59 = vshrl.u32 %v16549_v62, 16 }
 0x3c5   : > { %6599 = vst.msk [vmem:[#allocation3 + $0xac] sm:$0xf] %vm376_vm6, %v6391_v49  ;;  %6602 = vst [vmem:[#allocation3 + $0xb0] sm:$0x1] %v6601_v23  ;;  %v6907_v38 = vrot.slane %v6906_v33, 4  ;;  %v6916_v19 = vrot.slane %v6914_v29, 4  ;;  %v13592_v51 = vadd.f32 %v16417_v15, %v16199_v16  ;;  %v13593_v46 = vadd.f32 %v16421_v30, %v16211_v58 }
 0x3c6   : > { %v6919_v35 = vrot.slane %v6917_v31, 5  ;;  %v6925_v4 = vrot.slane %v6923_v24, 5  ;;  %v6929_v28 = vrot.slane %v6927_v59, 4  ;;  %v6933_v45 = vshll.u32 %v6782_v25, 16  ;;  %v16580_v16 = vld [vmem:[#allocation3 + $0x48] sm:$0xf] }
 0x3c7   : > { %v6912_v32 = vsel %vm14507_vm13, %v6907_v38, %v6911_v20  ;;  %v13594_v22 = vadd.f32 %v16423_v57, %v16214_v53  ;;  %v13595_v1 = vadd.f32 %v16427_v60, %v16216_v26  ;;  %v6669_v0 = vld [vmem:[#allocation3 + $0xb4] sm:$0x1]  ;;  %v5992_v6 = vadd.f32 %v16517_v52, %v13592_v51  ;;  %v16600_v20 = vld [vmem:[#allocation3 + $0x4c] sm:$0xf]  ;;  %v16602_v29 = vld [vmem:[#allocation3 + $0x50] sm:$0x1] }
 0x3c8   : > { %v6920_v37 = vor.u32 %v6919_v35, %v6916_v19  ;;  %v12194_v42 = vcombine.low %v6902_v44, %v6912_v32  ;;  %v6930_v39 = vor.u32 %v6929_v28, %v6925_v4  ;;  %v6935_v48 = vrot.slane %v6933_v45, 5  ;;  %v6617_v38 = vld [vmem:[#allocation3 + $0xcc] sm:$0xf]  ;;  %v6610_v45 = vld [vmem:[#allocation3 + $0xc0] sm:$0xf] }
 0x3c9   : > { %v6670_v58 = vsel %vm14401_vm3, 0, %v6669_v0  ;;  %v6666_v15 = vld [vmem:[#allocation3 + $0xa8] sm:$0x1]  ;;  %v5990_v5 = vadd.f32 %v16517_v52, %v13593_v46  ;;  %v5993_v53 = vadd.f32 %v16517_v52, %v13594_v22  ;;  %v6028_v40 = vmax.f32 %v5992_v6, 0.0 }
 0x3ca   : > { %v6723_v30 = vld [vmem:[#allocation3 + $0xbc] sm:$0x1]  ;;  %v6921_v34 = vrot.slane %v6920_v37, 4  ;;  %6671 = vst [vmem:[#allocation3 + $0xb4] sm:$0x1] %v6670_v58  ;;  %v6667_v26 = vsel %vm14401_vm3, 0, %v6666_v15  ;;  %13282 = vmatprep.mubr.msk.bf16.mxu1 %vm1420_vm12, %v12194_v42  ;;  %v5991_v54 = vadd.f32 %v16517_v52, %v13595_v1 }
 0x3cb   : > { %v6724_v57 = vsel %vm14410_vm5, 0, %v6723_v30  ;;  %v6931_v60 = vrot.slane %v6930_v39, 4  ;;  %6668 = vst [vmem:[#allocation3 + $0xa8] sm:$0x1] %v6667_v26  ;;  %v6026_v36 = vmax.f32 %v5990_v5, 0.0  ;;  %v6029_v12 = vmax.f32 %v5993_v53, 0.0 }
 0x3cc   : > { %6725 = vst [vmem:[#allocation3 + $0xbc] sm:$0x1] %v6724_v57  ;;  %v6926_v13 = vsel %vm14507_vm13, %v6921_v34, %v6925_v4  ;;  %v6720_v2 = vld [vmem:[#allocation3 + $0xb0] sm:$0x1]  ;;  %v12565_v10 = vpack.c.bf16 %v6028_v40, %v6028_v40  ;;  %v6938_v3 = vshrl.u32 %v16580_v16, 16  ;;  %v6941_v7 = vshll.u32 %v16580_v16, 16 }
 0x3cd   : > { %v6936_v56 = vsel %vm14507_vm13, %v6931_v60, %v6935_v48  ;;  %v6721_v8 = vsel %vm14410_vm5, 0, %v6720_v2  ;;  %v12563_v9 = vpack.c.bf16 %v6026_v36, %v6026_v36  ;;  %v12566_v63 = vpack.c.bf16 %v6029_v12, %v6029_v12  ;;  %v6621_v1 = vld [vmem:[#allocation3 + $0xd4] sm:$0x1]  ;;  %v16608_v15 = vld [vmem:[#allocation3 + $0x58] sm:$0xf] }
 0x3ce   : > { %v12195_v27 = vcombine.low %v6926_v13, %v6936_v56  ;;  %6722 = vst [vmem:[#allocation3 + $0xb0] sm:$0x1] %v6721_v8  ;;  %v6428_v33 = vshrl.u32 %v12565_v10, 16  ;;  %v6431_v52 = vshll.u32 %v12565_v10, 16  ;;  %v6027_v25 = vmax.f32 %v5991_v54, 0.0 }
 0x3cf   : > { %v6940_v31 = vrot.slane %v6938_v3, 4  ;;  %v6411_v24 = vshrl.u32 %v12563_v9, 16  ;;  %v6414_v49 = vshll.u32 %v12563_v9, 16  ;;  %v6436_v23 = vshrl.u32 %v12566_v63, 16  ;;  %v16612_v26 = vld [vmem:[#allocation3 + $0x54] sm:$0xf] }
 0x3d0   : > { %13283 = vmatmul.mubr.msk.bf16.gmra.mrb[24].mxu1 %vm1420_vm12, %v12195_v27  ;;  %v6439_v44 = vshll.u32 %v12566_v63, 16  ;;  %v6430_v59 = vrot.slane %v6428_v33, 7  ;;  %v12564_v19 = vpack.c.bf16 %v6027_v25, %v6027_v25  ;;  %v6943_v35 = vrot.slane %v6941_v7, 5  ;;  %v6614_v13 = vld [vmem:[#allocation3 + $0xc8] sm:$0x1] }
 0x3d1   : > { %v6947_v4 = vshll.u32 %v16600_v20, 16  ;;  %v6413_v28 = vrot.slane %v6411_v24, 7  ;;  %v6438_v51 = vrot.slane %v6436_v23, 7  ;;  %v6951_v46 = vshrl.u32 %v16600_v20, 16  ;;  %v16621_v10 = vld [vmem:[#allocation3 + $0x5c] sm:$0x1] }
 0x3d2   : > { %v6957_v32 = vshll.u32 %v16602_v29, 16  ;;  %v6433_v37 = vor.u32 %v6431_v52, %v6430_v59  ;;  %v6434_v22 = vrot.slane %v6430_v59, 4  ;;  %v6419_v0 = vshrl.u32 %v12564_v19, 16  ;;  %v16628_v27 = vld [vmem:[#allocation3 + $0x60] sm:$0xf] }
 0x3d3   : > { %v6422_v42 = vshll.u32 %v12564_v19, 16  ;;  %v6416_v39 = vor.u32 %v6414_v49, %v6413_v28  ;;  %v6417_v48 = vrot.slane %v6413_v28, 4  ;;  %v6441_v6 = vor.u32 %v6439_v44, %v6438_v51  ;;  %v16637_v25 = vld [vmem:[#allocation3 + $0x64] sm:$0xf] }
 0x3d4   : > { %v6443_v58 = vrot.slane %v6438_v51, 4  ;;  %v6618_v30 = vsel %vm14445_vm7, %v6433_v37, %v6617_v38  ;;  %v6421_v34 = vrot.slane %v6419_v0, 7  ;;  %v6944_v5 = vor.u32 %v6943_v35, %v6940_v31 }
 0x3d5   : > { %v6949_v53 = vrot.slane %v6947_v4, 5  ;;  %6619 = vst [vmem:[#allocation3 + $0xcc] sm:$0xf] %v6618_v30  ;;  %v6611_v57 = vsel %vm14445_vm7, %v6416_v39, %v6610_v45  ;;  %v6442_v60 = vsel %vm14493_vm11, %v6434_v22, %v6441_v6  ;;  %v6953_v36 = vrot.slane %v6951_v46, 4  ;;  %v16647_v45 = vld [vmem:[#allocation3 + $0x6c] sm:$0xf] }
 0x3d6   : > { %v6622_v40 = vsel %vm14401_vm3, %v6443_v58, %v6621_v1  ;;  %6612 = vst [vmem:[#allocation3 + $0xc0] sm:$0xf] %v6611_v57  ;;  %6620 = vst.msk [vmem:[#allocation3 + $0xd0] sm:$0xf] %vm376_vm6, %v6442_v60  ;;  %v6424_v12 = vor.u32 %v6422_v42, %v6421_v34  ;;  %v6426_v54 = vrot.slane %v6421_v34, 4  ;;  %v6945_v2 = vrot.slane %v6944_v5, 4 }
 0x3d7   : > { %6623 = vst [vmem:[#allocation3 + $0xd4] sm:$0x1] %v6622_v40  ;;  %v6959_v56 = vrot.slane %v6957_v32, 5  ;;  %6742 = vst.msk [vmem:[#allocation3 + $0xd0] sm:$0xf] %vm376_vm6, %v18428_v41  ;;  %v6954_v11 = vor.u32 %v6953_v36, %v6949_v53  ;;  %v6962_v3 = vshrl.u32 %v16612_v26, 16 }
 0x3d8   : > { %v6965_v7 = vshll.u32 %v16612_v26, 16  ;;  %v6971_v8 = vshll.u32 %v16608_v15, 16  ;;  %v6425_v9 = vsel %vm14493_vm11, %v6417_v48, %v6424_v12  ;;  %v6615_v63 = vsel %vm14401_vm3, %v6426_v54, %v6614_v13  ;;  %v16649_v22 = vld [vmem:[#allocation3 + $0x68] sm:$0x1]  ;;  %v16653_v6 = vld [vmem:[#allocation3 + $0x70] sm:$0xf] }
 0x3d9   : > { %v6950_v33 = vsel %vm14507_vm13, %v6945_v2, %v6949_v53  ;;  %v6975_v52 = vshrl.u32 %v16608_v15, 16  ;;  %6613 = vst.msk [vmem:[#allocation3 + $0xc4] sm:$0xf] %vm376_vm6, %v6425_v9  ;;  %6616 = vst [vmem:[#allocation3 + $0xc8] sm:$0x1] %v6615_v63  ;;  %v6955_v31 = vrot.slane %v6954_v11, 4 }
 0x3da   : > { %v6964_v24 = vrot.slane %v6962_v3, 4  ;;  %v6967_v49 = vrot.slane %v6965_v7, 5  ;;  %v6973_v23 = vrot.slane %v6971_v8, 5  ;;  %v6981_v61 = vshll.u32 %v16621_v10, 16  ;;  %v16660_v53 = vld [vmem:[#allocation3 + $0x74] sm:$0x1] }
 0x3db   : > { %v6977_v44 = vrot.slane %v6975_v52, 4  ;;  %v6986_v59 = vshrl.u32 %v16628_v27, 16  ;;  %v6989_v38 = vshll.u32 %v16628_v27, 16  ;;  %v6960_v19 = vsel %vm14507_vm13, %v6955_v31, %v6959_v56  ;;  %v16667_v13 = vld [vmem:[#allocation3 + $0x78] sm:$0xf] }
 0x3dc   : > { %v6968_v35 = vor.u32 %v6967_v49, %v6964_v24  ;;  %v6995_v4 = vshll.u32 %v16637_v25, 16  ;;  %v6999_v28 = vshrl.u32 %v16637_v25, 16  ;;  %v6675_v51 = vld [vmem:[#allocation3 + $0xcc] sm:$0x1]  ;;  %v12196_v46 = vcombine.low %v6950_v33, %v6960_v19  ;;  %v16681_v49 = vld [vmem:[#allocation3 + $0x7c] sm:$0xf] }
 0x3dd   : > { %v6978_v32 = vor.u32 %v6977_v44, %v6973_v23  ;;  %v6983_v37 = vrot.slane %v6981_v61, 5  ;;  %v6988_v1 = vrot.slane %v6986_v59, 4  ;;  %v6676_v0 = vsel %vm14401_vm3, 0, %v6675_v51  ;;  %v6672_v42 = vld [vmem:[#allocation3 + $0xc0] sm:$0x1] }
 0x3de   : > { %v6729_v39 = vld [vmem:[#allocation3 + $0xd4] sm:$0x1]  ;;  %v6969_v48 = vrot.slane %v6968_v35, 4  ;;  %6677 = vst [vmem:[#allocation3 + $0xcc] sm:$0x1] %v6676_v0  ;;  %v6673_v58 = vsel %vm14401_vm3, 0, %v6672_v42  ;;  %13286 = vmatprep.mubr.msk.bf16.mxu1 %vm1420_vm12, %v12196_v46 }
 0x3df   : > { %v6730_v30 = vsel %vm14410_vm5, 0, %v6729_v39  ;;  %v6979_v34 = vrot.slane %v6978_v32, 4  ;;  %v6991_v5 = vrot.slane %v6989_v38, 5  ;;  %6741 = vst.msk [vmem:[#allocation3 + $0xcc] sm:$0xf] %vm376_vm6, %v18428_v41  ;;  %v6997_v60 = vrot.slane %v6995_v4, 5 }
 0x3e0   : > { %6674 = vst [vmem:[#allocation3 + $0xc0] sm:$0x1] %v6673_v58  ;;  %6731 = vst [vmem:[#allocation3 + $0xd4] sm:$0x1] %v6730_v30  ;;  %v6974_v57 = vsel %vm14507_vm13, %v6969_v48, %v6973_v23  ;;  %v7001_v43 = vrot.slane %v6999_v28, 4  ;;  %v7005_v40 = vshll.u32 %v16649_v22, 16 }
 0x3e1   : > { %6743 = vst.msk [vmem:[#allocation3 + $0xd4] sm:$0x1] %vm251_vm1, %v18428_v41  ;;  %v6726_v36 = vld [vmem:[#allocation3 + $0xc8] sm:$0x1]  ;;  %v6984_v12 = vsel %vm14507_vm13, %v6979_v34, %v6983_v37  ;;  %v6992_v54 = vor.u32 %v6991_v5, %v6988_v1  ;;  %v7010_v2 = vshrl.u32 %v16647_v45, 16  ;;  %v7013_v56 = vshll.u32 %v16647_v45, 16 }
 0x3e2   : > { %v6727_v11 = vsel %vm14410_vm5, 0, %v6726_v36  ;;  %v12197_v3 = vcombine.low %v6974_v57, %v6984_v12  ;;  %v7002_v7 = vor.u32 %v7001_v43, %v6997_v60  ;;  %v7007_v8 = vrot.slane %v7005_v40, 5  ;;  %v16686_v59 = vld [vmem:[#allocation3 + $0x80] sm:$0x1]  ;;  %v16689_v19 = vld [vmem:[#allocation3 + $0x84] sm:$0xf] }
 0x3e3   : > { %6728 = vst [vmem:[#allocation3 + $0xc8] sm:$0x1] %v6727_v11  ;;  %v6993_v9 = vrot.slane %v6992_v54, 4  ;;  %v7012_v63 = vrot.slane %v7010_v2, 4  ;;  %v7015_v33 = vrot.slane %v7013_v56, 5  ;;  %v7019_v41 = vshll.u32 %v16653_v6, 16 }
 0x3e4   : > { %13287 = vmatmul.mubr.msk.bf16.gmra.mrb[28].mxu1 %vm1420_vm12, %v12197_v3  ;;  %v7003_v52 = vrot.slane %v7002_v7, 4  ;;  %v7023_v31 = vshrl.u32 %v16653_v6, 16  ;;  %v7029_v24 = vshll.u32 %v16660_v53, 16  ;;  %v7034_v17 = vshrl.u32 %v16667_v13, 16  ;;  %v16696_v48 = vld [vmem:[#allocation3 + $0x88] sm:$0xf] }
 0x3e5   : > { %v6998_v23 = vsel %vm14507_vm13, %v6993_v9, %v6997_v60  ;;  %v7016_v44 = vor.u32 %v7015_v33, %v7012_v63  ;;  %v7021_v61 = vrot.slane %v7019_v41, 5  ;;  %v7037_v38 = vshll.u32 %v16667_v13, 16  ;;  %v16702_v57 = vld [vmem:[#allocation3 + $0x8c] sm:$0x1]  ;;  %v16705_v43 = vld [vmem:[#allocation3 + $0x90] sm:$0xf] }
 0x3e6   : > { %v7008_v35 = vsel %vm14507_vm13, %v7003_v52, %v7007_v8  ;;  %v7025_v4 = vrot.slane %v7023_v31, 4  ;;  %v7031_v28 = vrot.slane %v7029_v24, 5  ;;  %v7036_v51 = vrot.slane %v7034_v17, 4  ;;  %v16712_v63 = vld [vmem:[#allocation3 + $0x94] sm:$0xf] }
 0x3e7   : > { %v12198_v46 = vcombine.low %v6998_v23, %v7008_v35  ;;  %v7017_v32 = vrot.slane %v7016_v44, 4  ;;  %v7039_v37 = vrot.slane %v7037_v38, 5  ;;  %v7043_v1 = vshll.u32 %v16681_v49, 16  ;;  %v16717_v17 = vld [vmem:[#allocation3 + $0x98] sm:$0x1] }
 0x3e8   : > { %v7026_v0 = vor.u32 %v7025_v4, %v7021_v61  ;;  %v7047_v42 = vshrl.u32 %v16681_v49, 16  ;;  %v7053_v39 = vshll.u32 %v16686_v59, 16  ;;  %v7058_v58 = vshrl.u32 %v16689_v19, 16  ;;  %v16719_v23 = vld [vmem:[#allocation3 + $0x9c] sm:$0xf] }
 0x3e9   : > { %13290 = vmatprep.mubr.msk.bf16.mxu1 %vm1420_vm12, %v12198_v46  ;;  %v7022_v30 = vsel %vm14507_vm13, %v7017_v32, %v7021_v61  ;;  %v7040_v34 = vor.u32 %v7039_v37, %v7036_v51  ;;  %v7045_v5 = vrot.slane %v7043_v1, 5  ;;  %v7061_v60 = vshll.u32 %v16689_v19, 16  ;;  %v16725_v32 = vld [vmem:[#allocation3 + $0xa0] sm:$0xf] }
 0x3ea   : > { %v7027_v40 = vrot.slane %v7026_v0, 4  ;;  %v7049_v36 = vrot.slane %v7047_v42, 4  ;;  %v7055_v12 = vrot.slane %v7053_v39, 5  ;;  %v7060_v54 = vrot.slane %v7058_v58, 4  ;;  %v16730_v42 = vld [vmem:[#allocation3 + $0xa4] sm:$0x1] }
 0x3eb   : > { %v7041_v2 = vrot.slane %v7040_v34, 4  ;;  %v7063_v56 = vrot.slane %v7061_v60, 5  ;;  %v7067_v11 = vshll.u32 %v16696_v48, 16  ;;  %v7071_v3 = vshrl.u32 %v16696_v48, 16  ;;  %v16735_v60 = vld [vmem:[#allocation3 + $0xa8] sm:$0xf] }
 0x3ec   : > { %v7032_v7 = vsel %vm14507_vm13, %v7027_v40, %v7031_v28  ;;  %v7050_v8 = vor.u32 %v7049_v36, %v7045_v5  ;;  %v7077_v9 = vshll.u32 %v16702_v57, 16  ;;  %v7082_v33 = vshrl.u32 %v16705_v43, 16 }
 0x3ed   : > { %v12199_v41 = vcombine.low %v7022_v30, %v7032_v7  ;;  %v7046_v52 = vsel %vm14507_vm13, %v7041_v2, %v7045_v5  ;;  %v7064_v31 = vor.u32 %v7063_v56, %v7060_v54  ;;  %v7069_v24 = vrot.slane %v7067_v11, 5 }
 0x3ee   : > { %v7051_v44 = vrot.slane %v7050_v8, 4  ;;  %v7073_v61 = vrot.slane %v7071_v3, 4  ;;  %v7079_v38 = vrot.slane %v7077_v9, 5  ;;  %v7084_v35 = vrot.slane %v7082_v33, 4  ;;  %v16743_v8 = vld [vmem:[#allocation3 + $0xb0] sm:$0x1] }
 0x3ef   : > { %13291 = vmatmul.mubr.msk.bf16.gmra.mrb[32].mxu1 %vm1420_vm12, %v12199_v41  ;;  %v7065_v4 = vrot.slane %v7064_v31, 4  ;;  %v7085_v28 = vshll.u32 %v16705_v43, 16  ;;  %v7091_v51 = vshll.u32 %v16712_v63, 16  ;;  %v7095_v46 = vshrl.u32 %v16712_v63, 16 }
 0x3f0   : > { %v7056_v37 = vsel %vm14507_vm13, %v7051_v44, %v7055_v12  ;;  %v7074_v1 = vor.u32 %v7073_v61, %v7069_v24  ;;  %v7101_v0 = vshll.u32 %v16717_v17, 16  ;;  %v7106_v39 = vshrl.u32 %v16719_v23, 16  ;;  %v16737_v12 = vld [vmem:[#allocation3 + $0xac] sm:$0xf] }
 0x3f1   : > { %v12200_v58 = vcombine.low %v7046_v52, %v7056_v37  ;;  %v7070_v30 = vsel %vm14507_vm13, %v7065_v4, %v7069_v24  ;;  %v7087_v34 = vrot.slane %v7085_v28, 5  ;;  %v7093_v5 = vrot.slane %v7091_v51, 5 }
 0x3f2   : > { %v7075_v40 = vrot.slane %v7074_v1, 4  ;;  %v7097_v36 = vrot.slane %v7095_v46, 4  ;;  %v7103_v54 = vrot.slane %v7101_v0, 5  ;;  %v7108_v2 = vrot.slane %v7106_v39, 4 }
 0x3f3   : > { %13294 = vmatprep.mubr.msk.bf16.mxu1 %vm1420_vm12, %v12200_v58  ;;  %v7088_v56 = vor.u32 %v7087_v34, %v7084_v35  ;;  %v7109_v11 = vshll.u32 %v16719_v23, 16  ;;  %v7115_v3 = vshll.u32 %v16725_v32, 16  ;;  %v7119_v7 = vshrl.u32 %v16725_v32, 16  ;;  %v16749_v35 = vld [vmem:[#allocation3 + $0xb4] sm:$0xf] }
 0x3f4   : > { %v7080_v9 = vsel %vm14507_vm13, %v7075_v40, %v7079_v38  ;;  %v7098_v33 = vor.u32 %v7097_v36, %v7093_v5  ;;  %v7125_v41 = vshll.u32 %v16730_v42, 16  ;;  %v7130_v52 = vshrl.u32 %v16735_v60, 16  ;;  %v16760_v40 = vld [vmem:[#allocation3 + $0xb8] sm:$0xf] }
 0x3f5   : > { %v12201_v31 = vcombine.low %v7070_v30, %v7080_v9  ;;  %v7089_v24 = vrot.slane %v7088_v56, 4  ;;  %v7111_v44 = vrot.slane %v7109_v11, 5  ;;  %v7117_v61 = vrot.slane %v7115_v3, 5  ;;  %v16762_v9 = vld [vmem:[#allocation3 + $0xbc] sm:$0x1] }
 0x3f6   : > { %v7099_v4 = vrot.slane %v7098_v33, 4  ;;  %v7121_v28 = vrot.slane %v7119_v7, 4  ;;  %v7127_v51 = vrot.slane %v7125_v41, 5  ;;  %v7132_v46 = vrot.slane %v7130_v52, 4 }
 0x3f7   : > { %13295 = vmatmul.mubr.msk.bf16.gmra.mrb[36].mxu1 %vm1420_vm12, %v12201_v31  ;;  %v7094_v38 = vsel %vm14507_vm13, %v7089_v24, %v7093_v5  ;;  %v7112_v37 = vor.u32 %v7111_v44, %v7108_v2  ;;  %v7133_v1 = vshll.u32 %v16735_v60, 16  ;;  %v7139_v0 = vshll.u32 %v16737_v12, 16 }
 0x3f8   : > { %v7104_v39 = vsel %vm14507_vm13, %v7099_v4, %v7103_v54  ;;  %v7122_v58 = vor.u32 %v7121_v28, %v7117_v61  ;;  %v7143_v30 = vshrl.u32 %v16737_v12, 16  ;;  %v7149_v34 = vshll.u32 %v16743_v8, 16 }
 0x3f9   : > { %v12202_v36 = vcombine.low %v7094_v38, %v7104_v39  ;;  %v7113_v56 = vrot.slane %v7112_v37, 4  ;;  %v7135_v11 = vrot.slane %v7133_v1, 5  ;;  %v7141_v3 = vrot.slane %v7139_v0, 5 }
 0x3fa   : > { %v7123_v5 = vrot.slane %v7122_v58, 4  ;;  %v7145_v2 = vrot.slane %v7143_v30, 4  ;;  %v7151_v7 = vrot.slane %v7149_v34, 5  ;;  %v7154_v33 = vshrl.u32 %v16749_v35, 16 }
 0x3fb   : > { %13298 = vmatprep.mubr.msk.bf16.mxu1 %vm1420_vm12, %v12202_v36  ;;  %v7118_v54 = vsel %vm14507_vm13, %v7113_v56, %v7117_v61  ;;  %v7136_v41 = vor.u32 %v7135_v11, %v7132_v46  ;;  %v7157_v52 = vshll.u32 %v16749_v35, 16  ;;  %v7163_v31 = vshll.u32 %v16760_v40, 16 }
 0x3fc   : > { %v7128_v24 = vsel %vm14507_vm13, %v7123_v5, %v7127_v51  ;;  %v7146_v44 = vor.u32 %v7145_v2, %v7141_v3  ;;  %v7156_v4 = vrot.slane %v7154_v33, 4  ;;  %v7167_v28 = vshrl.u32 %v16760_v40, 16  ;;  %v14299_v5 = vld [vmem:[#allocation3] sm:$0xf]  ;;  %v16779_v2 = vld [vmem:[#allocation3 + $0x4] sm:$0xf] }
 0x3fd   : > { %v12203_v38 = vcombine.low %v7118_v54, %v7128_v24  ;;  %v7137_v37 = vrot.slane %v7136_v41, 4  ;;  %v7159_v1 = vrot.slane %v7157_v52, 5  ;;  %v7165_v0 = vrot.slane %v7163_v31, 5  ;;  %v7742_v24 = vld [vmem:[#allocation3 + $0x90] sm:$0xe] }
 0x3fe   : > { %v7147_v39 = vrot.slane %v7146_v44, 4  ;;  %v7169_v58 = vrot.slane %v7167_v28, 4  ;;  %v7173_v61 = vshll.u32 %v16762_v9, 16  ;;  %v12222_v33 = vcombine.low %v14299_v5, %v16779_v2 }
 0x3ff   : > { %13299 = vmatmul.mubr.msk.bf16.gmra.mrb[40].mxu1 %vm1420_vm12, %v12203_v38  ;;  %v7142_v46 = vsel %vm14507_vm13, %v7137_v37, %v7141_v3  ;;  %v7160_v30 = vor.u32 %v7159_v1, %v7156_v4  ;;  %v12228_v54 = vcombine.low %v16580_v16, %v16600_v20  ;;  %v12229_v3 = vcombine.low %v16612_v26, %v16608_v15  ;;  %v7741_v4 = vld [vmem:[#allocation3 + $0x84] sm:$0xe] }
 0x400   : > { %v7152_v51 = vsel %vm14507_vm13, %v7147_v39, %v7151_v7  ;;  %v7170_v34 = vor.u32 %v7169_v58, %v7165_v0  ;;  %v7175_v36 = vrot.slane %v7173_v61, 5  ;;  %v12230_v52 = vcombine.low %v16628_v27, %v16637_v25  ;;  %v14301_v39 = vld [vmem:[#allocation3 + $0xc] sm:$0xf]  ;;  %v16809_v58 = vld [vmem:[#allocation3 + $0x10] sm:$0xf] }
 0x401   : > { %v12204_v56 = vcombine.low %v7142_v46, %v7152_v51  ;;  %v7161_v11 = vrot.slane %v7160_v30, 4  ;;  %v12223_v61 = vcombine.low %v14301_v39, %v16809_v58  ;;  %v14303_v46 = vld [vmem:[%s18269_s3 + $0x8] sm:$0xf]  ;;  %v7736_v51 = vld [vmem:[#allocation3 + $0x48] sm:$0xe]  ;;  %v7822_v5 = vrot.slane %v16600_v20, 5 }
 0x402   : > { %v7171_v41 = vrot.slane %v7170_v34, 4  ;;  %v7988_v30 = vsel %vm1475_vm0, %v14303_v46, 0  ;;  %v14304_v34 = vld [vmem:[#allocation3 + $0x18] sm:$0xf]  ;;  %v7738_v39 = vld [vmem:[#allocation3 + $0x60] sm:$0xe]  ;;  %v12226_v1 = vcombine.low %v16508_v18, %v16539_v50  ;;  %v18433_v26 = vcombine.low %v16705_v43, %v16712_v63 }
 0x403   : > { %13302 = vmatprep.mubr.msk.bf16.mxu1 %vm1420_vm12, %v12204_v56  ;;  %v7166_v31 = vsel %vm14507_vm13, %v7161_v11, %v7165_v0  ;;  %v16822_v11 = vld [vmem:[%s18269_s3 + $0xc] sm:$0xf]  ;;  %v14306_v46 = vld [vmem:[#allocation3 + $0x24] sm:$0xf]  ;;  %v12262_v50 = vrot.slane %v7738_v39, 9  ;;  %v7836_v37 = vrot.slane %v16637_v25, 5 }
 0x404   : > { %v7176_v28 = vsel %vm14507_vm13, %v7171_v41, %v7175_v36  ;;  %v16816_v36 = vld [vmem:[#allocation3 + $0x1c] sm:$0xf]  ;;  %v7737_v41 = vld [vmem:[#allocation3 + $0x54] sm:$0xe]  ;;  %v7839_v38 = vrot.slane %v16649_v22, 5  ;;  %v7850_v22 = vrot.slane %v16681_v49, 5 }
 0x405   : > { %v12205_v0 = vcombine.low %v7166_v31, %v7176_v28  ;;  %v12224_v56 = vcombine.low %v14304_v34, %v16816_v36  ;;  %v12260_v31 = vrot.slane %v7736_v51, 9  ;;  %v7824_v28 = vrot.slane %v7822_v5, 4  ;;  %v7730_v25 = vld [vmem:[#allocation3] sm:$0xe] }
 0x406   : > { %v12225_v34 = vcombine.low %v14306_v46, %v16490_v47  ;;  %v12261_v47 = vrot.slane %v7737_v41, 9  ;;  %v7739_v46 = vld [vmem:[#allocation3 + $0x6c] sm:$0xe]  ;;  %v7843_v41 = vrot.slane %v16653_v6, 5  ;;  %v7838_v39 = vrot.slane %v7836_v37, 4 }
 0x407   : > { %13303 = vmatmul.mubr.msk.bf16.gmra.mrb[44].mxu1 %vm1420_vm12, %v12205_v0  ;;  %v7829_v0 = vrot.slane %v16608_v15, 5  ;;  %v12263_v18 = vrot.slane %v7739_v46, 9  ;;  %v7852_v46 = vrot.slane %v7850_v22, 4  ;;  %v18432_v15 = vcombine.low %v16689_v19, %v16696_v48 }
 0x408   : > { %13308 = vmatprep.mubr.msk.bf16.mxu1 %vm1420_vm12, %v12222_v33  ;;  %v7825_v33 = vrot.slane %v16602_v29, 5  ;;  %v7832_v29 = vrot.slane %v16621_v10, 5  ;;  %v7740_v10 = vld [vmem:[#allocation3 + $0x78] sm:$0xe]  ;;  %v7780_v27 = vrot.slane %v16779_v2, 5  ;;  %v7794_v2 = vrot.slane %v16816_v36, 5 }
 0x409   : > { %v12264_v44 = vrot.slane %v7740_v10, 9 }
 0x40a   : > { %v16843_v51 = vsel %vm14856_vm2, %v7824_v28, %v7825_v33  ;;  %v7857_v28 = vrot.slane %v16696_v48, 5 }
 0x40c   : > { %v7859_v10 = vrot.slane %v7857_v28, 4 }
 0x40f   : > { %13309 = vmatmul.mubr.msk.bf16.vlgmr.msra.gmra.mrb[16].mxu1 %vm1420_vm12, %v12223_v61  ;;  %v12227_v61 = vcombine.low %v16545_v14, %v16549_v62 }
 0x410   : > { %13341 = vmatpush3.bf16.msra.mxu1 %v7988_v30  ;;  %13312 = vmatprep.mubr.msk.bf16.mxu1 %vm1420_vm12, %v12224_v56  ;;  %v16839_v30 = vsel %vm14856_vm2, %v12260_v31, %v7822_v5  ;;  %v7831_v56 = vrot.slane %v7829_v0, 4  ;;  %v16851_v5 = vsel %vm14856_vm2, %v12261_v47, %v7829_v0  ;;  %v7846_v31 = vrot.slane %v16660_v53, 5 }
 0x411   : > { %14137 = vmatprep.subr.msk.bf16.mxu1 %vm1475_vm0, %v16822_v11  ;;  %v16864_v0 = vsel %vm14856_vm2, %v12262_v50, %v7836_v37  ;;  %v7845_v47 = vrot.slane %v7843_v41, 4  ;;  %v16870_v53 = vsel %vm14856_vm2, %v7838_v39, %v7839_v38  ;;  %v7860_v38 = vrot.slane %v16702_v57, 5  ;;  %v7745_v37 = vld [vmem:[#allocation3 + $0xb4] sm:$0xe] }
 0x412   : > { %v16855_v33 = vsel %vm14856_vm2, %v7831_v56, %v7832_v29  ;;  %v7853_v29 = vrot.slane %v16686_v59, 5  ;;  %v16874_v56 = vsel %vm14856_vm2, %v12263_v18, %v7843_v41  ;;  %v16889_v50 = vsel %vm14856_vm2, %v12264_v44, %v7850_v22  ;;  %v7743_v41 = vld [vmem:[#allocation3 + $0x9c] sm:$0xe] }
 0x413   : > { %v16882_v59 = vsel %vm14856_vm2, %v7845_v47, %v7846_v31  ;;  %v12266_v39 = vrot.slane %v7742_v24, 9  ;;  %v7867_v57 = vrot.slane %v16717_v17, 5  ;;  %v7744_v47 = vld [vmem:[#allocation3 + $0xa8] sm:$0xe]  ;;  %v16905_v44 = vsel %vm14856_vm2, %v7859_v10, %v7860_v38 }
 0x414   : > { %v7871_v22 = vrot.slane %v16725_v32, 5  ;;  %v12267_v31 = vrot.slane %v7743_v41, 9  ;;  %v7878_v17 = vrot.slane %v16737_v12, 5  ;;  %v12268_v7 = vrot.slane %v7744_v47, 9  ;;  %v14308_v47 = vld [vmem:[#allocation3 + $0x14] sm:$0x1] }
 0x415   : > { %v7881_v38 = vrot.slane %v16743_v8, 5  ;;  %v7885_v24 = vrot.slane %v16760_v40, 5 }
 0x416   : > { %v7880_v41 = vrot.slane %v7878_v17, 4  ;;  %v16945_v62 = vsel %vm14856_vm2, %v12268_v7, %v7878_v17  ;;  %v18430_v7 = vcombine.low %v16647_v45, %v16653_v6  ;;  %v12254_v45 = vrot.slane %v7730_v25, 9  ;;  %v7733_v25 = vld [vmem:[#allocation3 + $0x24] sm:$0xe] }
 0x417   : > { %13313 = vmatmul.mubr.msk.bf16.gmra.mrb[20].mxu1 %vm1420_vm12, %v12225_v34  ;;  %v12265_v34 = vrot.slane %v7741_v4, 9  ;;  %v7864_v4 = vrot.slane %v16712_v63, 5  ;;  %v7782_v6 = vrot.slane %v7780_v27, 4  ;;  %v7787_v63 = vrot.slane %v16809_v58, 5 }
 0x418   : > { %13316 = vmatprep.mubr.msk.bf16.mxu1 %vm1420_vm12, %v12226_v1  ;;  %v16893_v1 = vsel %vm14856_vm2, %v7852_v46, %v7853_v29  ;;  %v7874_v29 = vrot.slane %v16730_v42, 5  ;;  %v16923_v42 = vsel %vm14856_vm2, %v12267_v31, %v7871_v22  ;;  %v7887_v31 = vrot.slane %v7885_v24, 4 }
 0x419   : > { %v16901_v18 = vsel %vm14856_vm2, %v12265_v34, %v7857_v28  ;;  %v7866_v46 = vrot.slane %v7864_v4, 4  ;;  %v16914_v28 = vsel %vm14856_vm2, %v12266_v39, %v7864_v4  ;;  %v7873_v34 = vrot.slane %v7871_v22, 4 }
 0x41a   : > { %v12269_v4 = vrot.slane %v7745_v37, 9  ;;  %v18431_v37 = vcombine.low %v16667_v13, %v16681_v49  ;;  %v18434_v13 = vcombine.low %v16719_v23, %v16725_v32  ;;  %v18435_v49 = vcombine.low %v16735_v60, %v16737_v12  ;;  %v7731_v60 = vld [vmem:[#allocation3 + $0xc] sm:$0xe]  ;;  %v14309_v12 = vld [vmem:[#allocation3 + $0x20] sm:$0x1] }
 0x41b   : > { %v16919_v10 = vsel %vm14856_vm2, %v7866_v46, %v7867_v57  ;;  %v16934_v8 = vsel %vm14856_vm2, %v7873_v34, %v7874_v29  ;;  %v7888_v57 = vrot.slane %v16762_v9, 5  ;;  %v7781_v19 = vsel %vm14856_vm2, %v12254_v45, %v7780_v27  ;;  %v17020_v27 = vld [vmem:[%s18269_s3 + $0x10] sm:$0xf]  ;;  %v14313_v45 = vld [vmem:[#allocation3 + $0x38] sm:$0x1] }
 0x41c   : > { %v12282_v39 = vcombine.low %v16914_v28, %v16919_v10  ;;  %v16955_v16 = vsel %vm14856_vm2, %v12269_v4, %v7885_v24  ;;  %v7790_v23 = vrot.slane %v14308_v47, 5  ;;  %v18436_v32 = vcombine.low %v16749_v35, %v16760_v40  ;;  %v7732_v24 = vld [vmem:[#allocation3 + $0x18] sm:$0xe]  ;;  %v14310_v40 = vld [vmem:[#allocation3 + $0x28] sm:$0xf] }
 0x41d   : > { %v16959_v20 = vsel %vm14856_vm2, %v7887_v31, %v7888_v57  ;;  %v7797_v22 = vrot.slane %v14309_v12, 5  ;;  %v7789_v29 = vrot.slane %v7787_v63, 4  ;;  %v7796_v46 = vrot.slane %v7794_v2, 4  ;;  %v14311_v31 = vld [vmem:[#allocation3 + $0x34] sm:$0xf] }
 0x41e   : > { %v12255_v17 = vrot.slane %v7731_v60, 9  ;;  %v12256_v36 = vrot.slane %v7732_v24, 9  ;;  %v8346_v4 = vsel %vm1475_vm0, %v16822_v11, 0  ;;  %v14315_v60 = vld [vmem:[#allocation3 + $0x44] sm:$0x1] }
 0x41f   : > { %13317 = vmatmul.mubr.msk.bf16.gmra.mrb[24].mxu1 %vm1420_vm12, %v12227_v61  ;;  %v16949_v61 = vsel %vm14856_vm2, %v7880_v41, %v7881_v38  ;;  %v7791_v58 = vsel %vm14856_vm2, %v7789_v29, %v7790_v23  ;;  %v7798_v34 = vsel %vm14856_vm2, %v7796_v46, %v7797_v22  ;;  %v7801_v38 = vrot.slane %v14310_v40, 5  ;;  %v7735_v22 = vld [vmem:[#allocation3 + $0x3c] sm:$0xe]  ;;  %v17049_v40 = vld [vmem:[#allocation3 + $0x34] sm:$0xf] }
 0x420   : > { %13320 = vmatprep.mubr.msk.bf16.mxu1 %vm1420_vm12, %v12228_v54  ;;  %v7788_v35 = vsel %vm14856_vm2, %v12255_v17, %v7787_v63  ;;  %v7795_v57 = vsel %vm14856_vm2, %v12256_v36, %v7794_v2  ;;  %v14314_v63 = vld [vmem:[#allocation3 + $0x40] sm:$0xf]  ;;  %v7818_v12 = vrot.slane %v14315_v60, 5  ;;  %v12259_v24 = vrot.slane %v7735_v22, 9  ;;  %v17192_v54 = vld [vmem:[#allocation3 + $0xa4] sm:$0x1] }
 0x421   : > { %v12271_v41 = vcombine.low %v7788_v35, %v7791_v58  ;;  %v7803_v11 = vrot.slane %v7801_v38, 4  ;;  %v7815_v2 = vrot.slane %v14314_v63, 5  ;;  %v18437_v36 = vcombine.low %v16839_v30, %v16843_v51  ;;  %v17047_v35 = vld [vmem:[#allocation3 + $0x2c] sm:$0x1]  ;;  %v17062_v51 = vld [vmem:[#allocation3 + $0x40] sm:$0xf] }
 0x422   : > { %v18439_v30 = vcombine.low %v16864_v0, %v16870_v53  ;;  %v17072_v0 = vld [vmem:[#allocation3 + $0x58] sm:$0xf]  ;;  %v9273_v22 = vld [vmem:[#allocation3 + $0x60] sm:$0xe]  ;;  %v9419_v14 = vrot.slane %v17192_v54, 5 }
 0x423   : > { %v7817_v29 = vrot.slane %v7815_v2, 4  ;;  %v7816_v17 = vsel %vm14856_vm2, %v12259_v24, %v7815_v2 }
 0x425   : > { %v7819_v46 = vsel %vm14856_vm2, %v7817_v29, %v7818_v12  ;;  %v17097_v29 = vld [vmem:[#allocation3 + $0x68] sm:$0x1] }
 0x426   : > { %v12275_v58 = vcombine.low %v7816_v17, %v7819_v46 }
 0x427   : > { %13321 = vmatmul.mubr.msk.bf16.gmra.mrb[28].mxu1 %vm1420_vm12, %v12229_v3  ;;  %v14307_v3 = vld [vmem:[#allocation3 + $0x8] sm:$0x1] }
 0x428   : > { %13324 = vmatprep.mubr.msk.bf16.mxu1 %vm1420_vm12, %v12230_v52  ;;  %v7783_v52 = vrot.slane %v14307_v3, 5  ;;  %v7734_v3 = vld [vmem:[#allocation3 + $0x30] sm:$0xe] }
 0x42a   : > { %v7784_v48 = vsel %vm14856_vm2, %v7782_v6, %v7783_v52  ;;  %v7811_v6 = vrot.slane %v14313_v45, 5 }
 0x42b   : > { %v12270_v43 = vcombine.low %v7781_v19, %v7784_v48  ;;  %v12258_v19 = vrot.slane %v7734_v3, 9 }
 0x42f   : > { %13325 = vmatmul.mubr.msk.bf16.gmra.mrb[32].mxu1 %vm1420_vm12, %v18430_v7  ;;  %v7808_v7 = vrot.slane %v14311_v31, 5  ;;  %v9269_v31 = vld [vmem:[#allocation3 + $0x30] sm:$0xe] }
 0x430   : > { %13328 = vmatprep.mubr.msk.bf16.mxu1 %vm1420_vm12, %v18431_v37  ;;  %v12272_v37 = vcombine.low %v7795_v57, %v7798_v34  ;;  %v17045_v34 = vld [vmem:[#allocation3 + $0x28] sm:$0xf]  ;;  %v12369_v45 = vrot.slane %v9269_v31, 9 }
 0x431   : > { %v7810_v52 = vrot.slane %v7808_v7, 4  ;;  %v7809_v23 = vsel %vm14856_vm2, %v12258_v19, %v7808_v7  ;;  %v9346_v57 = vrot.slane %v17045_v34, 5  ;;  %v17064_v7 = vld [vmem:[#allocation3 + $0x44] sm:$0x1]  ;;  %v17083_v19 = vld [vmem:[#allocation3 + $0x5c] sm:$0x1] }
 0x433   : > { %v7812_v48 = vsel %vm14856_vm2, %v7810_v52, %v7811_v6  ;;  %v9353_v6 = vrot.slane %v17049_v40, 5 }
 0x435   : > { %v17091_v63 = vsel %vm14856_vm2, %v12369_v45, %v9353_v6  ;;  %v9355_v2 = vrot.slane %v9353_v6, 4  ;;  %v9274_v45 = vld [vmem:[#allocation3 + $0x6c] sm:$0xe]  ;;  %v17132_v6 = vld [vmem:[#allocation3 + $0x7c] sm:$0xf] }
 0x436   : > { %18442 = vst [vmem:[#allocation15_spill] sm:$0xff] %v17091_v63 }
 0x437   : > { %13329 = vmatmul.mubr.msk.bf16.gmra.mrb[36].mxu1 %vm1420_vm12, %v18432_v15  ;;  %v14312_v15 = vld [vmem:[#allocation3 + $0x2c] sm:$0x1] }
 0x438   : > { %13332 = vmatprep.mubr.msk.bf16.mxu1 %vm1420_vm12, %v18433_v26  ;;  %v7804_v26 = vrot.slane %v14312_v15, 5  ;;  %v17066_v15 = vld [vmem:[#allocation3 + $0x4c] sm:$0xf] }
 0x439   : > { %v9367_v60 = vrot.slane %v17066_v15, 5 }
 0x43f   : > { %13333 = vmatmul.mubr.msk.bf16.gmra.mrb[40].mxu1 %vm1420_vm12, %v18434_v13  ;;  %v12257_v13 = vrot.slane %v7733_v25, 9  ;;  %v17069_v25 = vld [vmem:[#allocation3 + $0x50] sm:$0x1] }
 0x440   : > { %13336 = vmatprep.mubr.msk.bf16.mxu1 %vm1420_vm12, %v18435_v49  ;;  %v7805_v49 = vsel %vm14856_vm2, %v7803_v11, %v7804_v26  ;;  %v9349_v26 = vrot.slane %v17047_v35, 5  ;;  %v9271_v11 = vld [vmem:[#allocation3 + $0x48] sm:$0xe]  ;;  %v9370_v12 = vrot.slane %v17069_v25, 5 }
 0x447   : > { %13337 = vmatmul.mubr.msk.bf16.gmra.mrb[44].mxu1 %vm1420_vm12, %v18436_v32  ;;  %v12274_v32 = vcombine.low %v7809_v23, %v7812_v48  ;;  %v17085_v48 = vld [vmem:[#allocation3 + $0x64] sm:$0xf]  ;;  %v9363_v23 = vrot.slane %v17064_v7, 5 }
 0x448   : > { %13342 = vmatprep.mubr.msk.bf16.mxu1 %vm1420_vm12, %v12270_v43  ;;  %v7802_v43 = vsel %vm14856_vm2, %v12257_v13, %v7801_v38  ;;  %v9268_v38 = vld [vmem:[#allocation3 + $0x24] sm:$0xe] }
 0x449   : > { %v12273_v47 = vcombine.low %v7802_v43, %v7805_v49  ;;  %v9272_v49 = vld [vmem:[#allocation3 + $0x54] sm:$0xe]  ;;  %v17177_v43 = vld [vmem:[#allocation3 + $0xa0] sm:$0xf] }
 0x44f   : > { %13343 = vmatmul.mubr.msk.bf16.vlgmr.msra.gmra.mrb[16].mxu1 %vm1420_vm12, %v12271_v41  ;;  %v18438_v41 = vcombine.low %v16851_v5, %v16855_v33  ;;  %v12368_v5 = vrot.slane %v9268_v38, 9  ;;  %v9348_v33 = vrot.slane %v9346_v57, 4  ;;  %v17111_v38 = vld [vmem:[#allocation3 + $0x70] sm:$0xf] }
 0x450   : > { %13375 = vmatpush3.bf16.msra.mxu1 %v8346_v4  ;;  %13346 = vmatprep.mubr.msk.bf16.mxu1 %vm1420_vm12, %v12272_v37  ;;  %v17055_v4 = vld [vmem:[#allocation3 + $0x38] sm:$0x1]  ;;  %v9270_v37 = vld [vmem:[#allocation3 + $0x3c] sm:$0xe] }
 0x451   : > { %14138 = vmatprep.subr.msk.bf16.mxu1 %vm1475_vm0, %v17020_v27  ;;  %v17076_v53 = vsel %vm14856_vm2, %v12368_v5, %v9346_v57  ;;  %v17080_v3 = vsel %vm14856_vm2, %v9348_v33, %v9349_v26  ;;  %v9356_v52 = vrot.slane %v17055_v4, 5  ;;  %v12370_v13 = vrot.slane %v9270_v37, 9  ;;  %v17175_v57 = vld [vmem:[#allocation3 + $0x98] sm:$0x1] }
 0x452   : > { %18440 = vst [vmem:[#allocation13_spill] sm:$0xff] %v17076_v53  ;;  %18441 = vst [vmem:[#allocation14_spill] sm:$0xff] %v17080_v3  ;;  %v9374_v37 = vrot.slane %v17072_v0, 5  ;;  %v18447_v5 = vcombine.low %v16889_v50, %v16893_v1  ;;  %v12373_v33 = vrot.slane %v9273_v22, 9  ;;  %v9381_v26 = vrot.slane %v17085_v48, 5 }
 0x453   : > { %v17101_v24 = vsel %vm14856_vm2, %v9355_v2, %v9356_v52  ;;  %v17146_v2 = vld [vmem:[#allocation3 + $0x88] sm:$0xf]  ;;  %v8699_v53 = vshrl.u32 %v17062_v51, 16 }
 0x454   : > { %18443 = vst [vmem:[#allocation8_spill] sm:$0xff] %v17101_v24  ;;  %v9376_v52 = vrot.slane %v9374_v37, 4 }
 0x457   : > { %13347 = vmatmul.mubr.msk.bf16.gmra.mrb[20].mxu1 %vm1420_vm12, %v12273_v47  ;;  %v9360_v47 = vrot.slane %v17062_v51, 5 }
 0x458   : > { %13350 = vmatprep.mubr.msk.bf16.mxu1 %vm1420_vm12, %v12274_v32  ;;  %v12371_v32 = vrot.slane %v9271_v11, 9  ;;  %v9277_v11 = vld [vmem:[#allocation3 + $0x90] sm:$0xe] }
 0x459   : > { %v17105_v46 = vsel %vm14856_vm2, %v12370_v13, %v9360_v47  ;;  %v9362_v17 = vrot.slane %v9360_v47, 4  ;;  %v9275_v13 = vld [vmem:[#allocation3 + $0x78] sm:$0xe]  ;;  %v9276_v47 = vld [vmem:[#allocation3 + $0x84] sm:$0xe] }
 0x45a   : > { %18444 = vst [vmem:[#allocation10_spill] sm:$0xff] %v17105_v46  ;;  %v17119_v31 = vsel %vm14856_vm2, %v12371_v32, %v9367_v60  ;;  %v9383_v32 = vrot.slane %v9381_v26, 4 }
 0x45b   : > { %18446 = vst [vmem:[#allocation9_spill] sm:$0xff] %v17119_v31 }
 0x45f   : > { %13351 = vmatmul.mubr.msk.bf16.gmra.mrb[24].mxu1 %vm1420_vm12, %v12275_v58  ;;  %v12372_v58 = vrot.slane %v9272_v49, 9  ;;  %v17144_v49 = vld [vmem:[#allocation3 + $0x80] sm:$0x1] }
 0x460   : > { %13354 = vmatprep.mubr.msk.bf16.mxu1 %vm1420_vm12, %v18437_v36  ;;  %v18445_v36 = vcombine.low %v16874_v56, %v16882_v59  ;;  %v17128_v56 = vsel %vm14856_vm2, %v9362_v17, %v9363_v23  ;;  %v9377_v59 = vrot.slane %v17083_v19, 5  ;;  %v17152_v23 = vsel %vm14856_vm2, %v12373_v33, %v9381_v26 }
 0x461   : > { %18448 = vst [vmem:[#allocation12_spill] sm:$0xff] %v17128_v56  ;;  %v17142_v1 = vsel %vm14856_vm2, %v12372_v58, %v9374_v37  ;;  %18451 = vst [vmem:[#allocation7_spill] sm:$0xff] %v17152_v23  ;;  %v12374_v17 = vrot.slane %v9274_v45, 9  ;;  %v9388_v58 = vrot.slane %v17111_v38, 5  ;;  %v12375_v33 = vrot.slane %v9275_v13, 9 }
 0x462   : > { %18450 = vst [vmem:[#allocation6_spill] sm:$0xff] %v17142_v1  ;;  %v17159_v22 = vsel %vm14856_vm2, %v9376_v52, %v9377_v59  ;;  %v9395_v26 = vrot.slane %v17132_v6, 5  ;;  %v9398_v52 = vrot.slane %v17144_v49, 5  ;;  %v18456_v59 = vcombine.low %v16901_v18, %v16905_v44  ;;  %v9279_v18 = vld [vmem:[#allocation3 + $0xa8] sm:$0xe] }
 0x463   : > { %18452 = vst [vmem:[#allocation4_spill] sm:$0xff] %v17159_v22  ;;  %v9390_v45 = vrot.slane %v9388_v58, 4  ;;  %v17181_v37 = vsel %vm14856_vm2, %v12374_v17, %v9388_v58  ;;  %v12376_v17 = vrot.slane %v9276_v47, 9  ;;  %v12377_v47 = vrot.slane %v9277_v11, 9  ;;  %v9280_v23 = vld [vmem:[#allocation3 + $0xb4] sm:$0xe] }
 0x464   : > { %18454 = vst [vmem:[#allocation16_spill] sm:$0xff] %v17181_v37  ;;  %v17185_v13 = vsel %vm14856_vm2, %v12375_v33, %v9395_v26  ;;  %v12379_v37 = vrot.slane %v9279_v18, 9  ;;  %v17247_v22 = vld [vmem:[#allocation3 + $0xc8] sm:$0x1] }
 0x465   : > { %18455 = vst [vmem:[#allocation17_spill] sm:$0xff] %v17185_v13 }
 0x467   : > { %13355 = vmatmul.mubr.msk.bf16.gmra.mrb[28].mxu1 %vm1420_vm12, %v18438_v41  ;;  %v17113_v41 = vld [vmem:[#allocation3 + $0x74] sm:$0x1] }
 0x468   : > { %13358 = vmatprep.mubr.msk.bf16.mxu1 %vm1420_vm12, %v18439_v30  ;;  %v9369_v30 = vrot.slane %v9367_v60, 4  ;;  %v9384_v60 = vrot.slane %v17097_v29, 5 }
 0x46a   : > { %v17138_v50 = vsel %vm14856_vm2, %v9369_v30, %v9370_v12  ;;  %v17155_v12 = vld [vmem:[#allocation3 + $0x8c] sm:$0x1]  ;;  %v17163_v30 = vld [vmem:[#allocation3 + $0x94] sm:$0xf] }
 0x46b   : > { %18449 = vst [vmem:[#allocation11_spill] sm:$0xff] %v17138_v50  ;;  %v9405_v58 = vrot.slane %v17155_v12, 5  ;;  %v9409_v33 = vrot.slane %v17163_v30, 5 }
 0x46d   : > { %v9411_v10 = vrot.slane %v9409_v33, 4  ;;  %v17229_v11 = vsel %vm14856_vm2, %v12377_v47, %v9409_v33 }
 0x46e   : > { %18461 = vst [vmem:[#allocation22_spill] sm:$0xff] %v17229_v11 }
 0x46f   : > { %13359 = vmatmul.mubr.msk.bf16.gmra.mrb[32].mxu1 %vm1420_vm12, %v18445_v36  ;;  %v9391_v36 = vrot.slane %v17113_v41, 5 }
 0x470   : > { %13362 = vmatprep.mubr.msk.bf16.mxu1 %vm1420_vm12, %v18447_v5  ;;  %v17169_v5 = vsel %vm14856_vm2, %v9383_v32, %v9384_v60  ;;  %v9397_v32 = vrot.slane %v9395_v26, 4  ;;  %v9402_v60 = vrot.slane %v17146_v2, 5  ;;  %v17204_v26 = vld [vmem:[#allocation3 + $0xac] sm:$0xf] }
 0x471   : > { %18453 = vst [vmem:[#allocation5_spill] sm:$0xff] %v17169_v5  ;;  %v17196_v9 = vsel %vm14856_vm2, %v9390_v45, %v9391_v36  ;;  %v17212_v45 = vld [vmem:[#allocation3 + $0xb0] sm:$0x1] }
 0x472   : > { %18457 = vst [vmem:[#allocation18_spill] sm:$0xff] %v17196_v9  ;;  %v17210_v44 = vsel %vm14856_vm2, %v9397_v32, %v9398_v52  ;;  %v9404_v36 = vrot.slane %v9402_v60, 4  ;;  %v17218_v28 = vsel %vm14856_vm2, %v12376_v17, %v9402_v60  ;;  %v17221_v9 = vld [vmem:[#allocation3 + $0xb8] sm:$0xf]  ;;  %v9416_v32 = vrot.slane %v17177_v43, 5 }
 0x473   : > { %18458 = vst [vmem:[#allocation19_spill] sm:$0xff] %v17210_v44  ;;  %18459 = vst [vmem:[#allocation20_spill] sm:$0xff] %v17218_v28  ;;  %v17233_v60 = vld [vmem:[#allocation3 + $0xbc] sm:$0x1]  ;;  %v17235_v17 = vld [vmem:[#allocation3 + $0xc4] sm:$0xf] }
 0x474   : > { %v17225_v52 = vsel %vm14856_vm2, %v9404_v36, %v9405_v58  ;;  %v9423_v36 = vrot.slane %v17204_v26, 5  ;;  %v9418_v47 = vrot.slane %v9416_v32, 4  ;;  %v9426_v5 = vrot.slane %v17212_v45, 5  ;;  %v17331_v28 = vld [vmem:[#allocation3 + $0x20] sm:$0x1] }
 0x475   : > { %18460 = vst [vmem:[#allocation21_spill] sm:$0xff] %v17225_v52  ;;  %v9433_v33 = vrot.slane %v17233_v60, 5  ;;  %18476 = vst [vmem:[#allocation34_spill] sm:$0xff] %v17331_v28  ;;  %v8633_v31 = vshll.u32 %v17331_v28, 16 }
 0x476   : > { %v9425_v52 = vrot.slane %v9423_v36, 4  ;;  %v17260_v18 = vsel %vm14856_vm2, %v12379_v37, %v9423_v36  ;;  %v18468_v37 = vcombine.low %v16945_v62, %v16949_v61  ;;  %v17323_v62 = vld [vmem:[#allocation3 + $0x1c] sm:$0xf]  ;;  %v8547_v36 = vld [vmem:[#allocation3 + $0x24] sm:$0xf] }
 0x477   : > { %13363 = vmatmul.mubr.msk.bf16.gmra.mrb[36].mxu1 %vm1420_vm12, %v18456_v59  ;;  %v9278_v59 = vld [vmem:[#allocation3 + $0x9c] sm:$0xe]  ;;  %18465 = vst [vmem:[#allocation26_spill] sm:$0xff] %v17260_v18  ;;  %18474 = vst [vmem:[#allocation32_spill] sm:$0xff] %v17323_v62  ;;  %v8627_v18 = vshrl.u32 %v17323_v62, 16 }
 0x478   : > { %13366 = vmatprep.mubr.msk.bf16.mxu1 %vm1420_vm12, %v12282_v39  ;;  %v9412_v39 = vrot.slane %v17175_v57, 5  ;;  %v12378_v58 = vrot.slane %v9278_v59, 9  ;;  %v9281_v59 = vld [vmem:[#allocation3 + $0xc0] sm:$0xe] }
 0x47a   : > { %v17241_v13 = vsel %vm14856_vm2, %v9411_v10, %v9412_v39  ;;  %v17251_v44 = vsel %vm14856_vm2, %v12378_v58, %v9416_v32  ;;  %v9430_v10 = vrot.slane %v17221_v9, 5  ;;  %v17256_v39 = vsel %vm14856_vm2, %v9418_v47, %v9419_v14 }
 0x47b   : > { %18462 = vst [vmem:[#allocation23_spill] sm:$0xff] %v17241_v13  ;;  %18463 = vst [vmem:[#allocation24_spill] sm:$0xff] %v17251_v44  ;;  %v9437_v13 = vrot.slane %v17235_v17, 5  ;;  %v18466_v32 = vcombine.low %v16923_v42, %v16934_v8  ;;  %v17272_v14 = vsel %vm14856_vm2, %v9425_v52, %v9426_v5  ;;  %v12380_v47 = vrot.slane %v9280_v23, 9 }
 0x47c   : > { %18464 = vst [vmem:[#allocation25_spill] sm:$0xff] %v17256_v39  ;;  %18467 = vst [vmem:[#allocation27_spill] sm:$0xff] %v17272_v14  ;;  %v9432_v11 = vrot.slane %v9430_v10, 4  ;;  %v12381_v42 = vrot.slane %v9281_v59, 9  ;;  %v18473_v59 = vcombine.low %v16955_v16, %v16959_v20  ;;  %v8541_v16 = vld [vmem:[#allocation3 + $0xc] sm:$0xf] }
 0x47d   : > { %v9439_v8 = vrot.slane %v9437_v13, 4  ;;  %v17283_v58 = vsel %vm14856_vm2, %v12380_v47, %v9430_v10  ;;  %v14223_v10 = vld [vmem:[#allocation3 + $0xc] sm:$0xff]   ;;  %v17311_v47 = vld [vmem:[%s18269_s3 + $0x14] sm:$0xf]  ;;  %v8623_v14 = vshll.u32 %v17323_v62, 16  ;;  %v8638_v44 = vshrl.u32 %v8547_v36, 16 }
 0x47e   : > { %18469 = vst [vmem:[#allocation28_spill] sm:$0xff] %v17283_v58  ;;  %v17287_v23 = vsel %vm14856_vm2, %v9432_v11, %v9433_v33  ;;  %v17293_v61 = vsel %vm14856_vm2, %v12381_v42, %v9437_v13  ;;  %v14224_v11 = vld [vmem:[#allocation3 + $0x18] sm:$0xff]   ;;  %v9071_v13 = vsel %vm1475_vm0, %v17020_v27, 0  ;;  %v14225_v33 = vld [vmem:[#allocation3 + $0x24] sm:$0xff]   ;;  %v17317_v20 = vld [vmem:[#allocation3 + $0x10] sm:$0xf] }
 0x47f   : > { %13367 = vmatmul.mubr.msk.bf16.gmra.mrb[40].mxu1 %vm1420_vm12, %v18466_v32  ;;  %v9440_v32 = vrot.slane %v17247_v22, 5  ;;  %18470 = vst [vmem:[#allocation29_spill] sm:$0xff] %v17287_v23  ;;  %18471 = vst [vmem:[#allocation30_spill] sm:$0xff] %v17293_v61  ;;  %v8593_v42 = vshll.u32 %v8541_v16, 16  ;;  %v8544_v27 = vld [vmem:[#allocation3 + $0x18] sm:$0xf] }
 0x480   : > { %13370 = vmatprep.mubr.msk.bf16.mxu1 %vm1420_vm12, %v18468_v37  ;;  %v8590_v37 = vshrl.u32 %v8541_v16, 16  ;;  %v8617_v52 = vshll.u32 %v8544_v27, 16  ;;  %v14228_v39 = vld [vmem:[#allocation3 + $0x48] sm:$0xff]   ;;  %v8640_v1 = vrot.slane %v8638_v44, 4 }
 0x481   : > { %v17297_v5 = vsel %vm14856_vm2, %v9439_v8, %v9440_v32  ;;  %v14226_v8 = vld [vmem:[#allocation3 + $0x30] sm:$0xff]   ;;  %v14227_v32 = vld [vmem:[#allocation3 + $0x3c] sm:$0xff]  }
 0x482   : > { %18472 = vst [vmem:[#allocation31_spill] sm:$0xff] %v17297_v5  ;;  %v17325_v5 = vld [vmem:[#allocation3 + $0x14] sm:$0x1] }
 0x483   : > { %18475 = vst [vmem:[#allocation33_spill] sm:$0xff] %v17325_v5 }
 0x487   : > { %13371 = vmatmul.mubr.msk.bf16.gmra.mrb[44].mxu1 %vm1420_vm12, %v18473_v59  ;;  %v8603_v59 = vshrl.u32 %v17317_v20, 16 }
 0x488   : > { %13376 = vmatprep.mubr.msk.bf16.mxu1 %vm1420_vm12, %v14223_v10  ;;  %v8599_v10 = vshll.u32 %v17317_v20, 16 }
 0x489   : > { %v8605_v61 = vrot.slane %v8603_v59, 4  ;;  %v8651_v59 = vshrl.u32 %v17045_v34, 16 }
 0x48a   : > { %v8601_v16 = vrot.slane %v8599_v10, 5  ;;  %v8647_v10 = vshll.u32 %v17045_v34, 16 }
 0x48c   : > { %v17337_v56 = vrot.slane %v8647_v10, 5  ;;  %v8556_v10 = vld [vmem:[#allocation3 + $0x48] sm:$0xf] }
 0x48f   : > { %13377 = vmatmul.mubr.msk.bf16.vlgmr.msra.gmra.mrb[16].mxu1 %vm1420_vm12, %v14224_v11  ;;  %v8614_v11 = vshrl.u32 %v8544_v27, 16  ;;  %v8606_v27 = vor.u32 %v8605_v61, %v8601_v16  ;;  %v8550_v61 = vld [vmem:[#allocation3 + $0x30] sm:$0xf] }
 0x490   : > { %13409 = vmatpush3.bf16.msra.mxu1 %v9071_v13  ;;  %13380 = vmatprep.mubr.msk.bf16.mxu1 %vm1420_vm12, %v14225_v33  ;;  %v8592_v13 = vrot.slane %v8590_v37, 4  ;;  %v8595_v33 = vrot.slane %v8593_v42, 5  ;;  %v14229_v37 = vld [vmem:[#allocation3 + $0x54] sm:$0xff]   ;;  %v8609_v42 = vshll.u32 %v17325_v5, 16 }
 0x491   : > { %14139 = vmatprep.subr.msk.bf16.mxu1 %vm1475_vm0, %v17311_v47  ;;  %v8616_v23 = vrot.slane %v8614_v11, 4  ;;  %v8607_v24 = vrot.slane %v8606_v27, 4  ;;  %v8665_v27 = vshll.u32 %v8550_v61, 16 }
 0x492   : > { %v8596_v58 = vor.u32 %v8595_v33, %v8592_v13  ;;  %v8625_v13 = vrot.slane %v8623_v14, 5  ;;  %v8629_v33 = vrot.slane %v8627_v18, 4  ;;  %v8611_v50 = vrot.slane %v8609_v42, 5  ;;  %v14231_v18 = vld [vmem:[#allocation3 + $0x6c] sm:$0xff]  }
 0x493   : > { %v8657_v14 = vshll.u32 %v17047_v35, 16 }
 0x494   : > { %v8630_v63 = vor.u32 %v8629_v33, %v8625_v13  ;;  %v8612_v44 = vsel %vm14507_vm13, %v8607_v24, %v8611_v50  ;;  %v8675_v24 = vshrl.u32 %v17049_v40, 16 }
 0x497   : > { %13381 = vmatmul.mubr.msk.bf16.gmra.mrb[20].mxu1 %vm1420_vm12, %v14226_v8  ;;  %v8619_v8 = vrot.slane %v8617_v52, 5  ;;  %v8597_v52 = vrot.slane %v8596_v58, 4 }
 0x498   : > { %13384 = vmatprep.mubr.msk.bf16.mxu1 %vm1420_vm12, %v14227_v32  ;;  %v8641_v32 = vshll.u32 %v8547_v36, 16 }
 0x499   : > { %v8620_v11 = vor.u32 %v8619_v8, %v8616_v23  ;;  %v8602_v46 = vsel %vm14507_vm13, %v8597_v52, %v8601_v16  ;;  %v8635_v23 = vrot.slane %v8633_v31, 5  ;;  %v8662_v8 = vshrl.u32 %v8550_v61, 16  ;;  %v8559_v31 = vld [vmem:[#allocation3 + $0x54] sm:$0xf] }
 0x49a   : > { %v8643_v36 = vrot.slane %v8641_v32, 5  ;;  %v8553_v32 = vld [vmem:[#allocation3 + $0x3c] sm:$0xf]  ;;  %v17345_v42 = vcombine.low %v8602_v46, %v8612_v44  ;;  %v8659_v52 = vrot.slane %v8657_v14, 5  ;;  %v8713_v61 = vshll.u32 %v8556_v10, 16 }
 0x49b   : > { %v8621_v34 = vrot.slane %v8620_v11, 4  ;;  %v8686_v11 = vshrl.u32 %v8553_v32, 16  ;;  %v8689_v46 = vshll.u32 %v8553_v32, 16  ;;  %v8734_v44 = vshrl.u32 %v8559_v31, 16  ;;  %v14232_v14 = vld [vmem:[#allocation3 + $0x78] sm:$0xff]  }
 0x49c   : > { %v8644_v58 = vor.u32 %v8643_v36, %v8640_v1  ;;  %v8631_v1 = vrot.slane %v8630_v63, 4  ;;  %v8664_v36 = vrot.slane %v8662_v8, 4  ;;  %v14233_v8 = vld [vmem:[#allocation3 + $0x84] sm:$0xff]  }
 0x49d   : > { %v8626_v35 = vsel %vm14507_vm13, %v8621_v34, %v8625_v13  ;;  %v8737_v13 = vshll.u32 %v8559_v31, 16  ;;  %v8677_v34 = vrot.slane %v8675_v24, 4  ;;  %v8688_v3 = vrot.slane %v8686_v11, 4 }
 0x49e   : > { %v8645_v50 = vrot.slane %v8644_v58, 4  ;;  %v8636_v33 = vsel %vm14507_vm13, %v8631_v1, %v8635_v23  ;;  %v8695_v58 = vshll.u32 %v17062_v51, 16  ;;  %v8691_v32 = vrot.slane %v8689_v46, 5 }
 0x49f   : > { %13385 = vmatmul.mubr.msk.bf16.gmra.mrb[24].mxu1 %vm1420_vm12, %v14228_v39  ;;  %v8653_v39 = vrot.slane %v8651_v59, 4  ;;  %v8671_v59 = vshll.u32 %v17049_v40, 16  ;;  %v8681_v40 = vshll.u32 %v17055_v4, 16  ;;  %v8719_v23 = vshll.u32 %v17066_v15, 16 }
 0x4a0   : > { %13388 = vmatprep.mubr.msk.bf16.mxu1 %vm1420_vm12, %v14229_v37  ;;  %v14230_v37 = vld [vmem:[#allocation3 + $0x60] sm:$0xff]   ;;  %v8743_v1 = vshll.u32 %v17072_v0, 16  ;;  %v8736_v4 = vrot.slane %v8734_v44, 4  ;;  %v8739_v24 = vrot.slane %v8737_v13, 5  ;;  %v8747_v31 = vshrl.u32 %v17072_v0, 16 }
 0x4a1   : > { %v8654_v16 = vor.u32 %v8653_v39, %v17337_v56  ;;  %v8710_v39 = vshrl.u32 %v8556_v10, 16  ;;  %v17355_v63 = vrot.slane %v8671_v59, 5  ;;  %v17364_v59 = vcombine.low %v8626_v35, %v8636_v33 }
 0x4a2   : > { %v8650_v51 = vsel %vm14507_vm13, %v8645_v50, %v17337_v56  ;;  %v17373_v46 = vrot.slane %v8681_v40, 5  ;;  %v8692_v33 = vor.u32 %v8691_v32, %v8688_v3  ;;  %v8701_v44 = vrot.slane %v8699_v53, 4  ;;  %v14235_v32 = vld [vmem:[#allocation3 + $0x9c] sm:$0xff]  }
 0x4a3   : > { %v8712_v10 = vrot.slane %v8710_v39, 4  ;;  %v8562_v39 = vld [vmem:[#allocation3 + $0x60] sm:$0xf]  ;;  %v8678_v35 = vor.u32 %v8677_v34, %v17355_v63  ;;  %v8721_v0 = vrot.slane %v8719_v23, 5  ;;  %v8740_v28 = vor.u32 %v8739_v24, %v8736_v4 }
 0x4a4   : > { %v8749_v62 = vrot.slane %v8747_v31, 4  ;;  %v8758_v56 = vshrl.u32 %v8562_v39, 16  ;;  %v8761_v50 = vshll.u32 %v8562_v39, 16  ;;  %v8705_v53 = vshll.u32 %v17064_v7, 16 }
 0x4a5   : > { %v8679_v3 = vrot.slane %v8678_v35, 4  ;;  %v8729_v40 = vshll.u32 %v17069_v25, 16  ;;  %v8693_v23 = vrot.slane %v8692_v33, 4 }
 0x4a6   : > { %v8763_v24 = vrot.slane %v8761_v50, 5 }
 0x4a7   : > { %13389 = vmatmul.mubr.msk.bf16.gmra.mrb[28].mxu1 %vm1420_vm12, %v14230_v37  ;;  %v8655_v37 = vrot.slane %v8654_v16, 4  ;;  %v8715_v16 = vrot.slane %v8713_v61, 5  ;;  %v8697_v61 = vrot.slane %v8695_v58, 5  ;;  %v8565_v58 = vld [vmem:[#allocation3 + $0x6c] sm:$0xf]  ;;  %v8731_v39 = vrot.slane %v8729_v40, 5 }
 0x4a8   : > { %13392 = vmatprep.mubr.msk.bf16.mxu1 %vm1420_vm12, %v14231_v18  ;;  %v8667_v18 = vrot.slane %v8665_v27, 5  ;;  %v8723_v27 = vshrl.u32 %v17066_v15, 16  ;;  %v8782_v25 = vshrl.u32 %v8565_v58, 16  ;;  %v17419_v40 = vld [vmem:[#allocation3 + $0x20] sm:$0x1] }
 0x4a9   : > { %v8660_v11 = vsel %vm14507_vm13, %v8655_v37, %v8659_v52  ;;  %v8716_v13 = vor.u32 %v8715_v16, %v8712_v10  ;;  %v8771_v37 = vshrl.u32 %v17085_v48, 16  ;;  %v8702_v34 = vor.u32 %v8701_v44, %v8697_v61 }
 0x4aa   : > { %v8668_v15 = vor.u32 %v8667_v18, %v8664_v36  ;;  %v17378_v5 = vcombine.low %v8650_v51, %v8660_v11  ;;  %v8767_v36 = vshll.u32 %v17085_v48, 16  ;;  %v14234_v18 = vld [vmem:[#allocation3 + $0x90] sm:$0xff]   ;;  %v8760_v48 = vrot.slane %v8758_v56, 4 }
 0x4ab   : > { %v8717_v10 = vrot.slane %v8716_v13, 4  ;;  %v8773_v7 = vrot.slane %v8771_v37, 4  ;;  %v8785_v51 = vshll.u32 %v8565_v58, 16  ;;  %v8777_v56 = vshll.u32 %v17097_v29, 16  ;;  %v14237_v37 = vld [vmem:[#allocation3 + $0xb4] sm:$0xff]  }
 0x4ac   : > { %v8669_v52 = vrot.slane %v8668_v15, 4  ;;  %v17388_v31 = vrot.slane %v8767_v36, 5  ;;  %v8703_v15 = vrot.slane %v8702_v34, 4  ;;  %v8795_v34 = vshrl.u32 %v17111_v38, 16 }
 0x4ad   : > { %v17404_v36 = vrot.slane %v8785_v51, 5  ;;  %v17450_v51 = vld [vmem:[#allocation3 + $0x38] sm:$0x1] }
 0x4ae   : > { %v8674_v11 = vsel %vm14507_vm13, %v8669_v52, %v17355_v63  ;;  %v14236_v63 = vld [vmem:[#allocation3 + $0xa8] sm:$0xff]   ;;  %v8774_v50 = vor.u32 %v8773_v7, %v17388_v31  ;;  %v17402_v52 = vrot.slane %v8782_v25, 4  ;;  %18479 = vst [vmem:[#allocation37_spill] sm:$0xff] %v17450_v51 }
 0x4af   : > { %13393 = vmatmul.mubr.msk.bf16.gmra.mrb[32].mxu1 %vm1420_vm12, %v14232_v14  ;;  %v8725_v14 = vrot.slane %v8723_v27, 4  ;;  %v8753_v27 = vshll.u32 %v17083_v19, 16  ;;  %v8707_v19 = vrot.slane %v8705_v53, 5  ;;  %v17417_v53 = vld [vmem:[#allocation3 + $0x78] sm:$0xf] }
 0x4b0   : > { %13396 = vmatprep.mubr.msk.bf16.mxu1 %vm1420_vm12, %v14233_v8  ;;  %v17376_v8 = vrot.slane %v8743_v1, 5  ;;  %v8741_v1 = vrot.slane %v8740_v28, 4  ;;  %v8698_v28 = vsel %vm14507_vm13, %v8693_v23, %v8697_v61  ;;  %v8791_v61 = vshll.u32 %v17111_v38, 16 }
 0x4b1   : > { %v8726_v16 = vor.u32 %v8725_v14, %v8721_v0  ;;  %v8755_v33 = vrot.slane %v8753_v27, 5  ;;  %v8764_v14 = vor.u32 %v8763_v24, %v8760_v48  ;;  %v17444_v24 = vrot.slane %v8774_v50, 4  ;;  %v17463_v50 = vld [vmem:[#allocation3 + $0x44] sm:$0x1] }
 0x4b2   : > { %v8750_v4 = vor.u32 %v8749_v62, %v17376_v8  ;;  %v8722_v62 = vsel %vm14507_vm13, %v8717_v10, %v8721_v0  ;;  %v8746_v44 = vsel %vm14507_vm13, %v8741_v1, %v17376_v8  ;;  %v17407_v0 = vld [vmem:[#allocation3 + $0x1c] sm:$0xf]  ;;  %v8684_v8 = vsel %vm14507_vm13, %v8679_v3, %v17373_v46  ;;  %v17429_v3 = vld [vmem:[#allocation3 + $0x28] sm:$0xf]  ;;  %v17431_v10 = vld [vmem:[#allocation3 + $0x2c] sm:$0x1] }
 0x4b3   : > { %v8727_v35 = vrot.slane %v8726_v16, 4  ;;  %v17421_v58 = vcombine.low %v8674_v11, %v8684_v8  ;;  %18477 = vst [vmem:[#allocation35_spill] sm:$0xff] %v17431_v10  ;;  %v10818_v16 = vld [vmem:[#allocation3 + $0x18] sm:$0xe]  ;;  %v17436_v27 = vrot.slane %v8764_v14, 4  ;;  %v17438_v1 = vrot.slane %v8777_v56, 5 }
 0x4b4   : > { %v8751_v13 = vrot.slane %v8750_v4, 4  ;;  %v17440_v4 = vld [vmem:[#allocation3 + $0x34] sm:$0xf]  ;;  %v10884_v48 = vrot.slane %v17407_v0, 5  ;;  %v17448_v25 = vrot.slane %v8791_v61, 5  ;;  %v10887_v11 = vrot.slane %v17419_v40, 5 }
 0x4b5   : > { %v8732_v29 = vsel %vm14507_vm13, %v8727_v35, %v8731_v39  ;;  %18478 = vst [vmem:[#allocation36_spill] sm:$0xff] %v17440_v4  ;;  %v17456_v39 = vld [vmem:[#allocation3 + $0x40] sm:$0xf]  ;;  %v10819_v35 = vld [vmem:[#allocation3 + $0x24] sm:$0xe]  ;;  %v10894_v14 = vrot.slane %v17431_v10, 5 }
 0x4b6   : > { %v17425_v23 = vcombine.low %v8722_v62, %v8732_v29  ;;  %v8756_v46 = vsel %vm14507_vm13, %v8751_v13, %v8755_v33  ;;  %v10886_v62 = vrot.slane %v10884_v48, 4  ;;  %v10891_v13 = vrot.slane %v17429_v3, 5  ;;  %v10820_v56 = vld [vmem:[#allocation3 + $0x30] sm:$0xe]  ;;  %18480 = vst [vmem:[#allocation38_spill] sm:$0xff] %v17463_v50  ;;  %v14238_v29 = vld [vmem:[#allocation3 + $0xc0] sm:$0xff]  }
 0x4b7   : > { %13397 = vmatmul.mubr.msk.bf16.gmra.mrb[36].mxu1 %vm1420_vm12, %v14234_v18  ;;  %v8708_v18 = vsel %vm14507_vm13, %v8703_v15, %v8707_v19  ;;  %v17434_v38 = vcombine.low %v8746_v44, %v8756_v46  ;;  %v17453_v15 = vrot.slane %v8795_v34, 4  ;;  %v8806_v19 = vshrl.u32 %v17417_v53, 16  ;;  %v17465_v61 = vld [vmem:[#allocation3 + $0x4c] sm:$0xf]  ;;  %v17477_v46 = vld [vmem:[#allocation3 + $0x58] sm:$0xf] }
 0x4b8   : > { %13400 = vmatprep.mubr.msk.bf16.mxu1 %vm1420_vm12, %v14235_v32  ;;  %v17423_v32 = vcombine.low %v8698_v28, %v8708_v18  ;;  %v12478_v28 = vrot.slane %v10818_v16, 9  ;;  %18481 = vst [vmem:[#allocation39_spill] sm:$0xff] %v17465_v61  ;;  %v17473_v8 = vsel %vm14856_vm2, %v10886_v62, %v10887_v11  ;;  %v10898_v18 = vrot.slane %v17440_v4, 5  ;;  %18484 = vst [vmem:[#allocation42_spill] sm:$0xff] %v17477_v46  ;;  %v17479_v16 = vld [vmem:[#allocation3 + $0x5c] sm:$0x1] }
 0x4b9   : > { %18483 = vst [vmem:[#allocation41_spill] sm:$0xff] %v17473_v8  ;;  %18485 = vst [vmem:[#allocation43_spill] sm:$0xff] %v17479_v16  ;;  %v10893_v7 = vrot.slane %v10891_v13, 4  ;;  %v10901_v11 = vrot.slane %v17450_v51, 5  ;;  %v10821_v62 = vld [vmem:[#allocation3 + $0x3c] sm:$0xe] }
 0x4ba   : > { %v10900_v44 = vrot.slane %v10898_v18, 4  ;;  %v17486_v4 = vld [vmem:[#allocation3 + $0x50] sm:$0x1]  ;;  %v10822_v33 = vld [vmem:[#allocation3 + $0x48] sm:$0xe] }
 0x4bb   : > { %18486 = vst [vmem:[#allocation44_spill] sm:$0xff] %v17486_v4  ;;  %v17494_v10 = vsel %vm14856_vm2, %v10893_v7, %v10894_v14  ;;  %v17501_v8 = vld [vmem:[#allocation3 + $0x64] sm:$0xf] }
 0x4bc   : > { %18488 = vst [vmem:[#allocation46_spill] sm:$0xff] %v17494_v10  ;;  %18489 = vst [vmem:[#allocation47_spill] sm:$0xff] %v17501_v8  ;;  %v17513_v14 = vsel %vm14856_vm2, %v10900_v44, %v10901_v11  ;;  %v12482_v10 = vrot.slane %v10822_v33, 9  ;;  %v10922_v44 = vrot.slane %v17479_v16, 5  ;;  %v10824_v11 = vld [vmem:[#allocation3 + $0x60] sm:$0xe] }
 0x4bd   : > { %18492 = vst [vmem:[#allocation50_spill] sm:$0xff] %v17513_v14  ;;  %v17533_v14 = vld [vmem:[#allocation3 + $0x74] sm:$0x1] }
 0x4be   : > { %18496 = vst [vmem:[#allocation54_spill] sm:$0xff] %v17533_v14 }
 0x4bf   : > { %13401 = vmatmul.mubr.msk.bf16.gmra.mrb[40].mxu1 %vm1420_vm12, %v14236_v63  ;;  %v12479_v63 = vrot.slane %v10819_v35, 9  ;;  %v10905_v35 = vrot.slane %v17456_v39, 5 }
 0x4c0   : > { %13404 = vmatprep.mubr.msk.bf16.mxu1 %vm1420_vm12, %v14237_v37  ;;  %v17469_v37 = vsel %vm14856_vm2, %v12478_v28, %v10884_v48  ;;  %v17483_v48 = vrot.slane %v8806_v19, 4  ;;  %v12480_v28 = vrot.slane %v10820_v56, 9  ;;  %v10908_v19 = vrot.slane %v17463_v50, 5 }
 0x4c1   : > { %18482 = vst [vmem:[#allocation40_spill] sm:$0xff] %v17469_v37  ;;  %v17490_v34 = vsel %vm14856_vm2, %v12479_v63, %v10891_v13  ;;  %v9540_v56 = vsel %vm1475_vm0, %v17311_v47, 0  ;;  %v17503_v37 = vld [vmem:[#allocation3 + $0x70] sm:$0xf]  ;;  %v10823_v63 = vld [vmem:[#allocation3 + $0x54] sm:$0xe] }
 0x4c2   : > { %18487 = vst [vmem:[#allocation45_spill] sm:$0xff] %v17490_v34  ;;  %18490 = vst [vmem:[#allocation48_spill] sm:$0xff] %v17503_v37  ;;  %v17509_v7 = vsel %vm14856_vm2, %v12480_v28, %v10898_v18  ;;  %v17517_v47 = vld [vmem:[#allocation3 + $0x68] sm:$0x1]  ;;  %v12481_v50 = vrot.slane %v10821_v62, 9  ;;  %v10907_v51 = vrot.slane %v10905_v35, 4 }
 0x4c3   : > { %18491 = vst [vmem:[#allocation49_spill] sm:$0xff] %v17509_v7  ;;  %18493 = vst [vmem:[#allocation51_spill] sm:$0xff] %v17517_v47  ;;  %v10912_v13 = vrot.slane %v17465_v61, 5  ;;  %v10915_v18 = vrot.slane %v17486_v4, 5  ;;  %v10919_v28 = vrot.slane %v17477_v46, 5  ;;  %v10926_v46 = vrot.slane %v17501_v8, 5 }
 0x4c4   : > { %v17531_v34 = vsel %vm14856_vm2, %v10907_v51, %v10908_v19  ;;  %v17544_v4 = vld [vmem:[#allocation3 + $0x88] sm:$0xf]  ;;  %v12484_v19 = vrot.slane %v10824_v11, 9  ;;  %v10933_v33 = vrot.slane %v17503_v37, 5 }
 0x4c5   : > { %18495 = vst [vmem:[#allocation53_spill] sm:$0xff] %v17531_v34  ;;  %v10914_v62 = vrot.slane %v10912_v13, 4  ;;  %v17539_v7 = vsel %vm14856_vm2, %v12482_v10, %v10912_v13  ;;  %v10921_v16 = vrot.slane %v10919_v28, 4  ;;  %18498 = vst [vmem:[#allocation56_spill] sm:$0xff] %v17544_v4  ;;  %v17552_v34 = vld [vmem:[#allocation3 + $0x80] sm:$0x1] }
 0x4c6   : > { %18497 = vst [vmem:[#allocation55_spill] sm:$0xff] %v17539_v7  ;;  %18500 = vst [vmem:[#allocation58_spill] sm:$0xff] %v17552_v34  ;;  %v17554_v10 = vld [vmem:[#allocation3 + $0x8c] sm:$0x1]  ;;  %v17556_v13 = vld [vmem:[#allocation3 + $0x94] sm:$0xf]  ;;  %v17588_v7 = vsel %vm14856_vm2, %v12484_v19, %v10926_v46 }
 0x4c7   : > { %13405 = vmatmul.mubr.msk.bf16.gmra.mrb[44].mxu1 %vm1420_vm12, %v14238_v29  ;;  %v12483_v29 = vrot.slane %v10823_v63, 9  ;;  %v17548_v51 = vsel %vm14856_vm2, %v10914_v62, %v10915_v18  ;;  %v10929_v63 = vrot.slane %v17517_v47, 5  ;;  %18501 = vst [vmem:[#allocation59_spill] sm:$0xff] %v17554_v10  ;;  %18502 = vst [vmem:[#allocation60_spill] sm:$0xff] %v17556_v13  ;;  %v17566_v18 = vsel %vm14856_vm2, %v10921_v16, %v10922_v44  ;;  %v10826_v62 = vld [vmem:[#allocation3 + $0x78] sm:$0xe] }
 0x4c8   : > { %13410 = vmatprep.mubr.msk.bf16.mxu1 %vm1420_vm12, %v17345_v42  ;;  %v17527_v42 = vsel %vm14856_vm2, %v12481_v50, %v10905_v35  ;;  %v10825_v50 = vld [vmem:[#allocation3 + $0x6c] sm:$0xe]  ;;  %v17542_v35 = vld [vmem:[#allocation3 + $0x7c] sm:$0xf]  ;;  %18499 = vst [vmem:[#allocation57_spill] sm:$0xff] %v17548_v51  ;;  %18504 = vst [vmem:[#allocation62_spill] sm:$0xff] %v17566_v18 }
 0x4c9   : > { %18494 = vst [vmem:[#allocation52_spill] sm:$0xff] %v17527_v42  ;;  %v17562_v8 = vsel %vm14856_vm2, %v12483_v29, %v10919_v28  ;;  %v10928_v11 = vrot.slane %v10926_v46, 4  ;;  %v17571_v37 = vld [vmem:[%s18269_s3 + $0x18] sm:$0xf]  ;;  %v12485_v61 = vrot.slane %v10825_v50, 9  ;;  %v10935_v42 = vrot.slane %v10933_v33, 4 }
 0x4ca   : > { %18503 = vst [vmem:[#allocation61_spill] sm:$0xff] %v17562_v8  ;;  %v10936_v51 = vrot.slane %v17533_v14, 5  ;;  %v18505_v16 = vshll.u32 %v17417_v53, 16  ;;  %v17582_v28 = vld [vmem:[#allocation3 + $0x98] sm:$0x1]  ;;  %18507 = vst [vmem:[#allocation64_spill] sm:$0xff] %v17588_v7 }
 0x4cb   : > { %18506 = vst [vmem:[#allocation63_spill] sm:$0xff] %v17582_v28  ;;  %v17584_v44 = vld [vmem:[#allocation3 + $0xa0] sm:$0xf]  ;;  %v17592_v50 = vsel %vm14856_vm2, %v10928_v11, %v10929_v63  ;;  %v10940_v47 = vrot.slane %v17542_v35, 5  ;;  %v10827_v18 = vld [vmem:[#allocation3 + $0x84] sm:$0xe]  ;;  %v17603_v46 = vsel %vm14856_vm2, %v12485_v61, %v10933_v33 }
 0x4cc   : > { %v17580_v29 = vrot.slane %v18505_v16, 5  ;;  %18508 = vst [vmem:[#allocation65_spill] sm:$0xff] %v17592_v50  ;;  %18510 = vst [vmem:[#allocation67_spill] sm:$0xff] %v17603_v46  ;;  %v17607_v19 = vsel %vm14856_vm2, %v10935_v42, %v10936_v51  ;;  %v10943_v63 = vrot.slane %v17552_v34, 5  ;;  %v10828_v11 = vld [vmem:[#allocation3 + $0x90] sm:$0xe] }
 0x4cd   : > { %18511 = vst [vmem:[#allocation68_spill] sm:$0xff] %v17607_v19  ;;  %v12486_v16 = vrot.slane %v10826_v62, 9  ;;  %v10942_v53 = vrot.slane %v10940_v47, 4  ;;  %v10947_v61 = vrot.slane %v17544_v4, 5  ;;  %v12487_v33 = vrot.slane %v10827_v18, 9 }
 0x4ce   : > { %v10950_v50 = vrot.slane %v17554_v10, 5  ;;  %v10954_v42 = vrot.slane %v17556_v13, 5  ;;  %v10957_v51 = vrot.slane %v17582_v28, 5  ;;  %v10829_v7 = vld [vmem:[#allocation3 + $0x9c] sm:$0xe]  ;;  %v12488_v19 = vrot.slane %v10828_v11, 9 }
 0x4cf   : > { %13411 = vmatmul.mubr.msk.bf16.vlgmr.msra.gmra.mrb[16].mxu1 %vm1420_vm12, %v17364_v59  ;;  %v17597_v59 = vld [vmem:[#allocation3 + $0xa4] sm:$0x1]  ;;  %v10133_v8 = vld [vmem:[#allocation3 + $0xb8] sm:$0xf]  ;;  %v17622_v34 = vsel %vm14856_vm2, %v12486_v16, %v10940_v47  ;;  %v10949_v62 = vrot.slane %v10947_v61, 4  ;;  %v17634_v28 = vsel %vm14856_vm2, %v12487_v33, %v10947_v61  ;;  %v10961_v13 = vrot.slane %v17584_v44, 5 }
 0x4d0   : > { %13443 = vmatpush3.bf16.msra.mxu1 %v9540_v56  ;;  %13414 = vmatprep.mubr.msk.bf16.mxu1 %vm1420_vm12, %v17378_v5  ;;  %18509 = vst [vmem:[#allocation66_spill] sm:$0xff] %v17597_v59  ;;  %v17612_v5 = vld [vmem:[#allocation3 + $0xac] sm:$0xf]  ;;  %18512 = vst [vmem:[#allocation69_spill] sm:$0xff] %v17622_v34  ;;  %v17626_v56 = vsel %vm14856_vm2, %v10942_v53, %v10943_v63  ;;  %v17628_v46 = vld [vmem:[#allocation3 + $0xb0] sm:$0x1]  ;;  %v17649_v33 = vsel %vm14856_vm2, %v12488_v19, %v10954_v42 }
 0x4d1   : > { %14140 = vmatprep.subr.msk.bf16.mxu1 %vm1475_vm0, %v17571_v37  ;;  %18513 = vst [vmem:[#allocation70_spill] sm:$0xff] %v17626_v56  ;;  %v10956_v10 = vrot.slane %v10954_v42, 4  ;;  %v10830_v47 = vld [vmem:[#allocation3 + $0xa8] sm:$0xe]  ;;  %v10134_v16 = vld [vmem:[#allocation3 + $0xbc] sm:$0x1]  ;;  %v17639_v53 = vsel %vm14856_vm2, %v10949_v62, %v10950_v50 }
 0x4d2   : > { %18514 = vst [vmem:[#allocation71_spill] sm:$0xff] %v17639_v53  ;;  %v12489_v63 = vrot.slane %v10829_v7, 9  ;;  %v10964_v11 = vrot.slane %v17597_v59, 5  ;;  %v10968_v4 = vrot.slane %v17612_v5, 5  ;;  %v17643_v14 = vld [vmem:[#allocation3 + $0xc4] sm:$0xf] }
 0x4d3   : > { %v10137_v18 = vld [vmem:[#allocation3 + $0xc8] sm:$0x1]  ;;  %18515 = vst [vmem:[#allocation72_spill] sm:$0xff] %v17649_v33  ;;  %v17653_v56 = vsel %vm14856_vm2, %v10956_v10, %v10957_v51  ;;  %v10963_v50 = vrot.slane %v10961_v13, 4  ;;  %v12490_v62 = vrot.slane %v10830_v47, 9  ;;  %v10971_v59 = vrot.slane %v17628_v46, 5 }
 0x4d4   : > { %18516 = vst [vmem:[#allocation73_spill] sm:$0xff] %v17653_v56  ;;  %v10970_v34 = vrot.slane %v10968_v4, 4  ;;  %v10831_v61 = vld [vmem:[#allocation3 + $0xb4] sm:$0xe]  ;;  %v8571_v19 = vld [vmem:[#allocation3 + $0x84] sm:$0xf]  ;;  %v17664_v10 = vsel %vm14856_vm2, %v12489_v63, %v10961_v13 }
 0x4d5   : > { %v17668_v42 = vsel %vm14856_vm2, %v10963_v50, %v10964_v11  ;;  %v10978_v51 = vrot.slane %v10134_v16, 5  ;;  %v10832_v7 = vld [vmem:[#allocation3 + $0xc0] sm:$0xe]  ;;  %v17674_v56 = vsel %vm14856_vm2, %v12490_v62, %v10968_v4  ;;  %v10982_v13 = vrot.slane %v17643_v14, 5  ;;  %v18594_v21 = vld [vmem:[#allocation52_spill] sm:$0xff] }
 0x4d6   : > { %v12491_v11 = vrot.slane %v10831_v61, 9  ;;  %v10985_v16 = vrot.slane %v10137_v18, 5  ;;  %v8830_v50 = vshrl.u32 %v8571_v19, 16  ;;  %v8833_v33 = vshll.u32 %v8571_v19, 16  ;;  %v8574_v18 = vld [vmem:[#allocation3 + $0x90] sm:$0xf] }
 0x4d7   : > { %13415 = vmatmul.mubr.msk.bf16.gmra.mrb[20].mxu1 %vm1420_vm12, %v17421_v58  ;;  %v10975_v58 = vrot.slane %v10133_v8, 5  ;;  %v12492_v53 = vrot.slane %v10832_v7, 9  ;;  %v10984_v47 = vrot.slane %v10982_v13, 4  ;;  %v8798_v4 = vor.u32 %v17453_v15, %v17448_v25 }
 0x4d8   : > { %13418 = vmatprep.mubr.msk.bf16.mxu1 %vm1420_vm12, %v17423_v32  ;;  %v17678_v32 = vsel %vm14856_vm2, %v10970_v34, %v10971_v59  ;;  %v8839_v62 = vshll.u32 %v17146_v2, 16  ;;  %v8843_v61 = vshrl.u32 %v17146_v2, 16  ;;  %v18520_v2 = vshrl.u32 %v17132_v6, 16 }
 0x4d9   : > { %v10977_v8 = vrot.slane %v10975_v58, 4  ;;  %v17688_v34 = vsel %vm14856_vm2, %v12491_v11, %v10975_v58  ;;  %v17699_v19 = vsel %vm14856_vm2, %v12492_v53, %v10982_v13  ;;  %v17703_v15 = vsel %vm14856_vm2, %v10984_v47, %v10985_v16  ;;  %v8577_v16 = vld [vmem:[#allocation3 + $0x9c] sm:$0xf] }
 0x4da   : > { %18517 = vst [vmem:[#allocation74_spill] sm:$0xff] %v17703_v15  ;;  %v18518_v58 = vor.u32 %v17404_v36, %v17402_v52  ;;  %v8821_v63 = vrot.slane %v18520_v2, 4  ;;  %v18521_v53 = vshll.u32 %v17113_v41, 16  ;;  %v8812_v13 = vor.u32 %v17580_v29, %v17483_v48 }
 0x4db   : > { %v17692_v59 = vsel %vm14856_vm2, %v10977_v8, %v10978_v51  ;;  %v18519_v51 = vshll.u32 %v17132_v6, 16  ;;  %v8832_v52 = vrot.slane %v8830_v50, 4  ;;  %v8835_v36 = vrot.slane %v8833_v33, 5 }
 0x4dc   : > { %v8789_v11 = vrot.slane %v18518_v58, 4  ;;  %v8803_v47 = vrot.slane %v18521_v53, 5  ;;  %v8770_v6 = vsel %vm14507_vm13, %v17436_v27, %v17388_v31  ;;  %v8780_v41 = vsel %vm14507_vm13, %v17444_v24, %v17438_v1 }
 0x4dd   : > { %v8817_v8 = vrot.slane %v18519_v51, 5  ;;  %v8857_v58 = vshll.u32 %v8574_v18, 16  ;;  %v8799_v51 = vrot.slane %v8798_v4, 4  ;;  %v8825_v48 = vshll.u32 %v17144_v49, 16 }
 0x4de   : > { %v8841_v29 = vrot.slane %v8839_v62, 5  ;;  %v8845_v33 = vrot.slane %v8843_v61, 4  ;;  %v8878_v2 = vshrl.u32 %v8577_v16, 16  ;;  %v8881_v53 = vshll.u32 %v8577_v16, 16 }
 0x4df   : > { %13419 = vmatmul.mubr.msk.bf16.gmra.mrb[24].mxu1 %vm1420_vm12, %v17425_v23  ;;  %v8854_v23 = vshrl.u32 %v8574_v18, 16  ;;  %v8822_v50 = vor.u32 %v8821_v63, %v8817_v8  ;;  %v8804_v31 = vsel %vm14507_vm13, %v8799_v51, %v8803_v47  ;;  %v8813_v27 = vrot.slane %v8812_v13, 4  ;;  %v8580_v13 = vld [vmem:[#allocation3 + $0xa8] sm:$0xf] }
 0x4e0   : > { %13422 = vmatprep.mubr.msk.bf16.mxu1 %vm1420_vm12, %v17434_v38  ;;  %v8794_v38 = vsel %vm14507_vm13, %v8789_v11, %v17448_v25  ;;  %v8836_v7 = vor.u32 %v8835_v36, %v8832_v52  ;;  %v8849_v1 = vshll.u32 %v17155_v12, 16  ;;  %v8859_v4 = vrot.slane %v8857_v58, 5  ;;  %v8583_v58 = vld [vmem:[#allocation3 + $0xb4] sm:$0xf] }
 0x4e1   : > { %v8856_v24 = vrot.slane %v8854_v23, 4  ;;  %v8863_v49 = vshll.u32 %v17163_v30, 16  ;;  %v8867_v62 = vshrl.u32 %v17163_v30, 16  ;;  %v12341_v61 = vcombine.low %v8770_v6, %v8780_v41 }
 0x4e2   : > { %v12342_v18 = vcombine.low %v8794_v38, %v8804_v31  ;;  %v8827_v15 = vrot.slane %v8825_v48, 5  ;;  %v8846_v25 = vor.u32 %v8845_v33, %v8841_v29  ;;  %v8880_v63 = vrot.slane %v8878_v2, 4 }
 0x4e3   : > { %v8883_v11 = vrot.slane %v8881_v53, 5  ;;  %v8887_v16 = vshll.u32 %v17177_v43, 16  ;;  %v8891_v47 = vshrl.u32 %v17177_v43, 16  ;;  %v8818_v12 = vsel %vm14507_vm13, %v8813_v27, %v8817_v8 }
 0x4e4   : > { %v8823_v52 = vrot.slane %v8822_v50, 4  ;;  %v8837_v36 = vrot.slane %v8836_v7, 4  ;;  %v8851_v30 = vrot.slane %v8849_v1, 5  ;;  %v8860_v6 = vor.u32 %v8859_v4, %v8856_v24 }
 0x4e5   : > { %v8865_v41 = vrot.slane %v8863_v49, 5  ;;  %v8869_v23 = vrot.slane %v8867_v62, 4  ;;  %v8847_v48 = vrot.slane %v8846_v25, 4  ;;  %v8902_v43 = vshrl.u32 %v8580_v13, 16 }
 0x4e6   : > { %v8828_v51 = vsel %vm14507_vm13, %v8823_v52, %v8827_v15  ;;  %v8905_v33 = vshll.u32 %v8580_v13, 16  ;;  %v8873_v38 = vshll.u32 %v17175_v57, 16  ;;  %v8884_v2 = vor.u32 %v8883_v11, %v8880_v63 }
 0x4e7   : > { %13423 = vmatmul.mubr.msk.bf16.gmra.mrb[28].mxu1 %vm1420_vm12, %v12341_v61  ;;  %v8889_v53 = vrot.slane %v8887_v16, 5  ;;  %v8893_v8 = vrot.slane %v8891_v47, 4  ;;  %v12343_v50 = vcombine.low %v8818_v12, %v8828_v51  ;;  %v8842_v7 = vsel %vm14507_vm13, %v8837_v36, %v8841_v29  ;;  %v8586_v12 = vld [vmem:[#allocation3 + $0xc0] sm:$0xf] }
 0x4e8   : > { %13426 = vmatprep.mubr.msk.bf16.mxu1 %vm1420_vm12, %v12342_v18  ;;  %v8926_v31 = vshrl.u32 %v8583_v58, 16  ;;  %v8929_v27 = vshll.u32 %v8583_v58, 16  ;;  %v8852_v1 = vsel %vm14507_vm13, %v8847_v48, %v8851_v30  ;;  %v8861_v24 = vrot.slane %v8860_v6, 4 }
 0x4e9   : > { %v8870_v4 = vor.u32 %v8869_v23, %v8865_v41  ;;  %v8897_v15 = vshll.u32 %v17192_v54, 16  ;;  %v8904_v49 = vrot.slane %v8902_v43, 4  ;;  %v8907_v62 = vrot.slane %v8905_v33, 5 }
 0x4ea   : > { %v8911_v57 = vshll.u32 %v17204_v26, 16  ;;  %v8915_v61 = vshrl.u32 %v17204_v26, 16  ;;  %v12344_v18 = vcombine.low %v8842_v7, %v8852_v1  ;;  %v8875_v25 = vrot.slane %v8873_v38, 5 }
 0x4eb   : > { %v8885_v63 = vrot.slane %v8884_v2, 4  ;;  %v8894_v11 = vor.u32 %v8893_v8, %v8889_v53  ;;  %v8928_v29 = vrot.slane %v8926_v31, 4  ;;  %v8931_v16 = vrot.slane %v8929_v27, 5 }
 0x4ec   : > { %v8935_v47 = vshll.u32 %v17221_v9, 16  ;;  %v8939_v13 = vshrl.u32 %v17221_v9, 16  ;;  %v8866_v54 = vsel %vm14507_vm13, %v8861_v24, %v8865_v41  ;;  %v8899_v52 = vrot.slane %v8897_v15, 5 }
 0x4ed   : > { %v8871_v26 = vrot.slane %v8870_v4, 4  ;;  %v8908_v36 = vor.u32 %v8907_v62, %v8904_v49  ;;  %v8913_v30 = vrot.slane %v8911_v57, 5  ;;  %v8917_v6 = vrot.slane %v8915_v61, 4 }
 0x4ee   : > { %v8890_v23 = vsel %vm14507_vm13, %v8885_v63, %v8889_v53  ;;  %v8895_v58 = vrot.slane %v8894_v11, 4  ;;  %v8950_v51 = vshrl.u32 %v8586_v12, 16  ;;  %v8953_v48 = vshll.u32 %v8586_v12, 16 }
 0x4ef   : > { %13427 = vmatmul.mubr.msk.bf16.gmra.mrb[32].mxu1 %vm1420_vm12, %v12343_v50  ;;  %v8876_v9 = vsel %vm14507_vm13, %v8871_v26, %v8875_v25  ;;  %v8932_v43 = vor.u32 %v8931_v16, %v8928_v29  ;;  %v8937_v33 = vrot.slane %v8935_v47, 5  ;;  %v8941_v38 = vrot.slane %v8939_v13, 4  ;;  %v18522_v26 = vld [vmem:[#allocation33_spill] sm:$0xff] }
 0x4f0   : > { %13430 = vmatprep.mubr.msk.bf16.mxu1 %vm1420_vm12, %v12344_v18  ;;  %v12345_v2 = vcombine.low %v8866_v54, %v8876_v9  ;;  %v8900_v41 = vsel %vm14507_vm13, %v8895_v58, %v8899_v52  ;;  %v8921_v8 = vshll.u32 %v17212_v45, 16  ;;  %v8909_v7 = vrot.slane %v8908_v36, 4  ;;  %v18523_v9 = vld [vmem:[#allocation32_spill] sm:$0xff] }
 0x4f1   : > { %v12346_v50 = vcombine.low %v8890_v23, %v8900_v41  ;;  %v8918_v31 = vor.u32 %v8917_v6, %v8913_v30  ;;  %v8945_v53 = vshll.u32 %v17233_v60, 16  ;;  %v8952_v27 = vrot.slane %v8950_v51, 4  ;;  %v9266_v6 = vld [vmem:[#allocation3 + $0xc] sm:$0xe] }
 0x4f2   : > { %v8955_v1 = vrot.slane %v8953_v48, 5  ;;  %v8959_v24 = vshll.u32 %v17235_v17, 16  ;;  %v8963_v4 = vshrl.u32 %v17235_v17, 16  ;;  %v8933_v15 = vrot.slane %v8932_v43, 4  ;;  %v18524_v41 = vld [vmem:[#allocation34_spill] sm:$0xff] }
 0x4f3   : > { %v8942_v49 = vor.u32 %v8941_v38, %v8937_v33  ;;  %v8923_v62 = vrot.slane %v8921_v8, 5  ;;  %v8914_v45 = vsel %vm14507_vm13, %v8909_v7, %v8913_v30  ;;  %v8947_v57 = vrot.slane %v8945_v53, 5 }
 0x4f4   : > { %v8919_v61 = vrot.slane %v8918_v31, 4  ;;  %v8956_v18 = vor.u32 %v8955_v1, %v8952_v27  ;;  %v8961_v60 = vrot.slane %v8959_v24, 5  ;;  %v8965_v25 = vrot.slane %v8963_v4, 4  ;;  %v10525_v4 = vld [vmem:[%s18269_s3 + $0x1c] sm:$0xf] }
 0x4f5   : > { %v8938_v63 = vsel %vm14507_vm13, %v8933_v15, %v8937_v33  ;;  %v8943_v11 = vrot.slane %v8942_v49, 4  ;;  %v8969_v29 = vshll.u32 %v17247_v22, 16  ;;  %v9332_v13 = vrot.slane %v17317_v20, 5  ;;  %v18525_v15 = vld [vmem:[#allocation13_spill] sm:$0xff]  ;;  %v18526_v49 = vld [vmem:[#allocation14_spill] sm:$0xff] }
 0x4f6   : > { %v8924_v17 = vsel %vm14507_vm13, %v8919_v61, %v8923_v62  ;;  %v8957_v54 = vrot.slane %v8956_v18, 4  ;;  %v8966_v52 = vor.u32 %v8965_v25, %v8961_v60  ;;  %v9335_v36 = vrot.slane %v18522_v26, 5  ;;  %v18532_v18 = vld [vmem:[#allocation12_spill] sm:$0xff]  ;;  %v18534_v25 = vld [vmem:[#allocation9_spill] sm:$0xff] }
 0x4f7   : > { %13431 = vmatmul.mubr.msk.bf16.gmra.mrb[36].mxu1 %vm1420_vm12, %v12345_v2  ;;  %v12347_v16 = vcombine.low %v8914_v45, %v8924_v17  ;;  %v8948_v47 = vsel %vm14507_vm13, %v8943_v11, %v8947_v57  ;;  %v8971_v30 = vrot.slane %v8969_v29, 5  ;;  %v9334_v23 = vrot.slane %v9332_v13, 4  ;;  %v18528_v45 = vld [vmem:[#allocation15_spill] sm:$0xff]  ;;  %v18529_v57 = vld [vmem:[#allocation8_spill] sm:$0xff]  ;;  %v18537_v17 = vld [vmem:[#allocation6_spill] sm:$0xff] }
 0x4f8   : > { %13434 = vmatprep.mubr.msk.bf16.mxu1 %vm1420_vm12, %v12346_v50  ;;  %v12348_v12 = vcombine.low %v8938_v63, %v8948_v47  ;;  %v8962_v22 = vsel %vm14507_vm13, %v8957_v54, %v8961_v60  ;;  %v8967_v58 = vrot.slane %v8966_v52, 4  ;;  %v12366_v51 = vrot.slane %v9266_v6, 9  ;;  %v9267_v50 = vld [vmem:[#allocation3 + $0x18] sm:$0xe]  ;;  %v18535_v63 = vld [vmem:[#allocation11_spill] sm:$0xff]  ;;  %v18544_v52 = vld [vmem:[#allocation18_spill] sm:$0xff] }
 0x4f9   : > { %v9336_v20 = vsel %vm14856_vm2, %v9334_v23, %v9335_v36  ;;  %v9339_v43 = vrot.slane %v18523_v9, 5  ;;  %v9342_v8 = vrot.slane %v18524_v41, 5  ;;  %v12367_v31 = vrot.slane %v9267_v50, 9  ;;  %v18538_v29 = vld [vmem:[#allocation4_spill] sm:$0xff]  ;;  %v18540_v47 = vld [vmem:[#allocation7_spill] sm:$0xff]  ;;  %v18546_v36 = vld [vmem:[#allocation17_spill] sm:$0xff] }
 0x4fa   : > { %v8972_v48 = vsel %vm14507_vm13, %v8967_v58, %v8971_v30  ;;  %v9333_v38 = vsel %vm14856_vm2, %v12366_v51, %v9332_v13  ;;  %v9898_v24 = vsel %vm1475_vm0, %v17571_v37, 0  ;;  %v18527_v62 = vcombine.low %v18525_v15, %v18526_v49  ;;  %v18531_v37 = vld [vmem:[#allocation10_spill] sm:$0xff]  ;;  %v18541_v13 = vld [vmem:[#allocation5_spill] sm:$0xff]  ;;  %v18543_v54 = vld [vmem:[#allocation16_spill] sm:$0xff] }
 0x4fb   : > { %v12349_v33 = vcombine.low %v8962_v22, %v8972_v48  ;;  %v12382_v2 = vcombine.low %v9333_v38, %v9336_v20  ;;  %v9341_v7 = vrot.slane %v9339_v43, 4  ;;  %v9340_v27 = vsel %vm14856_vm2, %v12367_v31, %v9339_v43  ;;  %v18547_v30 = vld [vmem:[#allocation19_spill] sm:$0xff]  ;;  %v18549_v23 = vld [vmem:[#allocation20_spill] sm:$0xff]  ;;  %v18550_v22 = vld [vmem:[#allocation21_spill] sm:$0xff] }
 0x4fc   : > { %v18530_v61 = vcombine.low %v18528_v45, %v18529_v57  ;;  %v18533_v60 = vcombine.low %v18531_v37, %v18532_v18  ;;  %v18536_v11 = vcombine.low %v18534_v25, %v18535_v63  ;;  %v18545_v26 = vcombine.low %v18543_v54, %v18544_v52  ;;  %v18552_v51 = vld [vmem:[#allocation22_spill] sm:$0xff]  ;;  %v18553_v20 = vld [vmem:[#allocation23_spill] sm:$0xff]  ;;  %v18555_v9 = vld [vmem:[#allocation24_spill] sm:$0xff] }
 0x4fd   : > { %v9343_v53 = vsel %vm14856_vm2, %v9341_v7, %v9342_v8  ;;  %v18548_v6 = vcombine.low %v18546_v36, %v18547_v30  ;;  %v18551_v58 = vcombine.low %v18549_v23, %v18550_v22  ;;  %v18554_v48 = vcombine.low %v18552_v51, %v18553_v20  ;;  %v18556_v43 = vld [vmem:[#allocation25_spill] sm:$0xff]  ;;  %v18558_v38 = vld [vmem:[#allocation26_spill] sm:$0xff]  ;;  %v18561_v8 = vld [vmem:[#allocation28_spill] sm:$0xff] }
 0x4fe   : > { %v12383_v1 = vcombine.low %v9340_v27, %v9343_v53  ;;  %v18562_v50 = vld [vmem:[#allocation29_spill] sm:$0xff]  ;;  %v14239_v31 = vld [vmem:[#allocation3 + $0x18] sm:$0xff]   ;;  %v18564_v53 = vld [vmem:[#allocation30_spill] sm:$0xff]  ;;  %v10623_v15 = vsel %vm1475_vm0, %v10525_v4, 0  ;;  %v10161_v20 = vshll.u32 %v17419_v40, 16 }
 0x4ff   : > { %13435 = vmatmul.mubr.msk.bf16.gmra.mrb[40].mxu1 %vm1420_vm12, %v12347_v16  ;;  %v18539_v16 = vcombine.low %v18537_v17, %v18538_v29  ;;  %v18563_v7 = vcombine.low %v18561_v8, %v18562_v50  ;;  %v18565_v27 = vld [vmem:[#allocation31_spill] sm:$0xff]  ;;  %v14242_v45 = vld [vmem:[#allocation3 + $0x3c] sm:$0xff]   ;;  %v14243_v57 = vld [vmem:[#allocation3 + $0x48] sm:$0xff]   ;;  %v10151_v29 = vshll.u32 %v17407_v0, 16 }
 0x500   : > { %13438 = vmatprep.mubr.msk.bf16.mxu1 %vm1420_vm12, %v12348_v12  ;;  %v18542_v12 = vcombine.low %v18540_v47, %v18541_v13  ;;  %v14241_v49 = vld [vmem:[#allocation3 + $0x30] sm:$0xff]   ;;  %v14247_v18 = vld [vmem:[#allocation3 + $0x78] sm:$0xff]   ;;  %v14248_v25 = vld [vmem:[#allocation3 + $0x84] sm:$0xff]  }
 0x501   : > { %v14246_v37 = vld [vmem:[#allocation3 + $0x6c] sm:$0xff]   ;;  %v10096_v47 = vld [vmem:[#allocation3 + $0x24] sm:$0xf]  ;;  %v17886_v52 = vrot.slane %v10151_v29, 5 }
 0x502   : > { %v14249_v63 = vld [vmem:[#allocation3 + $0x90] sm:$0xff]   ;;  %v10166_v36 = vshrl.u32 %v10096_v47, 16  ;;  %v10169_v30 = vshll.u32 %v10096_v47, 16 }
 0x503   : > { %v10099_v54 = vld [vmem:[#allocation3 + $0x30] sm:$0xf] }
 0x504   : > { %v10190_v23 = vshrl.u32 %v10099_v54, 16  ;;  %v10193_v22 = vshll.u32 %v10099_v54, 16 }
 0x506   : > { %v10192_v8 = vrot.slane %v10190_v23, 4  ;;  %v10195_v50 = vrot.slane %v10193_v22, 5  ;;  %v10833_v23 = vld [vmem:[#allocation3 + $0xcc] sm:$0xe] }
 0x507   : > { %13439 = vmatmul.mubr.msk.bf16.gmra.mrb[44].mxu1 %vm1420_vm12, %v12349_v33  ;;  %v18557_v33 = vcombine.low %v18555_v9, %v18556_v43  ;;  %v10102_v9 = vld [vmem:[#allocation3 + $0x3c] sm:$0xf] }
 0x508   : > { %13444 = vmatprep.mubr.msk.bf16.mxu1 %vm1420_vm12, %v12382_v2  ;;  %v18559_v2 = vld [vmem:[#allocation27_spill] sm:$0xff] }
 0x509   : > { %v18560_v41 = vcombine.low %v18558_v38, %v18559_v2  ;;  %v10171_v38 = vrot.slane %v10169_v30, 5  ;;  %v18567_v2 = vld [vmem:[#allocation35_spill] sm:$0xff]  ;;  %v18569_v30 = vld [vmem:[#allocation37_spill] sm:$0xff] }
 0x50f   : > { %13445 = vmatmul.mubr.msk.bf16.vlgmr.msra.gmra.mrb[16].mxu1 %vm1420_vm12, %v12383_v1  ;;  %v18566_v1 = vcombine.low %v18564_v53, %v18565_v27  ;;  %v10214_v27 = vshrl.u32 %v10102_v9, 16 }
 0x510   : > { %13477 = vmatpush3.bf16.msra.mxu1 %v9898_v24  ;;  %13448 = vmatprep.mubr.msk.bf16.mxu1 %vm1420_vm12, %v18527_v62  ;;  %v14240_v24 = vld [vmem:[#allocation3 + $0x24] sm:$0xff]   ;;  %v17870_v62 = vld [vmem:[%s18269_s3 + $0x20] sm:$0xf] }
 0x511   : > { %14141 = vmatprep.subr.msk.bf16.mxu1 %vm1475_vm0, %v10525_v4  ;;  %v14244_v4 = vld [vmem:[#allocation3 + $0x54] sm:$0xff]  }
 0x517   : > { %13449 = vmatmul.mubr.msk.bf16.gmra.mrb[20].mxu1 %vm1420_vm12, %v18530_v61  ;;  %v14245_v61 = vld [vmem:[#allocation3 + $0x60] sm:$0xff]  }
 0x518   : > { %13452 = vmatprep.mubr.msk.bf16.mxu1 %vm1420_vm12, %v18533_v60  ;;  %v10093_v60 = vld [vmem:[#allocation3 + $0x18] sm:$0xf] }
 0x519   : > { %v10145_v17 = vshll.u32 %v10093_v60, 16 }
 0x51f   : > { %13453 = vmatmul.mubr.msk.bf16.gmra.mrb[24].mxu1 %vm1420_vm12, %v18536_v11  ;;  %v10142_v11 = vshrl.u32 %v10093_v60, 16 }
 0x520   : > { %13456 = vmatprep.mubr.msk.bf16.mxu1 %vm1420_vm12, %v18539_v16  ;;  %v10155_v16 = vshrl.u32 %v17407_v0, 16  ;;  %v10175_v0 = vshll.u32 %v17429_v3, 16 }
 0x521   : > { %v10144_v13 = vrot.slane %v10142_v11, 4 }
 0x527   : > { %13457 = vmatmul.mubr.msk.bf16.gmra.mrb[28].mxu1 %vm1420_vm12, %v18542_v12  ;;  %v10147_v12 = vrot.slane %v10145_v17, 5  ;;  %v10216_v17 = vrot.slane %v10214_v27, 4 }
 0x528   : > { %13460 = vmatprep.mubr.msk.bf16.mxu1 %vm1420_vm12, %v18545_v26  ;;  %v10157_v26 = vrot.slane %v10155_v16, 4  ;;  %v10227_v16 = vshrl.u32 %v17456_v39, 16 }
 0x529   : > { %v10148_v51 = vor.u32 %v10147_v12, %v10144_v13 }
 0x52a   : > { %v10158_v43 = vor.u32 %v10157_v26, %v17886_v52  ;;  %v17912_v26 = vld [vmem:[#allocation3 + $0xd0] sm:$0xf] }
 0x52b   : > { %v10149_v40 = vrot.slane %v10148_v51, 4 }
 0x52d   : > { %v10154_v11 = vsel %vm14507_vm13, %v10149_v40, %v17886_v52 }
 0x52f   : > { %13461 = vmatmul.mubr.msk.bf16.gmra.mrb[32].mxu1 %vm1420_vm12, %v18548_v6  ;;  %v14250_v6 = vld [vmem:[#allocation3 + $0x9c] sm:$0xff]  }
 0x530   : > { %13464 = vmatprep.mubr.msk.bf16.mxu1 %vm1420_vm12, %v18551_v58  ;;  %v14251_v58 = vld [vmem:[#allocation3 + $0xa8] sm:$0xff]  }
 0x537   : > { %13465 = vmatmul.mubr.msk.bf16.gmra.mrb[36].mxu1 %vm1420_vm12, %v18554_v48  ;;  %v10179_v48 = vshrl.u32 %v17429_v3, 16  ;;  %v17897_v3 = vrot.slane %v10175_v0, 5  ;;  %v10108_v0 = vld [vmem:[#allocation3 + $0x54] sm:$0xf] }
 0x538   : > { %13468 = vmatprep.mubr.msk.bf16.mxu1 %vm1420_vm12, %v18557_v33  ;;  %v10168_v33 = vrot.slane %v10166_v36, 4  ;;  %v17914_v36 = vld [vmem:[#allocation3 + $0xd4] sm:$0x1]  ;;  %v10262_v27 = vshrl.u32 %v10108_v0, 16 }
 0x539   : > { %v10992_v22 = vrot.slane %v17914_v36, 5 }
 0x53f   : > { %13469 = vmatmul.mubr.msk.bf16.gmra.mrb[40].mxu1 %vm1420_vm12, %v18560_v41  ;;  %v10185_v41 = vshll.u32 %v18567_v2, 16 }
 0x540   : > { %13472 = vmatprep.mubr.msk.bf16.mxu1 %vm1420_vm12, %v18563_v7  ;;  %v18568_v7 = vld [vmem:[#allocation36_spill] sm:$0xff] }
 0x541   : > { %v10203_v53 = vshrl.u32 %v18568_v7, 16 }
 0x543   : > { %v10205_v60 = vrot.slane %v10203_v53, 4  ;;  %v18571_v53 = vld [vmem:[#allocation38_spill] sm:$0xff] }
 0x544   : > { %v10233_v40 = vshll.u32 %v18571_v53, 16 }
 0x547   : > { %13473 = vmatmul.mubr.msk.bf16.gmra.mrb[44].mxu1 %vm1420_vm12, %v18566_v1  ;;  %v10217_v1 = vshll.u32 %v10102_v9, 16 }
 0x548   : > { %13478 = vmatprep.mubr.msk.bf16.mxu1 %vm1420_vm12, %v14239_v31  ;;  %v10199_v31 = vshll.u32 %v18568_v7, 16 }
 0x549   : > { %v10219_v29 = vrot.slane %v10217_v1, 5  ;;  %v10265_v1 = vshll.u32 %v10108_v0, 16 }
 0x54b   : > { %v10220_v9 = vor.u32 %v10219_v29, %v10216_v17 }
 0x54f   : > { %13479 = vmatmul.mubr.msk.bf16.vlgmr.msra.gmra.mrb[16].mxu1 %vm1420_vm12, %v14240_v24  ;;  %v10163_v24 = vrot.slane %v10161_v20, 5 }
 0x550   : > { %13511 = vmatpush3.bf16.msra.mxu1 %v10623_v15  ;;  %13482 = vmatprep.mubr.msk.bf16.mxu1 %vm1420_vm12, %v14241_v49  ;;  %v10181_v15 = vrot.slane %v10179_v48, 4  ;;  %v10159_v49 = vrot.slane %v10158_v43, 4  ;;  %v12493_v48 = vrot.slane %v10833_v23, 9  ;;  %v10229_v43 = vrot.slane %v10227_v16, 4  ;;  %v18572_v16 = vld [vmem:[#allocation44_spill] sm:$0xff] }
 0x551   : > { %14142 = vmatprep.subr.msk.bf16.mxu1 %vm1475_vm0, %v17870_v62 }
 0x552   : > { %v10164_v47 = vsel %vm14507_vm13, %v10159_v49, %v10163_v24  ;;  %v10182_v13 = vor.u32 %v10181_v15, %v17897_v3 }
 0x553   : > { %v12446_v15 = vcombine.low %v10154_v11, %v10164_v47  ;;  %v10257_v47 = vshll.u32 %v18572_v16, 16  ;;  %v18577_v16 = vld [vmem:[#allocation48_spill] sm:$0xff] }
 0x557   : > { %13483 = vmatmul.mubr.msk.bf16.gmra.mrb[20].mxu1 %vm1420_vm12, %v14242_v45  ;;  %v10172_v45 = vor.u32 %v10171_v38, %v10168_v33  ;;  %v18570_v33 = vld [vmem:[#allocation39_spill] sm:$0xff] }
 0x558   : > { %13486 = vmatprep.mubr.msk.bf16.mxu1 %vm1420_vm12, %v14243_v57  ;;  %v17899_v57 = vrot.slane %v10185_v41, 5  ;;  %v10247_v38 = vshll.u32 %v18570_v33, 16  ;;  %v14254_v41 = vld [vmem:[#allocation3 + $0xcc] sm:$0xff]   ;;  %v10251_v7 = vshrl.u32 %v18570_v33, 16  ;;  %v10259_v33 = vrot.slane %v10257_v47, 5 }
 0x559   : > { %v10173_v52 = vrot.slane %v10172_v45, 4  ;;  %v10183_v45 = vrot.slane %v10182_v13, 4  ;;  %v10264_v13 = vrot.slane %v10262_v27, 4  ;;  %v10319_v47 = vshll.u32 %v18577_v16, 16 }
 0x55a   : > { %v10249_v17 = vrot.slane %v10247_v38, 5  ;;  %v10253_v29 = vrot.slane %v10251_v7, 4 }
 0x55b   : > { %v10178_v49 = vsel %vm14507_vm13, %v10173_v52, %v17897_v3  ;;  %v10235_v3 = vrot.slane %v10233_v40, 5  ;;  %v10117_v40 = vld [vmem:[#allocation3 + $0x78] sm:$0xf] }
 0x55f   : > { %13487 = vmatmul.mubr.msk.bf16.gmra.mrb[24].mxu1 %vm1420_vm12, %v14244_v4  ;;  %v10105_v4 = vld [vmem:[#allocation3 + $0x48] sm:$0xf] }
 0x560   : > { %13490 = vmatprep.mubr.msk.bf16.mxu1 %vm1420_vm12, %v14245_v61  ;;  %v14252_v61 = vld [vmem:[#allocation3 + $0xb4] sm:$0xff]   ;;  %v10238_v12 = vshrl.u32 %v10105_v4, 16  ;;  %v10241_v54 = vshll.u32 %v10105_v4, 16 }
 0x567   : > { %13491 = vmatmul.mubr.msk.bf16.gmra.mrb[28].mxu1 %vm1420_vm12, %v14246_v37  ;;  %v10196_v37 = vor.u32 %v10195_v50, %v10192_v8  ;;  %v10240_v8 = vrot.slane %v10238_v12, 4  ;;  %v10243_v50 = vrot.slane %v10241_v54, 5  ;;  %v10267_v12 = vrot.slane %v10265_v1, 5  ;;  %v18573_v54 = vld [vmem:[#allocation42_spill] sm:$0xff] }
 0x568   : > { %13494 = vmatprep.mubr.msk.bf16.mxu1 %vm1420_vm12, %v14247_v18  ;;  %v17901_v18 = vrot.slane %v10199_v31, 5  ;;  %v10271_v52 = vshll.u32 %v18573_v54, 16 }
 0x569   : > { %v10244_v11 = vor.u32 %v10243_v50, %v10240_v8  ;;  %v10268_v38 = vor.u32 %v10267_v12, %v10264_v13  ;;  %v11092_v8 = vsel %vm1475_vm0, %v17870_v62, 0  ;;  %v10323_v13 = vshrl.u32 %v18577_v16, 16 }
 0x56a   : > { %v10206_v51 = vor.u32 %v10205_v60, %v17901_v18  ;;  %v10273_v50 = vrot.slane %v10271_v52, 5  ;;  %vm11470_vm0 = vcmask 1046528  }
 0x56b   : > { %v10269_v62 = vrot.slane %v10268_v38, 4  ;;  %v10123_v38 = vld [vmem:[#allocation3 + $0x90] sm:$0xf] }
 0x56f   : > { %13495 = vmatmul.mubr.msk.bf16.gmra.mrb[32].mxu1 %vm1420_vm12, %v14248_v25  ;;  %v10223_v25 = vshll.u32 %v17456_v39, 16  ;;  %v10989_v39 = vrot.slane %v17912_v26, 5 }
 0x570   : > { %13498 = vmatprep.mubr.msk.bf16.mxu1 %vm1420_vm12, %v14249_v63  ;;  %v14253_v63 = vld [vmem:[#allocation3 + $0xc0] sm:$0xff]  }
 0x571   : > { %v17921_v20 = vrot.slane %v10223_v25, 5  ;;  %v10991_v2 = vrot.slane %v10989_v39, 4  ;;  %v17927_v31 = vsel %vm14856_vm2, %v12493_v48, %v10989_v39  ;;  %v10245_v48 = vrot.slane %v10244_v11, 4 }
 0x573   : > { %v17932_v24 = vsel %vm14856_vm2, %v10991_v2, %v10992_v22  ;;  %v10230_v25 = vor.u32 %v10229_v43, %v17921_v20  ;;  %v10114_v43 = vld [vmem:[#allocation3 + $0x6c] sm:$0xf]  ;;  %v18574_v2 = vld [vmem:[#allocation47_spill] sm:$0xff] }
 0x574   : > { %v12509_v4 = vcombine.low %v17927_v31, %v17932_v24  ;;  %v10310_v1 = vshrl.u32 %v10114_v43, 16  ;;  %v18121_v31 = vld [vmem:[%s18270_s4] ss:$0 sm:$0xff] }
 0x575   : > { %v10231_v22 = vrot.slane %v10230_v25, 4 }
 0x577   : > { %13499 = vmatmul.mubr.msk.bf16.gmra.mrb[36].mxu1 %vm1420_vm12, %v14250_v6  ;;  %v10209_v6 = vshll.u32 %v18569_v30, 16  ;;  %v10275_v30 = vshrl.u32 %v18573_v54, 16 }
 0x578   : > { %13502 = vmatprep.mubr.msk.bf16.mxu1 %vm1420_vm12, %v14251_v58  ;;  %v10197_v58 = vrot.slane %v10196_v37, 4  ;;  %v10207_v37 = vrot.slane %v10206_v51, 4 }
 0x579   : > { %v10211_v60 = vrot.slane %v10209_v6, 5  ;;  %v10286_v6 = vshrl.u32 %v10111_v55, 16  ;;  %v10277_v7 = vrot.slane %v10275_v30, 4 }
 0x57b   : > { %v10212_v39 = vsel %vm14507_vm13, %v10207_v37, %v10211_v60  ;;  %v10288_v53 = vrot.slane %v10286_v6, 4  ;;  %v18575_v37 = vld [vmem:[#allocation43_spill] sm:$0xff]  ;;  %v10278_v11 = vor.u32 %v10277_v7, %v10273_v50  ;;  %v10343_v6 = vshll.u32 %v17542_v35, 16 }
 0x57c   : > { %v10281_v60 = vshll.u32 %v18575_v37, 16 }
 0x57e   : > { %v10283_v30 = vrot.slane %v10281_v60, 5  ;;  %v18580_v60 = vld [vmem:[#allocation56_spill] sm:$0xff] }
 0x57f   : > { %13503 = vmatmul.mubr.msk.bf16.gmra.mrb[40].mxu1 %vm1420_vm12, %v14252_v61  ;;  %v10202_v61 = vsel %vm14507_vm13, %v10197_v58, %v17901_v18  ;;  %v10188_v18 = vsel %vm14507_vm13, %v10183_v45, %v17899_v57  ;;  %v10289_v58 = vshll.u32 %v10111_v55, 16  ;;  %v10236_v57 = vsel %vm14507_vm13, %v10231_v22, %v10235_v3 }
 0x580   : > { %13506 = vmatprep.mubr.msk.bf16.mxu1 %vm1420_vm12, %v14253_v63  ;;  %v10221_v63 = vrot.slane %v10220_v9, 4  ;;  %v12447_v23 = vcombine.low %v10178_v49, %v10188_v18  ;;  %v12448_v51 = vcombine.low %v10202_v61, %v10212_v39  ;;  %v10254_v9 = vor.u32 %v10253_v29, %v10249_v17  ;;  %v18576_v29 = vld [vmem:[#allocation51_spill] sm:$0xff] }
 0x581   : > { %v10291_v27 = vrot.slane %v10289_v58, 5  ;;  %v10250_v45 = vsel %vm14507_vm13, %v10245_v48, %v10249_v17  ;;  %v10334_v55 = vshrl.u32 %v10117_v40, 16  ;;  %v10305_v3 = vshll.u32 %v18576_v29, 16 }
 0x582   : > { %v10226_v0 = vsel %vm14507_vm13, %v10221_v63, %v17921_v20  ;;  %v10299_v20 = vshrl.u32 %v18574_v2, 16  ;;  %v10255_v61 = vrot.slane %v10254_v9, 4  ;;  %v10337_v63 = vshll.u32 %v10117_v40, 16 }
 0x583   : > { %v12449_v49 = vcombine.low %v10226_v0, %v10236_v57  ;;  %v10292_v12 = vor.u32 %v10291_v27, %v10288_v53  ;;  %v10312_v17 = vrot.slane %v10310_v1, 4  ;;  %v10274_v22 = vsel %vm14507_vm13, %v10269_v62, %v10273_v50  ;;  %v10120_v0 = vld [vmem:[#allocation3 + $0x84] sm:$0xf] }
 0x584   : > { %v10301_v18 = vrot.slane %v10299_v20, 4  ;;  %v10260_v52 = vsel %vm14507_vm13, %v10255_v61, %v10259_v33  ;;  %v10336_v58 = vrot.slane %v10334_v55, 4  ;;  %v10279_v48 = vrot.slane %v10278_v11, 4  ;;  %v18579_v61 = vld [vmem:[#allocation58_spill] sm:$0xff] }
 0x585   : > { %v12450_v39 = vcombine.low %v10250_v45, %v10260_v52  ;;  %v10307_v9 = vrot.slane %v10305_v3, 5  ;;  %v10325_v57 = vrot.slane %v10323_v13, 4  ;;  %v10358_v40 = vshrl.u32 %v10120_v0, 16 }
 0x586   : > { %v10361_v27 = vshll.u32 %v10120_v0, 16  ;;  %v10284_v50 = vsel %vm14507_vm13, %v10279_v48, %v10283_v30  ;;  %v10382_v1 = vshrl.u32 %v10123_v38, 16  ;;  %v10353_v37 = vshll.u32 %v18579_v61, 16 }
 0x587   : > { %13507 = vmatmul.mubr.msk.bf16.gmra.mrb[44].mxu1 %vm1420_vm12, %v14254_v41  ;;  %v10295_v41 = vshll.u32 %v18574_v2, 16  ;;  %v10293_v2 = vrot.slane %v10292_v12, 4  ;;  %v10367_v62 = vshll.u32 %v18580_v60, 16  ;;  %v10371_v55 = vshrl.u32 %v18580_v60, 16 }
 0x588   : > { %13512 = vmatprep.mubr.msk.bf16.mxu1 %vm1420_vm12, %v12446_v15  ;;  %v10313_v15 = vshll.u32 %v10114_v43, 16  ;;  %v10321_v43 = vrot.slane %v10319_v47, 5  ;;  %v10360_v47 = vrot.slane %v10358_v40, 4  ;;  %v10363_v13 = vrot.slane %v10361_v27, 5 }
 0x589   : > { %v10297_v25 = vrot.slane %v10295_v41, 5  ;;  %v10355_v30 = vrot.slane %v10353_v37, 5  ;;  %v10415_v27 = vshll.u32 %v17584_v44, 16 }
 0x58a   : > { %v10315_v54 = vrot.slane %v10313_v15, 5  ;;  %v10385_v15 = vshll.u32 %v10123_v38, 16  ;;  %v10326_v45 = vor.u32 %v10325_v57, %v10321_v43  ;;  %v10364_v57 = vor.u32 %v10363_v13, %v10360_v47  ;;  %v18582_v38 = vld [vmem:[#allocation59_spill] sm:$0xff] }
 0x58b   : > { %v10302_v41 = vor.u32 %v10301_v18, %v10297_v25 }
 0x58c   : > { %v10316_v33 = vor.u32 %v10315_v54, %v10312_v17  ;;  %v10384_v17 = vrot.slane %v10382_v1, 4  ;;  %v10387_v54 = vrot.slane %v10385_v15, 5  ;;  %v10327_v52 = vrot.slane %v10326_v45, 4 }
 0x58d   : > { %v10303_v11 = vrot.slane %v10302_v41, 4  ;;  %v10129_v41 = vld [vmem:[#allocation3 + $0xa8] sm:$0xf]  ;;  %v10365_v60 = vrot.slane %v10364_v57, 4 }
 0x58e   : > { %v10317_v29 = vrot.slane %v10316_v33, 4  ;;  %v10430_v15 = vshrl.u32 %v10129_v41, 16  ;;  %v10433_v45 = vshll.u32 %v10129_v41, 16 }
 0x58f   : > { %13513 = vmatmul.mubr.msk.bf16.vlgmr.msra.gmra.mrb[16].mxu1 %vm1420_vm12, %v12447_v23  ;;  %v10347_v23 = vshrl.u32 %v17542_v35, 16  ;;  %v10345_v35 = vrot.slane %v10343_v6, 5  ;;  %v10308_v12 = vsel %vm14507_vm13, %v10303_v11, %v10307_v9  ;;  %v10369_v6 = vrot.slane %v10367_v62, 5 }
 0x590   : > { %13545 = vmatpush3.bf16.msra.mxu1 %v11092_v8  ;;  %13516 = vmatprep.mubr.msk.bf16.mxu1 %vm1420_vm12, %v12448_v51  ;;  %v10339_v51 = vrot.slane %v10337_v63, 5  ;;  %v18578_v8 = vld [vmem:[#allocation54_spill] sm:$0xff]  ;;  %v10298_v63 = vsel %vm14507_vm13, %v10293_v2, %v10297_v25  ;;  %v10322_v25 = vsel %vm14507_vm13, %v10317_v29, %v10321_v43  ;;  %v10377_v2 = vshll.u32 %v18582_v38, 16 }
 0x591   : > { %v10329_v7 = vshll.u32 %v18578_v8, 16  ;;  %v10349_v53 = vrot.slane %v10347_v23, 4  ;;  %v10373_v23 = vrot.slane %v10371_v55, 4  ;;  %v10388_v43 = vor.u32 %v10387_v54, %v10384_v17  ;;  %v18583_v55 = vld [vmem:[#allocation63_spill] sm:$0xff] }
 0x592   : > { %v10340_v20 = vor.u32 %v10339_v51, %v10336_v58  ;;  %v18581_v58 = vld [vmem:[#allocation60_spill] sm:$0xff]  ;;  %v10379_v62 = vrot.slane %v10377_v2, 5  ;;  %v18004_v29 = vrot.slane %v10415_v27, 5  ;;  %v10370_v17 = vsel %vm14507_vm13, %v10365_v60, %v10369_v6  ;;  %v10132_v54 = vld [vmem:[#allocation3 + $0xb4] sm:$0xf] }
 0x593   : > { %v10331_v3 = vrot.slane %v10329_v7, 5  ;;  %v10350_v16 = vor.u32 %v10349_v53, %v10345_v35  ;;  %v10391_v51 = vshll.u32 %v18581_v58, 16  ;;  %v10395_v0 = vshrl.u32 %v18581_v58, 16 }
 0x594   : > { %v10341_v18 = vrot.slane %v10340_v20, 4  ;;  %v10374_v40 = vor.u32 %v10373_v23, %v10369_v6  ;;  %v10457_v57 = vshll.u32 %v10132_v54, 16 }
 0x595   : > { %v10332_v48 = vsel %vm14507_vm13, %v10327_v52, %v10331_v3  ;;  %v10351_v9 = vrot.slane %v10350_v16, 4  ;;  %v10393_v20 = vrot.slane %v10391_v51, 5  ;;  %v10397_v1 = vrot.slane %v10395_v0, 4 }
 0x596   : > { %v10346_v33 = vsel %vm14507_vm13, %v10341_v18, %v10345_v35  ;;  %v12453_v61 = vcombine.low %v10322_v25, %v10332_v48  ;;  %v10389_v35 = vrot.slane %v10388_v43, 4  ;;  %v10439_v16 = vshll.u32 %v17612_v5, 16 }
 0x597   : > { %13517 = vmatmul.mubr.msk.bf16.gmra.mrb[20].mxu1 %vm1420_vm12, %v12449_v49  ;;  %v12451_v49 = vcombine.low %v10274_v22, %v10284_v50  ;;  %v12452_v22 = vcombine.low %v10298_v63, %v10308_v12  ;;  %v10356_v53 = vsel %vm14507_vm13, %v10351_v9, %v10355_v30  ;;  %v10419_v50 = vshrl.u32 %v17584_v44, 16 }
 0x598   : > { %13520 = vmatprep.mubr.msk.bf16.mxu1 %vm1420_vm12, %v12450_v39  ;;  %v10126_v39 = vld [vmem:[#allocation3 + $0x9c] sm:$0xf]  ;;  %v12454_v37 = vcombine.low %v10346_v33, %v10356_v53  ;;  %v10443_v44 = vshrl.u32 %v17612_v5, 16  ;;  %v10375_v47 = vrot.slane %v10374_v40, 4  ;;  %v10398_v13 = vor.u32 %v10397_v1, %v10393_v20  ;;  %v10135_v5 = vld [vmem:[#allocation3 + $0xc0] sm:$0xf] }
 0x599   : > { %v10406_v8 = vshrl.u32 %v10126_v39, 16  ;;  %v10409_v7 = vshll.u32 %v10126_v39, 16  ;;  %v10421_v3 = vrot.slane %v10419_v50, 4  ;;  %v10432_v12 = vrot.slane %v10430_v15, 4  ;;  %v18584_v39 = vld [vmem:[#allocation66_spill] sm:$0xff] }
 0x59a   : > { %v10435_v18 = vrot.slane %v10433_v45, 5  ;;  %v10380_v52 = vsel %vm14507_vm13, %v10375_v47, %v10379_v62  ;;  %v10394_v25 = vsel %vm14507_vm13, %v10389_v35, %v10393_v20  ;;  %v10441_v51 = vrot.slane %v10439_v16, 5  ;;  %v14316_v50 = vld [vmem:[#allocation3 + $0xb8] sm:$0xf]  ;;  %v10138_v1 = vld [vmem:[#allocation3 + $0xcc] sm:$0xf] }
 0x59b   : > { %v10408_v63 = vrot.slane %v10406_v8, 4  ;;  %v10411_v11 = vrot.slane %v10409_v7, 5  ;;  %v10422_v58 = vor.u32 %v10421_v3, %v18004_v29  ;;  %v10445_v0 = vrot.slane %v10443_v44, 4 }
 0x59c   : > { %v10399_v48 = vrot.slane %v10398_v13, 4  ;;  %v10436_v6 = vor.u32 %v10435_v18, %v10432_v12  ;;  %v10454_v9 = vshrl.u32 %v10132_v54, 16  ;;  %v12455_v38 = vcombine.low %v10370_v17, %v10380_v52  ;;  %v14317_v18 = vld [vmem:[#allocation3 + $0xbc] sm:$0x1] }
 0x59d   : > { %v10412_v23 = vor.u32 %v10411_v11, %v10408_v63  ;;  %v10478_v2 = vshrl.u32 %v10135_v5, 16  ;;  %v10481_v41 = vshll.u32 %v10135_v5, 16  ;;  %v10449_v7 = vshll.u32 %v17628_v46, 16 }
 0x59e   : > { %v10423_v40 = vrot.slane %v10422_v58, 4  ;;  %v10446_v27 = vor.u32 %v10445_v0, %v10441_v51  ;;  %v10463_v20 = vshll.u32 %v14316_v50, 16  ;;  %v10437_v15 = vrot.slane %v10436_v6, 4  ;;  %v14318_v58 = vld [vmem:[#allocation3 + $0xc8] sm:$0x1] }
 0x59f   : > { %13521 = vmatmul.mubr.msk.bf16.gmra.mrb[24].mxu1 %vm1420_vm12, %v12451_v49  ;;  %v10401_v49 = vshll.u32 %v18583_v55, 16  ;;  %v10413_v43 = vrot.slane %v10412_v23, 4  ;;  %v10456_v45 = vrot.slane %v10454_v9, 4  ;;  %v10480_v60 = vrot.slane %v10478_v2, 4 }
 0x5a0   : > { %13524 = vmatprep.mubr.msk.bf16.mxu1 %vm1420_vm12, %v12452_v22  ;;  %v10425_v22 = vshll.u32 %v18584_v39, 16  ;;  %v10483_v62 = vrot.slane %v10481_v41, 5  ;;  %v10487_v35 = vshll.u32 %v17643_v14, 16  ;;  %v10491_v55 = vshrl.u32 %v17643_v14, 16 }
 0x5a1   : > { %v10403_v30 = vrot.slane %v10401_v49, 5  ;;  %v10502_v46 = vshrl.u32 %v10138_v1, 16  ;;  %v10505_v49 = vshll.u32 %v10138_v1, 16  ;;  %v10511_v63 = vshll.u32 %v17912_v26, 16 }
 0x5a2   : > { %v10427_v8 = vrot.slane %v10425_v22, 5  ;;  %v10515_v11 = vshrl.u32 %v17912_v26, 16  ;;  %v10418_v3 = vsel %vm14507_vm13, %v10413_v43, %v18004_v29  ;;  %v10447_v44 = vrot.slane %v10446_v27, 4 }
 0x5a3   : > { %v10404_v33 = vsel %vm14507_vm13, %v10399_v48, %v10403_v30  ;;  %v10451_v47 = vrot.slane %v10449_v7, 5  ;;  %v10465_v12 = vrot.slane %v10463_v20, 5  ;;  %v10473_v17 = vshll.u32 %v14317_v18, 16  ;;  %v18600_v18 = vld [vmem:[#allocation61_spill] sm:$0xff] }
 0x5a4   : > { %v12456_v53 = vcombine.low %v10394_v25, %v10404_v33  ;;  %v10428_v16 = vsel %vm14507_vm13, %v10423_v40, %v10427_v8  ;;  %v10442_v54 = vsel %vm14507_vm13, %v10437_v15, %v10441_v51  ;;  %v10484_v52 = vor.u32 %v10483_v62, %v10480_v60  ;;  %v18585_v62 = vld [vmem:[#allocation40_spill] sm:$0xff] }
 0x5a5   : > { %v10489_v30 = vrot.slane %v10487_v35, 5  ;;  %v10493_v26 = vrot.slane %v10491_v55, 4  ;;  %v10504_v23 = vrot.slane %v10502_v46, 4  ;;  %v10507_v39 = vrot.slane %v10505_v49, 5  ;;  %v18586_v35 = vld [vmem:[#allocation41_spill] sm:$0xff]  ;;  %v18589_v49 = vld [vmem:[#allocation46_spill] sm:$0xff] }
 0x5a6   : > { %v10513_v22 = vrot.slane %v10511_v63, 5  ;;  %v10517_v29 = vrot.slane %v10515_v11, 4  ;;  %v12457_v5 = vcombine.low %v10418_v3, %v10428_v16  ;;  %v10452_v25 = vsel %vm14507_vm13, %v10447_v44, %v10451_v47  ;;  %v18588_v46 = vld [vmem:[#allocation45_spill] sm:$0xff]  ;;  %v18592_v3 = vld [vmem:[#allocation50_spill] sm:$0xff] }
 0x5a7   : > { %13525 = vmatmul.mubr.msk.bf16.gmra.mrb[28].mxu1 %vm1420_vm12, %v12453_v61  ;;  %v10459_v61 = vrot.slane %v10457_v57, 5  ;;  %v10497_v0 = vshll.u32 %v14318_v58, 16  ;;  %v12458_v48 = vcombine.low %v10442_v54, %v10452_v25  ;;  %v10485_v57 = vrot.slane %v10484_v52, 4  ;;  %v18591_v11 = vld [vmem:[#allocation49_spill] sm:$0xff]  ;;  %v18603_v52 = vld [vmem:[#allocation64_spill] sm:$0xff]  ;;  %v18612_v58 = vld [vmem:[#allocation71_spill] sm:$0xff] }
 0x5a8   : > { %13528 = vmatprep.mubr.msk.bf16.mxu1 %vm1420_vm12, %v12454_v37  ;;  %v10467_v37 = vshrl.u32 %v14316_v50, 16  ;;  %v10494_v51 = vor.u32 %v10493_v26, %v10489_v30  ;;  %v10508_v2 = vor.u32 %v10507_v39, %v10504_v23  ;;  %v10518_v41 = vor.u32 %v10517_v29, %v10513_v22  ;;  %v18595_v44 = vld [vmem:[#allocation53_spill] sm:$0xff]  ;;  %v18606_v23 = vld [vmem:[#allocation67_spill] sm:$0xff]  ;;  %v18607_v39 = vld [vmem:[#allocation68_spill] sm:$0xff] }
 0x5a9   : > { %v10460_v13 = vor.u32 %v10459_v61, %v10456_v45  ;;  %v10521_v33 = vshll.u32 %v17914_v36, 16  ;;  %v10499_v43 = vrot.slane %v10497_v0, 5  ;;  %v18587_v55 = vcombine.low %v18585_v62, %v18586_v35  ;;  %v18609_v29 = vld [vmem:[#allocation69_spill] sm:$0xff] }
 0x5aa   : > { %v10469_v14 = vrot.slane %v10467_v37, 4  ;;  %v10495_v40 = vrot.slane %v10494_v51, 4  ;;  %v10509_v50 = vrot.slane %v10508_v2, 4  ;;  %v10519_v20 = vrot.slane %v10518_v41, 4 }
 0x5ab   : > { %v10461_v6 = vrot.slane %v10460_v13, 4  ;;  %v10523_v1 = vrot.slane %v10521_v33, 5  ;;  %v18590_v63 = vcombine.low %v18588_v46, %v18589_v49  ;;  %v18593_v16 = vcombine.low %v18591_v11, %v18592_v3  ;;  %v18597_v13 = vld [vmem:[#allocation55_spill] sm:$0xff] }
 0x5ac   : > { %v10470_v9 = vor.u32 %v10469_v14, %v10465_v12  ;;  %v10500_v45 = vsel %vm14507_vm13, %v10495_v40, %v10499_v43  ;;  %v10514_v61 = vsel %vm14507_vm13, %v10509_v50, %v10513_v22  ;;  %v18596_v47 = vcombine.low %v18594_v21, %v18595_v44  ;;  %v11328_v33 = vld [vmem:[#allocation2 + $0x20] sm:$0x1] }
 0x5ad   : > { %v10466_v8 = vsel %vm14507_vm13, %v10461_v6, %v10465_v12  ;;  %v10524_v37 = vsel %vm14507_vm13, %v10519_v20, %v10523_v1  ;;  %v18598_v12 = vld [vmem:[#allocation57_spill] sm:$0xff]  ;;  %v18608_v22 = vcombine.low %v18606_v23, %v18607_v39  ;;  %v18613_v0 = vcombine.low %v17634_v28, %v18612_v58  ;;  %v11337_v20 = vld [vmem:[#allocation2 + $0x44] sm:$0x1]  ;;  %v11343_v58 = vld [vmem:[#allocation2 + $0x5c] sm:$0x1] }
 0x5ae   : > { %v10471_v7 = vrot.slane %v10470_v9, 4  ;;  %v12461_v60 = vcombine.low %v10514_v61, %v10524_v37  ;;  %v18599_v14 = vcombine.low %v18597_v13, %v18598_v12  ;;  %v18615_v6 = vld [vmem:[#allocation73_spill] sm:$0xff]  ;;  %v18618_v51 = vcombine.low %v17674_v56, %v17678_v32  ;;  %v11331_v56 = vld [vmem:[#allocation2 + $0x2c] sm:$0x1]  ;;  %v11334_v61 = vld [vmem:[#allocation2 + $0x38] sm:$0x1] }
 0x5af   : > { %13529 = vmatmul.mubr.msk.bf16.gmra.mrb[32].mxu1 %vm1420_vm12, %v12455_v38  ;;  %v10475_v38 = vrot.slane %v10473_v17, 5  ;;  %v18601_v17 = vld [vmem:[#allocation62_spill] sm:$0xff]  ;;  %v18619_v28 = vcombine.low %v17688_v34, %v17692_v59  ;;  %v11379_v59 = vunpack.c.l.bf16 %v11331_v56  ;;  %v11385_v11 = vunpack.c.l.bf16 %v11337_v20 }
 0x5b0   : > { %13532 = vmatprep.mubr.msk.bf16.mxu1 %vm1420_vm12, %v12456_v53  ;;  %v10490_v53 = vsel %vm14507_vm13, %v10485_v57, %v10489_v30  ;;  %v18602_v54 = vcombine.low %v18600_v18, %v18601_v17  ;;  %v18604_v30 = vld [vmem:[#allocation65_spill] sm:$0xff]  ;;  %v18617_v57 = vcombine.low %v17664_v10, %v17668_v42  ;;  %v11329_v10 = vld [vmem:[#allocation2 + $0x24] sm:$0xff]   ;;  %v12568_v42 = vld [vmem:[#allocation2 + $0x18] sm:$0xff]  }
 0x5b1   : > { %v10476_v27 = vsel %vm14507_vm13, %v10471_v7, %v10475_v38  ;;  %v12460_v36 = vcombine.low %v10490_v53, %v10500_v45  ;;  %v18605_v26 = vcombine.low %v18603_v52, %v18604_v30  ;;  %v18620_v38 = vld [vmem:[#allocation74_spill] sm:$0xff]  ;;  %v11377_v32 = vunpack.c.l.bf16 %v11329_v10 }
 0x5b2   : > { %v12459_v15 = vcombine.low %v10466_v8, %v10476_v27  ;;  %v18621_v2 = vcombine.low %v17699_v19, %v18620_v38  ;;  %v11378_v41 = vunpack.c.h.bf16 %v11329_v10  ;;  %v12569_v43 = vunpack.c.l.bf16 %v12568_v42  ;;  %v11335_v27 = vld [vmem:[#allocation2 + $0x3c] sm:$0xff]  }
 0x5b3   : > { %v12570_v34 = vunpack.c.h.bf16 %v12568_v42  ;;  %v11376_v8 = vunpack.c.l.bf16 %v11328_v33  ;;  %v11476_v7 = vrot.slane %v11377_v32, 1  ;;  %v11479_v24 = vrot.slane %v11379_v59, 1 }
 0x5b4   : > { %v11477_v19 = vrot.slane %v11378_v41, 1  ;;  %v11471_v53 = vrot.slane %v12569_v43, 1  ;;  %v11383_v45 = vunpack.c.l.bf16 %v11335_v27  ;;  %v11391_v33 = vunpack.c.l.bf16 %v11343_v58 }
 0x5b5   : > { %v11472_v40 = vrot.slane %v12570_v34, 1  ;;  %v11474_v50 = vrot.slane %v11376_v8, 1 }
 0x5b7   : > { %13533 = vmatmul.mubr.msk.bf16.gmra.mrb[36].mxu1 %vm1420_vm12, %v12457_v5  ;;  %v18610_v5 = vld [vmem:[#allocation70_spill] sm:$0xff]  ;;  %v11473_v62 = vsel %vm11470_vm0, %v11471_v53, %v11472_v40  ;;  %v11475_v44 = vsel %vm11470_vm0, %v11472_v40, %v11474_v50 }
 0x5b8   : > { %13536 = vmatprep.mubr.msk.bf16.mxu1 %vm1420_vm12, %v12458_v48  ;;  %v18611_v25 = vcombine.low %v18609_v29, %v18610_v5  ;;  %v18614_v48 = vld [vmem:[#allocation72_spill] sm:$0xff] }
 0x5b9   : > { %v18616_v9 = vcombine.low %v18614_v48, %v18615_v6  ;;  %v12600_v29 = vld [vmem:[#allocation2 + $0x48] sm:$0xff]  }
 0x5ba   : > { %v12577_v10 = vunpack.c.l.bf16 %v12600_v29  ;;  %v12578_v42 = vunpack.c.h.bf16 %v12600_v29 }
 0x5bc   : > { %v11491_v50 = vrot.slane %v12577_v10, 1  ;;  %v11492_v20 = vrot.slane %v12578_v42, 1 }
 0x5bf   : > { %13537 = vmatmul.mubr.msk.bf16.gmra.mrb[40].mxu1 %vm1420_vm12, %v12459_v15  ;;  %v11478_v15 = vsel %vm11470_vm0, %v11476_v7, %v11477_v19 }
 0x5c0   : > { %13540 = vmatprep.mubr.msk.bf16.mxu1 %vm1420_vm12, %v12460_v36  ;;  %v11384_v36 = vunpack.c.h.bf16 %v11335_v27 }
 0x5c2   : > { %v11487_v18 = vrot.slane %v11384_v36, 1  ;;  %v11499_v36 = vrot.slane %v11391_v33, 1  ;;  %v11352_v33 = vld [vmem:[#allocation2 + $0x80] sm:$0x1] }
 0x5c7   : > { %13541 = vmatmul.mubr.msk.bf16.gmra.mrb[44].mxu1 %vm1420_vm12, %v12461_v60 }
 0x5c8   : > { %13546 = vmatprep.mubr.msk.bf16.mxu1 %vm1420_vm12, %v18587_v55 }
 0x5cf   : > { %13547 = vmatmul.mubr.msk.bf16.vlgmr.msra.gmra.mrb[16].mxu1 %vm1420_vm12, %v18590_v63  ;;  %v11480_v63 = vsel %vm11470_vm0, %v11477_v19, %v11479_v24 }
 0x5d0   : > { %13550 = vmatprep.mubr.msk.bf16.mxu1 %vm1420_vm12, %v18593_v16 }
 0x5d7   : > { %13551 = vmatmul.mubr.msk.bf16.gmra.mrb[20].mxu1 %vm1420_vm12, %v18596_v47  ;;  %v11382_v47 = vunpack.c.l.bf16 %v11334_v61  ;;  %v12601_v61 = vld [vmem:[#allocation2 + $0x60] sm:$0xff]  }
 0x5d8   : > { %13554 = vmatprep.mubr.msk.bf16.mxu1 %vm1420_vm12, %v18599_v14  ;;  %v11486_v14 = vrot.slane %v11383_v45, 1 }
 0x5da   : > { %v11488_v6 = vsel %vm11470_vm0, %v11486_v14, %v11487_v18 }
 0x5df   : > { %13555 = vmatmul.mubr.msk.bf16.gmra.mrb[24].mxu1 %vm1420_vm12, %v18602_v54 }
 0x5e0   : > { %13558 = vmatprep.mubr.msk.bf16.mxu1 %vm1420_vm12, %v18605_v26  ;;  %v11341_v26 = vld [vmem:[#allocation2 + $0x54] sm:$0xff]  }
 0x5e7   : > { %13559 = vmatmul.mubr.msk.bf16.gmra.mrb[28].mxu1 %vm1420_vm12, %v18608_v22  ;;  %v11489_v22 = vrot.slane %v11385_v11, 1  ;;  %v11346_v11 = vld [vmem:[#allocation2 + $0x68] sm:$0x1] }
 0x5e8   : > { %13562 = vmatprep.mubr.msk.bf16.mxu1 %vm1420_vm12, %v18611_v25  ;;  %v11484_v25 = vrot.slane %v11382_v47, 1  ;;  %v12582_v47 = vunpack.c.h.bf16 %v12601_v61 }
 0x5e9   : > { %v11490_v41 = vsel %vm11470_vm0, %v11487_v18, %v11489_v22 }
 0x5ef   : > { %13563 = vmatmul.mubr.msk.bf16.gmra.mrb[32].mxu1 %vm1420_vm12, %v18613_v0 }
 0x5f0   : > { %13566 = vmatprep.mubr.msk.bf16.mxu1 %vm1420_vm12, %v18616_v9  ;;  %v11389_v9 = vunpack.c.l.bf16 %v11341_v26 }
 0x5f2   : > { %v11496_v40 = vrot.slane %v11389_v9, 1 }
 0x5f7   : > { %13567 = vmatmul.mubr.msk.bf16.gmra.mrb[36].mxu1 %vm1420_vm12, %v18617_v57  ;;  %v11390_v57 = vunpack.c.h.bf16 %v11341_v26  ;;  %v11394_v26 = vunpack.c.l.bf16 %v11346_v11  ;;  %v12603_v11 = vld [vmem:[#allocation2 + $0x90] sm:$0xff]  }
 0x5f8   : > { %13570 = vmatprep.mubr.msk.bf16.mxu1 %vm1420_vm12, %v18618_v51  ;;  %v11340_v51 = vld [vmem:[#allocation2 + $0x50] sm:$0x1] }
 0x5f9   : > { %v11388_v7 = vunpack.c.l.bf16 %v11340_v51  ;;  %v11497_v27 = vrot.slane %v11390_v57, 1  ;;  %v12602_v51 = vld [vmem:[#allocation2 + $0x78] sm:$0xff]  }
 0x5fb   : > { %v11500_v14 = vsel %vm11470_vm0, %v11497_v27, %v11499_v36 }
 0x5ff   : > { %13571 = vmatmul.mubr.msk.bf16.gmra.mrb[40].mxu1 %vm1420_vm12, %v18619_v28 }
 0x600   : > { %13574 = vmatprep.mubr.msk.bf16.mxu1 %vm1420_vm12, %v18621_v2 }
 0x607   : > { %13575 = vmatmul.mubr.msk.bf16.gmra.mrb[44].mxu1 %vm1420_vm12, %v12509_v4  ;;  %v12599_v4 = vld [vmem:[#allocation2 + $0x30] sm:$0xff]  }
 0x608   : > { %v12573_v35 = vunpack.c.l.bf16 %v12599_v4  ;;  %v12574_v55 = vunpack.c.h.bf16 %v12599_v4 }
 0x60a   : > { %v11481_v52 = vrot.slane %v12573_v35, 1  ;;  %v11482_v30 = vrot.slane %v12574_v55, 1 }
 0x60c   : > { %v11483_v2 = vsel %vm11470_vm0, %v11481_v52, %v11482_v30  ;;  %v11485_v8 = vsel %vm11470_vm0, %v11482_v30, %v11484_v25 }
 0x6a2   : > { %v13548_v1 = vpop.f32.mrb[16].mxu1 }
 0x6a3   : > { %v11296_v37 = vadd.f32 %v13548_v1, %v18121_v31  ;;  %v11128_v60 = vpop.f32.mrb[17].mxu1  ;;  %v11347_v1 = vld [vmem:[#allocation2 + $0x6c] sm:$0xff]  }
 0x6a4   : > { %v11294_v46 = vadd.f32 %v18121_v31, %v11128_v60  ;;  %v13549_v49 = vpop.f32.mrb[18].mxu1  ;;  %v11494_v60 = vrot.slane %v11388_v7, 1  ;;  %v12586_v7 = vunpack.c.h.bf16 %v12602_v51 }
 0x6a5   : > { %v11585_v3 = vadd.f32 %v11478_v15, %v11296_v37  ;;  %v11297_v16 = vadd.f32 %v13549_v49, %v18121_v31  ;;  %v11131_v21 = vpop.f32.mrb[19].mxu1  ;;  %v11395_v49 = vunpack.c.l.bf16 %v11347_v1 }
 0x6a6   : > { %v11583_v13 = vadd.f32 %v11473_v62, %v11294_v46  ;;  %v11295_v12 = vadd.f32 %v18121_v31, %v11131_v21  ;;  %v11349_v62 = vld [vmem:[#allocation2 + $0x74] sm:$0x1]  ;;  %v11498_v46 = vsel %vm11470_vm0, %v11496_v40, %v11497_v27  ;;  %v11493_v21 = vsel %vm11470_vm0, %v11491_v50, %v11492_v20 }
 0x6a7   : > { %v11617_v17 = vmax.f32 %v11585_v3, 0.0  ;;  %v11586_v54 = vadd.f32 %v11480_v63, %v11297_v16  ;;  %v11396_v63 = vunpack.c.h.bf16 %v11347_v1  ;;  %v11397_v18 = vunpack.c.l.bf16 %v11349_v62 }
 0x6a8   : > { %v11615_v23 = vmax.f32 %v11583_v13, 0.0  ;;  %v11584_v39 = vadd.f32 %v11475_v44, %v11295_v12  ;;  %v12581_v44 = vunpack.c.l.bf16 %v12601_v61  ;;  %v11495_v30 = vsel %vm11470_vm0, %v11492_v20, %v11494_v60 }
 0x6a9   : > { %11649 = vst.msk [vmem:[%s18134_s30 + $0x10] sm:$0xff] %vm1420_vm12, %v11617_v17  ;;  %v11618_v5 = vmax.f32 %v11586_v54, 0.0  ;;  %v11506_v22 = vrot.slane %v11395_v49, 1  ;;  %v11507_v29 = vrot.slane %v11396_v63, 1  ;;  %v11509_v57 = vrot.slane %v11397_v18, 1 }
 0x6aa   : > { %11647 = vst.msk [vmem:[%s18134_s30] sm:$0xff] %vm1420_vm12, %v11615_v23  ;;  %v11616_v0 = vmax.f32 %v11584_v39, 0.0  ;;  %v13552_v48 = vpop.f32.mrb[20].mxu1  ;;  %v11501_v58 = vrot.slane %v12581_v44, 1  ;;  %v11400_v1 = vunpack.c.l.bf16 %v11352_v33  ;;  %v11358_v18 = vld [vmem:[#allocation2 + $0x98] sm:$0x1] }
 0x6ab   : > { %11650 = vst.msk [vmem:[%s18134_s30 + $0x18] sm:$0xff] %vm1420_vm12, %v11618_v5  ;;  %v11300_v28 = vadd.f32 %v13552_v48, %v18121_v31  ;;  %v11144_v38 = vpop.f32.mrb[21].mxu1  ;;  %v11353_v48 = vld [vmem:[#allocation2 + $0x84] sm:$0xff]   ;;  %v11510_v40 = vsel %vm11470_vm0, %v11507_v29, %v11509_v57 }
 0x6ac   : > { %11648 = vst.msk [vmem:[%s18134_s30 + $0x8] sm:$0xff] %vm1420_vm12, %v11616_v0  ;;  %v11298_v56 = vadd.f32 %v18121_v31, %v11144_v38  ;;  %v13553_v32 = vpop.f32.mrb[22].mxu1  ;;  %v11502_v0 = vrot.slane %v12582_v47, 1  ;;  %v11504_v38 = vrot.slane %v11394_v26, 1  ;;  %v12590_v26 = vunpack.c.h.bf16 %v12603_v11  ;;  %v12604_v33 = vld [vmem:[#allocation2 + $0xa8] sm:$0xff]  }
 0x6ad   : > { %v11589_v43 = vadd.f32 %v11488_v6, %v11300_v28  ;;  %v11301_v34 = vadd.f32 %v13553_v32, %v18121_v31  ;;  %v11147_v59 = vpop.f32.mrb[23].mxu1  ;;  %v11401_v32 = vunpack.c.l.bf16 %v11353_v48 }
 0x6ae   : > { %v11587_v19 = vadd.f32 %v11483_v2, %v11298_v56  ;;  %v11299_v53 = vadd.f32 %v18121_v31, %v11147_v59  ;;  %v11355_v2 = vld [vmem:[#allocation2 + $0x8c] sm:$0x1]  ;;  %v11508_v56 = vsel %vm11470_vm0, %v11506_v22, %v11507_v29  ;;  %v11503_v59 = vsel %vm11470_vm0, %v11501_v58, %v11502_v0 }
 0x6af   : > { %v11621_v24 = vmax.f32 %v11589_v43, 0.0  ;;  %v11590_v4 = vadd.f32 %v11490_v41, %v11301_v34  ;;  %v11402_v41 = vunpack.c.h.bf16 %v11353_v48  ;;  %v11403_v27 = vunpack.c.l.bf16 %v11355_v2 }
 0x6b0   : > { %v11619_v15 = vmax.f32 %v11587_v19, 0.0  ;;  %v11588_v45 = vadd.f32 %v11485_v8, %v11299_v53  ;;  %v12585_v8 = vunpack.c.l.bf16 %v12602_v51  ;;  %v11505_v20 = vsel %vm11470_vm0, %v11502_v0, %v11504_v38 }
 0x6b1   : > { %11653 = vst.msk [vmem:[%s18134_s30 + $0x30] sm:$0xff] %vm1420_vm12, %v11621_v24  ;;  %v11622_v37 = vmax.f32 %v11590_v4, 0.0  ;;  %v11516_v36 = vrot.slane %v11401_v32, 1  ;;  %v11517_v61 = vrot.slane %v11402_v41, 1  ;;  %v11519_v63 = vrot.slane %v11403_v27, 1 }
 0x6b2   : > { %11651 = vst.msk [vmem:[%s18134_s30 + $0x20] sm:$0xff] %vm1420_vm12, %v11619_v15  ;;  %v11620_v35 = vmax.f32 %v11588_v45, 0.0  ;;  %v13556_v55 = vpop.f32.mrb[24].mxu1  ;;  %v11511_v62 = vrot.slane %v12585_v8, 1  ;;  %v11406_v48 = vunpack.c.l.bf16 %v11358_v18  ;;  %v11364_v27 = vld [vmem:[#allocation2 + $0xb0] sm:$0x1] }
 0x6b3   : > { %11654 = vst.msk [vmem:[%s18134_s30 + $0x38] sm:$0xff] %vm1420_vm12, %v11622_v37  ;;  %v11304_v3 = vadd.f32 %v13556_v55, %v18121_v31  ;;  %v11160_v16 = vpop.f32.mrb[25].mxu1  ;;  %v11359_v55 = vld [vmem:[#allocation2 + $0x9c] sm:$0xff]   ;;  %v11520_v22 = vsel %vm11470_vm0, %v11517_v61, %v11519_v63 }
 0x6b4   : > { %11652 = vst.msk [vmem:[%s18134_s30 + $0x28] sm:$0xff] %vm1420_vm12, %v11620_v35  ;;  %v11302_v13 = vadd.f32 %v18121_v31, %v11160_v16  ;;  %v13557_v12 = vpop.f32.mrb[26].mxu1  ;;  %v11512_v35 = vrot.slane %v12586_v7, 1  ;;  %v11514_v16 = vrot.slane %v11400_v1, 1  ;;  %v12594_v1 = vunpack.c.h.bf16 %v12604_v33  ;;  %v12605_v18 = vld [vmem:[#allocation2 + $0xc0] sm:$0xff]  }
 0x6b5   : > { %v11593_v17 = vadd.f32 %v11498_v46, %v11304_v3  ;;  %v11305_v54 = vadd.f32 %v13557_v12, %v18121_v31  ;;  %v11163_v52 = vpop.f32.mrb[27].mxu1  ;;  %v11407_v12 = vunpack.c.l.bf16 %v11359_v55 }
 0x6b6   : > { %v11591_v23 = vadd.f32 %v11493_v21, %v11302_v13  ;;  %v11303_v39 = vadd.f32 %v18121_v31, %v11163_v52  ;;  %v11361_v21 = vld [vmem:[#allocation2 + $0xa4] sm:$0x1]  ;;  %v11518_v13 = vsel %vm11470_vm0, %v11516_v36, %v11517_v61  ;;  %v11513_v52 = vsel %vm11470_vm0, %v11511_v62, %v11512_v35 }
 0x6b7   : > { %v11625_v5 = vmax.f32 %v11593_v17, 0.0  ;;  %v11594_v25 = vadd.f32 %v11500_v14, %v11305_v54  ;;  %v11408_v14 = vunpack.c.h.bf16 %v11359_v55  ;;  %v11409_v29 = vunpack.c.l.bf16 %v11361_v21 }
 0x6b8   : > { %v11623_v6 = vmax.f32 %v11591_v23, 0.0  ;;  %v11592_v9 = vadd.f32 %v11495_v30, %v11303_v39  ;;  %v12589_v30 = vunpack.c.l.bf16 %v12603_v11  ;;  %v11515_v0 = vsel %vm11470_vm0, %v11512_v35, %v11514_v16 }
 0x6b9   : > { %11657 = vst.msk [vmem:[%s18134_s30 + $0x50] sm:$0xff] %vm1420_vm12, %v11625_v5  ;;  %v11626_v28 = vmax.f32 %v11594_v25, 0.0  ;;  %v11526_v57 = vrot.slane %v11407_v12, 1  ;;  %v11527_v51 = vrot.slane %v11408_v14, 1  ;;  %v11529_v41 = vrot.slane %v11409_v29, 1 }
 0x6ba   : > { %11655 = vst.msk [vmem:[%s18134_s30 + $0x40] sm:$0xff] %vm1420_vm12, %v11623_v6  ;;  %v11624_v10 = vmax.f32 %v11592_v9, 0.0  ;;  %v13560_v42 = vpop.f32.mrb[28].mxu1  ;;  %v11521_v2 = vrot.slane %v12589_v30, 1  ;;  %v11412_v55 = vunpack.c.l.bf16 %v11364_v27  ;;  %v11370_v29 = vld [vmem:[#allocation2 + $0xc8] sm:$0x1] }
 0x6bb   : > { %11658 = vst.msk [vmem:[%s18134_s30 + $0x58] sm:$0xff] %vm1420_vm12, %v11626_v28  ;;  %v11308_v43 = vadd.f32 %v13560_v42, %v18121_v31  ;;  %v11176_v34 = vpop.f32.mrb[29].mxu1  ;;  %v11365_v42 = vld [vmem:[#allocation2 + $0xb4] sm:$0xff]   ;;  %v11530_v36 = vsel %vm11470_vm0, %v11527_v51, %v11529_v41 }
 0x6bc   : > { %11656 = vst.msk [vmem:[%s18134_s30 + $0x48] sm:$0xff] %vm1420_vm12, %v11624_v10  ;;  %v11306_v19 = vadd.f32 %v18121_v31, %v11176_v34  ;;  %v13561_v53 = vpop.f32.mrb[30].mxu1  ;;  %v11522_v10 = vrot.slane %v12590_v26, 1  ;;  %v11524_v34 = vrot.slane %v11406_v48, 1  ;;  %v12598_v48 = vunpack.c.h.bf16 %v12605_v18 }
 0x6bd   : > { %v11597_v24 = vadd.f32 %v11508_v56, %v11308_v43  ;;  %v11309_v4 = vadd.f32 %v13561_v53, %v18121_v31  ;;  %v11179_v50 = vpop.f32.mrb[31].mxu1  ;;  %v11413_v53 = vunpack.c.l.bf16 %v11365_v42 }
 0x6be   : > { %v11595_v15 = vadd.f32 %v11503_v59, %v11306_v19  ;;  %v11307_v45 = vadd.f32 %v18121_v31, %v11179_v50  ;;  %v11367_v59 = vld [vmem:[#allocation2 + $0xbc] sm:$0x1]  ;;  %v11528_v19 = vsel %vm11470_vm0, %v11526_v57, %v11527_v51  ;;  %v11523_v50 = vsel %vm11470_vm0, %v11521_v2, %v11522_v10 }
 0x6bf   : > { %v11629_v37 = vmax.f32 %v11597_v24, 0.0  ;;  %v11598_v60 = vadd.f32 %v11510_v40, %v11309_v4  ;;  %v11414_v40 = vunpack.c.h.bf16 %v11365_v42  ;;  %v11415_v61 = vunpack.c.l.bf16 %v11367_v59 }
 0x6c0   : > { %v11627_v46 = vmax.f32 %v11595_v15, 0.0  ;;  %v11596_v49 = vadd.f32 %v11505_v20, %v11307_v45  ;;  %v12593_v20 = vunpack.c.l.bf16 %v12604_v33  ;;  %v11525_v35 = vsel %vm11470_vm0, %v11522_v10, %v11524_v34 }
 0x6c1   : > { %11661 = vst.msk [vmem:[%s18134_s30 + $0x70] sm:$0xff] %vm1420_vm12, %v11629_v37  ;;  %v11630_v3 = vmax.f32 %v11598_v60, 0.0  ;;  %v11536_v63 = vrot.slane %v11413_v53, 1  ;;  %v11537_v11 = vrot.slane %v11414_v40, 1  ;;  %v11539_v14 = vrot.slane %v11415_v61, 1 }
 0x6c2   : > { %11659 = vst.msk [vmem:[%s18134_s30 + $0x60] sm:$0xff] %vm1420_vm12, %v11627_v46  ;;  %v11628_v44 = vmax.f32 %v11596_v49, 0.0  ;;  %v13564_v47 = vpop.f32.mrb[32].mxu1  ;;  %v11531_v21 = vrot.slane %v12593_v20, 1  ;;  %v11418_v42 = vunpack.c.l.bf16 %v11370_v29 }
 0x6c3   : > { %11662 = vst.msk [vmem:[%s18134_s30 + $0x78] sm:$0xff] %vm1420_vm12, %v11630_v3  ;;  %v11312_v17 = vadd.f32 %v13564_v47, %v18121_v31  ;;  %v11192_v54 = vpop.f32.mrb[33].mxu1  ;;  %v11371_v47 = vld [vmem:[#allocation2 + $0xcc] sm:$0xff]   ;;  %v11540_v57 = vsel %vm11470_vm0, %v11537_v11, %v11539_v14 }
 0x6c4   : > { %11660 = vst.msk [vmem:[%s18134_s30 + $0x68] sm:$0xff] %vm1420_vm12, %v11628_v44  ;;  %v11310_v23 = vadd.f32 %v18121_v31, %v11192_v54  ;;  %v13565_v39 = vpop.f32.mrb[34].mxu1  ;;  %v11532_v44 = vrot.slane %v12594_v1, 1  ;;  %v11534_v54 = vrot.slane %v11412_v55, 1  ;;  %v11544_v27 = vrot.slane %v11418_v42, 1 }
 0x6c5   : > { %v11601_v5 = vadd.f32 %v11518_v13, %v11312_v17  ;;  %v11313_v25 = vadd.f32 %v13565_v39, %v18121_v31  ;;  %v11195_v58 = vpop.f32.mrb[35].mxu1  ;;  %v11419_v39 = vunpack.c.l.bf16 %v11371_v47 }
 0x6c6   : > { %v11599_v6 = vadd.f32 %v11513_v52, %v11310_v23  ;;  %v11311_v9 = vadd.f32 %v18121_v31, %v11195_v58  ;;  %v11373_v52 = vld [vmem:[#allocation2 + $0xd4] sm:$0x1]  ;;  %v11538_v23 = vsel %vm11470_vm0, %v11536_v63, %v11537_v11  ;;  %v11533_v58 = vsel %vm11470_vm0, %v11531_v21, %v11532_v44 }
 0x6c7   : > { %v11633_v28 = vmax.f32 %v11601_v5, 0.0  ;;  %v11602_v38 = vadd.f32 %v11520_v22, %v11313_v25  ;;  %v11420_v22 = vunpack.c.h.bf16 %v11371_v47  ;;  %v11421_v51 = vunpack.c.l.bf16 %v11373_v52 }
 0x6c8   : > { %v11631_v56 = vmax.f32 %v11599_v6, 0.0  ;;  %v11600_v32 = vadd.f32 %v11515_v0, %v11311_v9  ;;  %v12597_v0 = vunpack.c.l.bf16 %v12605_v18  ;;  %v11535_v10 = vsel %vm11470_vm0, %v11532_v44, %v11534_v54 }
 0x6c9   : > { %11665 = vst.msk [vmem:[%s18134_s30 + $0x90] sm:$0xff] %vm1420_vm12, %v11633_v28  ;;  %v11634_v43 = vmax.f32 %v11602_v38, 0.0  ;;  %v11546_v41 = vrot.slane %v11419_v39, 1  ;;  %v11547_v33 = vrot.slane %v11420_v22, 1  ;;  %v11549_v53 = vrot.slane %v11421_v51, 1 }
 0x6ca   : > { %11663 = vst.msk [vmem:[%s18134_s30 + $0x80] sm:$0xff] %vm1420_vm12, %v11631_v56  ;;  %v11632_v8 = vmax.f32 %v11600_v32, 0.0  ;;  %v13568_v7 = vpop.f32.mrb[36].mxu1  ;;  %v11541_v59 = vrot.slane %v12597_v0, 1 }
 0x6cb   : > { %11666 = vst.msk [vmem:[%s18134_s30 + $0x98] sm:$0xff] %vm1420_vm12, %v11634_v43  ;;  %v11316_v24 = vadd.f32 %v13568_v7, %v18121_v31  ;;  %v11208_v4 = vpop.f32.mrb[37].mxu1  ;;  %v11550_v61 = vsel %vm11470_vm0, %v11547_v33, %v11549_v53 }
 0x6cc   : > { %11664 = vst.msk [vmem:[%s18134_s30 + $0x88] sm:$0xff] %vm1420_vm12, %v11632_v8  ;;  %v11314_v15 = vadd.f32 %v18121_v31, %v11208_v4  ;;  %v13569_v45 = vpop.f32.mrb[38].mxu1  ;;  %v11542_v8 = vrot.slane %v12598_v48, 1 }
 0x6cd   : > { %v11605_v37 = vadd.f32 %v11528_v19, %v11316_v24  ;;  %v11317_v60 = vadd.f32 %v13569_v45, %v18121_v31  ;;  %v11211_v62 = vpop.f32.mrb[39].mxu1 }
 0x6ce   : > { %v11603_v46 = vadd.f32 %v11523_v50, %v11314_v15  ;;  %v11315_v49 = vadd.f32 %v18121_v31, %v11211_v62  ;;  %v11548_v50 = vsel %vm11470_vm0, %v11546_v41, %v11547_v33  ;;  %v11543_v15 = vsel %vm11470_vm0, %v11541_v59, %v11542_v8 }
 0x6cf   : > { %v11637_v3 = vmax.f32 %v11605_v37, 0.0  ;;  %v11606_v16 = vadd.f32 %v11530_v36, %v11317_v60 }
 0x6d0   : > { %v11635_v13 = vmax.f32 %v11603_v46, 0.0  ;;  %v11604_v12 = vadd.f32 %v11525_v35, %v11315_v49  ;;  %v11545_v35 = vsel %vm11470_vm0, %v11542_v8, %v11544_v27 }
 0x6d1   : > { %11669 = vst.msk [vmem:[%s18134_s30 + $0xb0] sm:$0xff] %vm1420_vm12, %v11637_v3  ;;  %v11638_v17 = vmax.f32 %v11606_v16, 0.0 }
 0x6d2   : > { %11667 = vst.msk [vmem:[%s18134_s30 + $0xa0] sm:$0xff] %vm1420_vm12, %v11635_v13  ;;  %v11636_v30 = vmax.f32 %v11604_v12, 0.0  ;;  %v13572_v26 = vpop.f32.mrb[40].mxu1 }
 0x6d3   : > { %11670 = vst.msk [vmem:[%s18134_s30 + $0xb8] sm:$0xff] %vm1420_vm12, %v11638_v17  ;;  %v11320_v5 = vadd.f32 %v13572_v26, %v18121_v31  ;;  %v11224_v25 = vpop.f32.mrb[41].mxu1 }
 0x6d4   : > { %11668 = vst.msk [vmem:[%s18134_s30 + $0xa8] sm:$0xff] %vm1420_vm12, %v11636_v30  ;;  %v11318_v6 = vadd.f32 %v18121_v31, %v11224_v25  ;;  %v13573_v9 = vpop.f32.mrb[42].mxu1 }
 0x6d5   : > { %v11609_v28 = vadd.f32 %v11538_v23, %v11320_v5  ;;  %v11321_v38 = vadd.f32 %v13573_v9, %v18121_v31  ;;  %v11227_v2 = vpop.f32.mrb[43].mxu1 }
 0x6d6   : > { %v11607_v56 = vadd.f32 %v11533_v58, %v11318_v6  ;;  %v11319_v32 = vadd.f32 %v18121_v31, %v11227_v2 }
 0x6d7   : > { %v11641_v43 = vmax.f32 %v11609_v28, 0.0  ;;  %v11610_v34 = vadd.f32 %v11540_v57, %v11321_v38 }
 0x6d8   : > { %v11639_v7 = vmax.f32 %v11607_v56, 0.0  ;;  %v11608_v19 = vadd.f32 %v11535_v10, %v11319_v32 }
 0x6d9   : > { %11673 = vst.msk [vmem:[%s18134_s30 + $0xd0] sm:$0xff] %vm1420_vm12, %v11641_v43  ;;  %v11642_v40 = vmax.f32 %v11610_v34, 0.0 }
 0x6da   : > { %11671 = vst.msk [vmem:[%s18134_s30 + $0xc0] sm:$0xff] %vm1420_vm12, %v11639_v7  ;;  %v11640_v24 = vmax.f32 %v11608_v19, 0.0  ;;  %v13576_v4 = vpop.f32.mrb[44].mxu1 }
 0x6db   : > { %11674 = vst.msk [vmem:[%s18134_s30 + $0xd8] sm:$0xff] %vm1420_vm12, %v11642_v40  ;;  %v11324_v20 = vadd.f32 %v13576_v4, %v18121_v31  ;;  %v11240_v1 = vpop.f32.mrb[45].mxu1 }
 0x6dc   : > { %11672 = vst.msk [vmem:[%s18134_s30 + $0xc8] sm:$0xff] %vm1420_vm12, %v11640_v24  ;;  %v11322_v45 = vadd.f32 %v18121_v31, %v11240_v1  ;;  %v13577_v36 = vpop.f32.mrb[46].mxu1 }
 0x6dd   : > { %v11613_v37 = vadd.f32 %v11548_v50, %v11324_v20  ;;  %v11325_v60 = vadd.f32 %v13577_v36, %v18121_v31  ;;  %v11243_v62 = vpop.f32.mrb[47].mxu1 }
 0x6de   : > { %v11611_v55 = vadd.f32 %v11543_v15, %v11322_v45  ;;  %v11323_v46 = vadd.f32 %v18121_v31, %v11243_v62 }
 0x6df   : > { %v11645_v49 = vmax.f32 %v11613_v37, 0.0  ;;  %v11614_v63 = vadd.f32 %v11550_v61, %v11325_v60 }
 0x6e0   : > { %v11643_v11 = vmax.f32 %v11611_v55, 0.0  ;;  %v11612_v3 = vadd.f32 %v11545_v35, %v11323_v46 }
 0x6e1   : > { %11677 = vst.msk [vmem:[%s18134_s30 + $0xf0] sm:$0xff] %vm1420_vm12, %v11645_v49  ;;  %v11646_v16 = vmax.f32 %v11614_v63, 0.0 }
 0x6e2   : > { %11675 = vst.msk [vmem:[%s18134_s30 + $0xe0] sm:$0xff] %vm1420_vm12, %v11643_v11  ;;  %v11644_v21 = vmax.f32 %v11612_v3, 0.0 }
 0x6e3   : > { %11678 = vst.msk [vmem:[%s18134_s30 + $0xf8] sm:$0xff] %vm1420_vm12, %v11646_v16 }
 0x6e4   : > { %11676 = vst.msk [vmem:[%s18134_s30 + $0xe8] sm:$0xff] %vm1420_vm12, %v11644_v21 }
 0x6e5 PF: > { %s15_s20 = sadd.s32 1, %s14341_s20   ;;  %s18622_s18 = smov %s14337_s19 }
 0x6e6   : > { %p12_p5 = scmp.ge.s32.totalorder %s15_s20, 4   ;;  %s18623_s19 = smov %s18625_s21 }
 0x6e8   :  { %14 = sbr.rel (!%p12_p5) target bundleno = 2 (0x2), region = 80 }

</bundles_post_ra>
